<compile_context>
chip_gen: v7x
topology: tpu7x:2x2x1
jax: 0.10.0
libtpu: 0.0.40
codegen_flags: <defaults>
</compile_context>

<pallas_src>
import functools

import jax
import jax.numpy as jnp
from jax import lax
from jax.experimental import pallas as pl
from jax.experimental.pallas import tpu as pltpu

# ----------------------------- config ---------------------------------------
HIDDEN_SIZE = 128           # config.hidden_size (small test size)
NUM_ALTUP_INPUTS = 4        # config.altup_num_inputs
ALTUP_ACTIVE_IDX = 0        # config.altup_active_idx
ALTUP_COEF_CLIP = 120.0     # config.altup_coef_clip
ALTUP_CORRECT_SCALE = True  # config.altup_correct_scale
RMS_NORM_EPS = 1e-6         # config.rms_norm_eps
NUM_TOKENS = 200            # deliberately not "nice" (also exercised with a ragged multi-tile run)
DEFAULT_BLOCK_T = 1024      # tokens per grid step for large T (mem-bound roofline sweet spot)


def _round_up(x, m):
    return (x + m - 1) // m * m


def _choose_block_t(T: int, block_t) -> int:
    """Pick the token tile.

    Big enough to amortize per-step overhead (~0.35us) on an HBM-bound op, small enough to
    double-buffer comfortably inside a 48 MiB scoped-VMEM request (v7x has 64 MiB/TC), and
    such that medium/large T yields >= 2 tiles so v7x megacore uses both TensorCores.
    """
    if block_t is None:
        if T <= 512:
            block_t = T                    # one tile; T*H*4 traffic is tiny anyway
        elif T <= DEFAULT_BLOCK_T:
            block_t = pl.cdiv(T, 2)        # two tiles -> both TCs on v7x
        else:
            block_t = DEFAULT_BLOCK_T
    bt = _round_up(block_t, 8)             # second-to-last block dim must be a multiple of 8 ...
    if bt >= T:
        return T                           # ... or equal the full array dim (no padding at all)
    return bt


def _altup_kernel(
    hidden_ref,      # [A, bt, H]   f32
    act_ref,         # [bt, H]      f32
    mr_w_ref,        # [H, A]       f32  modality_router W^T with router_norm weight & 1/H folded in
    w_pred_ref,      # [A, A, A*H]  f32  clipped prediction coefs, lane-replicated
    w_corr_ref,      # [A, A*H]     f32  clipped correction coefs, lane-replicated
    scale_ref,       # [1, H]       f32  correct_output_scale
    corrected_ref,   # [A, bt, H]   f32  output 0
    output_ref,      # [bt, H]      f32  output 1
    *,
    eps: float,
    active_idx: int,
    correct_scale: bool,
):
    A = hidden_ref.shape[0]
    H = act_ref.shape[-1]

    def router_modalities(x):
        # RMSNorm (its weight and the 1/H router_input_scale are folded into mr_w_ref)
        # + router matmul + tanh. Per-row only, so ragged-tail padding rows stay local.
        var = jnp.mean(x * x, axis=-1, keepdims=True)
        xn = x * lax.rsqrt(var + eps)
        routed = jnp.dot(xn, mr_w_ref[...], preferred_element_type=jnp.float32)  # [bt, A]
        return jnp.tanh(routed)

    mod1 = router_modalities(hidden_ref[active_idx])   # predict path   [bt, A]
    mod2 = router_modalities(act_ref[...])             # correct path   [bt, A]

    wc = w_corr_ref[...]                               # [A, A*H] tiny, loaded once

    def predict(a):
        # coef plane for (a, b) = pred_coef[t, a*A + b], already lane-broadcast: the MXU does
        # the broadcast via the lane-replicated [A, H] weight slice (128-aligned => free slice).
        wa = w_pred_ref[a]                             # [A, A*H]
        acc = hidden_ref[a]
        for b in range(A):
            coef = jnp.dot(mod1, wa[:, b * H:(b + 1) * H],
                           preferred_element_type=jnp.float32)            # [bt, H]
            acc = acc + coef * hidden_ref[b]
        return acc

    # ---- streamed predict / correct (only ~2 [bt, H] slabs live at a time) ----
    pred_active = predict(active_idx)
    innovation = act_ref[...] - pred_active                                # [bt, H]

    for a in range(A):
        pred_a = pred_active if a == active_idx else predict(a)
        corr_coef = jnp.dot(mod2, wc[:, a * H:(a + 1) * H],
                            preferred_element_type=jnp.float32) + 1.0      # [bt, H]
        corrected_a = innovation * corr_coef + pred_a
        corrected_ref[a] = corrected_a
        if a == active_idx:
            out = corrected_a * scale_ref[...] if correct_scale else corrected_a
            output_ref[...] = out


def gemma3n_altup_forward(hidden_states, activated, params, *, block_t=None):
    """hidden_states: [A, T, H], activated: [T, H] -> (corrected [A,T,H], output [T,H])."""
    A, T, H = hidden_states.shape
    hidden_states = hidden_states.astype(jnp.float32)
    activated = activated.astype(jnp.float32)

    # ---- weight prep, hoisted out of the kernel (runs once per call in XLA) ----
    rn_w = params["router_norm_weight"].astype(jnp.float32)                  # [H]
    mr_w = params["modality_router_weight"].astype(jnp.float32)              # [A, H]
    scale = params["correct_output_scale"].astype(jnp.float32).reshape(1, H)
    pc_w = jnp.clip(params["prediction_coefs_weight"].astype(jnp.float32),
                    -ALTUP_COEF_CLIP, ALTUP_COEF_CLIP)                       # [A*A, A]
    cc_w = jnp.clip(params["correction_coefs_weight"].astype(jnp.float32),
                    -ALTUP_COEF_CLIP, ALTUP_COEF_CLIP)                       # [A, A]

    # Fold router_norm weight and router_input_scale (1/H) into the router weight.
    mr_w_scaled = (rn_w.reshape(H, 1) * mr_w.T) * (1.0 / float(H))           # [H, A]

    # Lane-replicated coefficient matrices so the MXU emits pre-broadcast planes.
    # w_pred[a, c, b*H + h] = pc_w[a*A + b, c]
    w_pred = jnp.transpose(pc_w.reshape(A, A, A), (0, 2, 1))                 # [a, c, b]
    w_pred = jnp.broadcast_to(w_pred[..., None], (A, A, A, H)).reshape(A, A, A * H)
    # w_corr[c, a*H + h] = cc_w[a, c]
    w_corr = jnp.broadcast_to(cc_w.T[..., None], (A, A, H)).reshape(A, A * H)

    # ---- 1-D grid over tokens; ragged last tile handled by Pallas (no pad/slice copies) ----
    bt = _choose_block_t(T, block_t)
    grid = (pl.cdiv(T, bt),)

    kernel = functools.partial(
        _altup_kernel,
        eps=RMS_NORM_EPS,
        active_idx=ALTUP_ACTIVE_IDX,
        correct_scale=ALTUP_CORRECT_SCALE,
    )

    # Advisory cost hint: HBM-bound op, trivial FLOPs.
    bytes_accessed = (2 * A + 2) * T * H * 4
    flops = T * H * (2 * (2 * A + 4) + A * A * (2 * A + 2) + A * (2 * A + 4))
    transcendentals = 2 * T * A + 2 * T
    cost = pl.CostEstimate(flops=flops, transcendentals=transcendentals,
                           bytes_accessed=bytes_accessed)

    corrected, output = pl.pallas_call(
        kernel,
        out_shape=(
            jax.ShapeDtypeStruct((A, T, H), jnp.float32),
            jax.ShapeDtypeStruct((T, H), jnp.float32),
        ),
        grid=grid,
        in_specs=[
            pl.BlockSpec((A, bt, H), lambda i: (0, i, 0)),        # hidden_states (tiled on T)
            pl.BlockSpec((bt, H), lambda i: (i, 0)),              # activated     (tiled on T)
            pl.BlockSpec((H, A), lambda i: (0, 0)),               # folded router W^T (resident)
            pl.BlockSpec((A, A, A * H), lambda i: (0, 0, 0)),     # prediction coef planes (resident)
            pl.BlockSpec((A, A * H), lambda i: (0, 0)),           # correction coef planes (resident)
            pl.BlockSpec((1, H), lambda i: (0, 0)),               # correct_output_scale (resident)
        ],
        out_specs=(
            pl.BlockSpec((A, bt, H), lambda i: (0, i, 0)),        # corrected (tiled on T)
            pl.BlockSpec((bt, H), lambda i: (i, 0)),              # output    (tiled on T)
        ),
        compiler_params=pltpu.CompilerParams(
            dimension_semantics=("parallel",),   # shard T tiles across TCs on v7x megacore
            # Explicit (v5e scoped default is only 16 MiB); <= ~48 MiB stays safe on v7x's
            # 64 MiB physical VMEM while allowing bt up to ~2048 double-buffered on v5e/v6e.
            vmem_limit_bytes=48 * 1024 * 1024,
        ),
        cost_estimate=cost,
    )(hidden_states, activated, mr_w_scaled, w_pred, w_corr, scale)

    return corrected, output


# ----------------------------- reference (pure JAX) --------------------------
def _reference(hidden_states, activated, params):
    A, T, H = hidden_states.shape
    rn_w = params["router_norm_weight"]
    mr_w = params["modality_router_weight"]
    pc_w = jnp.clip(params["prediction_coefs_weight"], -ALTUP_COEF_CLIP, ALTUP_COEF_CLIP)
    cc_w = jnp.clip(params["correction_coefs_weight"], -ALTUP_COEF_CLIP, ALTUP_COEF_CLIP)
    scale = params["correct_output_scale"]

    def modalities_of(x):
        var = jnp.mean(x * x, axis=-1, keepdims=True)
        xn = x * lax.rsqrt(var + RMS_NORM_EPS) * rn_w
        routed = (xn / H) @ mr_w.T
        return jnp.tanh(routed)

    mod1 = modalities_of(hidden_states[ALTUP_ACTIVE_IDX])          # [T, A]
    all_coefs = (mod1 @ pc_w.T).reshape(T, A, A).transpose(0, 2, 1)  # [T, A, A]
    preds = jnp.einsum("bth,tba->ath", hidden_states, all_coefs) + hidden_states

    mod2 = modalities_of(activated)
    cc = (mod2 @ cc_w.T) + 1.0                                      # [T, A]
    innovation = activated - preds[ALTUP_ACTIVE_IDX]                # [T, H]
    corrected = innovation[None] * cc.T[:, :, None] + preds         # [A, T, H]
    output = corrected[ALTUP_ACTIVE_IDX] * scale
    return corrected, output


if __name__ == "__main__":
    key = jax.random.PRNGKey(0)
    ks = jax.random.split(key, 7)

    A, T, H = NUM_ALTUP_INPUTS, NUM_TOKENS, HIDDEN_SIZE

    hidden_states = jax.random.normal(ks[0], (A, T, H), dtype=jnp.float32)
    activated = jax.random.normal(ks[1], (T, H), dtype=jnp.float32)

    params = {
        # nn.Parameter(torch.zeros(H)) in the module; random here so the test is non-trivial.
        "correct_output_scale": 0.5 + 0.1 * jax.random.normal(ks[2], (H,), dtype=jnp.float32),
        "router_norm_weight": 1.0 + 0.02 * jax.random.normal(ks[3], (H,), dtype=jnp.float32),
        "modality_router_weight": 0.05 * jax.random.normal(ks[4], (A, H), dtype=jnp.float32),
        "prediction_coefs_weight": 0.05 * jax.random.normal(ks[5], (A * A, A), dtype=jnp.float32),
        "correction_coefs_weight": 0.05 * jax.random.normal(ks[6], (A, A), dtype=jnp.float32),
    }

    ref_corrected, ref_output = _reference(hidden_states, activated, params)

    # Default (auto tile -> single full-dim tile at this small T).
    corrected, output = gemma3n_altup_forward(hidden_states, activated, params)
    jax.block_until_ready((corrected, output))
    assert corrected.shape == (A, T, H) and output.shape == (T, H)
    assert jnp.allclose(corrected, ref_corrected, rtol=1e-4, atol=1e-4), "corrected mismatch"
    assert jnp.allclose(output, ref_output, rtol=1e-4, atol=1e-4), "output mismatch"

    # Forced small tile -> multi-tile grid with a ragged last tile (exercises masked tail writes).
    corrected2, output2 = gemma3n_altup_forward(hidden_states, activated, params, block_t=64)
    jax.block_until_ready((corrected2, output2))
    assert jnp.allclose(corrected2, ref_corrected, rtol=1e-4, atol=1e-4), "corrected mismatch (ragged)"
    assert jnp.allclose(output2, ref_output, rtol=1e-4, atol=1e-4), "output mismatch (ragged)"

    print("KERNEL_OK")
</pallas_src>

<mosaic_0001>
module attributes {stable_mosaic.version = 11 : i64} {
  func.func @_altup_kernel(%arg0: i32, %arg1: memref<4x200x128xf32, #tpu.memory_space<vmem>>, %arg2: memref<200x128xf32, #tpu.memory_space<vmem>>, %arg3: memref<128x4xf32, #tpu.memory_space<vmem>>, %arg4: memref<4x4x512xf32, #tpu.memory_space<vmem>>, %arg5: memref<4x512xf32, #tpu.memory_space<vmem>>, %arg6: memref<1x128xf32, #tpu.memory_space<vmem>>, %arg7: memref<4x200x128xf32, #tpu.memory_space<vmem>>, %arg8: memref<200x128xf32, #tpu.memory_space<vmem>>) attributes {dimension_semantics = [#tpu.dimension_semantics<parallel>], iteration_bounds = array<i64: 1>, scalar_prefetch = 0 : i64, scratch_operands = 0 : i64, tpu.core_type = #tpu.core_type<tc>, window_params = [{transform_indices = @transform_0, window_bounds = array<i64: 4, 200, 128>}, {transform_indices = @transform_1, window_bounds = array<i64: 200, 128>}, {pipeline_mode = #tpu.pipeline_mode<synchronous>, transform_indices = @transform_2, window_bounds = array<i64: 128, 4>}, {pipeline_mode = #tpu.pipeline_mode<synchronous>, transform_indices = @transform_3, window_bounds = array<i64: 4, 4, 512>}, {pipeline_mode = #tpu.pipeline_mode<synchronous>, transform_indices = @transform_4, window_bounds = array<i64: 4, 512>}, {pipeline_mode = #tpu.pipeline_mode<synchronous>, transform_indices = @transform_5, window_bounds = array<i64: 1, 128>}, {transform_indices = @transform_6, window_bounds = array<i64: 4, 200, 128>}, {transform_indices = @transform_7, window_bounds = array<i64: 200, 128>}]} {
    %c0 = arith.constant 0 : index
    %c0_0 = arith.constant 0 : index
    %c0_1 = arith.constant 0 : index
    %0 = vector.load %arg1[%c0, %c0_0, %c0_1] : memref<4x200x128xf32, #tpu.memory_space<vmem>>, vector<1x200x128xf32>
    %1 = vector.shape_cast %0 : vector<1x200x128xf32> to vector<200x128xf32>
    %2 = arith.mulf %1, %1 : vector<200x128xf32>
    %cst = arith.constant dense<0.000000e+00> : vector<200xf32>
    %3 = vector.multi_reduction <add>, %2, %cst [1] : vector<200x128xf32> to vector<200xf32>
    %4 = vector.shape_cast %3 : vector<200xf32> to vector<200x1xf32>
    %cst_2 = arith.constant 1.280000e+02 : f32
    %5 = vector.broadcast %cst_2 : f32 to vector<200x1xf32>
    %6 = arith.divf %4, %5 : vector<200x1xf32>
    %cst_3 = arith.constant 9.99999997E-7 : f32
    %7 = vector.broadcast %cst_3 : f32 to vector<200x1xf32>
    %8 = arith.addf %6, %7 : vector<200x1xf32>
    %9 = math.rsqrt %8 : vector<200x1xf32>
    %10 = vector.broadcast %9 : vector<200x1xf32> to vector<200x128xf32>
    %11 = arith.mulf %1, %10 : vector<200x128xf32>
    %c0_4 = arith.constant 0 : index
    %c0_5 = arith.constant 0 : index
    %12 = vector.load %arg3[%c0_4, %c0_5] : memref<128x4xf32, #tpu.memory_space<vmem>>, vector<128x4xf32>
    %cst_6 = arith.constant dense<0.000000e+00> : vector<200x4xf32>
    %13 = tpu.matmul %11, %12, %cst_6 {dimension_numbers = #tpu.dot_dimension_numbers<[1], [0], [0], [1], [0, 0, 1, 1], [], []>} : vector<200x128xf32>, vector<128x4xf32>, vector<200x4xf32> -> vector<200x4xf32>
    %14 = math.tanh %13 : vector<200x4xf32>
    %c0_7 = arith.constant 0 : index
    %c0_8 = arith.constant 0 : index
    %15 = vector.load %arg2[%c0_7, %c0_8] : memref<200x128xf32, #tpu.memory_space<vmem>>, vector<200x128xf32>
    %16 = arith.mulf %15, %15 : vector<200x128xf32>
    %cst_9 = arith.constant dense<0.000000e+00> : vector<200xf32>
    %17 = vector.multi_reduction <add>, %16, %cst_9 [1] : vector<200x128xf32> to vector<200xf32>
    %18 = vector.shape_cast %17 : vector<200xf32> to vector<200x1xf32>
    %cst_10 = arith.constant 1.280000e+02 : f32
    %19 = vector.broadcast %cst_10 : f32 to vector<200x1xf32>
    %20 = arith.divf %18, %19 : vector<200x1xf32>
    %cst_11 = arith.constant 9.99999997E-7 : f32
    %21 = vector.broadcast %cst_11 : f32 to vector<200x1xf32>
    %22 = arith.addf %20, %21 : vector<200x1xf32>
    %23 = math.rsqrt %22 : vector<200x1xf32>
    %24 = vector.broadcast %23 : vector<200x1xf32> to vector<200x128xf32>
    %25 = arith.mulf %15, %24 : vector<200x128xf32>
    %c0_12 = arith.constant 0 : index
    %c0_13 = arith.constant 0 : index
    %26 = vector.load %arg3[%c0_12, %c0_13] : memref<128x4xf32, #tpu.memory_space<vmem>>, vector<128x4xf32>
    %cst_14 = arith.constant dense<0.000000e+00> : vector<200x4xf32>
    %27 = tpu.matmul %25, %26, %cst_14 {dimension_numbers = #tpu.dot_dimension_numbers<[1], [0], [0], [1], [0, 0, 1, 1], [], []>} : vector<200x128xf32>, vector<128x4xf32>, vector<200x4xf32> -> vector<200x4xf32>
    %28 = math.tanh %27 : vector<200x4xf32>
    %c0_15 = arith.constant 0 : index
    %c0_16 = arith.constant 0 : index
    %29 = vector.load %arg5[%c0_15, %c0_16] : memref<4x512xf32, #tpu.memory_space<vmem>>, vector<4x512xf32>
    %c0_17 = arith.constant 0 : index
    %c0_18 = arith.constant 0 : index
    %c0_19 = arith.constant 0 : index
    %30 = vector.load %arg4[%c0_17, %c0_18, %c0_19] : memref<4x4x512xf32, #tpu.memory_space<vmem>>, vector<1x4x512xf32>
    %31 = vector.shape_cast %30 : vector<1x4x512xf32> to vector<4x512xf32>
    %c0_20 = arith.constant 0 : index
    %c0_21 = arith.constant 0 : index
    %c0_22 = arith.constant 0 : index
    %32 = vector.load %arg1[%c0_20, %c0_21, %c0_22] : memref<4x200x128xf32, #tpu.memory_space<vmem>>, vector<1x200x128xf32>
    %33 = vector.shape_cast %32 : vector<1x200x128xf32> to vector<200x128xf32>
    %34 = vector.extract_strided_slice %31 {offsets = [0, 0], sizes = [4, 128], strides = [1, 1]} : vector<4x512xf32> to vector<4x128xf32>
    %cst_23 = arith.constant dense<0.000000e+00> : vector<200x128xf32>
    %35 = tpu.matmul %14, %34, %cst_23 {dimension_numbers = #tpu.dot_dimension_numbers<[1], [0], [0], [1], [0, 0, 1, 1], [], []>} : vector<200x4xf32>, vector<4x128xf32>, vector<200x128xf32> -> vector<200x128xf32>
    %c0_24 = arith.constant 0 : index
    %c0_25 = arith.constant 0 : index
    %c0_26 = arith.constant 0 : index
    %36 = vector.load %arg1[%c0_24, %c0_25, %c0_26] : memref<4x200x128xf32, #tpu.memory_space<vmem>>, vector<1x200x128xf32>
    %37 = vector.shape_cast %36 : vector<1x200x128xf32> to vector<200x128xf32>
    %38 = arith.mulf %35, %37 : vector<200x128xf32>
    %39 = arith.addf %33, %38 : vector<200x128xf32>
    %40 = vector.extract_strided_slice %31 {offsets = [0, 128], sizes = [4, 128], strides = [1, 1]} : vector<4x512xf32> to vector<4x128xf32>
    %cst_27 = arith.constant dense<0.000000e+00> : vector<200x128xf32>
    %41 = tpu.matmul %14, %40, %cst_27 {dimension_numbers = #tpu.dot_dimension_numbers<[1], [0], [0], [1], [0, 0, 1, 1], [], []>} : vector<200x4xf32>, vector<4x128xf32>, vector<200x128xf32> -> vector<200x128xf32>
    %c1 = arith.constant 1 : index
    %c0_28 = arith.constant 0 : index
    %c0_29 = arith.constant 0 : index
    %42 = vector.load %arg1[%c1, %c0_28, %c0_29] : memref<4x200x128xf32, #tpu.memory_space<vmem>>, vector<1x200x128xf32>
    %43 = vector.shape_cast %42 : vector<1x200x128xf32> to vector<200x128xf32>
    %44 = arith.mulf %41, %43 : vector<200x128xf32>
    %45 = arith.addf %39, %44 : vector<200x128xf32>
    %46 = vector.extract_strided_slice %31 {offsets = [0, 256], sizes = [4, 128], strides = [1, 1]} : vector<4x512xf32> to vector<4x128xf32>
    %cst_30 = arith.constant dense<0.000000e+00> : vector<200x128xf32>
    %47 = tpu.matmul %14, %46, %cst_30 {dimension_numbers = #tpu.dot_dimension_numbers<[1], [0], [0], [1], [0, 0, 1, 1], [], []>} : vector<200x4xf32>, vector<4x128xf32>, vector<200x128xf32> -> vector<200x128xf32>
    %c2 = arith.constant 2 : index
    %c0_31 = arith.constant 0 : index
    %c0_32 = arith.constant 0 : index
    %48 = vector.load %arg1[%c2, %c0_31, %c0_32] : memref<4x200x128xf32, #tpu.memory_space<vmem>>, vector<1x200x128xf32>
    %49 = vector.shape_cast %48 : vector<1x200x128xf32> to vector<200x128xf32>
    %50 = arith.mulf %47, %49 : vector<200x128xf32>
    %51 = arith.addf %45, %50 : vector<200x128xf32>
    %52 = vector.extract_strided_slice %31 {offsets = [0, 384], sizes = [4, 128], strides = [1, 1]} : vector<4x512xf32> to vector<4x128xf32>
    %cst_33 = arith.constant dense<0.000000e+00> : vector<200x128xf32>
    %53 = tpu.matmul %14, %52, %cst_33 {dimension_numbers = #tpu.dot_dimension_numbers<[1], [0], [0], [1], [0, 0, 1, 1], [], []>} : vector<200x4xf32>, vector<4x128xf32>, vector<200x128xf32> -> vector<200x128xf32>
    %c3 = arith.constant 3 : index
    %c0_34 = arith.constant 0 : index
    %c0_35 = arith.constant 0 : index
    %54 = vector.load %arg1[%c3, %c0_34, %c0_35] : memref<4x200x128xf32, #tpu.memory_space<vmem>>, vector<1x200x128xf32>
    %55 = vector.shape_cast %54 : vector<1x200x128xf32> to vector<200x128xf32>
    %56 = arith.mulf %53, %55 : vector<200x128xf32>
    %57 = arith.addf %51, %56 : vector<200x128xf32>
    %c0_36 = arith.constant 0 : index
    %c0_37 = arith.constant 0 : index
    %58 = vector.load %arg2[%c0_36, %c0_37] : memref<200x128xf32, #tpu.memory_space<vmem>>, vector<200x128xf32>
    %59 = arith.subf %58, %57 : vector<200x128xf32>
    %60 = vector.extract_strided_slice %29 {offsets = [0, 0], sizes = [4, 128], strides = [1, 1]} : vector<4x512xf32> to vector<4x128xf32>
    %cst_38 = arith.constant dense<0.000000e+00> : vector<200x128xf32>
    %61 = tpu.matmul %28, %60, %cst_38 {dimension_numbers = #tpu.dot_dimension_numbers<[1], [0], [0], [1], [0, 0, 1, 1], [], []>} : vector<200x4xf32>, vector<4x128xf32>, vector<200x128xf32> -> vector<200x128xf32>
    %cst_39 = arith.constant 1.000000e+00 : f32
    %62 = vector.broadcast %cst_39 : f32 to vector<200x128xf32>
    %63 = arith.addf %61, %62 : vector<200x128xf32>
    %64 = arith.mulf %59, %63 : vector<200x128xf32>
    %65 = arith.addf %64, %57 : vector<200x128xf32>
    %c0_40 = arith.constant 0 : index
    %c0_41 = arith.constant 0 : index
    %c0_42 = arith.constant 0 : index
    %66 = vector.load %arg7[%c0_40, %c0_41, %c0_42] : memref<4x200x128xf32, #tpu.memory_space<vmem>>, vector<1x200x128xf32>
    %67 = vector.shape_cast %66 : vector<1x200x128xf32> to vector<200x128xf32>
    %68 = vector.shape_cast %65 : vector<200x128xf32> to vector<1x200x128xf32>
    tpu.vector_store %arg7[%c0_40, %c0_41, %c0_42], %68 {strides = array<i32>} : memref<4x200x128xf32, #tpu.memory_space<vmem>>, vector<1x200x128xf32>,
    %c0_43 = arith.constant 0 : index
    %c0_44 = arith.constant 0 : index
    %69 = vector.load %arg6[%c0_43, %c0_44] : memref<1x128xf32, #tpu.memory_space<vmem>>, vector<1x128xf32>
    %70 = vector.broadcast %69 : vector<1x128xf32> to vector<200x128xf32>
    %71 = arith.mulf %65, %70 : vector<200x128xf32>
    %c0_45 = arith.constant 0 : index
    %c0_46 = arith.constant 0 : index
    %72 = vector.load %arg8[%c0_45, %c0_46] : memref<200x128xf32, #tpu.memory_space<vmem>>, vector<200x128xf32>
    tpu.vector_store %arg8[%c0_45, %c0_46], %71 {strides = array<i32>} : memref<200x128xf32, #tpu.memory_space<vmem>>, vector<200x128xf32>,
    %c1_47 = arith.constant 1 : index
    %c0_48 = arith.constant 0 : index
    %c0_49 = arith.constant 0 : index
    %73 = vector.load %arg4[%c1_47, %c0_48, %c0_49] : memref<4x4x512xf32, #tpu.memory_space<vmem>>, vector<1x4x512xf32>
    %74 = vector.shape_cast %73 : vector<1x4x512xf32> to vector<4x512xf32>
    %c1_50 = arith.constant 1 : index
    %c0_51 = arith.constant 0 : index
    %c0_52 = arith.constant 0 : index
    %75 = vector.load %arg1[%c1_50, %c0_51, %c0_52] : memref<4x200x128xf32, #tpu.memory_space<vmem>>, vector<1x200x128xf32>
    %76 = vector.shape_cast %75 : vector<1x200x128xf32> to vector<200x128xf32>
    %77 = vector.extract_strided_slice %74 {offsets = [0, 0], sizes = [4, 128], strides = [1, 1]} : vector<4x512xf32> to vector<4x128xf32>
    %cst_53 = arith.constant dense<0.000000e+00> : vector<200x128xf32>
    %78 = tpu.matmul %14, %77, %cst_53 {dimension_numbers = #tpu.dot_dimension_numbers<[1], [0], [0], [1], [0, 0, 1, 1], [], []>} : vector<200x4xf32>, vector<4x128xf32>, vector<200x128xf32> -> vector<200x128xf32>
    %c0_54 = arith.constant 0 : index
    %c0_55 = arith.constant 0 : index
    %c0_56 = arith.constant 0 : index
    %79 = vector.load %arg1[%c0_54, %c0_55, %c0_56] : memref<4x200x128xf32, #tpu.memory_space<vmem>>, vector<1x200x128xf32>
    %80 = vector.shape_cast %79 : vector<1x200x128xf32> to vector<200x128xf32>
    %81 = arith.mulf %78, %80 : vector<200x128xf32>
    %82 = arith.addf %76, %81 : vector<200x128xf32>
    %83 = vector.extract_strided_slice %74 {offsets = [0, 128], sizes = [4, 128], strides = [1, 1]} : vector<4x512xf32> to vector<4x128xf32>
    %cst_57 = arith.constant dense<0.000000e+00> : vector<200x128xf32>
    %84 = tpu.matmul %14, %83, %cst_57 {dimension_numbers = #tpu.dot_dimension_numbers<[1], [0], [0], [1], [0, 0, 1, 1], [], []>} : vector<200x4xf32>, vector<4x128xf32>, vector<200x128xf32> -> vector<200x128xf32>
    %c1_58 = arith.constant 1 : index
    %c0_59 = arith.constant 0 : index
    %c0_60 = arith.constant 0 : index
    %85 = vector.load %arg1[%c1_58, %c0_59, %c0_60] : memref<4x200x128xf32, #tpu.memory_space<vmem>>, vector<1x200x128xf32>
    %86 = vector.shape_cast %85 : vector<1x200x128xf32> to vector<200x128xf32>
    %87 = arith.mulf %84, %86 : vector<200x128xf32>
    %88 = arith.addf %82, %87 : vector<200x128xf32>
    %89 = vector.extract_strided_slice %74 {offsets = [0, 256], sizes = [4, 128], strides = [1, 1]} : vector<4x512xf32> to vector<4x128xf32>
    %cst_61 = arith.constant dense<0.000000e+00> : vector<200x128xf32>
    %90 = tpu.matmul %14, %89, %cst_61 {dimension_numbers = #tpu.dot_dimension_numbers<[1], [0], [0], [1], [0, 0, 1, 1], [], []>} : vector<200x4xf32>, vector<4x128xf32>, vector<200x128xf32> -> vector<200x128xf32>
    %c2_62 = arith.constant 2 : index
    %c0_63 = arith.constant 0 : index
    %c0_64 = arith.constant 0 : index
    %91 = vector.load %arg1[%c2_62, %c0_63, %c0_64] : memref<4x200x128xf32, #tpu.memory_space<vmem>>, vector<1x200x128xf32>
    %92 = vector.shape_cast %91 : vector<1x200x128xf32> to vector<200x128xf32>
    %93 = arith.mulf %90, %92 : vector<200x128xf32>
    %94 = arith.addf %88, %93 : vector<200x128xf32>
    %95 = vector.extract_strided_slice %74 {offsets = [0, 384], sizes = [4, 128], strides = [1, 1]} : vector<4x512xf32> to vector<4x128xf32>
    %cst_65 = arith.constant dense<0.000000e+00> : vector<200x128xf32>
    %96 = tpu.matmul %14, %95, %cst_65 {dimension_numbers = #tpu.dot_dimension_numbers<[1], [0], [0], [1], [0, 0, 1, 1], [], []>} : vector<200x4xf32>, vector<4x128xf32>, vector<200x128xf32> -> vector<200x128xf32>
    %c3_66 = arith.constant 3 : index
    %c0_67 = arith.constant 0 : index
    %c0_68 = arith.constant 0 : index
    %97 = vector.load %arg1[%c3_66, %c0_67, %c0_68] : memref<4x200x128xf32, #tpu.memory_space<vmem>>, vector<1x200x128xf32>
    %98 = vector.shape_cast %97 : vector<1x200x128xf32> to vector<200x128xf32>
    %99 = arith.mulf %96, %98 : vector<200x128xf32>
    %100 = arith.addf %94, %99 : vector<200x128xf32>
    %101 = vector.extract_strided_slice %29 {offsets = [0, 128], sizes = [4, 128], strides = [1, 1]} : vector<4x512xf32> to vector<4x128xf32>
    %cst_69 = arith.constant dense<0.000000e+00> : vector<200x128xf32>
    %102 = tpu.matmul %28, %101, %cst_69 {dimension_numbers = #tpu.dot_dimension_numbers<[1], [0], [0], [1], [0, 0, 1, 1], [], []>} : vector<200x4xf32>, vector<4x128xf32>, vector<200x128xf32> -> vector<200x128xf32>
    %cst_70 = arith.constant 1.000000e+00 : f32
    %103 = vector.broadcast %cst_70 : f32 to vector<200x128xf32>
    %104 = arith.addf %102, %103 : vector<200x128xf32>
    %105 = arith.mulf %59, %104 : vector<200x128xf32>
    %106 = arith.addf %105, %100 : vector<200x128xf32>
    %c1_71 = arith.constant 1 : index
    %c0_72 = arith.constant 0 : index
    %c0_73 = arith.constant 0 : index
    %107 = vector.load %arg7[%c1_71, %c0_72, %c0_73] : memref<4x200x128xf32, #tpu.memory_space<vmem>>, vector<1x200x128xf32>
    %108 = vector.shape_cast %107 : vector<1x200x128xf32> to vector<200x128xf32>
    %109 = vector.shape_cast %106 : vector<200x128xf32> to vector<1x200x128xf32>
    tpu.vector_store %arg7[%c1_71, %c0_72, %c0_73], %109 {strides = array<i32>} : memref<4x200x128xf32, #tpu.memory_space<vmem>>, vector<1x200x128xf32>,
    %c2_74 = arith.constant 2 : index
    %c0_75 = arith.constant 0 : index
    %c0_76 = arith.constant 0 : index
    %110 = vector.load %arg4[%c2_74, %c0_75, %c0_76] : memref<4x4x512xf32, #tpu.memory_space<vmem>>, vector<1x4x512xf32>
    %111 = vector.shape_cast %110 : vector<1x4x512xf32> to vector<4x512xf32>
    %c2_77 = arith.constant 2 : index
    %c0_78 = arith.constant 0 : index
    %c0_79 = arith.constant 0 : index
    %112 = vector.load %arg1[%c2_77, %c0_78, %c0_79] : memref<4x200x128xf32, #tpu.memory_space<vmem>>, vector<1x200x128xf32>
    %113 = vector.shape_cast %112 : vector<1x200x128xf32> to vector<200x128xf32>
    %114 = vector.extract_strided_slice %111 {offsets = [0, 0], sizes = [4, 128], strides = [1, 1]} : vector<4x512xf32> to vector<4x128xf32>
    %cst_80 = arith.constant dense<0.000000e+00> : vector<200x128xf32>
    %115 = tpu.matmul %14, %114, %cst_80 {dimension_numbers = #tpu.dot_dimension_numbers<[1], [0], [0], [1], [0, 0, 1, 1], [], []>} : vector<200x4xf32>, vector<4x128xf32>, vector<200x128xf32> -> vector<200x128xf32>
    %c0_81 = arith.constant 0 : index
    %c0_82 = arith.constant 0 : index
    %c0_83 = arith.constant 0 : index
    %116 = vector.load %arg1[%c0_81, %c0_82, %c0_83] : memref<4x200x128xf32, #tpu.memory_space<vmem>>, vector<1x200x128xf32>
    %117 = vector.shape_cast %116 : vector<1x200x128xf32> to vector<200x128xf32>
    %118 = arith.mulf %115, %117 : vector<200x128xf32>
    %119 = arith.addf %113, %118 : vector<200x128xf32>
    %120 = vector.extract_strided_slice %111 {offsets = [0, 128], sizes = [4, 128], strides = [1, 1]} : vector<4x512xf32> to vector<4x128xf32>
    %cst_84 = arith.constant dense<0.000000e+00> : vector<200x128xf32>
    %121 = tpu.matmul %14, %120, %cst_84 {dimension_numbers = #tpu.dot_dimension_numbers<[1], [0], [0], [1], [0, 0, 1, 1], [], []>} : vector<200x4xf32>, vector<4x128xf32>, vector<200x128xf32> -> vector<200x128xf32>
    %c1_85 = arith.constant 1 : index
    %c0_86 = arith.constant 0 : index
    %c0_87 = arith.constant 0 : index
    %122 = vector.load %arg1[%c1_85, %c0_86, %c0_87] : memref<4x200x128xf32, #tpu.memory_space<vmem>>, vector<1x200x128xf32>
    %123 = vector.shape_cast %122 : vector<1x200x128xf32> to vector<200x128xf32>
    %124 = arith.mulf %121, %123 : vector<200x128xf32>
    %125 = arith.addf %119, %124 : vector<200x128xf32>
    %126 = vector.extract_strided_slice %111 {offsets = [0, 256], sizes = [4, 128], strides = [1, 1]} : vector<4x512xf32> to vector<4x128xf32>
    %cst_88 = arith.constant dense<0.000000e+00> : vector<200x128xf32>
    %127 = tpu.matmul %14, %126, %cst_88 {dimension_numbers = #tpu.dot_dimension_numbers<[1], [0], [0], [1], [0, 0, 1, 1], [], []>} : vector<200x4xf32>, vector<4x128xf32>, vector<200x128xf32> -> vector<200x128xf32>
    %c2_89 = arith.constant 2 : index
    %c0_90 = arith.constant 0 : index
    %c0_91 = arith.constant 0 : index
    %128 = vector.load %arg1[%c2_89, %c0_90, %c0_91] : memref<4x200x128xf32, #tpu.memory_space<vmem>>, vector<1x200x128xf32>
    %129 = vector.shape_cast %128 : vector<1x200x128xf32> to vector<200x128xf32>
    %130 = arith.mulf %127, %129 : vector<200x128xf32>
    %131 = arith.addf %125, %130 : vector<200x128xf32>
    %132 = vector.extract_strided_slice %111 {offsets = [0, 384], sizes = [4, 128], strides = [1, 1]} : vector<4x512xf32> to vector<4x128xf32>
    %cst_92 = arith.constant dense<0.000000e+00> : vector<200x128xf32>
    %133 = tpu.matmul %14, %132, %cst_92 {dimension_numbers = #tpu.dot_dimension_numbers<[1], [0], [0], [1], [0, 0, 1, 1], [], []>} : vector<200x4xf32>, vector<4x128xf32>, vector<200x128xf32> -> vector<200x128xf32>
    %c3_93 = arith.constant 3 : index
    %c0_94 = arith.constant 0 : index
    %c0_95 = arith.constant 0 : index
    %134 = vector.load %arg1[%c3_93, %c0_94, %c0_95] : memref<4x200x128xf32, #tpu.memory_space<vmem>>, vector<1x200x128xf32>
    %135 = vector.shape_cast %134 : vector<1x200x128xf32> to vector<200x128xf32>
    %136 = arith.mulf %133, %135 : vector<200x128xf32>
    %137 = arith.addf %131, %136 : vector<200x128xf32>
    %138 = vector.extract_strided_slice %29 {offsets = [0, 256], sizes = [4, 128], strides = [1, 1]} : vector<4x512xf32> to vector<4x128xf32>
    %cst_96 = arith.constant dense<0.000000e+00> : vector<200x128xf32>
    %139 = tpu.matmul %28, %138, %cst_96 {dimension_numbers = #tpu.dot_dimension_numbers<[1], [0], [0], [1], [0, 0, 1, 1], [], []>} : vector<200x4xf32>, vector<4x128xf32>, vector<200x128xf32> -> vector<200x128xf32>
    %cst_97 = arith.constant 1.000000e+00 : f32
    %140 = vector.broadcast %cst_97 : f32 to vector<200x128xf32>
    %141 = arith.addf %139, %140 : vector<200x128xf32>
    %142 = arith.mulf %59, %141 : vector<200x128xf32>
    %143 = arith.addf %142, %137 : vector<200x128xf32>
    %c2_98 = arith.constant 2 : index
    %c0_99 = arith.constant 0 : index
    %c0_100 = arith.constant 0 : index
    %144 = vector.load %arg7[%c2_98, %c0_99, %c0_100] : memref<4x200x128xf32, #tpu.memory_space<vmem>>, vector<1x200x128xf32>
    %145 = vector.shape_cast %144 : vector<1x200x128xf32> to vector<200x128xf32>
    %146 = vector.shape_cast %143 : vector<200x128xf32> to vector<1x200x128xf32>
    tpu.vector_store %arg7[%c2_98, %c0_99, %c0_100], %146 {strides = array<i32>} : memref<4x200x128xf32, #tpu.memory_space<vmem>>, vector<1x200x128xf32>,
    %c3_101 = arith.constant 3 : index
    %c0_102 = arith.constant 0 : index
    %c0_103 = arith.constant 0 : index
    %147 = vector.load %arg4[%c3_101, %c0_102, %c0_103] : memref<4x4x512xf32, #tpu.memory_space<vmem>>, vector<1x4x512xf32>
    %148 = vector.shape_cast %147 : vector<1x4x512xf32> to vector<4x512xf32>
    %c3_104 = arith.constant 3 : index
    %c0_105 = arith.constant 0 : index
    %c0_106 = arith.constant 0 : index
    %149 = vector.load %arg1[%c3_104, %c0_105, %c0_106] : memref<4x200x128xf32, #tpu.memory_space<vmem>>, vector<1x200x128xf32>
    %150 = vector.shape_cast %149 : vector<1x200x128xf32> to vector<200x128xf32>
    %151 = vector.extract_strided_slice %148 {offsets = [0, 0], sizes = [4, 128], strides = [1, 1]} : vector<4x512xf32> to vector<4x128xf32>
    %cst_107 = arith.constant dense<0.000000e+00> : vector<200x128xf32>
    %152 = tpu.matmul %14, %151, %cst_107 {dimension_numbers = #tpu.dot_dimension_numbers<[1], [0], [0], [1], [0, 0, 1, 1], [], []>} : vector<200x4xf32>, vector<4x128xf32>, vector<200x128xf32> -> vector<200x128xf32>
    %c0_108 = arith.constant 0 : index
    %c0_109 = arith.constant 0 : index
    %c0_110 = arith.constant 0 : index
    %153 = vector.load %arg1[%c0_108, %c0_109, %c0_110] : memref<4x200x128xf32, #tpu.memory_space<vmem>>, vector<1x200x128xf32>
    %154 = vector.shape_cast %153 : vector<1x200x128xf32> to vector<200x128xf32>
    %155 = arith.mulf %152, %154 : vector<200x128xf32>
    %156 = arith.addf %150, %155 : vector<200x128xf32>
    %157 = vector.extract_strided_slice %148 {offsets = [0, 128], sizes = [4, 128], strides = [1, 1]} : vector<4x512xf32> to vector<4x128xf32>
    %cst_111 = arith.constant dense<0.000000e+00> : vector<200x128xf32>
    %158 = tpu.matmul %14, %157, %cst_111 {dimension_numbers = #tpu.dot_dimension_numbers<[1], [0], [0], [1], [0, 0, 1, 1], [], []>} : vector<200x4xf32>, vector<4x128xf32>, vector<200x128xf32> -> vector<200x128xf32>
    %c1_112 = arith.constant 1 : index
    %c0_113 = arith.constant 0 : index
    %c0_114 = arith.constant 0 : index
    %159 = vector.load %arg1[%c1_112, %c0_113, %c0_114] : memref<4x200x128xf32, #tpu.memory_space<vmem>>, vector<1x200x128xf32>
    %160 = vector.shape_cast %159 : vector<1x200x128xf32> to vector<200x128xf32>
    %161 = arith.mulf %158, %160 : vector<200x128xf32>
    %162 = arith.addf %156, %161 : vector<200x128xf32>
    %163 = vector.extract_strided_slice %148 {offsets = [0, 256], sizes = [4, 128], strides = [1, 1]} : vector<4x512xf32> to vector<4x128xf32>
    %cst_115 = arith.constant dense<0.000000e+00> : vector<200x128xf32>
    %164 = tpu.matmul %14, %163, %cst_115 {dimension_numbers = #tpu.dot_dimension_numbers<[1], [0], [0], [1], [0, 0, 1, 1], [], []>} : vector<200x4xf32>, vector<4x128xf32>, vector<200x128xf32> -> vector<200x128xf32>
    %c2_116 = arith.constant 2 : index
    %c0_117 = arith.constant 0 : index
    %c0_118 = arith.constant 0 : index
    %165 = vector.load %arg1[%c2_116, %c0_117, %c0_118] : memref<4x200x128xf32, #tpu.memory_space<vmem>>, vector<1x200x128xf32>
    %166 = vector.shape_cast %165 : vector<1x200x128xf32> to vector<200x128xf32>
    %167 = arith.mulf %164, %166 : vector<200x128xf32>
    %168 = arith.addf %162, %167 : vector<200x128xf32>
    %169 = vector.extract_strided_slice %148 {offsets = [0, 384], sizes = [4, 128], strides = [1, 1]} : vector<4x512xf32> to vector<4x128xf32>
    %cst_119 = arith.constant dense<0.000000e+00> : vector<200x128xf32>
    %170 = tpu.matmul %14, %169, %cst_119 {dimension_numbers = #tpu.dot_dimension_numbers<[1], [0], [0], [1], [0, 0, 1, 1], [], []>} : vector<200x4xf32>, vector<4x128xf32>, vector<200x128xf32> -> vector<200x128xf32>
    %c3_120 = arith.constant 3 : index
    %c0_121 = arith.constant 0 : index
    %c0_122 = arith.constant 0 : index
    %171 = vector.load %arg1[%c3_120, %c0_121, %c0_122] : memref<4x200x128xf32, #tpu.memory_space<vmem>>, vector<1x200x128xf32>
    %172 = vector.shape_cast %171 : vector<1x200x128xf32> to vector<200x128xf32>
    %173 = arith.mulf %170, %172 : vector<200x128xf32>
    %174 = arith.addf %168, %173 : vector<200x128xf32>
    %175 = vector.extract_strided_slice %29 {offsets = [0, 384], sizes = [4, 128], strides = [1, 1]} : vector<4x512xf32> to vector<4x128xf32>
    %cst_123 = arith.constant dense<0.000000e+00> : vector<200x128xf32>
    %176 = tpu.matmul %28, %175, %cst_123 {dimension_numbers = #tpu.dot_dimension_numbers<[1], [0], [0], [1], [0, 0, 1, 1], [], []>} : vector<200x4xf32>, vector<4x128xf32>, vector<200x128xf32> -> vector<200x128xf32>
    %cst_124 = arith.constant 1.000000e+00 : f32
    %177 = vector.broadcast %cst_124 : f32 to vector<200x128xf32>
    %178 = arith.addf %176, %177 : vector<200x128xf32>
    %179 = arith.mulf %59, %178 : vector<200x128xf32>
    %180 = arith.addf %179, %174 : vector<200x128xf32>
    %c3_125 = arith.constant 3 : index
    %c0_126 = arith.constant 0 : index
    %c0_127 = arith.constant 0 : index
    %181 = vector.load %arg7[%c3_125, %c0_126, %c0_127] : memref<4x200x128xf32, #tpu.memory_space<vmem>>, vector<1x200x128xf32>
    %182 = vector.shape_cast %181 : vector<1x200x128xf32> to vector<200x128xf32>
    %183 = vector.shape_cast %180 : vector<200x128xf32> to vector<1x200x128xf32>
    tpu.vector_store %arg7[%c3_125, %c0_126, %c0_127], %183 {strides = array<i32>} : memref<4x200x128xf32, #tpu.memory_space<vmem>>, vector<1x200x128xf32>,
    return
  }
  func.func @transform_0(%arg0: i32) -> (i32, i32, i32) {
    %c0_i32 = arith.constant 0 : i32
    %c0_i32_0 = arith.constant 0 : i32
    %c0_i32_1 = arith.constant 0 : i32
    return %c0_i32, %arg0, %c0_i32_0 : i32, i32, i32
  }
  func.func @transform_1(%arg0: i32) -> (i32, i32) {
    %c0_i32 = arith.constant 0 : i32
    %c0_i32_0 = arith.constant 0 : i32
    return %arg0, %c0_i32 : i32, i32
  }
  func.func @transform_2(%arg0: i32) -> (i32, i32) {
    %c0_i32 = arith.constant 0 : i32
    %c0_i32_0 = arith.constant 0 : i32
    %c0_i32_1 = arith.constant 0 : i32
    return %c0_i32, %c0_i32_0 : i32, i32
  }
  func.func @transform_3(%arg0: i32) -> (i32, i32, i32) {
    %c0_i32 = arith.constant 0 : i32
    %c0_i32_0 = arith.constant 0 : i32
    %c0_i32_1 = arith.constant 0 : i32
    %c0_i32_2 = arith.constant 0 : i32
    return %c0_i32, %c0_i32_0, %c0_i32_1 : i32, i32, i32
  }
  func.func @transform_4(%arg0: i32) -> (i32, i32) {
    %c0_i32 = arith.constant 0 : i32
    %c0_i32_0 = arith.constant 0 : i32
    %c0_i32_1 = arith.constant 0 : i32
    return %c0_i32, %c0_i32_0 : i32, i32
  }
  func.func @transform_5(%arg0: i32) -> (i32, i32) {
    %c0_i32 = arith.constant 0 : i32
    %c0_i32_0 = arith.constant 0 : i32
    %c0_i32_1 = arith.constant 0 : i32
    return %c0_i32, %c0_i32_0 : i32, i32
  }
  func.func @transform_6(%arg0: i32) -> (i32, i32, i32) {
    %c0_i32 = arith.constant 0 : i32
    %c0_i32_0 = arith.constant 0 : i32
    %c0_i32_1 = arith.constant 0 : i32
    return %c0_i32, %arg0, %c0_i32_0 : i32, i32, i32
  }
  func.func @transform_7(%arg0: i32) -> (i32, i32) {
    %c0_i32 = arith.constant 0 : i32
    %c0_i32_0 = arith.constant 0 : i32
    return %arg0, %c0_i32 : i32, i32
  }
}

</mosaic_0001>

<bundles_post_ra>
// kernel: tpu_custom_call.1
= control target key start
LH: loop header
LB: loop body
LE: loop exit
PB: predicated region body
PF: predicated region fallthrough
CT: control target
= control target key end

     0   :  { %13 = vsyncpa [#allocation3], 0  ;;  %s13654_s0 = inlined_call_operand.hbm [shape: f32[4,200,128], index: 0, kind: input, shape index: {}]   ;;  %s13655_s1 = inlined_call_operand.hbm [shape: f32[200,128], index: 1, kind: input, shape index: {}]   ;;  %s13656_s2 = inlined_call_operand.vmem [shape: f32[128,4], index: 2, kind: input, shape index: {}]   ;;  %s13657_s3 = inlined_call_operand.vmem [shape: f32[4,4,512], index: 3, kind: input, shape index: {}]   ;;  %s13658_s4 = inlined_call_operand.vmem [shape: f32[4,512], index: 4, kind: input, shape index: {}]   ;;  %s13659_s5 = inlined_call_operand.vmem [shape: f32[1,128], index: 5, kind: input, shape index: {}]   ;;  %s13660_s6 = inlined_call_operand.hbm [shape: f32[4,200,128], index: 6, kind: output, shape index: {0}]   ;;  %s13661_s7 = inlined_call_operand.hbm [shape: f32[200,128], index: 7, kind: output, shape index: {1}]  }
   0x1   :  { %14 = vsyncpa [#allocation6], 0 }
   0x2   :  { %15 = vsyncpa [#allocation4], 0 }
   0x3   :  { %16 = vsyncpa [#allocation9], 0  ;;  %s9821_s24 = smov [#allocation2]   ;;  %s9725_s28 = scalar_lea.hbm %s13654_s0, 12800 }
   0x4   :  { %s22_s25 = sshll.u32 %s9821_s24, 4  ;;  %p9726_p0 = scmp.ne.s32.totalorder %s13654_s0, %s9725_s28  ;;  %s23_s25 = int_to_ptr.vmem [resolvable:$true] %s22_s25 }
   0x5   :  { %p9729_p1 = scmp.lt.u32.totalorder %s9725_s28, %s13654_s0 }
   0x7   :  { %p9731_p2 = pnand %p9729_p1, %p9726_p0 }
   0x9   :  { %9734 = shalt.err (!%p9731_p2)
}
   0xa   :  { %s9735_s10 = scalar_lea.vmem %s23_s25, 12800  ;;  %p9740_p4 = scmp.lt.s32.totalorder %s23_s25, %s23_s25 }
   0xb   :  { %p9736_p3 = scmp.ne.s32.totalorder %s23_s25, %s9735_s10  ;;  %p9741_p5 = scmp.lt.s32.totalorder %s9735_s10, %s9735_s10 }
   0xd   :  { %p9742_p6 = por %p9741_p5, %p9740_p4 }
   0xf   :  { %p9743_p7 = pnand %p9742_p6, %p9736_p3 }
  0x11   :  { %9746 = shalt.err (!%p9743_p7)
}
  0x12   :  { %s9822_s11 = smov 128   ;;  %s9823_s12 = smov 8  }
  0x13   :  { %28 = dma.hbm_to_vmem [thread:$0]  %s13654_s0, 12800, %s23_s25, [#allocation3], %s9822_s11, %s9822_s11, %s9823_s12  }
  0x14   :  { %s9824_s15 = smov [#allocation5]   ;;  %s9747_s19 = scalar_lea.hbm %s13655_s1, 3200 }
  0x15   :  { %s34_s16 = sshll.u32 %s9824_s15, 4  ;;  %p9748_p8 = scmp.ne.s32.totalorder %s13655_s1, %s9747_s19  ;;  %s35_s16 = int_to_ptr.vmem [resolvable:$true] %s34_s16 }
  0x16   :  { %p9751_p9 = scmp.lt.u32.totalorder %s9747_s19, %s13655_s1 }
  0x18   :  { %p9753_p10 = pnand %p9751_p9, %p9748_p8 }
  0x1a   :  { %9756 = shalt.err (!%p9753_p10)
}
  0x1b   :  { %s9757_s24 = scalar_lea.vmem %s35_s16, 3200  ;;  %p9762_p12 = scmp.lt.s32.totalorder %s35_s16, %s35_s16 }
  0x1c   :  { %p9758_p11 = scmp.ne.s32.totalorder %s35_s16, %s9757_s24  ;;  %p9763_p13 = scmp.lt.s32.totalorder %s9757_s24, %s9757_s24 }
  0x1e   :  { %p9764_p0 = por %p9763_p13, %p9762_p12 }
  0x20   :  { %p9765_p1 = pnand %p9764_p0, %p9758_p11 }
  0x22   :  { %9768 = shalt.err (!%p9765_p1)
}
  0x23   :  { %40 = dma.hbm_to_vmem [thread:$0]  %s13655_s1, 3200, %s35_s16, [#allocation6], %s9822_s11, %s9822_s11, %s9823_s12  }
  0x24   :  { %9813 = dma.done.wait [#allocation3], 12800  }
  0x25   :  { %9814 = vsyncadd [#allocation3], 4294954496 }
  0x26   :  { %9815 = dma.done.wait [#allocation6], 3200  }
  0x27   :  { %9816 = vsyncadd [#allocation6], 4294964096  ;;  %v9825_v0 = vmov 0.0|0.0   ;;  %v9902_v1 = vld [vmem:[#allocation2] sm:$0xff]  ;;  %v9904_v2 = vld [vmem:[#allocation2 + $0x8] sm:$0xff]  ;;  %vm9826_vm0 = vmmov 0  }
  0x28   :  { %9407 = vmatprep.subr.bf16.mxu0 %v9825_v0  ;;  %9431 = vmatprep.subr.bf16.mxu1 %v9825_v0  ;;  %v9906_v3 = vld [vmem:[#allocation2 + $0x10] sm:$0xff]  ;;  %v80_v4 = vmul.f32 %v9902_v1, %v9902_v1  ;;  %v9912_v6 = vld [vmem:[#allocation2 + $0x18] sm:$0xff]  ;;  %v81_v7 = vmul.f32 %v9904_v2, %v9904_v2  ;;  %v9918_v9 = vld [vmem:[#allocation2 + $0x20] sm:$0xff]  ;;  %v13662_v55 = vmov 0.0   ;;  %vm982_vm1 = vcmask 1043456  }
  0x29   :  { %v82_v5 = vmul.f32 %v9906_v3, %v9906_v3  ;;  %v83_v8 = vmul.f32 %v9912_v6, %v9912_v6  ;;  %v9920_v10 = vld [vmem:[#allocation2 + $0x28] sm:$0xff]  ;;  %v84_v11 = vmul.f32 %v9918_v9, %v9918_v9  ;;  %v9926_v13 = vld [vmem:[#allocation2 + $0x30] sm:$0xff]  ;;  %v9928_v14 = vld [vmem:[#allocation2 + $0x38] sm:$0xff]  ;;  %7685 = vmatprep.mubr.msk.f32.mxu0 %vm9826_vm0, %v13662_v55  ;;  %7792 = vmatprep.mubr.msk.f32.mxu1 %vm9826_vm0, %v13662_v55  ;;  %vm906_vm2 = vcmask 31744  }
  0x2a   :  { %105 = vadd.xlane.f32.xlu0 %v80_v4  ;;  %v85_v12 = vmul.f32 %v9920_v10, %v9920_v10  ;;  %v256_v15 = vld [vmem:[%s13656_s2] sm:$0xff]  ;;  %v257_v16 = vld [vmem:[%s13656_s2 + $0x8] sm:$0xff]  ;;  %v258_v18 = vld [vmem:[%s13656_s2 + $0x10] sm:$0xff]  ;;  %v86_v20 = vmul.f32 %v9926_v13, %v9926_v13  ;;  %v87_v21 = vmul.f32 %v9928_v14, %v9928_v14 }
  0x2b   :  { %109 = vadd.xlane.f32.xlu1 %v82_v5  ;;  %v9408_v17 = vpack.c.bf16 %v257_v16, %v256_v15  ;;  %v259_v19 = vld [vmem:[%s13656_s2 + $0x18] sm:$0xff]  ;;  %v9946_v22 = vld [vmem:[#allocation2 + $0x40] sm:$0xff]  ;;  %v9948_v23 = vld [vmem:[#allocation2 + $0x48] sm:$0xff] }
  0x2c   :  { %v9411_v24 = vpack.c.bf16 %v259_v19, %v258_v18  ;;  %v260_v25 = vld [vmem:[%s13656_s2 + $0x20] sm:$0xff]  ;;  %v261_v26 = vld [vmem:[%s13656_s2 + $0x28] sm:$0xff]  ;;  %v88_v27 = vmul.f32 %v9946_v22, %v9946_v22  ;;  %v89_v28 = vmul.f32 %v9948_v23, %v9948_v23  ;;  %v9962_v29 = vld [vmem:[#allocation2 + $0x50] sm:$0xff] }
  0x2d   :  { %9409 = vmatpush3.bf16.msra.mxu0 %v9408_v17  ;;  %9433 = vmatpush3.bf16.msra.mxu1 %v9408_v17  ;;  %v9964_v30 = vld [vmem:[#allocation2 + $0x58] sm:$0xff]  ;;  %v9414_v31 = vpack.c.bf16 %v261_v26, %v260_v25  ;;  %v262_v32 = vld [vmem:[%s13656_s2 + $0x30] sm:$0xff]  ;;  %v90_v34 = vmul.f32 %v9962_v29, %v9962_v29  ;;  %v9978_v36 = vld [vmem:[#allocation2 + $0x60] sm:$0xff] }
  0x2e   :  { %107 = vadd.xlane.f32.xlu0 %v81_v7  ;;  %9410 = vmatprep.subr.bf16.mxu0 %v9825_v0  ;;  %v263_v33 = vld [vmem:[%s13656_s2 + $0x38] sm:$0xff]  ;;  %v91_v35 = vmul.f32 %v9964_v30, %v9964_v30  ;;  %v9980_v37 = vld [vmem:[#allocation2 + $0x68] sm:$0xff]  ;;  %v264_v39 = vld [vmem:[%s13656_s2 + $0x40] sm:$0xff]  ;;  %v92_v41 = vmul.f32 %v9978_v36, %v9978_v36 }
  0x2f   :  { %111 = vadd.xlane.f32.xlu1 %v83_v8  ;;  %9434 = vmatprep.subr.bf16.mxu1 %v9825_v0  ;;  %v9417_v38 = vpack.c.bf16 %v263_v33, %v262_v32  ;;  %v265_v40 = vld [vmem:[%s13656_s2 + $0x48] sm:$0xff]  ;;  %v93_v42 = vmul.f32 %v9980_v37, %v9980_v37  ;;  %v9994_v43 = vld [vmem:[#allocation2 + $0x70] sm:$0xff]  ;;  %v9996_v44 = vld [vmem:[#allocation2 + $0x78] sm:$0xff] }
  0x30   :  { %v9420_v45 = vpack.c.bf16 %v265_v40, %v264_v39  ;;  %v266_v46 = vld [vmem:[%s13656_s2 + $0x50] sm:$0xff]  ;;  %v267_v47 = vld [vmem:[%s13656_s2 + $0x58] sm:$0xff]  ;;  %v94_v48 = vmul.f32 %v9994_v43, %v9994_v43  ;;  %v95_v49 = vmul.f32 %v9996_v44, %v9996_v44  ;;  %v10010_v50 = vld [vmem:[#allocation2 + $0x80] sm:$0xff] }
  0x31   :  { %9412 = vmatpush3.bf16.msra.mxu0 %v9411_v24  ;;  %9436 = vmatpush3.bf16.msra.mxu1 %v9411_v24  ;;  %v10012_v51 = vld [vmem:[#allocation2 + $0x88] sm:$0xff]  ;;  %v9423_v52 = vpack.c.bf16 %v267_v47, %v266_v46  ;;  %v268_v53 = vld [vmem:[%s13656_s2 + $0x60] sm:$0xff]  ;;  %v96_v56 = vmul.f32 %v10010_v50, %v10010_v50  ;;  %v10030_v58 = vld [vmem:[#allocation2 + $0x90] sm:$0xff] }
  0x32   :  { %113 = vadd.xlane.f32.xlu0 %v84_v11  ;;  %9413 = vmatprep.subr.bf16.mxu0 %v9825_v0  ;;  %v269_v54 = vld [vmem:[%s13656_s2 + $0x68] sm:$0xff]  ;;  %v97_v57 = vmul.f32 %v10012_v51, %v10012_v51  ;;  %v10032_v59 = vld [vmem:[#allocation2 + $0x98] sm:$0xff]  ;;  %v270_v61 = vld [vmem:[%s13656_s2 + $0x70] sm:$0xff]  ;;  %v98_v63 = vmul.f32 %v10030_v58, %v10030_v58 }
  0x33   :  { %115 = vadd.xlane.f32.xlu1 %v85_v12  ;;  %9437 = vmatprep.subr.bf16.mxu1 %v9825_v0  ;;  %v9426_v60 = vpack.c.bf16 %v269_v54, %v268_v53  ;;  %v271_v62 = vld [vmem:[%s13656_s2 + $0x78] sm:$0xff]  ;;  %v99_v4 = vmul.f32 %v10032_v59, %v10032_v59  ;;  %v10046_v5 = vld [vmem:[#allocation2 + $0xa0] sm:$0xff]  ;;  %v10048_v7 = vld [vmem:[#allocation2 + $0xa8] sm:$0xff] }
  0x34   :  { %v9429_v8 = vpack.c.bf16 %v271_v62, %v270_v61  ;;  %v100_v11 = vmul.f32 %v10046_v5, %v10046_v5  ;;  %v101_v12 = vmul.f32 %v10048_v7, %v10048_v7  ;;  %v10056_v15 = vld [vmem:[#allocation2 + $0xb0] sm:$0xff]  ;;  %v10058_v16 = vld [vmem:[#allocation2 + $0xb8] sm:$0xff]  ;;  %v10066_v18 = vld [vmem:[#allocation2 + $0xc0] sm:$0xff] }
  0x35   :  { %9415 = vmatpush3.bf16.msra.mxu0 %v9414_v31  ;;  %9439 = vmatpush3.bf16.msra.mxu1 %v9414_v31  ;;  %v103_v17 = vmul.f32 %v10058_v16, %v10058_v16  ;;  %v10068_v19 = vld [vmem:[#allocation5] sm:$0xff]  ;;  %v10074_v24 = vld [vmem:[#allocation5 + $0x8] sm:$0xff]  ;;  %v10076_v25 = vld [vmem:[#allocation5 + $0x10] sm:$0xff] }
  0x36   :  { %117 = vadd.xlane.f32.xlu0 %v86_v20  ;;  %9416 = vmatprep.subr.bf16.mxu0 %v9825_v0  ;;  %v104_v20 = vmul.f32 %v10066_v18, %v10066_v18  ;;  %v513_v26 = vmul.f32 %v10074_v24, %v10074_v24  ;;  %v10084_v31 = vld [vmem:[#allocation5 + $0x20] sm:$0xff]  ;;  %v10098_v40 = vld [vmem:[#allocation5 + $0x38] sm:$0xff]  ;;  %v10106_v46 = vld [vmem:[#allocation5 + $0x48] sm:$0xff] }
  0x37   :  { %119 = vadd.xlane.f32.xlu1 %v87_v21  ;;  %9440 = vmatprep.subr.bf16.mxu1 %v9825_v0  ;;  %v512_v21 = vmul.f32 %v10068_v19, %v10068_v19  ;;  %v516_v33 = vmul.f32 %v10084_v31, %v10084_v31  ;;  %v10108_v47 = vld [vmem:[#allocation5 + $0x50] sm:$0xff]  ;;  %v10116_v53 = vld [vmem:[#allocation5 + $0x60] sm:$0xff] }
  0x39   :  { %9418 = vmatpush3.bf16.msra.mxu0 %v9417_v38  ;;  %9442 = vmatpush3.bf16.msra.mxu1 %v9417_v38 }
  0x3a   :  { %121 = vadd.xlane.f32.xlu0 %v88_v27  ;;  %9419 = vmatprep.subr.bf16.mxu0 %v9825_v0  ;;  %v514_v27 = vmul.f32 %v10076_v25, %v10076_v25 }
  0x3b   :  { %123 = vadd.xlane.f32.xlu1 %v89_v28  ;;  %9443 = vmatprep.subr.bf16.mxu1 %v9825_v0  ;;  %v10082_v28 = vld [vmem:[#allocation5 + $0x18] sm:$0xff] }
  0x3c   :  { %v515_v32 = vmul.f32 %v10082_v28, %v10082_v28 }
  0x3d   :  { %9421 = vmatpush3.bf16.msra.mxu0 %v9420_v45  ;;  %9445 = vmatpush3.bf16.msra.mxu1 %v9420_v45 }
  0x3e   :  { %125 = vadd.xlane.f32.xlu0 %v90_v34  ;;  %9422 = vmatprep.subr.bf16.mxu0 %v9825_v0  ;;  %v10090_v34 = vld [vmem:[#allocation5 + $0x28] sm:$0xff] }
  0x3f   :  { %127 = vadd.xlane.f32.xlu1 %v91_v35  ;;  %9446 = vmatprep.subr.bf16.mxu1 %v9825_v0  ;;  %v10092_v35 = vld [vmem:[#allocation5 + $0x30] sm:$0xff]  ;;  %v517_v38 = vmul.f32 %v10090_v34, %v10090_v34 }
  0x40   :  { %v518_v39 = vmul.f32 %v10092_v35, %v10092_v35 }
  0x41   :  { %9424 = vmatpush3.bf16.msra.mxu0 %v9423_v52  ;;  %9448 = vmatpush3.bf16.msra.mxu1 %v9423_v52  ;;  %v10114_v52 = vld [vmem:[#allocation5 + $0x58] sm:$0xff] }
  0x42   :  { %129 = vadd.xlane.f32.xlu0 %v92_v41  ;;  %9425 = vmatprep.subr.bf16.mxu0 %v9825_v0  ;;  %v10100_v41 = vld [vmem:[#allocation5 + $0x40] sm:$0xff]  ;;  %v523_v54 = vmul.f32 %v10114_v52, %v10114_v52 }
  0x43   :  { %131 = vadd.xlane.f32.xlu1 %v93_v42  ;;  %9449 = vmatprep.subr.bf16.mxu1 %v9825_v0  ;;  %v519_v42 = vmul.f32 %v10098_v40, %v10098_v40  ;;  %v520_v45 = vmul.f32 %v10100_v41, %v10100_v41 }
  0x45   :  { %9427 = vmatpush3.bf16.msra.mxu0 %v9426_v60  ;;  %9451 = vmatpush3.bf16.msra.mxu1 %v9426_v60  ;;  %v10124_v60 = vld [vmem:[#allocation5 + $0x70] sm:$0xff] }
  0x46   :  { %133 = vadd.xlane.f32.xlu0 %v94_v48  ;;  %9428 = vmatprep.subr.bf16.mxu0 %v9825_v0  ;;  %v521_v48 = vmul.f32 %v10106_v46, %v10106_v46  ;;  %v526_v62 = vmul.f32 %v10124_v60, %v10124_v60 }
  0x47   :  { %135 = vadd.xlane.f32.xlu1 %v95_v49  ;;  %9452 = vmatprep.subr.bf16.mxu1 %v9825_v0  ;;  %v102_v0 = vmul.f32 %v10056_v15, %v10056_v15  ;;  %v522_v49 = vmul.f32 %v10108_v47, %v10108_v47 }
  0x49   :  { %9430 = vmatpush3.bf16.msra.mxu0 %v9429_v8  ;;  %9454 = vmatpush3.bf16.msra.mxu1 %v9429_v8 }
  0x4a   :  { %137 = vadd.xlane.f32.xlu0 %v96_v56  ;;  %7867 = vmatprep.subr.mxu0 %v13662_v55  ;;  %v524_v56 = vmul.f32 %v10116_v53, %v10116_v53 }
  0x4b   :  { %139 = vadd.xlane.f32.xlu1 %v97_v57  ;;  %7944 = vmatprep.subr.mxu1 %v13662_v55  ;;  %v10122_v57 = vld [vmem:[#allocation5 + $0x68] sm:$0xff] }
  0x4c   :  { %v525_v61 = vmul.f32 %v10122_v57, %v10122_v57 }
  0x4e   :  { %141 = vadd.xlane.f32.xlu0 %v98_v63  ;;  %v10130_v63 = vld [vmem:[#allocation5 + $0x78] sm:$0xff] }
  0x4f   :  { %143 = vadd.xlane.f32.xlu1 %v99_v4  ;;  %v10132_v4 = vld [vmem:[#allocation5 + $0x80] sm:$0xff]  ;;  %v527_v8 = vmul.f32 %v10130_v63, %v10130_v63 }
  0x52   :  { %145 = vadd.xlane.f32.xlu0 %v100_v11  ;;  %v528_v11 = vmul.f32 %v10132_v4, %v10132_v4 }
  0x53   :  { %147 = vadd.xlane.f32.xlu1 %v101_v12  ;;  %v10138_v12 = vld [vmem:[#allocation5 + $0x88] sm:$0xff] }
  0x56   :  { %149 = vadd.xlane.f32.xlu0 %v102_v0  ;;  %v10140_v0 = vld [vmem:[#allocation5 + $0x90] sm:$0xff] }
  0x57   :  { %151 = vadd.xlane.f32.xlu1 %v103_v17  ;;  %v529_v17 = vmul.f32 %v10138_v12, %v10138_v12 }
  0x5a   :  { %153 = vadd.xlane.f32.xlu0 %v104_v20  ;;  %v530_v20 = vmul.f32 %v10140_v0, %v10140_v0 }
  0x5b   :  { %537 = vadd.xlane.f32.xlu1 %v512_v21  ;;  %v10146_v21 = vld [vmem:[#allocation5 + $0x98] sm:$0xff] }
  0x5c   :  { %13827 = vst [vmem:[#allocation14_spill] sm:$0xff] %v10146_v21 }
  0x5e   :  { %539 = vadd.xlane.f32.xlu0 %v513_v26  ;;  %v10148_v26 = vld [vmem:[#allocation5 + $0xa0] sm:$0xff] }
  0x5f   :  { %541 = vadd.xlane.f32.xlu1 %v514_v27  ;;  %13828 = vst [vmem:[#allocation15_spill] sm:$0xff] %v10148_v26  ;;  %v531_v27 = vmul.f32 %v10146_v21, %v10146_v21 }
  0x62   :  { %543 = vadd.xlane.f32.xlu0 %v515_v32  ;;  %v532_v32 = vmul.f32 %v10148_v26, %v10148_v26 }
  0x63   :  { %545 = vadd.xlane.f32.xlu1 %v516_v33  ;;  %v10154_v33 = vld [vmem:[#allocation5 + $0xa8] sm:$0xff] }
  0x64   :  { %13829 = vst [vmem:[#allocation16_spill] sm:$0xff] %v10154_v33 }
  0x66   :  { %547 = vadd.xlane.f32.xlu0 %v517_v38  ;;  %v10156_v38 = vld [vmem:[#allocation5 + $0xb0] sm:$0xff] }
  0x67   :  { %549 = vadd.xlane.f32.xlu1 %v518_v39  ;;  %13830 = vst [vmem:[#allocation17_spill] sm:$0xff] %v10156_v38  ;;  %v533_v39 = vmul.f32 %v10154_v33, %v10154_v33 }
  0x6a   :  { %551 = vadd.xlane.f32.xlu0 %v519_v42  ;;  %v534_v42 = vmul.f32 %v10156_v38, %v10156_v38 }
  0x6b   :  { %553 = vadd.xlane.f32.xlu1 %v520_v45  ;;  %v10162_v45 = vld [vmem:[#allocation5 + $0xb8] sm:$0xff] }
  0x6c   :  { %13831 = vst [vmem:[#allocation18_spill] sm:$0xff] %v10162_v45 }
  0x6e   :  { %555 = vadd.xlane.f32.xlu0 %v521_v48  ;;  %v10164_v48 = vld [vmem:[#allocation5 + $0xc0] sm:$0xff] }
  0x6f   :  { %557 = vadd.xlane.f32.xlu1 %v522_v49  ;;  %13832 = vst [vmem:[#allocation19_spill] sm:$0xff] %v10164_v48  ;;  %v535_v49 = vmul.f32 %v10162_v45, %v10162_v45 }
  0x72   :  { %559 = vadd.xlane.f32.xlu0 %v523_v54  ;;  %v536_v54 = vmul.f32 %v10164_v48, %v10164_v48 }
  0x73   :  { %561 = vadd.xlane.f32.xlu1 %v524_v56 }
  0x76   :  { %563 = vadd.xlane.f32.xlu0 %v525_v61 }
  0x77   :  { %565 = vadd.xlane.f32.xlu1 %v526_v62 }
  0x7a   :  { %567 = vadd.xlane.f32.xlu0 %v527_v8 }
  0x7b   :  { %569 = vadd.xlane.f32.xlu1 %v528_v11 }
  0x7e   :  { %571 = vadd.xlane.f32.xlu0 %v529_v17 }
  0x7f   :  { %573 = vadd.xlane.f32.xlu1 %v530_v20 }
  0x82   :  { %575 = vadd.xlane.f32.xlu0 %v531_v27 }
  0x83   :  { %577 = vadd.xlane.f32.xlu1 %v532_v32 }
  0x86   :  { %579 = vadd.xlane.f32.xlu0 %v533_v39 }
  0x87   :  { %581 = vadd.xlane.f32.xlu1 %v534_v42 }
  0x8a   :  { %583 = vadd.xlane.f32.xlu0 %v535_v49 }
  0x8b   :  { %585 = vadd.xlane.f32.xlu1 %v536_v54 }
  0xb7   :  { %v106_v56 = vpop.xlane.xlu0 %105 }
  0xb8   :  { %v110_v61 = vpop.xlane.xlu1 %109  ;;  %v156_v62 = vmul.f32 0.0078125, %v106_v56 }
  0xb9   :  { %v158_v8 = vmul.f32 0.0078125, %v110_v61 }
  0xba   :  { %v181_v11 = vadd.f32 1e-06, %v156_v62 }
  0xbb   :  { %v108_v17 = vpop.xlane.xlu0 %107  ;;  %v183_v20 = vadd.f32 1e-06, %v158_v8 }
  0xbc   :  { %v112_v27 = vpop.xlane.xlu1 %111  ;;  %9474 = vrsqrt.f32 %v181_v11  ;;  %v157_v32 = vmul.f32 0.0078125, %v108_v17 }
  0xbd   :  { %v159_v39 = vmul.f32 0.0078125, %v112_v27  ;;  %9476 = vrsqrt.f32 %v183_v20 }
  0xbe   :  { %v182_v42 = vadd.f32 1e-06, %v157_v32 }
  0xbf   :  { %v114_v55 = vpop.xlane.xlu0 %113  ;;  %v184_v38 = vadd.f32 1e-06, %v159_v39 }
  0xc0   :  { %v116_v45 = vpop.xlane.xlu1 %115  ;;  %9478 = vrsqrt.f32 %v182_v42  ;;  %v160_v48 = vmul.f32 0.0078125, %v114_v55  ;;  %v10174_v55 = vld [vmem:[%s13657_s3] sm:$0xff] }
  0xc1   :  { %9480 = vrsqrt.f32 %v184_v38  ;;  %v161_v56 = vmul.f32 0.0078125, %v116_v45  ;;  %v13833_v38 = vmov 0.0  }
  0xc2   :  { %v185_v33 = vadd.f32 1e-06, %v160_v48 }
  0xc3   :  { %v118_v49 = vpop.xlane.xlu0 %117  ;;  %v186_v11 = vadd.f32 1e-06, %v161_v56 }
  0xc4   :  { %v120_v54 = vpop.xlane.xlu1 %119  ;;  %9482 = vrsqrt.f32 %v185_v33  ;;  %v162_v17 = vmul.f32 0.0078125, %v118_v49 }
  0xc5   :  { %9484 = vrsqrt.f32 %v186_v11  ;;  %v163_v32 = vmul.f32 0.0078125, %v120_v54 }
  0xc6   :  { %v9475_v61 = vpop.eup %9474  ;;  %v187_v48 = vadd.f32 1e-06, %v162_v17 }
  0xc7   :  { %v231_v62 = vmul.f32 %v9475_v61, %v9902_v1  ;;  %v122_v8 = vpop.xlane.xlu0 %121  ;;  %v9477_v20 = vpop.eup %9476  ;;  %v188_v61 = vadd.f32 1e-06, %v163_v32 }
  0xc8   :  { %v124_v26 = vpop.xlane.xlu1 %123  ;;  %v233_v39 = vmul.f32 %v9477_v20, %v9906_v3  ;;  %9486 = vrsqrt.f32 %v187_v48 }
  0xc9   :  { %7686 = vmatmul.mubr.f32.vlgmr.msra.gmra.mrb[0].mxu0 %v231_v62  ;;  %v164_v62 = vmul.f32 0.0078125, %v122_v8  ;;  %9488 = vrsqrt.f32 %v188_v61  ;;  %v165_v17 = vmul.f32 0.0078125, %v124_v26 }
  0xca   :  { %v9479_v27 = vpop.eup %9478  ;;  %7688 = vmatprep.mubr.msk.f32.mxu0 %vm9826_vm0, %v13833_v38  ;;  %7868 = vmatpush3.msk.msra.mxu0 %vm982_vm1, %v10174_v55 }
  0xcb   :  { %v232_v1 = vmul.f32 %v9479_v27, %v9904_v2  ;;  %v126_v45 = vpop.xlane.xlu0 %125  ;;  %8021 = vmatprep.subr.mxu0 %v13833_v38  ;;  %v9481_v42 = vpop.eup %9480  ;;  %v189_v3 = vadd.f32 1e-06, %v164_v62 }
  0xcc   :  { %v128_v33 = vpop.xlane.xlu1 %127  ;;  %v234_v2 = vmul.f32 %v9481_v42, %v9912_v6  ;;  %v190_v6 = vadd.f32 1e-06, %v165_v17  ;;  %v166_v32 = vmul.f32 0.0078125, %v126_v45 }
  0xcd   :  { %7689 = vmatmul.mubr.f32.gmra.mrb[2].mxu0 %v232_v1  ;;  %9490 = vrsqrt.f32 %v189_v3  ;;  %v167_v62 = vmul.f32 0.0078125, %v128_v33 }
  0xce   :  { %7691 = vmatprep.mubr.msk.f32.mxu0 %vm9826_vm0, %v13833_v38  ;;  %v9483_v27 = vpop.eup %9482  ;;  %9492 = vrsqrt.f32 %v190_v6  ;;  %v191_v61 = vadd.f32 1e-06, %v166_v32 }
  0xcf   :  { %v130_v49 = vpop.xlane.xlu0 %129  ;;  %v235_v20 = vmul.f32 %v9483_v27, %v9918_v9  ;;  %v9485_v1 = vpop.eup %9484  ;;  %v192_v3 = vadd.f32 1e-06, %v167_v62 }
  0xd0   :  { %v132_v56 = vpop.xlane.xlu1 %131  ;;  %9494 = vrsqrt.f32 %v191_v61  ;;  %v168_v17 = vmul.f32 0.0078125, %v130_v49 }
  0xd1   :  { %7692 = vmatmul.mubr.f32.gmra.mrb[4].mxu0 %v233_v39  ;;  %v236_v39 = vmul.f32 %v9485_v1, %v9920_v10  ;;  %9496 = vrsqrt.f32 %v192_v3  ;;  %v169_v32 = vmul.f32 0.0078125, %v132_v56 }
  0xd2   :  { %7694 = vmatprep.mubr.msk.f32.mxu0 %vm9826_vm0, %v13833_v38  ;;  %v9487_v42 = vpop.eup %9486  ;;  %v193_v6 = vadd.f32 1e-06, %v168_v17 }
  0xd3   :  { %v134_v54 = vpop.xlane.xlu0 %133  ;;  %v9489_v27 = vpop.eup %9488  ;;  %v194_v62 = vadd.f32 1e-06, %v169_v32 }
  0xd4   :  { %v136_v11 = vpop.xlane.xlu1 %135  ;;  %v170_v49 = vmul.f32 0.0078125, %v134_v54  ;;  %9498 = vrsqrt.f32 %v193_v6 }
  0xd5   :  { %7695 = vmatmul.mubr.f32.gmra.mrb[6].mxu0 %v234_v2  ;;  %v237_v2 = vmul.f32 %v9487_v42, %v9926_v13  ;;  %9500 = vrsqrt.f32 %v194_v62 }
  0xd6   :  { %7697 = vmatprep.mubr.msk.f32.mxu0 %vm9826_vm0, %v13833_v38 }
  0xd7   :  { %v10191_v8 = vpop.xlane.xlu0 %137  ;;  %v9491_v1 = vpop.eup %9490 }
  0xd8   :  { %v10193_v48 = vpop.xlane.xlu1 %139  ;;  %v9493_v42 = vpop.eup %9492 }
  0xd9   :  { %7698 = vmatmul.mubr.f32.gmra.mrb[8].mxu0 %v235_v20  ;;  %v238_v20 = vmul.f32 %v9489_v27, %v9928_v14  ;;  %v240_v27 = vmul.f32 %v9493_v42, %v9948_v23 }
  0xda   :  { %7700 = vmatprep.mubr.msk.f32.mxu0 %vm9826_vm0, %v13833_v38  ;;  %v9495_v3 = vpop.eup %9494 }
  0xdb   :  { %v10198_v26 = vpop.xlane.xlu0 %141  ;;  %v241_v6 = vmul.f32 %v9495_v3, %v9962_v29  ;;  %v9497_v32 = vpop.eup %9496 }
  0xdc   :  { %v10200_v9 = vpop.xlane.xlu1 %143  ;;  %v242_v62 = vmul.f32 %v9497_v32, %v9964_v30 }
  0xdd   :  { %7701 = vmatmul.mubr.f32.gmra.mrb[10].mxu0 %v236_v39  ;;  %v239_v39 = vmul.f32 %v9491_v1, %v9946_v22  ;;  %v195_v22 = vadd.f32 1e-06, %v170_v49  ;;  %v171_v1 = vmul.f32 0.0078125, %v136_v11 }
  0xde   :  { %7703 = vmatprep.mubr.msk.f32.mxu0 %vm9826_vm0, %v13833_v38 }
  0xdf   :  { %v10205_v45 = vpop.xlane.xlu0 %145  ;;  %v196_v49 = vadd.f32 1e-06, %v171_v1 }
  0xe0   :  { %v10207_v10 = vpop.xlane.xlu1 %147 }
  0xe1   :  { %7704 = vmatmul.mubr.f32.gmra.mrb[12].mxu0 %v237_v2 }
  0xe2   :  { %7706 = vmatprep.mubr.msk.f32.mxu0 %vm9826_vm0, %v13833_v38 }
  0xe3   :  { %v10212_v33 = vpop.xlane.xlu0 %149 }
  0xe4   :  { %v10214_v13 = vpop.xlane.xlu1 %151 }
  0xe5   :  { %7707 = vmatmul.mubr.f32.gmra.mrb[14].mxu0 %v238_v20 }
  0xe6   :  { %7709 = vmatprep.mubr.msk.f32.mxu0 %vm9826_vm0, %v13833_v38 }
  0xe7   :  { %v10219_v14 = vpop.xlane.xlu0 %153 }
  0xe8   :  { %v538_v61 = vpop.xlane.xlu1 %537 }
  0xe9   :  { %v587_v2 = vmul.f32 0.0078125, %v538_v61  ;;  %7710 = vmatmul.mubr.f32.gmra.mrb[16].mxu0 %v239_v39 }
  0xea   :  { %7712 = vmatprep.mubr.msk.f32.mxu0 %vm9826_vm0, %v13833_v38 }
  0xeb   :  { %v612_v56 = vadd.f32 1e-06, %v587_v2  ;;  %v540_v17 = vpop.xlane.xlu0 %539  ;;  %v172_v2 = vmul.f32 0.0078125, %v10191_v8 }
  0xec   :  { %v542_v20 = vpop.xlane.xlu1 %541  ;;  %v588_v54 = vmul.f32 0.0078125, %v540_v17 }
  0xed   :  { %v589_v21 = vmul.f32 0.0078125, %v542_v20  ;;  %7713 = vmatmul.mubr.f32.gmra.mrb[18].mxu0 %v240_v27  ;;  %9502 = vrsqrt.f32 %v612_v56  ;;  %v9499_v27 = vpop.eup %9498 }
  0xee   :  { %7715 = vmatprep.mubr.msk.f32.mxu0 %vm9826_vm0, %v13833_v38  ;;  %v613_v23 = vadd.f32 1e-06, %v588_v54  ;;  %9504 = vrsqrt.f32 %v195_v22  ;;  %v173_v22 = vmul.f32 0.0078125, %v10193_v48  ;;  %v243_v8 = vmul.f32 %v9499_v27, %v9978_v36  ;;  %v9501_v1 = vpop.eup %9500 }
  0xef   :  { %v614_v39 = vadd.f32 1e-06, %v589_v21  ;;  %v544_v42 = vpop.xlane.xlu0 %543  ;;  %v197_v21 = vadd.f32 1e-06, %v172_v2  ;;  %v244_v36 = vmul.f32 %v9501_v1, %v9980_v37  ;;  %v175_v37 = vmul.f32 0.0078125, %v10200_v9 }
  0xf0   :  { %v546_v61 = vpop.xlane.xlu1 %545  ;;  %9506 = vrsqrt.f32 %v613_v23  ;;  %v590_v11 = vmul.f32 0.0078125, %v544_v42  ;;  %v198_v32 = vadd.f32 1e-06, %v173_v22  ;;  %v174_v23 = vmul.f32 0.0078125, %v10198_v26 }
  0xf1   :  { %7716 = vmatmul.mubr.f32.gmra.mrb[20].mxu0 %v241_v6  ;;  %9508 = vrsqrt.f32 %v614_v39  ;;  %v591_v29 = vmul.f32 0.0078125, %v546_v61  ;;  %v1226_v6 = vcombine.high %v10174_v55, %v10174_v55  ;;  %v200_v9 = vadd.f32 1e-06, %v175_v37 }
  0xf2   :  { %7718 = vmatprep.mubr.msk.f32.mxu0 %vm9826_vm0, %v13833_v38  ;;  %v615_v3 = vadd.f32 1e-06, %v590_v11  ;;  %9510 = vrsqrt.f32 %v196_v49  ;;  %v199_v26 = vadd.f32 1e-06, %v174_v23 }
  0xf3   :  { %v548_v56 = vpop.xlane.xlu0 %547  ;;  %v616_v17 = vadd.f32 1e-06, %v591_v29 }
  0xf4   :  { %9512 = vrsqrt.f32 %v615_v3  ;;  %v592_v20 = vmul.f32 0.0078125, %v548_v56  ;;  %v550_v30 = vpop.xlane.xlu1 %549 }
  0xf5   :  { %7719 = vmatmul.mubr.f32.gmra.mrb[22].mxu0 %v242_v62  ;;  %9514 = vrsqrt.f32 %v197_v21  ;;  %v593_v61 = vmul.f32 0.0078125, %v550_v30  ;;  %v176_v21 = vmul.f32 0.0078125, %v10205_v45  ;;  %v177_v30 = vmul.f32 0.0078125, %v10207_v10 }
  0xf6   :  { %7721 = vmatprep.mubr.msk.f32.mxu0 %vm9826_vm0, %v13833_v38  ;;  %9516 = vrsqrt.f32 %v616_v17  ;;  %v617_v42 = vadd.f32 1e-06, %v592_v20 }
  0xf7   :  { %v9503_v54 = vpop.eup %9502  ;;  %v552_v2 = vpop.xlane.xlu0 %551  ;;  %9518 = vrsqrt.f32 %v198_v32  ;;  %v618_v62 = vadd.f32 1e-06, %v593_v61  ;;  %v201_v45 = vadd.f32 1e-06, %v176_v21  ;;  %v202_v10 = vadd.f32 1e-06, %v177_v30 }
  0xf8   :  { %v662_v48 = vmul.f32 %v9503_v54, %v10068_v19  ;;  %v9505_v39 = vpop.eup %9504  ;;  %9520 = vrsqrt.f32 %v617_v42  ;;  %v594_v29 = vmul.f32 0.0078125, %v552_v2 }
  0xf9   :  { %7722 = vmatmul.mubr.f32.gmra.mrb[24].mxu0 %v243_v8  ;;  %v245_v11 = vmul.f32 %v9505_v39, %v9994_v43  ;;  %9522 = vrsqrt.f32 %v199_v26  ;;  %v178_v39 = vmul.f32 0.0078125, %v10212_v33 }
  0xfa   :  { %v9507_v49 = vpop.eup %9506  ;;  %7724 = vmatprep.mubr.msk.f32.mxu0 %vm9826_vm0, %v13833_v38  ;;  %7793 = vmatmul.mubr.f32.vlgmr.msra.gmra.mrb[0].mxu1 %v662_v48  ;;  %9524 = vrsqrt.f32 %v618_v62  ;;  %v619_v22 = vadd.f32 1e-06, %v594_v29  ;;  %v180_v29 = vmul.f32 0.0078125, %v10219_v14 }
  0xfb   :  { %v9509_v55 = vpop.eup %9508  ;;  %7945 = vmatpush3.msk.msra.mxu1 %vm982_vm1, %v1226_v6  ;;  %7795 = vmatprep.mubr.msk.f32.mxu1 %vm9826_vm0, %v13833_v38  ;;  %v663_v19 = vmul.f32 %v9507_v49, %v10074_v24  ;;  %v554_v24 = vpop.xlane.xlu1 %553  ;;  %9526 = vrsqrt.f32 %v200_v9  ;;  %v203_v33 = vadd.f32 1e-06, %v178_v39 }
  0xfc   :  { %8098 = vmatprep.subr.mxu1 %v13833_v38  ;;  %v9511_v27 = vpop.eup %9510  ;;  %v664_v3 = vmul.f32 %v9509_v55, %v10076_v25  ;;  %v595_v8 = vmul.f32 0.0078125, %v554_v24  ;;  %v556_v20 = vpop.xlane.xlu0 %555  ;;  %9528 = vrsqrt.f32 %v619_v22  ;;  %v179_v55 = vmul.f32 0.0078125, %v10214_v13 }
  0xfd   :  { %7725 = vmatmul.mubr.f32.gmra.mrb[26].mxu0 %v244_v36  ;;  %v246_v43 = vmul.f32 %v9511_v27, %v9996_v44  ;;  %v596_v6 = vmul.f32 0.0078125, %v556_v20  ;;  %9530 = vrsqrt.f32 %v201_v45  ;;  %v205_v14 = vadd.f32 1e-06, %v180_v29 }
  0xfe   :  { %7727 = vmatprep.mubr.msk.f32.mxu0 %vm9826_vm0, %v13833_v38  ;;  %7796 = vmatmul.mubr.f32.gmra.mrb[2].mxu1 %v663_v19  ;;  %v9513_v56 = vpop.eup %9512  ;;  %v620_v54 = vadd.f32 1e-06, %v595_v8  ;;  %v204_v13 = vadd.f32 1e-06, %v179_v55 }
  0xff   :  { %7798 = vmatprep.mubr.msk.f32.mxu1 %vm9826_vm0, %v13833_v38  ;;  %v9515_v17 = vpop.eup %9514  ;;  %v665_v25 = vmul.f32 %v9513_v56, %v10082_v28  ;;  %v558_v23 = vpop.xlane.xlu1 %557  ;;  %v621_v36 = vadd.f32 1e-06, %v596_v6 }
 0x100   :  { %v9517_v1 = vpop.eup %9516  ;;  %v247_v44 = vmul.f32 %v9515_v17, %v10010_v50  ;;  %9532 = vrsqrt.f32 %v620_v54  ;;  %v597_v42 = vmul.f32 0.0078125, %v558_v23  ;;  %v560_v49 = vpop.xlane.xlu0 %559 }
 0x101   :  { %7728 = vmatmul.mubr.f32.gmra.mrb[28].mxu0 %v245_v11  ;;  %v9519_v32 = vpop.eup %9518  ;;  %v666_v28 = vmul.f32 %v9517_v1, %v10084_v31  ;;  %9534 = vrsqrt.f32 %v202_v10  ;;  %v598_v26 = vmul.f32 0.0078125, %v560_v49 }
 0x102   :  { %7730 = vmatprep.mubr.msk.f32.mxu0 %vm9826_vm0, %v13833_v38  ;;  %7799 = vmatmul.mubr.f32.gmra.mrb[4].mxu1 %v664_v3  ;;  %v9521_v48 = vpop.eup %9520  ;;  %v248_v50 = vmul.f32 %v9519_v32, %v10012_v51  ;;  %9536 = vrsqrt.f32 %v621_v36  ;;  %v622_v19 = vadd.f32 1e-06, %v597_v42 }
 0x103   :  { %7801 = vmatprep.mubr.msk.f32.mxu1 %vm9826_vm0, %v13833_v38  ;;  %v9523_v61 = vpop.eup %9522  ;;  %v667_v31 = vmul.f32 %v9521_v48, %v10090_v34  ;;  %v562_v11 = vpop.xlane.xlu1 %561  ;;  %9538 = vrsqrt.f32 %v203_v33  ;;  %v623_v27 = vadd.f32 1e-06, %v598_v26 }
 0x104   :  { %v9525_v2 = vpop.eup %9524  ;;  %v249_v51 = vmul.f32 %v9523_v61, %v10030_v58  ;;  %9540 = vrsqrt.f32 %v622_v19  ;;  %v599_v3 = vmul.f32 0.0078125, %v562_v11  ;;  %v564_v56 = vpop.xlane.xlu0 %563 }
 0x105   :  { %7731 = vmatmul.mubr.f32.gmra.mrb[30].mxu0 %v246_v43  ;;  %v9527_v37 = vpop.eup %9526  ;;  %v668_v34 = vmul.f32 %v9525_v2, %v10092_v35  ;;  %9542 = vrsqrt.f32 %v204_v13  ;;  %v600_v43 = vmul.f32 0.0078125, %v564_v56 }
 0x106   :  { %7733 = vmatprep.mubr.msk.f32.mxu0 %vm9826_vm0, %v13833_v38  ;;  %7802 = vmatmul.mubr.f32.gmra.mrb[6].mxu1 %v665_v25  ;;  %v9529_v62 = vpop.eup %9528  ;;  %v250_v58 = vmul.f32 %v9527_v37, %v10032_v59  ;;  %9544 = vrsqrt.f32 %v623_v27  ;;  %v624_v21 = vadd.f32 1e-06, %v599_v3 }
 0x107   :  { %7804 = vmatprep.mubr.msk.f32.mxu1 %vm9826_vm0, %v13833_v38  ;;  %v9531_v24 = vpop.eup %9530  ;;  %v669_v35 = vmul.f32 %v9529_v62, %v10098_v40  ;;  %v566_v8 = vpop.xlane.xlu1 %565  ;;  %9546 = vrsqrt.f32 %v205_v14 }
 0x108   :  { %v251_v59 = vmul.f32 %v9531_v24, %v10046_v5  ;;  %9548 = vrsqrt.f32 %v624_v21  ;;  %v625_v5 = vadd.f32 1e-06, %v600_v43  ;;  %v601_v20 = vmul.f32 0.0078125, %v566_v8 }
 0x109   :  { %7734 = vmatmul.mubr.f32.gmra.mrb[32].mxu0 %v247_v44 }
 0x10a   :  { %7736 = vmatprep.mubr.msk.f32.mxu0 %vm9826_vm0, %v13833_v38  ;;  %7805 = vmatmul.mubr.f32.gmra.mrb[8].mxu1 %v666_v28  ;;  %v9533_v9 = vpop.eup %9532  ;;  %9550 = vrsqrt.f32 %v625_v5  ;;  %v13835_v5 = vld [vmem:[#allocation15_spill] sm:$0xff] }
 0x10b   :  { %7807 = vmatprep.mubr.msk.f32.mxu1 %vm9826_vm0, %v13833_v38  ;;  %v9535_v22 = vpop.eup %9534  ;;  %v670_v40 = vmul.f32 %v9533_v9, %v10100_v41  ;;  %v568_v41 = vpop.xlane.xlu0 %567 }
 0x10c   :  { %v9537_v17 = vpop.eup %9536  ;;  %v252_v25 = vmul.f32 %v9535_v22, %v10048_v7  ;;  %v626_v7 = vadd.f32 1e-06, %v601_v20  ;;  %v602_v54 = vmul.f32 0.0078125, %v568_v41  ;;  %v570_v28 = vpop.xlane.xlu1 %569 }
 0x10d   :  { %7737 = vmatmul.mubr.f32.gmra.mrb[34].mxu0 %v248_v50  ;;  %v9539_v1 = vpop.eup %9538  ;;  %v671_v45 = vmul.f32 %v9537_v17, %v10106_v46  ;;  %v603_v48 = vmul.f32 0.0078125, %v570_v28  ;;  %v13839_v28 = vld [vmem:[#allocation19_spill] sm:$0xff] }
 0x10e   :  { %7739 = vmatprep.mubr.msk.f32.mxu0 %vm9826_vm0, %v13833_v38  ;;  %7808 = vmatmul.mubr.f32.gmra.mrb[10].mxu1 %v667_v31  ;;  %v9541_v30 = vpop.eup %9540  ;;  %v253_v44 = vmul.f32 %v9539_v1, %v10056_v15  ;;  %9552 = vrsqrt.f32 %v626_v7  ;;  %v627_v15 = vadd.f32 1e-06, %v602_v54  ;;  %v13836_v1 = vld [vmem:[#allocation16_spill] sm:$0xff]  ;;  %v13838_v54 = vld [vmem:[#allocation18_spill] sm:$0xff] }
 0x10f   :  { %7810 = vmatprep.mubr.msk.f32.mxu1 %vm9826_vm0, %v13833_v38  ;;  %v9543_v6 = vpop.eup %9542  ;;  %v672_v32 = vmul.f32 %v9541_v30, %v10108_v47  ;;  %v572_v50 = vpop.xlane.xlu0 %571  ;;  %v13837_v30 = vld [vmem:[#allocation17_spill] sm:$0xff] }
 0x110   :  { %v9545_v46 = vpop.eup %9544  ;;  %v254_v23 = vmul.f32 %v9543_v6, %v10058_v16  ;;  %9554 = vrsqrt.f32 %v627_v15  ;;  %v628_v16 = vadd.f32 1e-06, %v603_v48  ;;  %v604_v42 = vmul.f32 0.0078125, %v572_v50  ;;  %v574_v31 = vpop.xlane.xlu1 %573 }
 0x111   :  { %7740 = vmatmul.mubr.f32.gmra.mrb[36].mxu0 %v249_v51  ;;  %v9547_v10 = vpop.eup %9546  ;;  %v673_v39 = vmul.f32 %v9545_v46, %v10114_v52  ;;  %v605_v2 = vmul.f32 0.0078125, %v574_v31 }
 0x112   :  { %7742 = vmatprep.mubr.msk.f32.mxu0 %vm9826_vm0, %v13833_v38  ;;  %7811 = vmatmul.mubr.f32.gmra.mrb[12].mxu1 %v668_v34  ;;  %v9549_v47 = vpop.eup %9548  ;;  %v255_v36 = vmul.f32 %v9547_v10, %v10066_v18  ;;  %9556 = vrsqrt.f32 %v628_v16  ;;  %v629_v52 = vadd.f32 1e-06, %v604_v42 }
 0x113   :  { %7813 = vmatprep.mubr.msk.f32.mxu1 %vm9826_vm0, %v13833_v38  ;;  %v674_v61 = vmul.f32 %v9549_v47, %v10116_v53  ;;  %v576_v33 = vpop.xlane.xlu0 %575  ;;  %v630_v53 = vadd.f32 1e-06, %v605_v2 }
 0x114   :  { %v9551_v49 = vpop.eup %9550  ;;  %9558 = vrsqrt.f32 %v629_v52  ;;  %v606_v51 = vmul.f32 0.0078125, %v576_v33  ;;  %v578_v26 = vpop.xlane.xlu1 %577 }
 0x115   :  { %7743 = vmatmul.mubr.f32.gmra.mrb[38].mxu0 %v250_v58  ;;  %v675_v18 = vmul.f32 %v9551_v49, %v10122_v57  ;;  %9560 = vrsqrt.f32 %v630_v53  ;;  %v607_v34 = vmul.f32 0.0078125, %v578_v26 }
 0x116   :  { %7745 = vmatprep.mubr.msk.f32.mxu0 %vm9826_vm0, %v13833_v38  ;;  %7814 = vmatmul.mubr.f32.gmra.mrb[14].mxu1 %v669_v35  ;;  %v631_v57 = vadd.f32 1e-06, %v606_v51 }
 0x117   :  { %7816 = vmatprep.mubr.msk.f32.mxu1 %vm9826_vm0, %v13833_v38  ;;  %v580_v62 = vpop.xlane.xlu0 %579  ;;  %v632_v29 = vadd.f32 1e-06, %v607_v34 }
 0x118   :  { %v9553_v55 = vpop.eup %9552  ;;  %9562 = vrsqrt.f32 %v631_v57  ;;  %v608_v58 = vmul.f32 0.0078125, %v580_v62  ;;  %v582_v27 = vpop.xlane.xlu1 %581 }
 0x119   :  { %7746 = vmatmul.mubr.f32.gmra.mrb[40].mxu0 %v251_v59  ;;  %v676_v19 = vmul.f32 %v9553_v55, %v10124_v60  ;;  %9564 = vrsqrt.f32 %v632_v29  ;;  %v609_v35 = vmul.f32 0.0078125, %v582_v27 }
 0x11a   :  { %7748 = vmatprep.mubr.msk.f32.mxu0 %vm9826_vm0, %v13833_v38  ;;  %7817 = vmatmul.mubr.f32.gmra.mrb[16].mxu1 %v670_v40  ;;  %v9555_v37 = vpop.eup %9554  ;;  %v633_v24 = vadd.f32 1e-06, %v608_v58 }
 0x11b   :  { %7819 = vmatprep.mubr.msk.f32.mxu1 %vm9826_vm0, %v13833_v38  ;;  %v677_v11 = vmul.f32 %v9555_v37, %v10130_v63  ;;  %v584_v56 = vpop.xlane.xlu0 %583  ;;  %v634_v14 = vadd.f32 1e-06, %v609_v35 }
 0x11c   :  { %v9557_v13 = vpop.eup %9556  ;;  %9566 = vrsqrt.f32 %v633_v24  ;;  %v610_v59 = vmul.f32 0.0078125, %v584_v56  ;;  %v586_v21 = vpop.xlane.xlu1 %585 }
 0x11d   :  { %7749 = vmatmul.mubr.f32.gmra.mrb[42].mxu0 %v252_v25  ;;  %v678_v60 = vmul.f32 %v9557_v13, %v10132_v4  ;;  %9568 = vrsqrt.f32 %v634_v14  ;;  %v611_v40 = vmul.f32 0.0078125, %v586_v21 }
 0x11e   :  { %7751 = vmatprep.mubr.msk.f32.mxu0 %vm9826_vm0, %v13833_v38  ;;  %7820 = vmatmul.mubr.f32.gmra.mrb[18].mxu1 %v671_v45  ;;  %v9559_v3 = vpop.eup %9558  ;;  %v635_v22 = vadd.f32 1e-06, %v610_v59 }
 0x11f   :  { %7822 = vmatprep.mubr.msk.f32.mxu1 %vm9826_vm0, %v13833_v38  ;;  %v679_v63 = vmul.f32 %v9559_v3, %v10138_v12  ;;  %v9561_v9 = vpop.eup %9560  ;;  %v13834_v12 = vld [vmem:[#allocation14_spill] sm:$0xff]  ;;  %v636_v25 = vadd.f32 1e-06, %v611_v40 }
 0x120   :  { %v680_v4 = vmul.f32 %v9561_v9, %v10140_v0  ;;  %9570 = vrsqrt.f32 %v635_v22 }
 0x121   :  { %7752 = vmatmul.mubr.f32.gmra.mrb[44].mxu0 %v253_v44  ;;  %9572 = vrsqrt.f32 %v636_v25 }
 0x122   :  { %7754 = vmatprep.mubr.msk.f32.mxu0 %vm9826_vm0, %v13833_v38  ;;  %7823 = vmatmul.mubr.f32.gmra.mrb[20].mxu1 %v672_v32  ;;  %v9563_v43 = vpop.eup %9562 }
 0x123   :  { %7825 = vmatprep.mubr.msk.f32.mxu1 %vm9826_vm0, %v13833_v38  ;;  %v681_v8 = vmul.f32 %v9563_v43, %v13834_v12  ;;  %v9565_v17 = vpop.eup %9564 }
 0x124   :  { %v682_v0 = vmul.f32 %v9565_v17, %v13835_v5 }
 0x125   :  { %7755 = vmatmul.mubr.f32.gmra.mrb[46].mxu0 %v254_v23 }
 0x126   :  { %7757 = vmatprep.mubr.msk.f32.mxu0 %vm9826_vm0, %v13833_v38  ;;  %7826 = vmatmul.mubr.f32.gmra.mrb[22].mxu1 %v673_v39  ;;  %v9567_v20 = vpop.eup %9566  ;;  %v905_v39 = vld [vmem:[%s13657_s3 + $0x8] sm:$0xff] }
 0x127   :  { %7828 = vmatprep.mubr.msk.f32.mxu1 %vm9826_vm0, %v13833_v38  ;;  %v683_v45 = vmul.f32 %v9567_v20, %v13836_v1  ;;  %v9569_v41 = vpop.eup %9568 }
 0x128   :  { %v684_v44 = vmul.f32 %v9569_v41, %v13837_v30 }
 0x129   :  { %7758 = vmatmul.mubr.f32.gmra.mrb[48].mxu0 %v255_v36  ;;  %v1764_v36 = vcombine.high %v905_v39, %v905_v39 }
 0x12a   :  { %7829 = vmatmul.mubr.f32.gmra.mrb[24].mxu1 %v674_v61  ;;  %7869 = vmatprep.mubr.msk.f32.mxu0 %vm9826_vm0, %v13833_v38  ;;  %v9571_v7 = vpop.eup %9570 }
 0x12b   :  { %7831 = vmatprep.mubr.msk.f32.mxu1 %vm9826_vm0, %v13833_v38  ;;  %v685_v6 = vmul.f32 %v9571_v7, %v13838_v54  ;;  %v9573_v32 = vpop.eup %9572 }
 0x12c   :  { %v686_v46 = vmul.f32 %v9573_v32, %v13839_v28 }
 0x12e   :  { %7832 = vmatmul.mubr.f32.gmra.mrb[26].mxu1 %v675_v18 }
 0x12f   :  { %7834 = vmatprep.mubr.msk.f32.mxu1 %vm9826_vm0, %v13833_v38 }
 0x132   :  { %7835 = vmatmul.mubr.f32.gmra.mrb[28].mxu1 %v676_v19 }
 0x133   :  { %7837 = vmatprep.mubr.msk.f32.mxu1 %vm9826_vm0, %v13833_v38 }
 0x136   :  { %7838 = vmatmul.mubr.f32.gmra.mrb[30].mxu1 %v677_v11 }
 0x137   :  { %7840 = vmatprep.mubr.msk.f32.mxu1 %vm9826_vm0, %v13833_v38 }
 0x13a   :  { %7841 = vmatmul.mubr.f32.gmra.mrb[32].mxu1 %v678_v60 }
 0x13b   :  { %7843 = vmatprep.mubr.msk.f32.mxu1 %vm9826_vm0, %v13833_v38 }
 0x13e   :  { %7844 = vmatmul.mubr.f32.gmra.mrb[34].mxu1 %v679_v63 }
 0x13f   :  { %7846 = vmatprep.mubr.msk.f32.mxu1 %vm9826_vm0, %v13833_v38 }
 0x142   :  { %7847 = vmatmul.mubr.f32.gmra.mrb[36].mxu1 %v680_v4 }
 0x143   :  { %7849 = vmatprep.mubr.msk.f32.mxu1 %vm9826_vm0, %v13833_v38 }
 0x146   :  { %7850 = vmatmul.mubr.f32.gmra.mrb[38].mxu1 %v681_v8 }
 0x147   :  { %7852 = vmatprep.mubr.msk.f32.mxu1 %vm9826_vm0, %v13833_v38 }
 0x14a   :  { %7853 = vmatmul.mubr.f32.gmra.mrb[40].mxu1 %v682_v0 }
 0x14b   :  { %7855 = vmatprep.mubr.msk.f32.mxu1 %vm9826_vm0, %v13833_v38 }
 0x14e   :  { %7856 = vmatmul.mubr.f32.gmra.mrb[42].mxu1 %v683_v45 }
 0x14f   :  { %7858 = vmatprep.mubr.msk.f32.mxu1 %vm9826_vm0, %v13833_v38 }
 0x152   :  { %7859 = vmatmul.mubr.f32.gmra.mrb[44].mxu1 %v684_v44 }
 0x153   :  { %7861 = vmatprep.mubr.msk.f32.mxu1 %vm9826_vm0, %v13833_v38 }
 0x156   :  { %7862 = vmatmul.mubr.f32.gmra.mrb[46].mxu1 %v685_v6 }
 0x157   :  { %7864 = vmatprep.mubr.msk.f32.mxu1 %vm9826_vm0, %v13833_v38 }
 0x15a   :  { %7865 = vmatmul.mubr.f32.gmra.mrb[48].mxu1 %v686_v46 }
 0x15b   :  { %7946 = vmatprep.mubr.msk.f32.mxu1 %vm9826_vm0, %v13833_v38 }
 0x19c   :  { %v338_v23 = vpop.f32.mrb[0].mxu0 }
 0x19d   :  { %9574 = vtanh.f32 %v338_v23  ;;  %v7687_v15 = vpop.f32.mrb[1].mxu0 }
 0x1a0   :  { %v343_v48 = vpop.f32.mrb[2].mxu0 }
 0x1a1   :  { %9576 = vtanh.f32 %v343_v48  ;;  %v7690_v10 = vpop.f32.mrb[3].mxu0 }
 0x1a4   :  { %v348_v50 = vpop.f32.mrb[4].mxu0 }
 0x1a5   :  { %9578 = vtanh.f32 %v348_v50  ;;  %v7693_v47 = vpop.f32.mrb[5].mxu0 }
 0x1a7   :  { %v10362_v16 = vpop.eup %9574 }
 0x1a8   :  { %13840 = vst [vmem:[#allocation14_spill] sm:$0xff] %v10362_v16  ;;  %v353_v42 = vpop.f32.mrb[6].mxu0  ;;  %7870 = vmatmul.mubr.msk.f32.vlgmr.msra.gmra.mrb[50].mxu0 %vm906_vm2, %v10362_v16  ;;  %7947 = vmatmul.mubr.msk.f32.vlgmr.msra.gmra.mrb[50].mxu1 %vm906_vm2, %v10362_v16 }
 0x1a9   :  { %9580 = vtanh.f32 %v353_v42  ;;  %8022 = vmatpush3.msk.msra.mxu0 %vm982_vm1, %v905_v39  ;;  %8099 = vmatpush3.msk.msra.mxu1 %vm982_vm1, %v1764_v36  ;;  %v7696_v61 = vpop.f32.mrb[7].mxu0 }
 0x1aa   :  { %7872 = vmatprep.mubr.msk.f32.mxu0 %vm9826_vm0, %v13833_v38  ;;  %7949 = vmatprep.mubr.msk.f32.mxu1 %vm9826_vm0, %v13833_v38 }
 0x1ab   :  { %v10374_v31 = vpop.eup %9576  ;;  %8175 = vmatprep.subr.mxu0 %v13833_v38  ;;  %8252 = vmatprep.subr.mxu1 %v13833_v38 }
 0x1ac   :  { %13841 = vst [vmem:[#allocation15_spill] sm:$0xff] %v10374_v31  ;;  %v358_v49 = vpop.f32.mrb[8].mxu0  ;;  %7873 = vmatmul.mubr.msk.f32.gmra.mrb[52].mxu0 %vm906_vm2, %v10374_v31  ;;  %7950 = vmatmul.mubr.msk.f32.gmra.mrb[52].mxu1 %vm906_vm2, %v10374_v31 }
 0x1ad   :  { %9582 = vtanh.f32 %v358_v49  ;;  %v7699_v52 = vpop.f32.mrb[9].mxu0  ;;  %7875 = vmatprep.mubr.msk.f32.mxu0 %vm9826_vm0, %v13833_v38  ;;  %7952 = vmatprep.mubr.msk.f32.mxu1 %vm9826_vm0, %v13833_v38 }
 0x1af   :  { %v10386_v2 = vpop.eup %9578 }
 0x1b0   :  { %13842 = vst [vmem:[#allocation16_spill] sm:$0xff] %v10386_v2  ;;  %v363_v18 = vpop.f32.mrb[10].mxu0  ;;  %7876 = vmatmul.mubr.msk.f32.gmra.mrb[54].mxu0 %vm906_vm2, %v10386_v2  ;;  %7953 = vmatmul.mubr.msk.f32.gmra.mrb[54].mxu1 %vm906_vm2, %v10386_v2 }
 0x1b1   :  { %9584 = vtanh.f32 %v363_v18  ;;  %v7702_v33 = vpop.f32.mrb[11].mxu0  ;;  %7878 = vmatprep.mubr.msk.f32.mxu0 %vm9826_vm0, %v13833_v38  ;;  %7955 = vmatprep.mubr.msk.f32.mxu1 %vm9826_vm0, %v13833_v38 }
 0x1b3   :  { %v10396_v55 = vpop.eup %9580 }
 0x1b4   :  { %13843 = vst [vmem:[#allocation17_spill] sm:$0xff] %v10396_v55  ;;  %v368_v53 = vpop.f32.mrb[12].mxu0  ;;  %7879 = vmatmul.mubr.msk.f32.gmra.mrb[56].mxu0 %vm906_vm2, %v10396_v55  ;;  %7956 = vmatmul.mubr.msk.f32.gmra.mrb[56].mxu1 %vm906_vm2, %v10396_v55 }
 0x1b5   :  { %9586 = vtanh.f32 %v368_v53  ;;  %v7705_v51 = vpop.f32.mrb[13].mxu0  ;;  %7881 = vmatprep.mubr.msk.f32.mxu0 %vm9826_vm0, %v13833_v38  ;;  %7958 = vmatprep.mubr.msk.f32.mxu1 %vm9826_vm0, %v13833_v38 }
 0x1b7   :  { %v10406_v19 = vpop.eup %9582 }
 0x1b8   :  { %13844 = vst [vmem:[#allocation18_spill] sm:$0xff] %v10406_v19  ;;  %v373_v26 = vpop.f32.mrb[14].mxu0  ;;  %7882 = vmatmul.mubr.msk.f32.gmra.mrb[58].mxu0 %vm906_vm2, %v10406_v19  ;;  %7959 = vmatmul.mubr.msk.f32.gmra.mrb[58].mxu1 %vm906_vm2, %v10406_v19 }
 0x1b9   :  { %9588 = vtanh.f32 %v373_v26  ;;  %v7708_v37 = vpop.f32.mrb[15].mxu0  ;;  %7884 = vmatprep.mubr.msk.f32.mxu0 %vm9826_vm0, %v13833_v38  ;;  %7961 = vmatprep.mubr.msk.f32.mxu1 %vm9826_vm0, %v13833_v38 }
 0x1bb   :  { %v10416_v57 = vpop.eup %9584 }
 0x1bc   :  { %v378_v34 = vpop.f32.mrb[16].mxu0  ;;  %7885 = vmatmul.mubr.msk.f32.gmra.mrb[60].mxu0 %vm906_vm2, %v10416_v57  ;;  %7962 = vmatmul.mubr.msk.f32.gmra.mrb[60].mxu1 %vm906_vm2, %v10416_v57 }
 0x1bd   :  { %9590 = vtanh.f32 %v378_v34  ;;  %v7711_v11 = vpop.f32.mrb[17].mxu0  ;;  %7887 = vmatprep.mubr.msk.f32.mxu0 %vm9826_vm0, %v13833_v38  ;;  %7964 = vmatprep.mubr.msk.f32.mxu1 %vm9826_vm0, %v13833_v38 }
 0x1bf   :  { %v10426_v62 = vpop.eup %9586 }
 0x1c0   :  { %v383_v13 = vpop.f32.mrb[18].mxu0  ;;  %7888 = vmatmul.mubr.msk.f32.gmra.mrb[62].mxu0 %vm906_vm2, %v10426_v62  ;;  %7965 = vmatmul.mubr.msk.f32.gmra.mrb[62].mxu1 %vm906_vm2, %v10426_v62 }
 0x1c1   :  { %9592 = vtanh.f32 %v383_v13  ;;  %v7714_v29 = vpop.f32.mrb[19].mxu0  ;;  %7890 = vmatprep.mubr.msk.f32.mxu0 %vm9826_vm0, %v13833_v38  ;;  %7967 = vmatprep.mubr.msk.f32.mxu1 %vm9826_vm0, %v13833_v38 }
 0x1c3   :  { %v10436_v58 = vpop.eup %9588 }
 0x1c4   :  { %v388_v60 = vpop.f32.mrb[20].mxu0  ;;  %7891 = vmatmul.mubr.msk.f32.gmra.mrb[64].mxu0 %vm906_vm2, %v10436_v58  ;;  %7968 = vmatmul.mubr.msk.f32.gmra.mrb[64].mxu1 %vm906_vm2, %v10436_v58 }
 0x1c5   :  { %9594 = vtanh.f32 %v388_v60  ;;  %v7717_v27 = vpop.f32.mrb[21].mxu0  ;;  %7893 = vmatprep.mubr.msk.f32.mxu0 %vm9826_vm0, %v13833_v38  ;;  %7970 = vmatprep.mubr.msk.f32.mxu1 %vm9826_vm0, %v13833_v38 }
 0x1c7   :  { %v10446_v3 = vpop.eup %9590 }
 0x1c8   :  { %v393_v24 = vpop.f32.mrb[22].mxu0  ;;  %7894 = vmatmul.mubr.msk.f32.gmra.mrb[66].mxu0 %vm906_vm2, %v10446_v3  ;;  %7971 = vmatmul.mubr.msk.f32.gmra.mrb[66].mxu1 %vm906_vm2, %v10446_v3 }
 0x1c9   :  { %9596 = vtanh.f32 %v393_v24  ;;  %v7720_v35 = vpop.f32.mrb[23].mxu0  ;;  %7896 = vmatprep.mubr.msk.f32.mxu0 %vm9826_vm0, %v13833_v38  ;;  %7973 = vmatprep.mubr.msk.f32.mxu1 %vm9826_vm0, %v13833_v38 }
 0x1cb   :  { %v10456_v63 = vpop.eup %9592 }
 0x1cc   :  { %v398_v56 = vpop.f32.mrb[24].mxu0  ;;  %7897 = vmatmul.mubr.msk.f32.gmra.mrb[68].mxu0 %vm906_vm2, %v10456_v63  ;;  %7974 = vmatmul.mubr.msk.f32.gmra.mrb[68].mxu1 %vm906_vm2, %v10456_v63 }
 0x1cd   :  { %9598 = vtanh.f32 %v398_v56  ;;  %v7723_v9 = vpop.f32.mrb[25].mxu0  ;;  %7899 = vmatprep.mubr.msk.f32.mxu0 %vm9826_vm0, %v13833_v38  ;;  %7976 = vmatprep.mubr.msk.f32.mxu1 %vm9826_vm0, %v13833_v38  ;;  %v10466_v14 = vpop.f32.mrb[0].mxu1 }
 0x1ce   :  { %v7794_v59 = vpop.f32.mrb[1].mxu1 }
 0x1cf   :  { %v10468_v4 = vpop.eup %9594 }
 0x1d0   :  { %v403_v21 = vpop.f32.mrb[26].mxu0  ;;  %7900 = vmatmul.mubr.msk.f32.gmra.mrb[70].mxu0 %vm906_vm2, %v10468_v4  ;;  %7977 = vmatmul.mubr.msk.f32.gmra.mrb[70].mxu1 %vm906_vm2, %v10468_v4 }
 0x1d1   :  { %9600 = vtanh.f32 %v403_v21  ;;  %v7726_v43 = vpop.f32.mrb[27].mxu0  ;;  %7902 = vmatprep.mubr.msk.f32.mxu0 %vm9826_vm0, %v13833_v38  ;;  %7979 = vmatprep.mubr.msk.f32.mxu1 %vm9826_vm0, %v13833_v38  ;;  %v10478_v22 = vpop.f32.mrb[2].mxu1 }
 0x1d2   :  { %v7797_v40 = vpop.f32.mrb[3].mxu1 }
 0x1d3   :  { %v10480_v12 = vpop.eup %9596 }
 0x1d4   :  { %v408_v8 = vpop.f32.mrb[28].mxu0  ;;  %7903 = vmatmul.mubr.msk.f32.gmra.mrb[72].mxu0 %vm906_vm2, %v10480_v12  ;;  %7980 = vmatmul.mubr.msk.f32.gmra.mrb[72].mxu1 %vm906_vm2, %v10480_v12 }
 0x1d5   :  { %9602 = vtanh.f32 %v408_v8  ;;  %v7729_v17 = vpop.f32.mrb[29].mxu0  ;;  %7905 = vmatprep.mubr.msk.f32.mxu0 %vm9826_vm0, %v13833_v38  ;;  %7982 = vmatprep.mubr.msk.f32.mxu1 %vm9826_vm0, %v13833_v38  ;;  %v10490_v25 = vpop.f32.mrb[4].mxu1 }
 0x1d6   :  { %v7800_v5 = vpop.f32.mrb[5].mxu1 }
 0x1d7   :  { %v10492_v0 = vpop.eup %9598 }
 0x1d8   :  { %v413_v20 = vpop.f32.mrb[30].mxu0  ;;  %7906 = vmatmul.mubr.msk.f32.gmra.mrb[74].mxu0 %vm906_vm2, %v10492_v0  ;;  %7983 = vmatmul.mubr.msk.f32.gmra.mrb[74].mxu1 %vm906_vm2, %v10492_v0 }
 0x1d9   :  { %9604 = vtanh.f32 %v413_v20  ;;  %v7732_v1 = vpop.f32.mrb[31].mxu0  ;;  %7908 = vmatprep.mubr.msk.f32.mxu0 %vm9826_vm0, %v13833_v38  ;;  %7985 = vmatprep.mubr.msk.f32.mxu1 %vm9826_vm0, %v13833_v38  ;;  %v10502_v45 = vpop.f32.mrb[6].mxu1 }
 0x1da   :  { %v7803_v41 = vpop.f32.mrb[7].mxu1 }
 0x1db   :  { %v10504_v30 = vpop.eup %9600 }
 0x1dc   :  { %v418_v44 = vpop.f32.mrb[32].mxu0  ;;  %7909 = vmatmul.mubr.msk.f32.gmra.mrb[76].mxu0 %vm906_vm2, %v10504_v30  ;;  %7986 = vmatmul.mubr.msk.f32.gmra.mrb[76].mxu1 %vm906_vm2, %v10504_v30 }
 0x1dd   :  { %9606 = vtanh.f32 %v418_v44  ;;  %v7735_v7 = vpop.f32.mrb[33].mxu0  ;;  %7911 = vmatprep.mubr.msk.f32.mxu0 %vm9826_vm0, %v13833_v38  ;;  %7988 = vmatprep.mubr.msk.f32.mxu1 %vm9826_vm0, %v13833_v38  ;;  %v10514_v54 = vpop.f32.mrb[8].mxu1 }
 0x1de   :  { %v7806_v6 = vpop.f32.mrb[9].mxu1 }
 0x1df   :  { %v10516_v32 = vpop.eup %9602 }
 0x1e0   :  { %13845 = vst [vmem:[#allocation19_spill] sm:$0xff] %v10516_v32  ;;  %v423_v28 = vpop.f32.mrb[34].mxu0  ;;  %7912 = vmatmul.mubr.msk.f32.gmra.mrb[78].mxu0 %vm906_vm2, %v10516_v32  ;;  %7989 = vmatmul.mubr.msk.f32.gmra.mrb[78].mxu1 %vm906_vm2, %v10516_v32 }
 0x1e1   :  { %9608 = vtanh.f32 %v423_v28  ;;  %v7738_v46 = vpop.f32.mrb[35].mxu0  ;;  %7914 = vmatprep.mubr.msk.f32.mxu0 %vm9826_vm0, %v13833_v38  ;;  %7991 = vmatprep.mubr.msk.f32.mxu1 %vm9826_vm0, %v13833_v38  ;;  %v10526_v23 = vpop.f32.mrb[10].mxu1 }
 0x1e2   :  { %v7809_v15 = vpop.f32.mrb[11].mxu1 }
 0x1e3   :  { %v10528_v48 = vpop.eup %9604 }
 0x1e4   :  { %13846 = vst [vmem:[#allocation20_spill] sm:$0xff] %v10528_v48  ;;  %v428_v10 = vpop.f32.mrb[36].mxu0  ;;  %7915 = vmatmul.mubr.msk.f32.gmra.mrb[80].mxu0 %vm906_vm2, %v10528_v48  ;;  %7992 = vmatmul.mubr.msk.f32.gmra.mrb[80].mxu1 %vm906_vm2, %v10528_v48 }
 0x1e5   :  { %9610 = vtanh.f32 %v428_v10  ;;  %v7741_v39 = vpop.f32.mrb[37].mxu0  ;;  %7917 = vmatprep.mubr.msk.f32.mxu0 %vm9826_vm0, %v13833_v38  ;;  %7994 = vmatprep.mubr.msk.f32.mxu1 %vm9826_vm0, %v13833_v38  ;;  %v10538_v50 = vpop.f32.mrb[12].mxu1 }
 0x1e6   :  { %v7812_v47 = vpop.f32.mrb[13].mxu1  ;;  %v10651_v39 = vld [vmem:[%s13658_s4] sm:$0xff] }
 0x1e7   :  { %v10540_v36 = vpop.eup %9606  ;;  %v10656_v47 = vld [vmem:[%s13657_s3 + $0x10] sm:$0xff] }
 0x1e8   :  { %13847 = vst [vmem:[#allocation21_spill] sm:$0xff] %v10540_v36  ;;  %v433_v42 = vpop.f32.mrb[38].mxu0  ;;  %7918 = vmatmul.mubr.msk.f32.gmra.mrb[82].mxu0 %vm906_vm2, %v10540_v36  ;;  %7995 = vmatmul.mubr.msk.f32.gmra.mrb[82].mxu1 %vm906_vm2, %v10540_v36 }
 0x1e9   :  { %9612 = vtanh.f32 %v433_v42  ;;  %v7744_v61 = vpop.f32.mrb[39].mxu0  ;;  %7920 = vmatprep.mubr.msk.f32.mxu0 %vm9826_vm0, %v13833_v38  ;;  %7997 = vmatprep.mubr.msk.f32.mxu1 %vm9826_vm0, %v13833_v38  ;;  %v10550_v49 = vpop.f32.mrb[14].mxu1 }
 0x1ea   :  { %v7815_v52 = vpop.f32.mrb[15].mxu1 }
 0x1eb   :  { %v10552_v18 = vpop.eup %9608 }
 0x1ec   :  { %13848 = vst [vmem:[#allocation22_spill] sm:$0xff] %v10552_v18  ;;  %v438_v33 = vpop.f32.mrb[40].mxu0  ;;  %7921 = vmatmul.mubr.msk.f32.gmra.mrb[84].mxu0 %vm906_vm2, %v10552_v18  ;;  %7998 = vmatmul.mubr.msk.f32.gmra.mrb[84].mxu1 %vm906_vm2, %v10552_v18 }
 0x1ed   :  { %9614 = vtanh.f32 %v438_v33  ;;  %v7747_v53 = vpop.f32.mrb[41].mxu0  ;;  %7923 = vmatprep.mubr.msk.f32.mxu0 %vm9826_vm0, %v13833_v38  ;;  %8000 = vmatprep.mubr.msk.f32.mxu1 %vm9826_vm0, %v13833_v38  ;;  %v10562_v51 = vpop.f32.mrb[16].mxu1 }
 0x1ee   :  { %v7818_v26 = vpop.f32.mrb[17].mxu1 }
 0x1ef   :  { %v10564_v37 = vpop.eup %9610 }
 0x1f0   :  { %13849 = vst [vmem:[#allocation23_spill] sm:$0xff] %v10564_v37  ;;  %v443_v34 = vpop.f32.mrb[42].mxu0  ;;  %7924 = vmatmul.mubr.msk.f32.gmra.mrb[86].mxu0 %vm906_vm2, %v10564_v37  ;;  %8001 = vmatmul.mubr.msk.f32.gmra.mrb[86].mxu1 %vm906_vm2, %v10564_v37 }
 0x1f1   :  { %9616 = vtanh.f32 %v443_v34  ;;  %v7750_v11 = vpop.f32.mrb[43].mxu0  ;;  %7926 = vmatprep.mubr.msk.f32.mxu0 %vm9826_vm0, %v13833_v38  ;;  %8003 = vmatprep.mubr.msk.f32.mxu1 %vm9826_vm0, %v13833_v38  ;;  %v10574_v13 = vpop.f32.mrb[18].mxu1 }
 0x1f2   :  { %v7821_v29 = vpop.f32.mrb[19].mxu1 }
 0x1f3   :  { %v10576_v60 = vpop.eup %9612 }
 0x1f4   :  { %13850 = vst [vmem:[#allocation24_spill] sm:$0xff] %v10576_v60  ;;  %v448_v27 = vpop.f32.mrb[44].mxu0  ;;  %7927 = vmatmul.mubr.msk.f32.gmra.mrb[88].mxu0 %vm906_vm2, %v10576_v60  ;;  %8004 = vmatmul.mubr.msk.f32.gmra.mrb[88].mxu1 %vm906_vm2, %v10576_v60 }
 0x1f5   :  { %9618 = vtanh.f32 %v448_v27  ;;  %v7753_v24 = vpop.f32.mrb[45].mxu0  ;;  %7929 = vmatprep.mubr.msk.f32.mxu0 %vm9826_vm0, %v13833_v38  ;;  %8006 = vmatprep.mubr.msk.f32.mxu1 %vm9826_vm0, %v13833_v38  ;;  %v10586_v35 = vpop.f32.mrb[20].mxu1 }
 0x1f6   :  { %v7824_v56 = vpop.f32.mrb[21].mxu1 }
 0x1f7   :  { %v10588_v9 = vpop.eup %9614 }
 0x1f8   :  { %13851 = vst [vmem:[#allocation25_spill] sm:$0xff] %v10588_v9  ;;  %v453_v59 = vpop.f32.mrb[46].mxu0  ;;  %7930 = vmatmul.mubr.msk.f32.gmra.mrb[90].mxu0 %vm906_vm2, %v10588_v9  ;;  %8007 = vmatmul.mubr.msk.f32.gmra.mrb[90].mxu1 %vm906_vm2, %v10588_v9 }
 0x1f9   :  { %9620 = vtanh.f32 %v453_v59  ;;  %v7756_v21 = vpop.f32.mrb[47].mxu0  ;;  %7932 = vmatprep.mubr.msk.f32.mxu0 %vm9826_vm0, %v13833_v38  ;;  %8009 = vmatprep.mubr.msk.f32.mxu1 %vm9826_vm0, %v13833_v38  ;;  %v10598_v43 = vpop.f32.mrb[22].mxu1 }
 0x1fa   :  { %v7827_v40 = vpop.f32.mrb[23].mxu1 }
 0x1fb   :  { %v10600_v8 = vpop.eup %9616 }
 0x1fc   :  { %13852 = vst [vmem:[#allocation26_spill] sm:$0xff] %v10600_v8  ;;  %v458_v17 = vpop.f32.mrb[48].mxu0  ;;  %7933 = vmatmul.mubr.msk.f32.gmra.mrb[92].mxu0 %vm906_vm2, %v10600_v8  ;;  %8010 = vmatmul.mubr.msk.f32.gmra.mrb[92].mxu1 %vm906_vm2, %v10600_v8 }
 0x1fd   :  { %9622 = vtanh.f32 %v458_v17  ;;  %v7759_v5 = vpop.f32.mrb[49].mxu0  ;;  %7935 = vmatprep.mubr.msk.f32.mxu0 %vm9826_vm0, %v13833_v38  ;;  %8012 = vmatprep.mubr.msk.f32.mxu1 %vm9826_vm0, %v13833_v38  ;;  %v10610_v20 = vpop.f32.mrb[24].mxu1 }
 0x1fe   :  { %v7830_v1 = vpop.f32.mrb[25].mxu1  ;;  %9624 = vtanh.f32 %v10466_v14  ;;  %v2754_v14 = vcombine.high %v10656_v47, %v10656_v47 }
 0x1ff   :  { %v10612_v41 = vpop.eup %9618  ;;  %9626 = vtanh.f32 %v10478_v22  ;;  %v10890_v22 = vld [vmem:[%s13657_s3 + $0x18] sm:$0xff] }
 0x200   :  { %13853 = vst [vmem:[#allocation27_spill] sm:$0xff] %v10612_v41  ;;  %7936 = vmatmul.mubr.msk.f32.gmra.mrb[94].mxu0 %vm906_vm2, %v10612_v41  ;;  %8013 = vmatmul.mubr.msk.f32.gmra.mrb[94].mxu1 %vm906_vm2, %v10612_v41  ;;  %9628 = vtanh.f32 %v10490_v25 }
 0x201   :  { %7938 = vmatprep.mubr.msk.f32.mxu0 %vm9826_vm0, %v13833_v38  ;;  %8015 = vmatprep.mubr.msk.f32.mxu1 %vm9826_vm0, %v13833_v38  ;;  %v10622_v44 = vpop.f32.mrb[26].mxu1  ;;  %9630 = vtanh.f32 %v10502_v45 }
 0x202   :  { %v7833_v7 = vpop.f32.mrb[27].mxu1  ;;  %9632 = vtanh.f32 %v10514_v54 }
 0x203   :  { %v10624_v6 = vpop.eup %9620  ;;  %9634 = vtanh.f32 %v10526_v23 }
 0x204   :  { %13854 = vst [vmem:[#allocation28_spill] sm:$0xff] %v10624_v6  ;;  %7939 = vmatmul.mubr.msk.f32.gmra.mrb[96].mxu0 %vm906_vm2, %v10624_v6  ;;  %8016 = vmatmul.mubr.msk.f32.gmra.mrb[96].mxu1 %vm906_vm2, %v10624_v6  ;;  %9636 = vtanh.f32 %v10538_v50 }
 0x205   :  { %7941 = vmatprep.mubr.msk.f32.mxu0 %vm9826_vm0, %v13833_v38  ;;  %8018 = vmatprep.mubr.msk.f32.mxu1 %vm9826_vm0, %v13833_v38  ;;  %v10634_v28 = vpop.f32.mrb[28].mxu1  ;;  %9638 = vtanh.f32 %v10550_v49 }
 0x206   :  { %v7836_v46 = vpop.f32.mrb[29].mxu1  ;;  %9640 = vtanh.f32 %v10562_v51 }
 0x207   :  { %v10636_v15 = vpop.eup %9622  ;;  %9642 = vtanh.f32 %v10574_v13 }
 0x208   :  { %13855 = vst [vmem:[#allocation29_spill] sm:$0xff] %v10636_v15  ;;  %7942 = vmatmul.mubr.msk.f32.gmra.mrb[98].mxu0 %vm906_vm2, %v10636_v15  ;;  %8019 = vmatmul.mubr.msk.f32.gmra.mrb[98].mxu1 %vm906_vm2, %v10636_v15  ;;  %v10892_v46 = vpop.eup %9624  ;;  %9644 = vtanh.f32 %v10586_v35 }
 0x209   :  { %8023 = vmatprep.mubr.msk.f32.mxu0 %vm9826_vm0, %v13833_v38  ;;  %8100 = vmatprep.mubr.msk.f32.mxu1 %vm9826_vm0, %v13833_v38  ;;  %v10646_v10 = vpop.f32.mrb[30].mxu1  ;;  %13856 = vst [vmem:[#allocation30_spill] sm:$0xff] %v10892_v46  ;;  %v10906_v25 = vpop.eup %9626  ;;  %9646 = vtanh.f32 %v10598_v43 }
 0x20a   :  { %v7839_v42 = vpop.f32.mrb[31].mxu1  ;;  %13857 = vst [vmem:[#allocation31_spill] sm:$0xff] %v10906_v25  ;;  %v10919_v45 = vpop.eup %9628  ;;  %9648 = vtanh.f32 %v10610_v20 }
 0x20b   :  { %13858 = vst [vmem:[#allocation32_spill] sm:$0xff] %v10919_v45  ;;  %v10930_v54 = vpop.eup %9630  ;;  %9650 = vtanh.f32 %v10622_v44 }
 0x20c   :  { %8024 = vmatmul.mubr.msk.f32.vlgmr.msra.gmra.mrb[100].mxu0 %vm906_vm2, %v10362_v16  ;;  %8101 = vmatmul.mubr.msk.f32.vlgmr.msra.gmra.mrb[100].mxu1 %vm906_vm2, %v10362_v16  ;;  %13859 = vst [vmem:[#allocation33_spill] sm:$0xff] %v10930_v54  ;;  %9652 = vtanh.f32 %v10634_v28 }
 0x20d   :  { %8176 = vmatpush3.msk.msra.mxu0 %vm982_vm1, %v10651_v39  ;;  %8253 = vmatpush3.msk.msra.mxu1 %vm982_vm1, %v10656_v47  ;;  %v10666_v61 = vpop.f32.mrb[32].mxu1  ;;  %9654 = vtanh.f32 %v10646_v10 }
 0x20e   :  { %8026 = vmatprep.mubr.msk.f32.mxu0 %vm9826_vm0, %v13833_v38  ;;  %8103 = vmatprep.mubr.msk.f32.mxu1 %vm9826_vm0, %v13833_v38  ;;  %v7842_v52 = vpop.f32.mrb[33].mxu1  ;;  %9656 = vtanh.f32 %v10666_v61 }
 0x20f   :  { %8329 = vmatprep.subr.mxu0 %v13833_v38  ;;  %8406 = vmatprep.subr.mxu1 %v13833_v38  ;;  %v1420_v52 = vld [vmem:[#allocation2 + $0xc8] sm:$0xff] }
 0x210   :  { %8027 = vmatmul.mubr.msk.f32.gmra.mrb[102].mxu0 %vm906_vm2, %v10374_v31  ;;  %8104 = vmatmul.mubr.msk.f32.gmra.mrb[102].mxu1 %vm906_vm2, %v10374_v31 }
 0x211   :  { %8029 = vmatprep.mubr.msk.f32.mxu0 %vm9826_vm0, %v13833_v38  ;;  %8106 = vmatprep.mubr.msk.f32.mxu1 %vm9826_vm0, %v13833_v38  ;;  %v10682_v33 = vpop.f32.mrb[34].mxu1 }
 0x212   :  { %v7845_v53 = vpop.f32.mrb[35].mxu1  ;;  %9658 = vtanh.f32 %v10682_v33 }
 0x213   :  { %v9674_v53 = vld [vmem:[#allocation2] sm:$0xff] }
 0x214   :  { %8030 = vmatmul.mubr.msk.f32.gmra.mrb[104].mxu0 %vm906_vm2, %v10386_v2  ;;  %8107 = vmatmul.mubr.msk.f32.gmra.mrb[104].mxu1 %vm906_vm2, %v10386_v2 }
 0x215   :  { %8032 = vmatprep.mubr.msk.f32.mxu0 %vm9826_vm0, %v13833_v38  ;;  %8109 = vmatprep.mubr.msk.f32.mxu1 %vm9826_vm0, %v13833_v38  ;;  %v10692_v26 = vpop.f32.mrb[36].mxu1 }
 0x216   :  { %v7848_v34 = vpop.f32.mrb[37].mxu1  ;;  %9660 = vtanh.f32 %v10692_v26 }
 0x218   :  { %8033 = vmatmul.mubr.msk.f32.gmra.mrb[106].mxu0 %vm906_vm2, %v10396_v55  ;;  %8110 = vmatmul.mubr.msk.f32.gmra.mrb[106].mxu1 %vm906_vm2, %v10396_v55 }
 0x219   :  { %8035 = vmatprep.mubr.msk.f32.mxu0 %vm9826_vm0, %v13833_v38  ;;  %8112 = vmatprep.mubr.msk.f32.mxu1 %vm9826_vm0, %v13833_v38  ;;  %v10702_v11 = vpop.f32.mrb[38].mxu1 }
 0x21a   :  { %v7851_v29 = vpop.f32.mrb[39].mxu1  ;;  %9662 = vtanh.f32 %v10702_v11 }
 0x21c   :  { %8036 = vmatmul.mubr.msk.f32.gmra.mrb[108].mxu0 %vm906_vm2, %v10406_v19  ;;  %8113 = vmatmul.mubr.msk.f32.gmra.mrb[108].mxu1 %vm906_vm2, %v10406_v19 }
 0x21d   :  { %8038 = vmatprep.mubr.msk.f32.mxu0 %vm9826_vm0, %v13833_v38  ;;  %8115 = vmatprep.mubr.msk.f32.mxu1 %vm9826_vm0, %v13833_v38  ;;  %v10712_v27 = vpop.f32.mrb[40].mxu1 }
 0x21e   :  { %v7854_v24 = vpop.f32.mrb[41].mxu1 }
 0x220   :  { %8039 = vmatmul.mubr.msk.f32.gmra.mrb[110].mxu0 %vm906_vm2, %v10416_v57  ;;  %8116 = vmatmul.mubr.msk.f32.gmra.mrb[110].mxu1 %vm906_vm2, %v10416_v57 }
 0x221   :  { %8041 = vmatprep.mubr.msk.f32.mxu0 %vm9826_vm0, %v13833_v38  ;;  %8118 = vmatprep.mubr.msk.f32.mxu1 %vm9826_vm0, %v13833_v38  ;;  %v10722_v56 = vpop.f32.mrb[42].mxu1 }
 0x222   :  { %v7857_v59 = vpop.f32.mrb[43].mxu1 }
 0x224   :  { %8042 = vmatmul.mubr.msk.f32.gmra.mrb[112].mxu0 %vm906_vm2, %v10426_v62  ;;  %8119 = vmatmul.mubr.msk.f32.gmra.mrb[112].mxu1 %vm906_vm2, %v10426_v62 }
 0x225   :  { %8044 = vmatprep.mubr.msk.f32.mxu0 %vm9826_vm0, %v13833_v38  ;;  %8121 = vmatprep.mubr.msk.f32.mxu1 %vm9826_vm0, %v13833_v38  ;;  %v10732_v21 = vpop.f32.mrb[44].mxu1 }
 0x226   :  { %v7860_v40 = vpop.f32.mrb[45].mxu1 }
 0x227   :  { %v10941_v40 = vpop.eup %9632  ;;  %9664 = vtanh.f32 %v10712_v27 }
 0x228   :  { %8045 = vmatmul.mubr.msk.f32.gmra.mrb[114].mxu0 %vm906_vm2, %v10436_v58  ;;  %8122 = vmatmul.mubr.msk.f32.gmra.mrb[114].mxu1 %vm906_vm2, %v10436_v58  ;;  %13860 = vst [vmem:[#allocation34_spill] sm:$0xff] %v10941_v40 }
 0x229   :  { %8047 = vmatprep.mubr.msk.f32.mxu0 %vm9826_vm0, %v13833_v38  ;;  %8124 = vmatprep.mubr.msk.f32.mxu1 %vm9826_vm0, %v13833_v38  ;;  %v10742_v17 = vpop.f32.mrb[46].mxu1 }
 0x22a   :  { %v7863_v5 = vpop.f32.mrb[47].mxu1 }
 0x22c   :  { %8048 = vmatmul.mubr.msk.f32.gmra.mrb[116].mxu0 %vm906_vm2, %v10446_v3  ;;  %8125 = vmatmul.mubr.msk.f32.gmra.mrb[116].mxu1 %vm906_vm2, %v10446_v3 }
 0x22d   :  { %8050 = vmatprep.mubr.msk.f32.mxu0 %vm9826_vm0, %v13833_v38  ;;  %8127 = vmatprep.mubr.msk.f32.mxu1 %vm9826_vm0, %v13833_v38  ;;  %v10752_v1 = vpop.f32.mrb[48].mxu1 }
 0x22e   :  { %v7866_v7 = vpop.f32.mrb[49].mxu1 }
 0x230   :  { %8051 = vmatmul.mubr.msk.f32.gmra.mrb[118].mxu0 %vm906_vm2, %v10456_v63  ;;  %8128 = vmatmul.mubr.msk.f32.gmra.mrb[118].mxu1 %vm906_vm2, %v10456_v63 }
 0x231   :  { %8053 = vmatprep.mubr.msk.f32.mxu0 %vm9826_vm0, %v13833_v38  ;;  %8130 = vmatprep.mubr.msk.f32.mxu1 %vm9826_vm0, %v13833_v38 }
 0x234   :  { %8054 = vmatmul.mubr.msk.f32.gmra.mrb[120].mxu0 %vm906_vm2, %v10468_v4  ;;  %8131 = vmatmul.mubr.msk.f32.gmra.mrb[120].mxu1 %vm906_vm2, %v10468_v4 }
 0x235   :  { %8056 = vmatprep.mubr.msk.f32.mxu0 %vm9826_vm0, %v13833_v38  ;;  %8133 = vmatprep.mubr.msk.f32.mxu1 %vm9826_vm0, %v13833_v38 }
 0x238   :  { %8057 = vmatmul.mubr.msk.f32.gmra.mrb[122].mxu0 %vm906_vm2, %v10480_v12  ;;  %8134 = vmatmul.mubr.msk.f32.gmra.mrb[122].mxu1 %vm906_vm2, %v10480_v12 }
 0x239   :  { %8059 = vmatprep.mubr.msk.f32.mxu0 %vm9826_vm0, %v13833_v38  ;;  %8136 = vmatprep.mubr.msk.f32.mxu1 %vm9826_vm0, %v13833_v38 }
 0x23c   :  { %8060 = vmatmul.mubr.msk.f32.gmra.mrb[124].mxu0 %vm906_vm2, %v10492_v0  ;;  %8137 = vmatmul.mubr.msk.f32.gmra.mrb[124].mxu1 %vm906_vm2, %v10492_v0 }
 0x23d   :  { %8062 = vmatprep.mubr.msk.f32.mxu0 %vm9826_vm0, %v13833_v38  ;;  %8139 = vmatprep.mubr.msk.f32.mxu1 %vm9826_vm0, %v13833_v38 }
 0x240   :  { %8063 = vmatmul.mubr.msk.f32.gmra.mrb[126].mxu0 %vm906_vm2, %v10504_v30  ;;  %8140 = vmatmul.mubr.msk.f32.gmra.mrb[126].mxu1 %vm906_vm2, %v10504_v30 }
 0x241   :  { %8065 = vmatprep.mubr.msk.f32.mxu0 %vm9826_vm0, %v13833_v38  ;;  %8142 = vmatprep.mubr.msk.f32.mxu1 %vm9826_vm0, %v13833_v38 }
 0x244   :  { %8066 = vmatmul.mubr.msk.f32.gmra.mrb[128].mxu0 %vm906_vm2, %v10516_v32  ;;  %8143 = vmatmul.mubr.msk.f32.gmra.mrb[128].mxu1 %vm906_vm2, %v10516_v32 }
 0x245   :  { %8068 = vmatprep.mubr.msk.f32.mxu0 %vm9826_vm0, %v13833_v38  ;;  %8145 = vmatprep.mubr.msk.f32.mxu1 %vm9826_vm0, %v13833_v38 }
 0x248   :  { %8069 = vmatmul.mubr.msk.f32.gmra.mrb[130].mxu0 %vm906_vm2, %v10528_v48  ;;  %8146 = vmatmul.mubr.msk.f32.gmra.mrb[130].mxu1 %vm906_vm2, %v10528_v48 }
 0x249   :  { %8071 = vmatprep.mubr.msk.f32.mxu0 %vm9826_vm0, %v13833_v38  ;;  %8148 = vmatprep.mubr.msk.f32.mxu1 %vm9826_vm0, %v13833_v38 }
 0x24c   :  { %8072 = vmatmul.mubr.msk.f32.gmra.mrb[132].mxu0 %vm906_vm2, %v10540_v36  ;;  %8149 = vmatmul.mubr.msk.f32.gmra.mrb[132].mxu1 %vm906_vm2, %v10540_v36 }
 0x24d   :  { %8074 = vmatprep.mubr.msk.f32.mxu0 %vm9826_vm0, %v13833_v38  ;;  %8151 = vmatprep.mubr.msk.f32.mxu1 %vm9826_vm0, %v13833_v38 }
 0x250   :  { %8075 = vmatmul.mubr.msk.f32.gmra.mrb[134].mxu0 %vm906_vm2, %v10552_v18  ;;  %8152 = vmatmul.mubr.msk.f32.gmra.mrb[134].mxu1 %vm906_vm2, %v10552_v18 }
 0x251   :  { %8077 = vmatprep.mubr.msk.f32.mxu0 %vm9826_vm0, %v13833_v38  ;;  %8154 = vmatprep.mubr.msk.f32.mxu1 %vm9826_vm0, %v13833_v38 }
 0x254   :  { %8078 = vmatmul.mubr.msk.f32.gmra.mrb[136].mxu0 %vm906_vm2, %v10564_v37  ;;  %8155 = vmatmul.mubr.msk.f32.gmra.mrb[136].mxu1 %vm906_vm2, %v10564_v37 }
 0x255   :  { %8080 = vmatprep.mubr.msk.f32.mxu0 %vm9826_vm0, %v13833_v38  ;;  %8157 = vmatprep.mubr.msk.f32.mxu1 %vm9826_vm0, %v13833_v38 }
 0x258   :  { %8081 = vmatmul.mubr.msk.f32.gmra.mrb[138].mxu0 %vm906_vm2, %v10576_v60  ;;  %8158 = vmatmul.mubr.msk.f32.gmra.mrb[138].mxu1 %vm906_vm2, %v10576_v60 }
 0x259   :  { %8083 = vmatprep.mubr.msk.f32.mxu0 %vm9826_vm0, %v13833_v38  ;;  %8160 = vmatprep.mubr.msk.f32.mxu1 %vm9826_vm0, %v13833_v38 }
 0x25c   :  { %8084 = vmatmul.mubr.msk.f32.gmra.mrb[140].mxu0 %vm906_vm2, %v10588_v9  ;;  %8161 = vmatmul.mubr.msk.f32.gmra.mrb[140].mxu1 %vm906_vm2, %v10588_v9 }
 0x25d   :  { %8086 = vmatprep.mubr.msk.f32.mxu0 %vm9826_vm0, %v13833_v38  ;;  %8163 = vmatprep.mubr.msk.f32.mxu1 %vm9826_vm0, %v13833_v38 }
 0x260   :  { %8087 = vmatmul.mubr.msk.f32.gmra.mrb[142].mxu0 %vm906_vm2, %v10600_v8  ;;  %8164 = vmatmul.mubr.msk.f32.gmra.mrb[142].mxu1 %vm906_vm2, %v10600_v8 }
 0x261   :  { %8089 = vmatprep.mubr.msk.f32.mxu0 %vm9826_vm0, %v13833_v38  ;;  %8166 = vmatprep.mubr.msk.f32.mxu1 %vm9826_vm0, %v13833_v38 }
 0x264   :  { %8090 = vmatmul.mubr.msk.f32.gmra.mrb[144].mxu0 %vm906_vm2, %v10612_v41  ;;  %8167 = vmatmul.mubr.msk.f32.gmra.mrb[144].mxu1 %vm906_vm2, %v10612_v41 }
 0x265   :  { %8092 = vmatprep.mubr.msk.f32.mxu0 %vm9826_vm0, %v13833_v38  ;;  %8169 = vmatprep.mubr.msk.f32.mxu1 %vm9826_vm0, %v13833_v38 }
 0x268   :  { %8093 = vmatmul.mubr.msk.f32.gmra.mrb[146].mxu0 %vm906_vm2, %v10624_v6  ;;  %8170 = vmatmul.mubr.msk.f32.gmra.mrb[146].mxu1 %vm906_vm2, %v10624_v6 }
 0x269   :  { %8095 = vmatprep.mubr.msk.f32.mxu0 %vm9826_vm0, %v13833_v38  ;;  %8172 = vmatprep.mubr.msk.f32.mxu1 %vm9826_vm0, %v13833_v38 }
 0x26c   :  { %8096 = vmatmul.mubr.msk.f32.gmra.mrb[148].mxu0 %vm906_vm2, %v10636_v15  ;;  %8173 = vmatmul.mubr.msk.f32.gmra.mrb[148].mxu1 %vm906_vm2, %v10636_v15 }
 0x26d   :  { %8177 = vmatprep.mubr.msk.f32.mxu0 %vm9826_vm0, %v13833_v38  ;;  %8254 = vmatprep.mubr.msk.f32.mxu1 %vm9826_vm0, %v13833_v38 }
 0x270   :  { %8178 = vmatmul.mubr.msk.f32.vlgmr.msra.gmra.mrb[150].mxu0 %vm906_vm2, %v10892_v46  ;;  %8255 = vmatmul.mubr.msk.f32.vlgmr.msra.gmra.mrb[150].mxu1 %vm906_vm2, %v10362_v16 }
 0x271   :  { %8330 = vmatpush3.msk.msra.mxu0 %vm982_vm1, %v2754_v14  ;;  %8407 = vmatpush3.msk.msra.mxu1 %vm982_vm1, %v10890_v22  ;;  %v1421_v14 = vld [vmem:[#allocation2 + $0xd0] sm:$0xff] }
 0x272   :  { %8180 = vmatprep.mubr.msk.f32.mxu0 %vm9826_vm0, %v13833_v38  ;;  %8257 = vmatprep.mubr.msk.f32.mxu1 %vm9826_vm0, %v13833_v38 }
 0x273   :  { %8483 = vmatprep.subr.mxu0 %v13833_v38  ;;  %8560 = vmatprep.subr.mxu1 %v13833_v38 }
 0x274   :  { %8181 = vmatmul.mubr.msk.f32.gmra.mrb[152].mxu0 %vm906_vm2, %v10906_v25  ;;  %8258 = vmatmul.mubr.msk.f32.gmra.mrb[152].mxu1 %vm906_vm2, %v10374_v31 }
 0x275   :  { %8183 = vmatprep.mubr.msk.f32.mxu0 %vm9826_vm0, %v13833_v38  ;;  %8260 = vmatprep.mubr.msk.f32.mxu1 %vm9826_vm0, %v13833_v38 }
 0x278   :  { %8184 = vmatmul.mubr.msk.f32.gmra.mrb[154].mxu0 %vm906_vm2, %v10919_v45  ;;  %8261 = vmatmul.mubr.msk.f32.gmra.mrb[154].mxu1 %vm906_vm2, %v10386_v2 }
 0x279   :  { %8186 = vmatprep.mubr.msk.f32.mxu0 %vm9826_vm0, %v13833_v38  ;;  %8263 = vmatprep.mubr.msk.f32.mxu1 %vm9826_vm0, %v13833_v38 }
 0x27b   :  { %v1052_v47 = vpop.f32.mrb[50].mxu0  ;;  %v1295_v42 = vpop.f32.mrb[50].mxu1 }
 0x27c   :  { %v1176_v34 = vmul.f32 %v9674_v53, %v1052_v47  ;;  %v7871_v29 = vpop.f32.mrb[51].mxu0  ;;  %v7948_v24 = vpop.f32.mrb[51].mxu1  ;;  %8187 = vmatmul.mubr.msk.f32.gmra.mrb[156].mxu0 %vm906_vm2, %v10930_v54  ;;  %8264 = vmatmul.mubr.msk.f32.gmra.mrb[156].mxu1 %vm906_vm2, %v10396_v55  ;;  %v1445_v59 = vmul.f32 %v1420_v52, %v1295_v42 }
 0x27d   :  { %8189 = vmatprep.mubr.msk.f32.mxu0 %vm9826_vm0, %v13833_v38  ;;  %8266 = vmatprep.mubr.msk.f32.mxu1 %vm9826_vm0, %v13833_v38  ;;  %v9675_v29 = vld [vmem:[#allocation2 + $0x8] sm:$0xff]  ;;  %v10954_v52 = vpop.eup %9634  ;;  %9666 = vtanh.f32 %v10722_v56 }
 0x27e   :  { %v1201_v23 = vadd.f32 %v9674_v53, %v1176_v34  ;;  %13861 = vst [vmem:[#allocation35_spill] sm:$0xff] %v10954_v52  ;;  %v1422_v53 = vld [vmem:[#allocation2 + $0xd8] sm:$0xff] }
 0x27f   :  { %v1057_v5 = vpop.f32.mrb[52].mxu0  ;;  %v1300_v7 = vpop.f32.mrb[52].mxu1 }
 0x280   :  { %v10943_v47 = vadd.f32 %v1445_v59, %v1201_v23  ;;  %v1177_v24 = vmul.f32 %v9675_v29, %v1057_v5  ;;  %v7874_v54 = vpop.f32.mrb[53].mxu0  ;;  %v7951_v45 = vpop.f32.mrb[53].mxu1  ;;  %8190 = vmatmul.mubr.msk.f32.gmra.mrb[158].mxu0 %vm906_vm2, %v10941_v40  ;;  %8267 = vmatmul.mubr.msk.f32.gmra.mrb[158].mxu1 %vm906_vm2, %v10406_v19  ;;  %v1446_v42 = vmul.f32 %v1421_v14, %v1300_v7  ;;  %v9676_v23 = vld [vmem:[#allocation2 + $0x10] sm:$0xff] }
 0x281   :  { %8192 = vmatprep.mubr.msk.f32.mxu0 %vm9826_vm0, %v13833_v38  ;;  %8269 = vmatprep.mubr.msk.f32.mxu1 %vm9826_vm0, %v13833_v38  ;;  %v10967_v14 = vpop.eup %9636  ;;  %9668 = vtanh.f32 %v10732_v21 }
 0x282   :  { %v1202_v50 = vadd.f32 %v9675_v29, %v1177_v24  ;;  %13862 = vst [vmem:[#allocation36_spill] sm:$0xff] %v10967_v14  ;;  %v1423_v24 = vld [vmem:[#allocation2 + $0xe0] sm:$0xff] }
 0x283   :  { %v1062_v54 = vpop.f32.mrb[54].mxu0  ;;  %v1305_v45 = vpop.f32.mrb[54].mxu1 }
 0x284   :  { %v10956_v34 = vadd.f32 %v1446_v42, %v1202_v50  ;;  %v1178_v59 = vmul.f32 %v9676_v23, %v1062_v54  ;;  %v7877_v5 = vpop.f32.mrb[55].mxu0  ;;  %v7954_v40 = vpop.f32.mrb[55].mxu1  ;;  %8193 = vmatmul.mubr.msk.f32.gmra.mrb[160].mxu0 %vm906_vm2, %v10954_v52  ;;  %8270 = vmatmul.mubr.msk.f32.gmra.mrb[160].mxu1 %vm906_vm2, %v10416_v57  ;;  %v1447_v7 = vmul.f32 %v1422_v53, %v1305_v45  ;;  %v9677_v42 = vld [vmem:[#allocation2 + $0x18] sm:$0xff] }
 0x285   :  { %8195 = vmatprep.mubr.msk.f32.mxu0 %vm9826_vm0, %v13833_v38  ;;  %8272 = vmatprep.mubr.msk.f32.mxu1 %vm9826_vm0, %v13833_v38  ;;  %v10980_v53 = vpop.eup %9638  ;;  %9670 = vtanh.f32 %v10742_v17 }
 0x286   :  { %v1203_v49 = vadd.f32 %v9676_v23, %v1178_v59  ;;  %13863 = vst [vmem:[#allocation37_spill] sm:$0xff] %v10980_v53  ;;  %v1424_v59 = vld [vmem:[#allocation2 + $0xe8] sm:$0xff] }
 0x287   :  { %v1067_v29 = vpop.f32.mrb[56].mxu0  ;;  %v1310_v40 = vpop.f32.mrb[56].mxu1 }
 0x288   :  { %v10969_v50 = vadd.f32 %v1447_v7, %v1203_v49  ;;  %v1179_v54 = vmul.f32 %v9677_v42, %v1067_v29  ;;  %v7880_v5 = vpop.f32.mrb[57].mxu0  ;;  %v7957_v52 = vpop.f32.mrb[57].mxu1  ;;  %8196 = vmatmul.mubr.msk.f32.gmra.mrb[162].mxu0 %vm906_vm2, %v10967_v14  ;;  %8273 = vmatmul.mubr.msk.f32.gmra.mrb[162].mxu1 %vm906_vm2, %v10426_v62  ;;  %v1448_v45 = vmul.f32 %v1423_v24, %v1310_v40  ;;  %v9678_v7 = vld [vmem:[#allocation2 + $0x20] sm:$0xff] }
 0x289   :  { %8198 = vmatprep.mubr.msk.f32.mxu0 %vm9826_vm0, %v13833_v38  ;;  %8275 = vmatprep.mubr.msk.f32.mxu1 %vm9826_vm0, %v13833_v38  ;;  %v10993_v24 = vpop.eup %9640  ;;  %9672 = vtanh.f32 %v10752_v1 }
 0x28a   :  { %v1204_v51 = vadd.f32 %v9677_v42, %v1179_v54  ;;  %13864 = vst [vmem:[#allocation38_spill] sm:$0xff] %v10993_v24  ;;  %v1425_v54 = vld [vmem:[#allocation2 + $0xf0] sm:$0xff] }
 0x28b   :  { %v1072_v23 = vpop.f32.mrb[58].mxu0  ;;  %v1315_v52 = vpop.f32.mrb[58].mxu1 }
 0x28c   :  { %v10982_v49 = vadd.f32 %v1448_v45, %v1204_v51  ;;  %v1180_v29 = vmul.f32 %v9678_v7, %v1072_v23  ;;  %v7883_v5 = vpop.f32.mrb[59].mxu0  ;;  %v7960_v14 = vpop.f32.mrb[59].mxu1  ;;  %8199 = vmatmul.mubr.msk.f32.gmra.mrb[164].mxu0 %vm906_vm2, %v10980_v53  ;;  %8276 = vmatmul.mubr.msk.f32.gmra.mrb[164].mxu1 %vm906_vm2, %v10436_v58  ;;  %v1449_v40 = vmul.f32 %v1424_v59, %v1315_v52  ;;  %v9679_v45 = vld [vmem:[#allocation2 + $0x28] sm:$0xff] }
 0x28d   :  { %8201 = vmatprep.mubr.msk.f32.mxu0 %vm9826_vm0, %v13833_v38  ;;  %8278 = vmatprep.mubr.msk.f32.mxu1 %vm9826_vm0, %v13833_v38  ;;  %v11006_v59 = vpop.eup %9642 }
 0x28e   :  { %v1205_v13 = vadd.f32 %v9678_v7, %v1180_v29  ;;  %13865 = vst [vmem:[#allocation39_spill] sm:$0xff] %v11006_v59  ;;  %v1426_v29 = vld [vmem:[#allocation2 + $0xf8] sm:$0xff] }
 0x28f   :  { %v1077_v42 = vpop.f32.mrb[60].mxu0  ;;  %v1320_v14 = vpop.f32.mrb[60].mxu1 }
 0x290   :  { %v10995_v51 = vadd.f32 %v1449_v40, %v1205_v13  ;;  %v1181_v23 = vmul.f32 %v9679_v45, %v1077_v42  ;;  %v7886_v5 = vpop.f32.mrb[61].mxu0  ;;  %v7963_v53 = vpop.f32.mrb[61].mxu1  ;;  %8202 = vmatmul.mubr.msk.f32.gmra.mrb[166].mxu0 %vm906_vm2, %v10993_v24  ;;  %8279 = vmatmul.mubr.msk.f32.gmra.mrb[166].mxu1 %vm906_vm2, %v10446_v3  ;;  %v1450_v52 = vmul.f32 %v1425_v54, %v1320_v14  ;;  %v9680_v40 = vld [vmem:[#allocation2 + $0x30] sm:$0xff] }
 0x291   :  { %8204 = vmatprep.mubr.msk.f32.mxu0 %vm9826_vm0, %v13833_v38  ;;  %8281 = vmatprep.mubr.msk.f32.mxu1 %vm9826_vm0, %v13833_v38  ;;  %v11019_v54 = vpop.eup %9644 }
 0x292   :  { %v1206_v35 = vadd.f32 %v9679_v45, %v1181_v23  ;;  %13866 = vst [vmem:[#allocation40_spill] sm:$0xff] %v11019_v54  ;;  %v1427_v23 = vld [vmem:[#allocation2 + $0x100] sm:$0xff] }
 0x293   :  { %v1082_v7 = vpop.f32.mrb[62].mxu0  ;;  %v1325_v53 = vpop.f32.mrb[62].mxu1 }
 0x294   :  { %v11008_v13 = vadd.f32 %v1450_v52, %v1206_v35  ;;  %v1182_v42 = vmul.f32 %v9680_v40, %v1082_v7  ;;  %v7889_v5 = vpop.f32.mrb[63].mxu0  ;;  %v7966_v24 = vpop.f32.mrb[63].mxu1  ;;  %8205 = vmatmul.mubr.msk.f32.gmra.mrb[168].mxu0 %vm906_vm2, %v11006_v59  ;;  %8282 = vmatmul.mubr.msk.f32.gmra.mrb[168].mxu1 %vm906_vm2, %v10456_v63  ;;  %v1451_v14 = vmul.f32 %v1426_v29, %v1325_v53  ;;  %v9681_v52 = vld [vmem:[#allocation2 + $0x38] sm:$0xff] }
 0x295   :  { %8207 = vmatprep.mubr.msk.f32.mxu0 %vm9826_vm0, %v13833_v38  ;;  %8284 = vmatprep.mubr.msk.f32.mxu1 %vm9826_vm0, %v13833_v38  ;;  %v11032_v29 = vpop.eup %9646 }
 0x296   :  { %v1207_v43 = vadd.f32 %v9680_v40, %v1182_v42  ;;  %13867 = vst [vmem:[#allocation41_spill] sm:$0xff] %v11032_v29  ;;  %v1428_v42 = vld [vmem:[#allocation2 + $0x108] sm:$0xff] }
 0x297   :  { %v1087_v45 = vpop.f32.mrb[64].mxu0  ;;  %v1330_v24 = vpop.f32.mrb[64].mxu1 }
 0x298   :  { %v11021_v35 = vadd.f32 %v1451_v14, %v1207_v43  ;;  %v1183_v7 = vmul.f32 %v9681_v52, %v1087_v45  ;;  %v7892_v5 = vpop.f32.mrb[65].mxu0  ;;  %v7969_v59 = vpop.f32.mrb[65].mxu1  ;;  %8208 = vmatmul.mubr.msk.f32.gmra.mrb[170].mxu0 %vm906_vm2, %v11019_v54  ;;  %8285 = vmatmul.mubr.msk.f32.gmra.mrb[170].mxu1 %vm906_vm2, %v10468_v4  ;;  %v1452_v53 = vmul.f32 %v1427_v23, %v1330_v24  ;;  %v9682_v14 = vld [vmem:[#allocation2 + $0x40] sm:$0xff] }
 0x299   :  { %8210 = vmatprep.mubr.msk.f32.mxu0 %vm9826_vm0, %v13833_v38  ;;  %8287 = vmatprep.mubr.msk.f32.mxu1 %vm9826_vm0, %v13833_v38  ;;  %v11045_v23 = vpop.eup %9648 }
 0x29a   :  { %v1208_v20 = vadd.f32 %v9681_v52, %v1183_v7  ;;  %13868 = vst [vmem:[#allocation42_spill] sm:$0xff] %v11045_v23  ;;  %v1429_v7 = vld [vmem:[#allocation2 + $0x110] sm:$0xff] }
 0x29b   :  { %v1092_v40 = vpop.f32.mrb[66].mxu0  ;;  %v1335_v59 = vpop.f32.mrb[66].mxu1 }
 0x29c   :  { %v11034_v43 = vadd.f32 %v1452_v53, %v1208_v20  ;;  %v1184_v45 = vmul.f32 %v9682_v14, %v1092_v40  ;;  %v7895_v5 = vpop.f32.mrb[67].mxu0  ;;  %v7972_v54 = vpop.f32.mrb[67].mxu1  ;;  %8211 = vmatmul.mubr.msk.f32.gmra.mrb[172].mxu0 %vm906_vm2, %v11032_v29  ;;  %8288 = vmatmul.mubr.msk.f32.gmra.mrb[172].mxu1 %vm906_vm2, %v10480_v12  ;;  %v1453_v24 = vmul.f32 %v1428_v42, %v1335_v59  ;;  %v9683_v53 = vld [vmem:[#allocation2 + $0x48] sm:$0xff] }
 0x29d   :  { %8213 = vmatprep.mubr.msk.f32.mxu0 %vm9826_vm0, %v13833_v38  ;;  %8290 = vmatprep.mubr.msk.f32.mxu1 %vm9826_vm0, %v13833_v38  ;;  %v11058_v42 = vpop.eup %9650 }
 0x29e   :  { %v1209_v44 = vadd.f32 %v9682_v14, %v1184_v45  ;;  %13869 = vst [vmem:[#allocation43_spill] sm:$0xff] %v11058_v42  ;;  %v1430_v45 = vld [vmem:[#allocation2 + $0x118] sm:$0xff] }
 0x29f   :  { %v1097_v52 = vpop.f32.mrb[68].mxu0  ;;  %v1340_v54 = vpop.f32.mrb[68].mxu1 }
 0x2a0   :  { %v11047_v20 = vadd.f32 %v1453_v24, %v1209_v44  ;;  %v1185_v40 = vmul.f32 %v9683_v53, %v1097_v52  ;;  %v7898_v5 = vpop.f32.mrb[69].mxu0  ;;  %v7975_v29 = vpop.f32.mrb[69].mxu1  ;;  %8214 = vmatmul.mubr.msk.f32.gmra.mrb[174].mxu0 %vm906_vm2, %v11045_v23  ;;  %8291 = vmatmul.mubr.msk.f32.gmra.mrb[174].mxu1 %vm906_vm2, %v10492_v0  ;;  %v1454_v59 = vmul.f32 %v1429_v7, %v1340_v54  ;;  %v9684_v24 = vld [vmem:[#allocation2 + $0x50] sm:$0xff] }
 0x2a1   :  { %8216 = vmatprep.mubr.msk.f32.mxu0 %vm9826_vm0, %v13833_v38  ;;  %8293 = vmatprep.mubr.msk.f32.mxu1 %vm9826_vm0, %v13833_v38  ;;  %v11071_v7 = vpop.eup %9652 }
 0x2a2   :  { %v1210_v28 = vadd.f32 %v9683_v53, %v1185_v40  ;;  %13870 = vst [vmem:[#allocation44_spill] sm:$0xff] %v11071_v7  ;;  %v1431_v40 = vld [vmem:[#allocation2 + $0x120] sm:$0xff] }
 0x2a3   :  { %v1102_v14 = vpop.f32.mrb[70].mxu0  ;;  %v1345_v29 = vpop.f32.mrb[70].mxu1 }
 0x2a4   :  { %v11060_v44 = vadd.f32 %v1454_v59, %v1210_v28  ;;  %v1186_v52 = vmul.f32 %v9684_v24, %v1102_v14  ;;  %v7901_v5 = vpop.f32.mrb[71].mxu0  ;;  %v7978_v23 = vpop.f32.mrb[71].mxu1  ;;  %8217 = vmatmul.mubr.msk.f32.gmra.mrb[176].mxu0 %vm906_vm2, %v11058_v42  ;;  %8294 = vmatmul.mubr.msk.f32.gmra.mrb[176].mxu1 %vm906_vm2, %v10504_v30  ;;  %v1455_v54 = vmul.f32 %v1430_v45, %v1345_v29  ;;  %v9685_v59 = vld [vmem:[#allocation2 + $0x58] sm:$0xff] }
 0x2a5   :  { %8219 = vmatprep.mubr.msk.f32.mxu0 %vm9826_vm0, %v13833_v38  ;;  %8296 = vmatprep.mubr.msk.f32.mxu1 %vm9826_vm0, %v13833_v38  ;;  %v11084_v45 = vpop.eup %9654 }
 0x2a6   :  { %v1211_v10 = vadd.f32 %v9684_v24, %v1186_v52  ;;  %13871 = vst [vmem:[#allocation45_spill] sm:$0xff] %v11084_v45  ;;  %v1432_v52 = vld [vmem:[#allocation2 + $0x128] sm:$0xff] }
 0x2a7   :  { %v1107_v53 = vpop.f32.mrb[72].mxu0  ;;  %v1350_v23 = vpop.f32.mrb[72].mxu1 }
 0x2a8   :  { %v11073_v28 = vadd.f32 %v1455_v54, %v1211_v10  ;;  %v1187_v14 = vmul.f32 %v9685_v59, %v1107_v53  ;;  %v7904_v5 = vpop.f32.mrb[73].mxu0  ;;  %v7981_v42 = vpop.f32.mrb[73].mxu1  ;;  %8220 = vmatmul.mubr.msk.f32.gmra.mrb[178].mxu0 %vm906_vm2, %v11071_v7  ;;  %8297 = vmatmul.mubr.msk.f32.gmra.mrb[178].mxu1 %vm906_vm2, %v10516_v32  ;;  %v1456_v29 = vmul.f32 %v1431_v40, %v1350_v23  ;;  %v9686_v54 = vld [vmem:[#allocation2 + $0x60] sm:$0xff] }
 0x2a9   :  { %8222 = vmatprep.mubr.msk.f32.mxu0 %vm9826_vm0, %v13833_v38  ;;  %8299 = vmatprep.mubr.msk.f32.mxu1 %vm9826_vm0, %v13833_v38  ;;  %v11097_v40 = vpop.eup %9656 }
 0x2aa   :  { %v1212_v61 = vadd.f32 %v9685_v59, %v1187_v14  ;;  %13872 = vst [vmem:[#allocation46_spill] sm:$0xff] %v11097_v40  ;;  %v1433_v14 = vld [vmem:[#allocation2 + $0x130] sm:$0xff] }
 0x2ab   :  { %v1112_v24 = vpop.f32.mrb[74].mxu0  ;;  %v1355_v42 = vpop.f32.mrb[74].mxu1 }
 0x2ac   :  { %v11086_v10 = vadd.f32 %v1456_v29, %v1212_v61  ;;  %v1188_v53 = vmul.f32 %v9686_v54, %v1112_v24  ;;  %v7907_v5 = vpop.f32.mrb[75].mxu0  ;;  %v7984_v7 = vpop.f32.mrb[75].mxu1  ;;  %8223 = vmatmul.mubr.msk.f32.gmra.mrb[180].mxu0 %vm906_vm2, %v11084_v45  ;;  %8300 = vmatmul.mubr.msk.f32.gmra.mrb[180].mxu1 %vm906_vm2, %v10528_v48  ;;  %v1457_v23 = vmul.f32 %v1432_v52, %v1355_v42  ;;  %v9687_v29 = vld [vmem:[#allocation2 + $0x68] sm:$0xff] }
 0x2ad   :  { %8225 = vmatprep.mubr.msk.f32.mxu0 %vm9826_vm0, %v13833_v38  ;;  %8302 = vmatprep.mubr.msk.f32.mxu1 %vm9826_vm0, %v13833_v38  ;;  %v11110_v52 = vpop.eup %9658 }
 0x2ae   :  { %v1213_v33 = vadd.f32 %v9686_v54, %v1188_v53  ;;  %13873 = vst [vmem:[#allocation47_spill] sm:$0xff] %v11110_v52  ;;  %v1434_v53 = vld [vmem:[#allocation2 + $0x138] sm:$0xff] }
 0x2af   :  { %v1117_v59 = vpop.f32.mrb[76].mxu0  ;;  %v1360_v7 = vpop.f32.mrb[76].mxu1 }
 0x2b0   :  { %v11099_v61 = vadd.f32 %v1457_v23, %v1213_v33  ;;  %v1189_v24 = vmul.f32 %v9687_v29, %v1117_v59  ;;  %v7910_v5 = vpop.f32.mrb[77].mxu0  ;;  %v7987_v45 = vpop.f32.mrb[77].mxu1  ;;  %8226 = vmatmul.mubr.msk.f32.gmra.mrb[182].mxu0 %vm906_vm2, %v11097_v40  ;;  %8303 = vmatmul.mubr.msk.f32.gmra.mrb[182].mxu1 %vm906_vm2, %v10540_v36  ;;  %v1458_v42 = vmul.f32 %v1433_v14, %v1360_v7  ;;  %v9688_v23 = vld [vmem:[#allocation2 + $0x70] sm:$0xff] }
 0x2b1   :  { %8228 = vmatprep.mubr.msk.f32.mxu0 %vm9826_vm0, %v13833_v38  ;;  %8305 = vmatprep.mubr.msk.f32.mxu1 %vm9826_vm0, %v13833_v38  ;;  %v11123_v14 = vpop.eup %9660 }
 0x2b2   :  { %v1214_v26 = vadd.f32 %v9687_v29, %v1189_v24  ;;  %13874 = vst [vmem:[#allocation48_spill] sm:$0xff] %v11123_v14  ;;  %v1435_v24 = vld [vmem:[#allocation2 + $0x140] sm:$0xff] }
 0x2b3   :  { %v1122_v54 = vpop.f32.mrb[78].mxu0  ;;  %v1365_v45 = vpop.f32.mrb[78].mxu1 }
 0x2b4   :  { %v11112_v33 = vadd.f32 %v1458_v42, %v1214_v26  ;;  %v1190_v59 = vmul.f32 %v9688_v23, %v1122_v54  ;;  %v7913_v5 = vpop.f32.mrb[79].mxu0  ;;  %v7990_v40 = vpop.f32.mrb[79].mxu1  ;;  %8229 = vmatmul.mubr.msk.f32.gmra.mrb[184].mxu0 %vm906_vm2, %v11110_v52  ;;  %8306 = vmatmul.mubr.msk.f32.gmra.mrb[184].mxu1 %vm906_vm2, %v10552_v18  ;;  %v1459_v7 = vmul.f32 %v1434_v53, %v1365_v45  ;;  %v9689_v42 = vld [vmem:[#allocation2 + $0x78] sm:$0xff] }
 0x2b5   :  { %8231 = vmatprep.mubr.msk.f32.mxu0 %vm9826_vm0, %v13833_v38  ;;  %8308 = vmatprep.mubr.msk.f32.mxu1 %vm9826_vm0, %v13833_v38  ;;  %v11136_v53 = vpop.eup %9662 }
 0x2b6   :  { %v1215_v11 = vadd.f32 %v9688_v23, %v1190_v59  ;;  %13875 = vst [vmem:[#allocation49_spill] sm:$0xff] %v11136_v53  ;;  %v1436_v59 = vld [vmem:[#allocation2 + $0x148] sm:$0xff] }
 0x2b7   :  { %v1127_v29 = vpop.f32.mrb[80].mxu0  ;;  %v1370_v40 = vpop.f32.mrb[80].mxu1 }
 0x2b8   :  { %v11125_v26 = vadd.f32 %v1459_v7, %v1215_v11  ;;  %v1191_v54 = vmul.f32 %v9689_v42, %v1127_v29  ;;  %v7916_v5 = vpop.f32.mrb[81].mxu0  ;;  %v7993_v52 = vpop.f32.mrb[81].mxu1  ;;  %8232 = vmatmul.mubr.msk.f32.gmra.mrb[186].mxu0 %vm906_vm2, %v11123_v14  ;;  %8309 = vmatmul.mubr.msk.f32.gmra.mrb[186].mxu1 %vm906_vm2, %v10564_v37  ;;  %v1460_v45 = vmul.f32 %v1435_v24, %v1370_v40  ;;  %v9690_v7 = vld [vmem:[#allocation2 + $0x80] sm:$0xff] }
 0x2b9   :  { %8234 = vmatprep.mubr.msk.f32.mxu0 %vm9826_vm0, %v13833_v38  ;;  %8311 = vmatprep.mubr.msk.f32.mxu1 %vm9826_vm0, %v13833_v38  ;;  %v11149_v24 = vpop.eup %9664 }
 0x2ba   :  { %v1216_v27 = vadd.f32 %v9689_v42, %v1191_v54  ;;  %13876 = vst [vmem:[#allocation50_spill] sm:$0xff] %v11149_v24  ;;  %v1437_v54 = vld [vmem:[#allocation2 + $0x150] sm:$0xff] }
 0x2bb   :  { %v1132_v23 = vpop.f32.mrb[82].mxu0  ;;  %v1375_v52 = vpop.f32.mrb[82].mxu1 }
 0x2bc   :  { %v11138_v11 = vadd.f32 %v1460_v45, %v1216_v27  ;;  %v1192_v29 = vmul.f32 %v9690_v7, %v1132_v23  ;;  %v7919_v5 = vpop.f32.mrb[83].mxu0  ;;  %v7996_v14 = vpop.f32.mrb[83].mxu1  ;;  %8235 = vmatmul.mubr.msk.f32.gmra.mrb[188].mxu0 %vm906_vm2, %v11136_v53  ;;  %8312 = vmatmul.mubr.msk.f32.gmra.mrb[188].mxu1 %vm906_vm2, %v10576_v60  ;;  %v1461_v40 = vmul.f32 %v1436_v59, %v1375_v52  ;;  %v9691_v45 = vld [vmem:[#allocation2 + $0x88] sm:$0xff] }
 0x2bd   :  { %8237 = vmatprep.mubr.msk.f32.mxu0 %vm9826_vm0, %v13833_v38  ;;  %8314 = vmatprep.mubr.msk.f32.mxu1 %vm9826_vm0, %v13833_v38  ;;  %v11162_v59 = vpop.eup %9666 }
 0x2be   :  { %v1217_v56 = vadd.f32 %v9690_v7, %v1192_v29  ;;  %13877 = vst [vmem:[#allocation51_spill] sm:$0xff] %v11162_v59  ;;  %v1438_v29 = vld [vmem:[#allocation2 + $0x158] sm:$0xff] }
 0x2bf   :  { %v1137_v42 = vpop.f32.mrb[84].mxu0  ;;  %v1380_v14 = vpop.f32.mrb[84].mxu1 }
 0x2c0   :  { %v11151_v27 = vadd.f32 %v1461_v40, %v1217_v56  ;;  %v1193_v23 = vmul.f32 %v9691_v45, %v1137_v42  ;;  %v7922_v5 = vpop.f32.mrb[85].mxu0  ;;  %v7999_v53 = vpop.f32.mrb[85].mxu1  ;;  %8238 = vmatmul.mubr.msk.f32.gmra.mrb[190].mxu0 %vm906_vm2, %v11149_v24  ;;  %8315 = vmatmul.mubr.msk.f32.gmra.mrb[190].mxu1 %vm906_vm2, %v10588_v9  ;;  %v1462_v52 = vmul.f32 %v1437_v54, %v1380_v14  ;;  %v9692_v40 = vld [vmem:[#allocation2 + $0x90] sm:$0xff] }
 0x2c1   :  { %8240 = vmatprep.mubr.msk.f32.mxu0 %vm9826_vm0, %v13833_v38  ;;  %8317 = vmatprep.mubr.msk.f32.mxu1 %vm9826_vm0, %v13833_v38  ;;  %v11175_v54 = vpop.eup %9668 }
 0x2c2   :  { %v1218_v21 = vadd.f32 %v9691_v45, %v1193_v23  ;;  %13878 = vst [vmem:[#allocation52_spill] sm:$0xff] %v11175_v54  ;;  %v1439_v23 = vld [vmem:[#allocation2 + $0x160] sm:$0xff] }
 0x2c3   :  { %v1142_v7 = vpop.f32.mrb[86].mxu0  ;;  %v1385_v53 = vpop.f32.mrb[86].mxu1 }
 0x2c4   :  { %v11164_v56 = vadd.f32 %v1462_v52, %v1218_v21  ;;  %v1194_v42 = vmul.f32 %v9692_v40, %v1142_v7  ;;  %v7925_v5 = vpop.f32.mrb[87].mxu0  ;;  %v8002_v24 = vpop.f32.mrb[87].mxu1  ;;  %8241 = vmatmul.mubr.msk.f32.gmra.mrb[192].mxu0 %vm906_vm2, %v11162_v59  ;;  %8318 = vmatmul.mubr.msk.f32.gmra.mrb[192].mxu1 %vm906_vm2, %v10600_v8  ;;  %v1463_v14 = vmul.f32 %v1438_v29, %v1385_v53  ;;  %v9693_v52 = vld [vmem:[#allocation2 + $0x98] sm:$0xff] }
 0x2c5   :  { %8243 = vmatprep.mubr.msk.f32.mxu0 %vm9826_vm0, %v13833_v38  ;;  %8320 = vmatprep.mubr.msk.f32.mxu1 %vm9826_vm0, %v13833_v38  ;;  %v11187_v29 = vpop.eup %9670 }
 0x2c6   :  { %v1219_v17 = vadd.f32 %v9692_v40, %v1194_v42  ;;  %13879 = vst [vmem:[#allocation53_spill] sm:$0xff] %v11187_v29 }
 0x2c7   :  { %v1147_v45 = vpop.f32.mrb[88].mxu0  ;;  %v1390_v24 = vpop.f32.mrb[88].mxu1 }
 0x2c8   :  { %v11177_v21 = vadd.f32 %v1463_v14, %v1219_v17  ;;  %v1195_v7 = vmul.f32 %v9693_v52, %v1147_v45  ;;  %v7928_v5 = vpop.f32.mrb[89].mxu0  ;;  %v8005_v59 = vpop.f32.mrb[89].mxu1  ;;  %8244 = vmatmul.mubr.msk.f32.gmra.mrb[194].mxu0 %vm906_vm2, %v11175_v54  ;;  %8321 = vmatmul.mubr.msk.f32.gmra.mrb[194].mxu1 %vm906_vm2, %v10612_v41  ;;  %v1464_v53 = vmul.f32 %v1439_v23, %v1390_v24  ;;  %v1440_v17 = vld [vmem:[#allocation2 + $0x168] sm:$0xff]  ;;  %v9694_v14 = vld [vmem:[#allocation2 + $0xa0] sm:$0xff] }
 0x2c9   :  { %8246 = vmatprep.mubr.msk.f32.mxu0 %vm9826_vm0, %v13833_v38  ;;  %8323 = vmatprep.mubr.msk.f32.mxu1 %vm9826_vm0, %v13833_v38 }
 0x2ca   :  { %v1220_v1 = vadd.f32 %v9693_v52, %v1195_v7  ;;  %v11199_v52 = vpop.eup %9672 }
 0x2cb   :  { %v1152_v40 = vpop.f32.mrb[90].mxu0  ;;  %v1395_v42 = vpop.f32.mrb[90].mxu1  ;;  %13880 = vst [vmem:[#allocation54_spill] sm:$0xff] %v11199_v52 }
 0x2cc   :  { %v11189_v59 = vadd.f32 %v1464_v53, %v1220_v1  ;;  %v1196_v45 = vmul.f32 %v9694_v14, %v1152_v40  ;;  %v7931_v5 = vpop.f32.mrb[91].mxu0  ;;  %v8008_v54 = vpop.f32.mrb[91].mxu1  ;;  %8247 = vmatmul.mubr.msk.f32.gmra.mrb[196].mxu0 %vm906_vm2, %v11187_v29  ;;  %8324 = vmatmul.mubr.msk.f32.gmra.mrb[196].mxu1 %vm906_vm2, %v10624_v6  ;;  %v1465_v23 = vmul.f32 %v1440_v17, %v1395_v42  ;;  %v1441_v53 = vld [vmem:[#allocation2 + $0x170] sm:$0xff]  ;;  %v9695_v40 = vld [vmem:[#allocation2 + $0xa8] sm:$0xff] }
 0x2cd   :  { %8249 = vmatprep.mubr.msk.f32.mxu0 %vm9826_vm0, %v13833_v38  ;;  %8326 = vmatprep.mubr.msk.f32.mxu1 %vm9826_vm0, %v13833_v38  ;;  %v3533_v42 = vcombine.high %v10651_v39, %v10651_v39  ;;  %v3265_v17 = vcombine.high %v10890_v22, %v10890_v22 }
 0x2ce   :  { %v1221_v24 = vadd.f32 %v9694_v14, %v1196_v45 }
 0x2cf   :  { %v1157_v7 = vpop.f32.mrb[92].mxu0  ;;  %v1400_v1 = vpop.f32.mrb[92].mxu1 }
 0x2d0   :  { %v11201_v54 = vadd.f32 %v1465_v23, %v1221_v24  ;;  %v1197_v5 = vmul.f32 %v9695_v40, %v1157_v7  ;;  %v7934_v29 = vpop.f32.mrb[93].mxu0  ;;  %v8011_v25 = vpop.f32.mrb[93].mxu1  ;;  %8250 = vmatmul.mubr.msk.f32.gmra.mrb[198].mxu0 %vm906_vm2, %v11199_v52  ;;  %8327 = vmatmul.mubr.msk.f32.gmra.mrb[198].mxu1 %vm906_vm2, %v10636_v15  ;;  %v1442_v24 = vld [vmem:[#allocation2 + $0x178] sm:$0xff]  ;;  %v9696_v7 = vld [vmem:[#allocation2 + $0xb0] sm:$0xff] }
 0x2d1   :  { %8331 = vmatprep.mubr.msk.f32.mxu0 %vm9826_vm0, %v13833_v38  ;;  %8408 = vmatprep.mubr.msk.f32.mxu1 %vm9826_vm0, %v13833_v38  ;;  %v1466_v25 = vmul.f32 %v1441_v53, %v1400_v1 }
 0x2d2   :  { %v1222_v29 = vadd.f32 %v9695_v40, %v1197_v5  ;;  %v1443_v40 = vld [vmem:[#allocation2 + $0x180] sm:$0xff] }
 0x2d3   :  { %v1162_v14 = vpop.f32.mrb[94].mxu0  ;;  %v1405_v45 = vpop.f32.mrb[94].mxu1 }
 0x2d4   :  { %v11215_v23 = vadd.f32 %v1466_v25, %v1222_v29  ;;  %v1198_v52 = vmul.f32 %v9696_v7, %v1162_v14  ;;  %v7937_v46 = vpop.f32.mrb[95].mxu0  ;;  %v8014_v39 = vpop.f32.mrb[95].mxu1  ;;  %8332 = vmatmul.mubr.msk.f32.vlgmr.msra.gmra.mrb[200].mxu0 %vm906_vm2, %v10362_v16  ;;  %8409 = vmatmul.mubr.msk.f32.vlgmr.msra.gmra.mrb[200].mxu1 %vm906_vm2, %v10362_v16  ;;  %v1467_v1 = vmul.f32 %v1442_v24, %v1405_v45 }
 0x2d5   :  { %8484 = vmatpush3.msk.msra.mxu0 %vm982_vm1, %v3265_v17  ;;  %8561 = vmatpush3.msk.msra.mxu1 %vm982_vm1, %v3533_v42  ;;  %v9697_v17 = vld [vmem:[#allocation2 + $0xb8] sm:$0xff] }
 0x2d6   :  { %v1223_v22 = vadd.f32 %v9696_v7, %v1198_v52  ;;  %8334 = vmatprep.mubr.msk.f32.mxu0 %vm9826_vm0, %v13833_v38  ;;  %8411 = vmatprep.mubr.msk.f32.mxu1 %vm9826_vm0, %v13833_v38  ;;  %v1444_v7 = vld [vmem:[#allocation2 + $0x188] sm:$0xff] }
 0x2d7   :  { %v1167_v46 = vpop.f32.mrb[96].mxu0  ;;  %v1410_v53 = vpop.f32.mrb[96].mxu1  ;;  %8637 = vmatprep.subr.mxu0 %v13833_v38  ;;  %8714 = vmatprep.subr.mxu1 %v13833_v38 }
 0x2d8   :  { %v11229_v5 = vadd.f32 %v1467_v1, %v1223_v22  ;;  %v1199_v29 = vmul.f32 %v9697_v17, %v1167_v46  ;;  %v7940_v42 = vpop.f32.mrb[97].mxu0  ;;  %v8017_v52 = vpop.f32.mrb[97].mxu1  ;;  %8335 = vmatmul.mubr.msk.f32.gmra.mrb[202].mxu0 %vm906_vm2, %v10374_v31  ;;  %8412 = vmatmul.mubr.msk.f32.gmra.mrb[202].mxu1 %vm906_vm2, %v10374_v31  ;;  %v1468_v14 = vmul.f32 %v1443_v40, %v1410_v53  ;;  %v9698_v22 = vld [vmem:[#allocation2 + $0xc0] sm:$0xff] }
 0x2d9   :  { %8337 = vmatprep.mubr.msk.f32.mxu0 %vm9826_vm0, %v13833_v38  ;;  %8414 = vmatprep.mubr.msk.f32.mxu1 %vm9826_vm0, %v13833_v38  ;;  %v1689_v52 = vld [vmem:[#allocation2 + $0x190] sm:$0xff] }
 0x2da   :  { %v1224_v25 = vadd.f32 %v9697_v17, %v1199_v29 }
 0x2db   :  { %v1172_v45 = vpop.f32.mrb[98].mxu0  ;;  %v1415_v24 = vpop.f32.mrb[98].mxu1 }
 0x2dc   :  { %v11239_v39 = vadd.f32 %v1468_v14, %v1224_v25  ;;  %v1200_v1 = vmul.f32 %v9698_v22, %v1172_v45  ;;  %v7943_v46 = vpop.f32.mrb[99].mxu0  ;;  %v8020_v42 = vpop.f32.mrb[99].mxu1  ;;  %8338 = vmatmul.mubr.msk.f32.gmra.mrb[204].mxu0 %vm906_vm2, %v10386_v2  ;;  %8415 = vmatmul.mubr.msk.f32.gmra.mrb[204].mxu1 %vm906_vm2, %v10386_v2  ;;  %v1469_v40 = vmul.f32 %v1444_v7, %v1415_v24  ;;  %v1958_v25 = vld [vmem:[#allocation2 + $0x258] sm:$0xff] }
 0x2dd   :  { %8340 = vmatprep.mubr.msk.f32.mxu0 %vm9826_vm0, %v13833_v38  ;;  %8417 = vmatprep.mubr.msk.f32.mxu1 %vm9826_vm0, %v13833_v38  ;;  %v1690_v2 = vld [vmem:[#allocation2 + $0x198] sm:$0xff] }
 0x2de   :  { %v1225_v53 = vadd.f32 %v9698_v22, %v1200_v1 }
 0x2df   :  { %v1564_v17 = vpop.f32.mrb[100].mxu0  ;;  %v1833_v29 = vpop.f32.mrb[100].mxu1 }
 0x2e0   :  { %v11249_v14 = vadd.f32 %v1469_v40, %v1225_v53  ;;  %v1714_v45 = vmul.f32 %v1689_v52, %v1564_v17  ;;  %v8025_v46 = vpop.f32.mrb[101].mxu0  ;;  %v8102_v42 = vpop.f32.mrb[101].mxu1  ;;  %8341 = vmatmul.mubr.msk.f32.gmra.mrb[206].mxu0 %vm906_vm2, %v10396_v55  ;;  %8418 = vmatmul.mubr.msk.f32.gmra.mrb[206].mxu1 %vm906_vm2, %v10396_v55  ;;  %v1983_v7 = vmul.f32 %v1958_v25, %v1833_v29  ;;  %v1959_v52 = vld [vmem:[#allocation2 + $0x260] sm:$0xff] }
 0x2e1   :  { %8343 = vmatprep.mubr.msk.f32.mxu0 %vm9826_vm0, %v13833_v38  ;;  %8420 = vmatprep.mubr.msk.f32.mxu1 %vm9826_vm0, %v13833_v38  ;;  %v1691_v42 = vld [vmem:[#allocation2 + $0x1a0] sm:$0xff] }
 0x2e2   :  { %v1739_v24 = vadd.f32 %v1714_v45, %v10943_v47  ;;  %v1960_v45 = vld [vmem:[#allocation2 + $0x268] sm:$0xff] }
 0x2e3   :  { %v1569_v22 = vpop.f32.mrb[102].mxu0  ;;  %v1838_v1 = vpop.f32.mrb[102].mxu1 }
 0x2e4   :  { %v11260_v53 = vadd.f32 %v1983_v7, %v1739_v24  ;;  %v1715_v40 = vmul.f32 %v1690_v2, %v1569_v22  ;;  %v8028_v17 = vpop.f32.mrb[103].mxu0  ;;  %v8105_v46 = vpop.f32.mrb[103].mxu1  ;;  %8344 = vmatmul.mubr.msk.f32.gmra.mrb[208].mxu0 %vm906_vm2, %v10406_v19  ;;  %8421 = vmatmul.mubr.msk.f32.gmra.mrb[208].mxu1 %vm906_vm2, %v10406_v19  ;;  %v1984_v29 = vmul.f32 %v1959_v52, %v1838_v1 }
 0x2e5   :  { %8346 = vmatprep.mubr.msk.f32.mxu0 %vm9826_vm0, %v13833_v38  ;;  %8423 = vmatprep.mubr.msk.f32.mxu1 %vm9826_vm0, %v13833_v38  ;;  %v1692_v46 = vld [vmem:[#allocation2 + $0x1a8] sm:$0xff] }
 0x2e6   :  { %v1740_v47 = vadd.f32 %v1715_v40, %v10956_v34 }
 0x2e7   :  { %v1574_v25 = vpop.f32.mrb[104].mxu0  ;;  %v1843_v2 = vpop.f32.mrb[104].mxu1 }
 0x2e8   :  { %v11271_v24 = vadd.f32 %v1984_v29, %v1740_v47  ;;  %v1716_v7 = vmul.f32 %v1691_v42, %v1574_v25  ;;  %v8031_v22 = vpop.f32.mrb[105].mxu0  ;;  %v8108_v17 = vpop.f32.mrb[105].mxu1  ;;  %8347 = vmatmul.mubr.msk.f32.gmra.mrb[210].mxu0 %vm906_vm2, %v10416_v57  ;;  %8424 = vmatmul.mubr.msk.f32.gmra.mrb[210].mxu1 %vm906_vm2, %v10416_v57  ;;  %v1985_v1 = vmul.f32 %v1960_v45, %v1843_v2  ;;  %v1961_v42 = vld [vmem:[#allocation2 + $0x270] sm:$0xff] }
 0x2e9   :  { %8349 = vmatprep.mubr.msk.f32.mxu0 %vm9826_vm0, %v13833_v38  ;;  %8426 = vmatprep.mubr.msk.f32.mxu1 %vm9826_vm0, %v13833_v38  ;;  %v1693_v17 = vld [vmem:[#allocation2 + $0x1b0] sm:$0xff] }
 0x2ea   :  { %v1741_v34 = vadd.f32 %v1716_v7, %v10969_v50 }
 0x2eb   :  { %v1579_v52 = vpop.f32.mrb[106].mxu0  ;;  %v1848_v40 = vpop.f32.mrb[106].mxu1 }
 0x2ec   :  { %v11282_v47 = vadd.f32 %v1985_v1, %v1741_v34  ;;  %v1717_v29 = vmul.f32 %v1692_v46, %v1579_v52  ;;  %v8034_v25 = vpop.f32.mrb[107].mxu0  ;;  %v8111_v22 = vpop.f32.mrb[107].mxu1  ;;  %8350 = vmatmul.mubr.msk.f32.gmra.mrb[212].mxu0 %vm906_vm2, %v10426_v62  ;;  %8427 = vmatmul.mubr.msk.f32.gmra.mrb[212].mxu1 %vm906_vm2, %v10426_v62  ;;  %v1986_v2 = vmul.f32 %v1961_v42, %v1848_v40  ;;  %v1962_v46 = vld [vmem:[#allocation2 + $0x278] sm:$0xff] }
 0x2ed   :  { %8352 = vmatprep.mubr.msk.f32.mxu0 %vm9826_vm0, %v13833_v38  ;;  %8429 = vmatprep.mubr.msk.f32.mxu1 %vm9826_vm0, %v13833_v38  ;;  %v1694_v22 = vld [vmem:[#allocation2 + $0x1b8] sm:$0xff] }
 0x2ee   :  { %v1742_v50 = vadd.f32 %v1717_v29, %v10982_v49 }
 0x2ef   :  { %v1584_v45 = vpop.f32.mrb[108].mxu0  ;;  %v1853_v7 = vpop.f32.mrb[108].mxu1 }
 0x2f0   :  { %v11293_v34 = vadd.f32 %v1986_v2, %v1742_v50  ;;  %v1718_v1 = vmul.f32 %v1693_v17, %v1584_v45  ;;  %v8037_v52 = vpop.f32.mrb[109].mxu0  ;;  %v8114_v25 = vpop.f32.mrb[109].mxu1  ;;  %8353 = vmatmul.mubr.msk.f32.gmra.mrb[214].mxu0 %vm906_vm2, %v10436_v58  ;;  %8430 = vmatmul.mubr.msk.f32.gmra.mrb[214].mxu1 %vm906_vm2, %v10436_v58  ;;  %v1987_v40 = vmul.f32 %v1962_v46, %v1853_v7  ;;  %v1963_v17 = vld [vmem:[#allocation2 + $0x280] sm:$0xff] }
 0x2f1   :  { %8355 = vmatprep.mubr.msk.f32.mxu0 %vm9826_vm0, %v13833_v38  ;;  %8432 = vmatprep.mubr.msk.f32.mxu1 %vm9826_vm0, %v13833_v38  ;;  %v1695_v25 = vld [vmem:[#allocation2 + $0x1c0] sm:$0xff] }
 0x2f2   :  { %v1743_v49 = vadd.f32 %v1718_v1, %v10995_v51 }
 0x2f3   :  { %v1589_v42 = vpop.f32.mrb[110].mxu0  ;;  %v1858_v29 = vpop.f32.mrb[110].mxu1 }
 0x2f4   :  { %v11304_v50 = vadd.f32 %v1987_v40, %v1743_v49  ;;  %v1719_v2 = vmul.f32 %v1694_v22, %v1589_v42  ;;  %v8040_v45 = vpop.f32.mrb[111].mxu0  ;;  %v8117_v52 = vpop.f32.mrb[111].mxu1  ;;  %8356 = vmatmul.mubr.msk.f32.gmra.mrb[216].mxu0 %vm906_vm2, %v10446_v3  ;;  %8433 = vmatmul.mubr.msk.f32.gmra.mrb[216].mxu1 %vm906_vm2, %v10446_v3  ;;  %v1988_v7 = vmul.f32 %v1963_v17, %v1858_v29  ;;  %v1964_v22 = vld [vmem:[#allocation2 + $0x288] sm:$0xff] }
 0x2f5   :  { %8358 = vmatprep.mubr.msk.f32.mxu0 %vm9826_vm0, %v13833_v38  ;;  %8435 = vmatprep.mubr.msk.f32.mxu1 %vm9826_vm0, %v13833_v38  ;;  %v1696_v52 = vld [vmem:[#allocation2 + $0x1c8] sm:$0xff] }
 0x2f6   :  { %v1744_v51 = vadd.f32 %v1719_v2, %v11008_v13 }
 0x2f7   :  { %v1594_v46 = vpop.f32.mrb[112].mxu0  ;;  %v1863_v1 = vpop.f32.mrb[112].mxu1 }
 0x2f8   :  { %v11315_v49 = vadd.f32 %v1988_v7, %v1744_v51  ;;  %v1720_v40 = vmul.f32 %v1695_v25, %v1594_v46  ;;  %v8043_v42 = vpop.f32.mrb[113].mxu0  ;;  %v8120_v45 = vpop.f32.mrb[113].mxu1  ;;  %8359 = vmatmul.mubr.msk.f32.gmra.mrb[218].mxu0 %vm906_vm2, %v10456_v63  ;;  %8436 = vmatmul.mubr.msk.f32.gmra.mrb[218].mxu1 %vm906_vm2, %v10456_v63  ;;  %v1989_v29 = vmul.f32 %v1964_v22, %v1863_v1  ;;  %v1965_v25 = vld [vmem:[#allocation2 + $0x290] sm:$0xff] }
 0x2f9   :  { %8361 = vmatprep.mubr.msk.f32.mxu0 %vm9826_vm0, %v13833_v38  ;;  %8438 = vmatprep.mubr.msk.f32.mxu1 %vm9826_vm0, %v13833_v38  ;;  %v1697_v45 = vld [vmem:[#allocation2 + $0x1d0] sm:$0xff] }
 0x2fa   :  { %v1745_v13 = vadd.f32 %v1720_v40, %v11021_v35 }
 0x2fb   :  { %v1599_v17 = vpop.f32.mrb[114].mxu0  ;;  %v1868_v2 = vpop.f32.mrb[114].mxu1 }
 0x2fc   :  { %v11326_v51 = vadd.f32 %v1989_v29, %v1745_v13  ;;  %v1721_v7 = vmul.f32 %v1696_v52, %v1599_v17  ;;  %v8046_v46 = vpop.f32.mrb[115].mxu0  ;;  %v8123_v42 = vpop.f32.mrb[115].mxu1  ;;  %8362 = vmatmul.mubr.msk.f32.gmra.mrb[220].mxu0 %vm906_vm2, %v10468_v4  ;;  %8439 = vmatmul.mubr.msk.f32.gmra.mrb[220].mxu1 %vm906_vm2, %v10468_v4  ;;  %v1990_v1 = vmul.f32 %v1965_v25, %v1868_v2  ;;  %v1966_v52 = vld [vmem:[#allocation2 + $0x298] sm:$0xff] }
 0x2fd   :  { %8364 = vmatprep.mubr.msk.f32.mxu0 %vm9826_vm0, %v13833_v38  ;;  %8441 = vmatprep.mubr.msk.f32.mxu1 %vm9826_vm0, %v13833_v38  ;;  %v1698_v42 = vld [vmem:[#allocation2 + $0x1d8] sm:$0xff] }
 0x2fe   :  { %v1746_v35 = vadd.f32 %v1721_v7, %v11034_v43 }
 0x2ff   :  { %v1604_v22 = vpop.f32.mrb[116].mxu0  ;;  %v1873_v40 = vpop.f32.mrb[116].mxu1 }
 0x300   :  { %v11337_v13 = vadd.f32 %v1990_v1, %v1746_v35  ;;  %v1722_v29 = vmul.f32 %v1697_v45, %v1604_v22  ;;  %v8049_v17 = vpop.f32.mrb[117].mxu0  ;;  %v8126_v46 = vpop.f32.mrb[117].mxu1  ;;  %8365 = vmatmul.mubr.msk.f32.gmra.mrb[222].mxu0 %vm906_vm2, %v10480_v12  ;;  %8442 = vmatmul.mubr.msk.f32.gmra.mrb[222].mxu1 %vm906_vm2, %v10480_v12  ;;  %v1991_v2 = vmul.f32 %v1966_v52, %v1873_v40  ;;  %v1967_v45 = vld [vmem:[#allocation2 + $0x2a0] sm:$0xff] }
 0x301   :  { %8367 = vmatprep.mubr.msk.f32.mxu0 %vm9826_vm0, %v13833_v38  ;;  %8444 = vmatprep.mubr.msk.f32.mxu1 %vm9826_vm0, %v13833_v38  ;;  %v1699_v46 = vld [vmem:[#allocation2 + $0x1e0] sm:$0xff] }
 0x302   :  { %v1747_v43 = vadd.f32 %v1722_v29, %v11047_v20 }
 0x303   :  { %v1609_v25 = vpop.f32.mrb[118].mxu0  ;;  %v1878_v7 = vpop.f32.mrb[118].mxu1 }
 0x304   :  { %v11348_v35 = vadd.f32 %v1991_v2, %v1747_v43  ;;  %v1723_v1 = vmul.f32 %v1698_v42, %v1609_v25  ;;  %v8052_v22 = vpop.f32.mrb[119].mxu0  ;;  %v8129_v17 = vpop.f32.mrb[119].mxu1  ;;  %8368 = vmatmul.mubr.msk.f32.gmra.mrb[224].mxu0 %vm906_vm2, %v10492_v0  ;;  %8445 = vmatmul.mubr.msk.f32.gmra.mrb[224].mxu1 %vm906_vm2, %v10492_v0  ;;  %v1992_v40 = vmul.f32 %v1967_v45, %v1878_v7  ;;  %v1968_v42 = vld [vmem:[#allocation2 + $0x2a8] sm:$0xff] }
 0x305   :  { %8370 = vmatprep.mubr.msk.f32.mxu0 %vm9826_vm0, %v13833_v38  ;;  %8447 = vmatprep.mubr.msk.f32.mxu1 %vm9826_vm0, %v13833_v38  ;;  %v1700_v17 = vld [vmem:[#allocation2 + $0x1e8] sm:$0xff] }
 0x306   :  { %v1748_v20 = vadd.f32 %v1723_v1, %v11060_v44 }
 0x307   :  { %v1614_v52 = vpop.f32.mrb[120].mxu0  ;;  %v1883_v29 = vpop.f32.mrb[120].mxu1 }
 0x308   :  { %v11359_v43 = vadd.f32 %v1992_v40, %v1748_v20  ;;  %v1724_v2 = vmul.f32 %v1699_v46, %v1614_v52  ;;  %v8055_v25 = vpop.f32.mrb[121].mxu0  ;;  %v8132_v22 = vpop.f32.mrb[121].mxu1  ;;  %8371 = vmatmul.mubr.msk.f32.gmra.mrb[226].mxu0 %vm906_vm2, %v10504_v30  ;;  %8448 = vmatmul.mubr.msk.f32.gmra.mrb[226].mxu1 %vm906_vm2, %v10504_v30  ;;  %v1993_v7 = vmul.f32 %v1968_v42, %v1883_v29  ;;  %v1969_v46 = vld [vmem:[#allocation2 + $0x2b0] sm:$0xff] }
 0x309   :  { %8373 = vmatprep.mubr.msk.f32.mxu0 %vm9826_vm0, %v13833_v38  ;;  %8450 = vmatprep.mubr.msk.f32.mxu1 %vm9826_vm0, %v13833_v38  ;;  %v1701_v22 = vld [vmem:[#allocation2 + $0x1f0] sm:$0xff] }
 0x30a   :  { %v1749_v44 = vadd.f32 %v1724_v2, %v11073_v28 }
 0x30b   :  { %v1619_v45 = vpop.f32.mrb[122].mxu0  ;;  %v1888_v1 = vpop.f32.mrb[122].mxu1 }
 0x30c   :  { %v11370_v20 = vadd.f32 %v1993_v7, %v1749_v44  ;;  %v1725_v40 = vmul.f32 %v1700_v17, %v1619_v45  ;;  %v8058_v52 = vpop.f32.mrb[123].mxu0  ;;  %v8135_v25 = vpop.f32.mrb[123].mxu1  ;;  %8374 = vmatmul.mubr.msk.f32.gmra.mrb[228].mxu0 %vm906_vm2, %v10516_v32  ;;  %8451 = vmatmul.mubr.msk.f32.gmra.mrb[228].mxu1 %vm906_vm2, %v10516_v32  ;;  %v1994_v29 = vmul.f32 %v1969_v46, %v1888_v1  ;;  %v1970_v17 = vld [vmem:[#allocation2 + $0x2b8] sm:$0xff] }
 0x30d   :  { %8376 = vmatprep.mubr.msk.f32.mxu0 %vm9826_vm0, %v13833_v38  ;;  %8453 = vmatprep.mubr.msk.f32.mxu1 %vm9826_vm0, %v13833_v38  ;;  %v1702_v25 = vld [vmem:[#allocation2 + $0x1f8] sm:$0xff] }
 0x30e   :  { %v1750_v28 = vadd.f32 %v1725_v40, %v11086_v10 }
 0x30f   :  { %v1624_v42 = vpop.f32.mrb[124].mxu0  ;;  %v1893_v2 = vpop.f32.mrb[124].mxu1 }
 0x310   :  { %v11381_v44 = vadd.f32 %v1994_v29, %v1750_v28  ;;  %v1726_v7 = vmul.f32 %v1701_v22, %v1624_v42  ;;  %v8061_v45 = vpop.f32.mrb[125].mxu0  ;;  %v8138_v52 = vpop.f32.mrb[125].mxu1  ;;  %8377 = vmatmul.mubr.msk.f32.gmra.mrb[230].mxu0 %vm906_vm2, %v10528_v48  ;;  %8454 = vmatmul.mubr.msk.f32.gmra.mrb[230].mxu1 %vm906_vm2, %v10528_v48  ;;  %v1995_v1 = vmul.f32 %v1970_v17, %v1893_v2  ;;  %v1971_v22 = vld [vmem:[#allocation2 + $0x2c0] sm:$0xff] }
 0x311   :  { %8379 = vmatprep.mubr.msk.f32.mxu0 %vm9826_vm0, %v13833_v38  ;;  %8456 = vmatprep.mubr.msk.f32.mxu1 %vm9826_vm0, %v13833_v38  ;;  %v1703_v52 = vld [vmem:[#allocation2 + $0x200] sm:$0xff] }
 0x312   :  { %v1751_v10 = vadd.f32 %v1726_v7, %v11099_v61 }
 0x313   :  { %v1629_v46 = vpop.f32.mrb[126].mxu0  ;;  %v1898_v40 = vpop.f32.mrb[126].mxu1 }
 0x314   :  { %v11392_v28 = vadd.f32 %v1995_v1, %v1751_v10  ;;  %v1727_v29 = vmul.f32 %v1702_v25, %v1629_v46  ;;  %v8064_v42 = vpop.f32.mrb[127].mxu0  ;;  %v8141_v45 = vpop.f32.mrb[127].mxu1  ;;  %8380 = vmatmul.mubr.msk.f32.gmra.mrb[232].mxu0 %vm906_vm2, %v10540_v36  ;;  %8457 = vmatmul.mubr.msk.f32.gmra.mrb[232].mxu1 %vm906_vm2, %v10540_v36  ;;  %v1996_v2 = vmul.f32 %v1971_v22, %v1898_v40  ;;  %v1972_v25 = vld [vmem:[#allocation2 + $0x2c8] sm:$0xff] }
 0x315   :  { %8382 = vmatprep.mubr.msk.f32.mxu0 %vm9826_vm0, %v13833_v38  ;;  %8459 = vmatprep.mubr.msk.f32.mxu1 %vm9826_vm0, %v13833_v38  ;;  %v1704_v45 = vld [vmem:[#allocation2 + $0x208] sm:$0xff] }
 0x316   :  { %v1752_v61 = vadd.f32 %v1727_v29, %v11112_v33 }
 0x317   :  { %v1634_v17 = vpop.f32.mrb[128].mxu0  ;;  %v1903_v7 = vpop.f32.mrb[128].mxu1 }
 0x318   :  { %v11403_v10 = vadd.f32 %v1996_v2, %v1752_v61  ;;  %v1728_v1 = vmul.f32 %v1703_v52, %v1634_v17  ;;  %v8067_v46 = vpop.f32.mrb[129].mxu0  ;;  %v8144_v42 = vpop.f32.mrb[129].mxu1  ;;  %8383 = vmatmul.mubr.msk.f32.gmra.mrb[234].mxu0 %vm906_vm2, %v10552_v18  ;;  %8460 = vmatmul.mubr.msk.f32.gmra.mrb[234].mxu1 %vm906_vm2, %v10552_v18  ;;  %v1997_v40 = vmul.f32 %v1972_v25, %v1903_v7  ;;  %v1973_v52 = vld [vmem:[#allocation2 + $0x2d0] sm:$0xff] }
 0x319   :  { %8385 = vmatprep.mubr.msk.f32.mxu0 %vm9826_vm0, %v13833_v38  ;;  %8462 = vmatprep.mubr.msk.f32.mxu1 %vm9826_vm0, %v13833_v38  ;;  %v1705_v42 = vld [vmem:[#allocation2 + $0x210] sm:$0xff] }
 0x31a   :  { %v1753_v33 = vadd.f32 %v1728_v1, %v11125_v26 }
 0x31b   :  { %v1639_v22 = vpop.f32.mrb[130].mxu0  ;;  %v1908_v29 = vpop.f32.mrb[130].mxu1 }
 0x31c   :  { %v11414_v61 = vadd.f32 %v1997_v40, %v1753_v33  ;;  %v1729_v2 = vmul.f32 %v1704_v45, %v1639_v22  ;;  %v8070_v17 = vpop.f32.mrb[131].mxu0  ;;  %v8147_v46 = vpop.f32.mrb[131].mxu1  ;;  %8386 = vmatmul.mubr.msk.f32.gmra.mrb[236].mxu0 %vm906_vm2, %v10564_v37  ;;  %8463 = vmatmul.mubr.msk.f32.gmra.mrb[236].mxu1 %vm906_vm2, %v10564_v37  ;;  %v1998_v7 = vmul.f32 %v1973_v52, %v1908_v29  ;;  %v1974_v45 = vld [vmem:[#allocation2 + $0x2d8] sm:$0xff] }
 0x31d   :  { %8388 = vmatprep.mubr.msk.f32.mxu0 %vm9826_vm0, %v13833_v38  ;;  %8465 = vmatprep.mubr.msk.f32.mxu1 %vm9826_vm0, %v13833_v38  ;;  %v1706_v46 = vld [vmem:[#allocation2 + $0x218] sm:$0xff] }
 0x31e   :  { %v1754_v26 = vadd.f32 %v1729_v2, %v11138_v11 }
 0x31f   :  { %v1644_v25 = vpop.f32.mrb[132].mxu0  ;;  %v1913_v1 = vpop.f32.mrb[132].mxu1 }
 0x320   :  { %v11425_v33 = vadd.f32 %v1998_v7, %v1754_v26  ;;  %v1730_v40 = vmul.f32 %v1705_v42, %v1644_v25  ;;  %v8073_v22 = vpop.f32.mrb[133].mxu0  ;;  %v8150_v17 = vpop.f32.mrb[133].mxu1  ;;  %8389 = vmatmul.mubr.msk.f32.gmra.mrb[238].mxu0 %vm906_vm2, %v10576_v60  ;;  %8466 = vmatmul.mubr.msk.f32.gmra.mrb[238].mxu1 %vm906_vm2, %v10576_v60  ;;  %v1999_v29 = vmul.f32 %v1974_v45, %v1913_v1  ;;  %v1975_v42 = vld [vmem:[#allocation2 + $0x2e0] sm:$0xff] }
 0x321   :  { %8391 = vmatprep.mubr.msk.f32.mxu0 %vm9826_vm0, %v13833_v38  ;;  %8468 = vmatprep.mubr.msk.f32.mxu1 %vm9826_vm0, %v13833_v38  ;;  %v1707_v17 = vld [vmem:[#allocation2 + $0x220] sm:$0xff] }
 0x322   :  { %v1755_v11 = vadd.f32 %v1730_v40, %v11151_v27 }
 0x323   :  { %v1649_v52 = vpop.f32.mrb[134].mxu0  ;;  %v1918_v2 = vpop.f32.mrb[134].mxu1 }
 0x324   :  { %v11436_v26 = vadd.f32 %v1999_v29, %v1755_v11  ;;  %v1731_v7 = vmul.f32 %v1706_v46, %v1649_v52  ;;  %v8076_v25 = vpop.f32.mrb[135].mxu0  ;;  %v8153_v22 = vpop.f32.mrb[135].mxu1  ;;  %8392 = vmatmul.mubr.msk.f32.gmra.mrb[240].mxu0 %vm906_vm2, %v10588_v9  ;;  %8469 = vmatmul.mubr.msk.f32.gmra.mrb[240].mxu1 %vm906_vm2, %v10588_v9  ;;  %v2000_v1 = vmul.f32 %v1975_v42, %v1918_v2  ;;  %v1976_v46 = vld [vmem:[#allocation2 + $0x2e8] sm:$0xff] }
 0x325   :  { %8394 = vmatprep.mubr.msk.f32.mxu0 %vm9826_vm0, %v13833_v38  ;;  %8471 = vmatprep.mubr.msk.f32.mxu1 %vm9826_vm0, %v13833_v38  ;;  %v1708_v22 = vld [vmem:[#allocation2 + $0x228] sm:$0xff] }
 0x326   :  { %v1756_v27 = vadd.f32 %v1731_v7, %v11164_v56 }
 0x327   :  { %v1654_v45 = vpop.f32.mrb[136].mxu0  ;;  %v1923_v40 = vpop.f32.mrb[136].mxu1 }
 0x328   :  { %v11447_v11 = vadd.f32 %v2000_v1, %v1756_v27  ;;  %v1732_v29 = vmul.f32 %v1707_v17, %v1654_v45  ;;  %v8079_v52 = vpop.f32.mrb[137].mxu0  ;;  %v8156_v25 = vpop.f32.mrb[137].mxu1  ;;  %8395 = vmatmul.mubr.msk.f32.gmra.mrb[242].mxu0 %vm906_vm2, %v10600_v8  ;;  %8472 = vmatmul.mubr.msk.f32.gmra.mrb[242].mxu1 %vm906_vm2, %v10600_v8  ;;  %v2001_v2 = vmul.f32 %v1976_v46, %v1923_v40  ;;  %v1977_v17 = vld [vmem:[#allocation2 + $0x2f0] sm:$0xff] }
 0x329   :  { %8397 = vmatprep.mubr.msk.f32.mxu0 %vm9826_vm0, %v13833_v38  ;;  %8474 = vmatprep.mubr.msk.f32.mxu1 %vm9826_vm0, %v13833_v38  ;;  %v1709_v25 = vld [vmem:[#allocation2 + $0x230] sm:$0xff] }
 0x32a   :  { %v1757_v56 = vadd.f32 %v1732_v29, %v11177_v21 }
 0x32b   :  { %v1659_v42 = vpop.f32.mrb[138].mxu0  ;;  %v1928_v7 = vpop.f32.mrb[138].mxu1 }
 0x32c   :  { %v11458_v27 = vadd.f32 %v2001_v2, %v1757_v56  ;;  %v1733_v1 = vmul.f32 %v1708_v22, %v1659_v42  ;;  %v8082_v45 = vpop.f32.mrb[139].mxu0  ;;  %v8159_v52 = vpop.f32.mrb[139].mxu1  ;;  %8398 = vmatmul.mubr.msk.f32.gmra.mrb[244].mxu0 %vm906_vm2, %v10612_v41  ;;  %8475 = vmatmul.mubr.msk.f32.gmra.mrb[244].mxu1 %vm906_vm2, %v10612_v41  ;;  %v2002_v40 = vmul.f32 %v1977_v17, %v1928_v7  ;;  %v1978_v22 = vld [vmem:[#allocation2 + $0x2f8] sm:$0xff]  ;;  %v6787_v17 = vld [vmem:[%s13657_s3 + $0x20] sm:$0xff] }
 0x32d   :  { %8400 = vmatprep.mubr.msk.f32.mxu0 %vm9826_vm0, %v13833_v38  ;;  %8477 = vmatprep.mubr.msk.f32.mxu1 %vm9826_vm0, %v13833_v38  ;;  %v1710_v52 = vld [vmem:[#allocation2 + $0x238] sm:$0xff] }
 0x32e   :  { %v1758_v21 = vadd.f32 %v1733_v1, %v11189_v59 }
 0x32f   :  { %v1664_v46 = vpop.f32.mrb[140].mxu0  ;;  %v1933_v29 = vpop.f32.mrb[140].mxu1 }
 0x330   :  { %v11469_v56 = vadd.f32 %v2002_v40, %v1758_v21  ;;  %v1734_v2 = vmul.f32 %v1709_v25, %v1664_v46  ;;  %v8085_v42 = vpop.f32.mrb[141].mxu0  ;;  %v8162_v45 = vpop.f32.mrb[141].mxu1  ;;  %8401 = vmatmul.mubr.msk.f32.gmra.mrb[246].mxu0 %vm906_vm2, %v10624_v6  ;;  %8478 = vmatmul.mubr.msk.f32.gmra.mrb[246].mxu1 %vm906_vm2, %v10624_v6  ;;  %v2003_v7 = vmul.f32 %v1978_v22, %v1933_v29  ;;  %v1979_v21 = vld [vmem:[#allocation2 + $0x300] sm:$0xff] }
 0x331   :  { %8403 = vmatprep.mubr.msk.f32.mxu0 %vm9826_vm0, %v13833_v38  ;;  %8480 = vmatprep.mubr.msk.f32.mxu1 %vm9826_vm0, %v13833_v38  ;;  %v4098_v29 = vcombine.high %v6787_v17, %v6787_v17 }
 0x332   :  { %v1759_v59 = vadd.f32 %v1734_v2, %v11201_v54  ;;  %v1711_v54 = vld [vmem:[#allocation2 + $0x240] sm:$0xff] }
 0x333   :  { %v1669_v1 = vpop.f32.mrb[142].mxu0  ;;  %v1938_v25 = vpop.f32.mrb[142].mxu1 }
 0x334   :  { %v11483_v40 = vadd.f32 %v2003_v7, %v1759_v59  ;;  %v1735_v46 = vmul.f32 %v1710_v52, %v1669_v1  ;;  %v8088_v42 = vpop.f32.mrb[143].mxu0  ;;  %v8165_v45 = vpop.f32.mrb[143].mxu1  ;;  %8404 = vmatmul.mubr.msk.f32.gmra.mrb[248].mxu0 %vm906_vm2, %v10636_v15  ;;  %8481 = vmatmul.mubr.msk.f32.gmra.mrb[248].mxu1 %vm906_vm2, %v10636_v15  ;;  %v2004_v2 = vmul.f32 %v1979_v21, %v1938_v25  ;;  %v1980_v7 = vld [vmem:[#allocation2 + $0x308] sm:$0xff]  ;;  %v13881_v15 = vld [vmem:[#allocation30_spill] sm:$0xff] }
 0x335   :  { %8485 = vmatprep.mubr.msk.f32.mxu0 %vm9826_vm0, %v13833_v38  ;;  %8562 = vmatprep.mubr.msk.f32.mxu1 %vm9826_vm0, %v13833_v38 }
 0x336   :  { %v1760_v22 = vadd.f32 %v1735_v46, %v11215_v23  ;;  %v1712_v23 = vld [vmem:[#allocation2 + $0x248] sm:$0xff] }
 0x337   :  { %v1674_v52 = vpop.f32.mrb[144].mxu0  ;;  %v1943_v59 = vpop.f32.mrb[144].mxu1 }
 0x338   :  { %v11494_v1 = vadd.f32 %v2004_v2, %v1760_v22  ;;  %v1736_v42 = vmul.f32 %v1711_v54, %v1674_v52  ;;  %v8091_v45 = vpop.f32.mrb[145].mxu0  ;;  %v8168_v6 = vpop.f32.mrb[145].mxu1  ;;  %8486 = vmatmul.mubr.msk.f32.vlgmr.msra.gmra.mrb[250].mxu0 %vm906_vm2, %v10362_v16  ;;  %8563 = vmatmul.mubr.msk.f32.vlgmr.msra.gmra.mrb[250].mxu1 %vm906_vm2, %v13881_v15  ;;  %v2005_v21 = vmul.f32 %v1980_v7, %v1943_v59  ;;  %v1981_v54 = vld [vmem:[#allocation2 + $0x310] sm:$0xff] }
 0x339   :  { %8638 = vmatpush3.msk.msra.mxu0 %vm982_vm1, %v6787_v17  ;;  %8715 = vmatpush3.msk.msra.mxu1 %vm982_vm1, %v4098_v29  ;;  %v1713_v52 = vld [vmem:[#allocation2 + $0x250] sm:$0xff] }
 0x33a   :  { %v1761_v25 = vadd.f32 %v1736_v42, %v11229_v5  ;;  %8488 = vmatprep.mubr.msk.f32.mxu0 %vm9826_vm0, %v13833_v38  ;;  %8565 = vmatprep.mubr.msk.f32.mxu1 %vm9826_vm0, %v13833_v38  ;;  %v13882_v5 = vld [vmem:[#allocation31_spill] sm:$0xff] }
 0x33b   :  { %v1679_v6 = vpop.f32.mrb[146].mxu0  ;;  %v1948_v46 = vpop.f32.mrb[146].mxu1  ;;  %8791 = vmatprep.subr.mxu0 %v13833_v38  ;;  %8868 = vmatprep.subr.mxu1 %v13833_v38 }
 0x33c   :  { %v11509_v17 = vadd.f32 %v2005_v21, %v1761_v25  ;;  %v1737_v29 = vmul.f32 %v1712_v23, %v1679_v6  ;;  %v8094_v22 = vpop.f32.mrb[147].mxu0  ;;  %v8171_v2 = vpop.f32.mrb[147].mxu1  ;;  %8489 = vmatmul.mubr.msk.f32.gmra.mrb[252].mxu0 %vm906_vm2, %v10374_v31  ;;  %8566 = vmatmul.mubr.msk.f32.gmra.mrb[252].mxu1 %vm906_vm2, %v13882_v5  ;;  %v2006_v7 = vmul.f32 %v1981_v54, %v1948_v46  ;;  %v1982_v23 = vld [vmem:[#allocation2 + $0x318] sm:$0xff]  ;;  %v13884_v5 = vld [vmem:[#allocation32_spill] sm:$0xff] }
 0x33d   :  { %8491 = vmatprep.mubr.msk.f32.mxu0 %vm9826_vm0, %v13833_v38  ;;  %8568 = vmatprep.mubr.msk.f32.mxu1 %vm9826_vm0, %v13833_v38  ;;  %v13883_v2 = vld [vmem:[#allocation16_spill] sm:$0xff] }
 0x33e   :  { %v1762_v59 = vadd.f32 %v1737_v29, %v11239_v39 }
 0x33f   :  { %v1684_v42 = vpop.f32.mrb[148].mxu0  ;;  %v1953_v45 = vpop.f32.mrb[148].mxu1 }
 0x340   :  { %v11520_v25 = vadd.f32 %v2006_v7, %v1762_v59  ;;  %v1738_v21 = vmul.f32 %v1713_v52, %v1684_v42  ;;  %v8097_v6 = vpop.f32.mrb[149].mxu0  ;;  %v8174_v22 = vpop.f32.mrb[149].mxu1  ;;  %8492 = vmatmul.mubr.msk.f32.gmra.mrb[254].mxu0 %vm906_vm2, %v13883_v2  ;;  %8569 = vmatmul.mubr.msk.f32.gmra.mrb[254].mxu1 %vm906_vm2, %v13884_v5  ;;  %v2007_v46 = vmul.f32 %v1982_v23, %v1953_v45  ;;  %v9699_v52 = vld [vmem:[#allocation5] sm:$0xff]  ;;  %v13886_v5 = vld [vmem:[#allocation33_spill] sm:$0xff] }
 0x341   :  { %8494 = vmatprep.mubr.msk.f32.mxu0 %vm9826_vm0, %v13833_v38  ;;  %8571 = vmatprep.mubr.msk.f32.mxu1 %vm9826_vm0, %v13833_v38  ;;  %v11534_v59 = vsub.f32 %v9699_v52, %v11260_v53  ;;  %v11550_v45 = vld [vmem:[%s13659_s5] ss:$0 sm:$0xff] }
 0x342   :  { %v1763_v39 = vadd.f32 %v1738_v21, %v11249_v14 }
 0x343   :  { %v2202_v54 = vpop.f32.mrb[150].mxu0  ;;  %v11531_v29 = vpop.f32.mrb[150].mxu1  ;;  %13885 = vst [vmem:[#allocation55_spill] sm:$0xff] %v11534_v59 }
 0x344   :  { %v11536_v7 = vadd.f32 %v2007_v46, %v1763_v39  ;;  %v2203_v42 = vadd.f32 1.0, %v2202_v54  ;;  %v8179_v6 = vpop.f32.mrb[151].mxu0  ;;  %v8256_v22 = vpop.f32.mrb[151].mxu1  ;;  %8495 = vmatmul.mubr.msk.f32.gmra.mrb[0].mxu0 %vm906_vm2, %v10396_v55  ;;  %8572 = vmatmul.mubr.msk.f32.gmra.mrb[0].mxu1 %vm906_vm2, %v13886_v5  ;;  %v9700_v39 = vld [vmem:[#allocation5 + $0x8] sm:$0xff] }
 0x345   :  { %8497 = vmatprep.mubr.msk.f32.mxu0 %vm9826_vm0, %v13833_v38  ;;  %8574 = vmatprep.mubr.msk.f32.mxu1 %vm9826_vm0, %v13833_v38  ;;  %v11555_v46 = vsub.f32 %v9700_v39, %v11271_v24 }
 0x346   :  { %v2326_v14 = vmul.f32 %v2203_v42, %v11534_v59  ;;  %v13888_v42 = vld [vmem:[#allocation34_spill] sm:$0xff] }
 0x347   :  { %v2207_v23 = vpop.f32.mrb[152].mxu0  ;;  %v11552_v21 = vpop.f32.mrb[152].mxu1  ;;  %13887 = vst [vmem:[#allocation56_spill] sm:$0xff] %v11555_v46 }
 0x348   :  { %v2351_v54 = vadd.f32 %v2326_v14, %v11260_v53  ;;  %v2208_v52 = vadd.f32 1.0, %v2207_v23  ;;  %v8182_v6 = vpop.f32.mrb[153].mxu0  ;;  %v8259_v22 = vpop.f32.mrb[153].mxu1  ;;  %8498 = vmatmul.mubr.msk.f32.gmra.mrb[2].mxu0 %vm906_vm2, %v10406_v19  ;;  %8575 = vmatmul.mubr.msk.f32.gmra.mrb[2].mxu1 %vm906_vm2, %v13888_v42  ;;  %v13890_v19 = vld [vmem:[#allocation35_spill] sm:$0xff] }
 0x349   :  { %8500 = vmatprep.mubr.msk.f32.mxu0 %vm9826_vm0, %v13833_v38  ;;  %8577 = vmatprep.mubr.msk.f32.mxu1 %vm9826_vm0, %v13833_v38  ;;  %v9701_v6 = vld [vmem:[#allocation5 + $0x10] sm:$0xff] }
 0x34a   :  { %2376 = vst [vmem:[#allocation7] sm:$0xff] %v2351_v54  ;;  %v2408_v39 = vmul.f32 %v11550_v45, %v2351_v54  ;;  %v2327_v53 = vmul.f32 %v2208_v52, %v11555_v46  ;;  %v11571_v22 = vsub.f32 %v9701_v6, %v11282_v47  ;;  %v13892_v46 = vld [vmem:[#allocation36_spill] sm:$0xff] }
 0x34b   :  { %v2212_v14 = vpop.f32.mrb[154].mxu0  ;;  %v11568_v23 = vpop.f32.mrb[154].mxu1 }
 0x34c   :  { %13889 = vst [vmem:[#allocation57_spill] sm:$0xff] %v11571_v22  ;;  %2433 = vst [vmem:[#allocation8] sm:$0xff] %v2408_v39  ;;  %v2352_v42 = vadd.f32 %v2327_v53, %v11271_v24  ;;  %v2213_v5 = vadd.f32 1.0, %v2212_v14  ;;  %v8185_v15 = vpop.f32.mrb[155].mxu0  ;;  %v8262_v59 = vpop.f32.mrb[155].mxu1  ;;  %8501 = vmatmul.mubr.msk.f32.gmra.mrb[4].mxu0 %vm906_vm2, %v10416_v57  ;;  %8578 = vmatmul.mubr.msk.f32.gmra.mrb[4].mxu1 %vm906_vm2, %v13890_v19 }
 0x34d   :  { %8503 = vmatprep.mubr.msk.f32.mxu0 %vm9826_vm0, %v13833_v38  ;;  %8580 = vmatprep.mubr.msk.f32.mxu1 %vm9826_vm0, %v13833_v38  ;;  %v9702_v59 = vld [vmem:[#allocation5 + $0x18] sm:$0xff] }
 0x34e   :  { %2377 = vst [vmem:[#allocation7 + $0x8] sm:$0xff] %v2352_v42  ;;  %v2409_v54 = vmul.f32 %v11550_v45, %v2352_v42  ;;  %v2328_v24 = vmul.f32 %v2213_v5, %v11571_v22  ;;  %v11587_v39 = vsub.f32 %v9702_v59, %v11293_v34  ;;  %v13894_v22 = vld [vmem:[#allocation37_spill] sm:$0xff] }
 0x34f   :  { %v2217_v52 = vpop.f32.mrb[156].mxu0  ;;  %v11584_v15 = vpop.f32.mrb[156].mxu1 }
 0x350   :  { %13891 = vst [vmem:[#allocation58_spill] sm:$0xff] %v11587_v39  ;;  %2434 = vst [vmem:[#allocation8 + $0x8] sm:$0xff] %v2409_v54  ;;  %v2353_v53 = vadd.f32 %v2328_v24, %v11282_v47  ;;  %v2218_v14 = vadd.f32 1.0, %v2217_v52  ;;  %v8188_v6 = vpop.f32.mrb[157].mxu0  ;;  %v8265_v19 = vpop.f32.mrb[157].mxu1  ;;  %8504 = vmatmul.mubr.msk.f32.gmra.mrb[6].mxu0 %vm906_vm2, %v10426_v62  ;;  %8581 = vmatmul.mubr.msk.f32.gmra.mrb[6].mxu1 %vm906_vm2, %v13892_v46 }
 0x351   :  { %8506 = vmatprep.mubr.msk.f32.mxu0 %vm9826_vm0, %v13833_v38  ;;  %8583 = vmatprep.mubr.msk.f32.mxu1 %vm9826_vm0, %v13833_v38  ;;  %v9703_v19 = vld [vmem:[#allocation5 + $0x20] sm:$0xff] }
 0x352   :  { %2378 = vst [vmem:[#allocation7 + $0x10] sm:$0xff] %v2353_v53  ;;  %v2410_v5 = vmul.f32 %v11550_v45, %v2353_v53  ;;  %v2329_v47 = vmul.f32 %v2218_v14, %v11587_v39  ;;  %v11603_v24 = vsub.f32 %v9703_v19, %v11304_v50  ;;  %v13896_v39 = vld [vmem:[#allocation38_spill] sm:$0xff] }
 0x353   :  { %v2222_v42 = vpop.f32.mrb[158].mxu0  ;;  %v11600_v54 = vpop.f32.mrb[158].mxu1 }
 0x354   :  { %13893 = vst [vmem:[#allocation59_spill] sm:$0xff] %v11603_v24  ;;  %2435 = vst [vmem:[#allocation8 + $0x10] sm:$0xff] %v2410_v5  ;;  %v2354_v52 = vadd.f32 %v2329_v47, %v11293_v34  ;;  %v2223_v59 = vadd.f32 1.0, %v2222_v42  ;;  %v8191_v6 = vpop.f32.mrb[159].mxu0  ;;  %v8268_v46 = vpop.f32.mrb[159].mxu1  ;;  %8507 = vmatmul.mubr.msk.f32.gmra.mrb[8].mxu0 %vm906_vm2, %v10436_v58  ;;  %8584 = vmatmul.mubr.msk.f32.gmra.mrb[8].mxu1 %vm906_vm2, %v13894_v22 }
 0x355   :  { %8509 = vmatprep.mubr.msk.f32.mxu0 %vm9826_vm0, %v13833_v38  ;;  %8586 = vmatprep.mubr.msk.f32.mxu1 %vm9826_vm0, %v13833_v38  ;;  %v9704_v46 = vld [vmem:[#allocation5 + $0x28] sm:$0xff] }
 0x356   :  { %2379 = vst [vmem:[#allocation7 + $0x18] sm:$0xff] %v2354_v52  ;;  %v2411_v53 = vmul.f32 %v11550_v45, %v2354_v52  ;;  %v2330_v34 = vmul.f32 %v2223_v59, %v11603_v24  ;;  %v11619_v47 = vsub.f32 %v9704_v46, %v11315_v49  ;;  %v13898_v24 = vld [vmem:[#allocation39_spill] sm:$0xff] }
 0x357   :  { %v2227_v14 = vpop.f32.mrb[160].mxu0  ;;  %v11616_v5 = vpop.f32.mrb[160].mxu1 }
 0x358   :  { %13895 = vst [vmem:[#allocation60_spill] sm:$0xff] %v11619_v47  ;;  %2436 = vst [vmem:[#allocation8 + $0x18] sm:$0xff] %v2411_v53  ;;  %v2355_v42 = vadd.f32 %v2330_v34, %v11304_v50  ;;  %v2228_v19 = vadd.f32 1.0, %v2227_v14  ;;  %v8194_v6 = vpop.f32.mrb[161].mxu0  ;;  %v8271_v22 = vpop.f32.mrb[161].mxu1  ;;  %8510 = vmatmul.mubr.msk.f32.gmra.mrb[10].mxu0 %vm906_vm2, %v10446_v3  ;;  %8587 = vmatmul.mubr.msk.f32.gmra.mrb[10].mxu1 %vm906_vm2, %v13896_v39 }
 0x359   :  { %8512 = vmatprep.mubr.msk.f32.mxu0 %vm9826_vm0, %v13833_v38  ;;  %8589 = vmatprep.mubr.msk.f32.mxu1 %vm9826_vm0, %v13833_v38  ;;  %v9705_v22 = vld [vmem:[#allocation5 + $0x30] sm:$0xff] }
 0x35a   :  { %2380 = vst [vmem:[#allocation7 + $0x20] sm:$0xff] %v2355_v42  ;;  %v2412_v52 = vmul.f32 %v11550_v45, %v2355_v42  ;;  %v2331_v50 = vmul.f32 %v2228_v19, %v11619_v47  ;;  %v11635_v34 = vsub.f32 %v9705_v22, %v11326_v51  ;;  %v13900_v47 = vld [vmem:[#allocation40_spill] sm:$0xff] }
 0x35b   :  { %v2232_v59 = vpop.f32.mrb[162].mxu0  ;;  %v11632_v53 = vpop.f32.mrb[162].mxu1 }
 0x35c   :  { %13897 = vst [vmem:[#allocation61_spill] sm:$0xff] %v11635_v34  ;;  %2437 = vst [vmem:[#allocation8 + $0x20] sm:$0xff] %v2412_v52  ;;  %v2356_v14 = vadd.f32 %v2331_v50, %v11315_v49  ;;  %v2233_v46 = vadd.f32 1.0, %v2232_v59  ;;  %v8197_v6 = vpop.f32.mrb[163].mxu0  ;;  %v8274_v39 = vpop.f32.mrb[163].mxu1  ;;  %8513 = vmatmul.mubr.msk.f32.gmra.mrb[12].mxu0 %vm906_vm2, %v10456_v63  ;;  %8590 = vmatmul.mubr.msk.f32.gmra.mrb[12].mxu1 %vm906_vm2, %v13898_v24 }
 0x35d   :  { %8515 = vmatprep.mubr.msk.f32.mxu0 %vm9826_vm0, %v13833_v38  ;;  %8592 = vmatprep.mubr.msk.f32.mxu1 %vm9826_vm0, %v13833_v38  ;;  %v9706_v39 = vld [vmem:[#allocation5 + $0x38] sm:$0xff] }
 0x35e   :  { %2381 = vst [vmem:[#allocation7 + $0x28] sm:$0xff] %v2356_v14  ;;  %v2413_v42 = vmul.f32 %v11550_v45, %v2356_v14  ;;  %v2332_v49 = vmul.f32 %v2233_v46, %v11635_v34  ;;  %v11651_v50 = vsub.f32 %v9706_v39, %v11337_v13  ;;  %v13902_v34 = vld [vmem:[#allocation41_spill] sm:$0xff] }
 0x35f   :  { %v2237_v19 = vpop.f32.mrb[164].mxu0  ;;  %v11648_v52 = vpop.f32.mrb[164].mxu1 }
 0x360   :  { %13899 = vst [vmem:[#allocation62_spill] sm:$0xff] %v11651_v50  ;;  %2438 = vst [vmem:[#allocation8 + $0x28] sm:$0xff] %v2413_v42  ;;  %v2357_v59 = vadd.f32 %v2332_v49, %v11326_v51  ;;  %v2238_v22 = vadd.f32 1.0, %v2237_v19  ;;  %v8200_v6 = vpop.f32.mrb[165].mxu0  ;;  %v8277_v24 = vpop.f32.mrb[165].mxu1  ;;  %8516 = vmatmul.mubr.msk.f32.gmra.mrb[14].mxu0 %vm906_vm2, %v10468_v4  ;;  %8593 = vmatmul.mubr.msk.f32.gmra.mrb[14].mxu1 %vm906_vm2, %v13900_v47 }
 0x361   :  { %8518 = vmatprep.mubr.msk.f32.mxu0 %vm9826_vm0, %v13833_v38  ;;  %8595 = vmatprep.mubr.msk.f32.mxu1 %vm9826_vm0, %v13833_v38  ;;  %v9707_v24 = vld [vmem:[#allocation5 + $0x40] sm:$0xff] }
 0x362   :  { %2382 = vst [vmem:[#allocation7 + $0x30] sm:$0xff] %v2357_v59  ;;  %v2414_v14 = vmul.f32 %v11550_v45, %v2357_v59  ;;  %v2333_v51 = vmul.f32 %v2238_v22, %v11651_v50  ;;  %v11667_v49 = vsub.f32 %v9707_v24, %v11348_v35  ;;  %v13904_v50 = vld [vmem:[#allocation42_spill] sm:$0xff] }
 0x363   :  { %v2242_v46 = vpop.f32.mrb[166].mxu0  ;;  %v11664_v42 = vpop.f32.mrb[166].mxu1 }
 0x364   :  { %13901 = vst [vmem:[#allocation63_spill] sm:$0xff] %v11667_v49  ;;  %2439 = vst [vmem:[#allocation8 + $0x30] sm:$0xff] %v2414_v14  ;;  %v2358_v19 = vadd.f32 %v2333_v51, %v11337_v13  ;;  %v2243_v39 = vadd.f32 1.0, %v2242_v46  ;;  %v8203_v6 = vpop.f32.mrb[167].mxu0  ;;  %v8280_v47 = vpop.f32.mrb[167].mxu1  ;;  %8519 = vmatmul.mubr.msk.f32.gmra.mrb[16].mxu0 %vm906_vm2, %v10480_v12  ;;  %8596 = vmatmul.mubr.msk.f32.gmra.mrb[16].mxu1 %vm906_vm2, %v13902_v34 }
 0x365   :  { %8521 = vmatprep.mubr.msk.f32.mxu0 %vm9826_vm0, %v13833_v38  ;;  %8598 = vmatprep.mubr.msk.f32.mxu1 %vm9826_vm0, %v13833_v38  ;;  %v9708_v47 = vld [vmem:[#allocation5 + $0x48] sm:$0xff] }
 0x366   :  { %2383 = vst [vmem:[#allocation7 + $0x38] sm:$0xff] %v2358_v19  ;;  %v2415_v59 = vmul.f32 %v11550_v45, %v2358_v19  ;;  %v2334_v13 = vmul.f32 %v2243_v39, %v11667_v49  ;;  %v11683_v51 = vsub.f32 %v9708_v47, %v11359_v43  ;;  %v13906_v49 = vld [vmem:[#allocation43_spill] sm:$0xff] }
 0x367   :  { %v2247_v22 = vpop.f32.mrb[168].mxu0  ;;  %v11680_v14 = vpop.f32.mrb[168].mxu1 }
 0x368   :  { %13903 = vst [vmem:[#allocation64_spill] sm:$0xff] %v11683_v51  ;;  %2440 = vst [vmem:[#allocation8 + $0x38] sm:$0xff] %v2415_v59  ;;  %v2359_v46 = vadd.f32 %v2334_v13, %v11348_v35  ;;  %v2248_v24 = vadd.f32 1.0, %v2247_v22  ;;  %v8206_v6 = vpop.f32.mrb[169].mxu0  ;;  %v8283_v34 = vpop.f32.mrb[169].mxu1  ;;  %8522 = vmatmul.mubr.msk.f32.gmra.mrb[18].mxu0 %vm906_vm2, %v10492_v0  ;;  %8599 = vmatmul.mubr.msk.f32.gmra.mrb[18].mxu1 %vm906_vm2, %v13904_v50 }
 0x369   :  { %8524 = vmatprep.mubr.msk.f32.mxu0 %vm9826_vm0, %v13833_v38  ;;  %8601 = vmatprep.mubr.msk.f32.mxu1 %vm9826_vm0, %v13833_v38  ;;  %v9709_v34 = vld [vmem:[#allocation5 + $0x50] sm:$0xff] }
 0x36a   :  { %2384 = vst [vmem:[#allocation7 + $0x40] sm:$0xff] %v2359_v46  ;;  %v2416_v19 = vmul.f32 %v11550_v45, %v2359_v46  ;;  %v2335_v35 = vmul.f32 %v2248_v24, %v11683_v51  ;;  %v11699_v13 = vsub.f32 %v9709_v34, %v11370_v20  ;;  %v13908_v51 = vld [vmem:[#allocation44_spill] sm:$0xff] }
 0x36b   :  { %v2252_v39 = vpop.f32.mrb[170].mxu0  ;;  %v11696_v59 = vpop.f32.mrb[170].mxu1 }
 0x36c   :  { %13905 = vst [vmem:[#allocation65_spill] sm:$0xff] %v11699_v13  ;;  %2441 = vst [vmem:[#allocation8 + $0x40] sm:$0xff] %v2416_v19  ;;  %v2360_v22 = vadd.f32 %v2335_v35, %v11359_v43  ;;  %v2253_v47 = vadd.f32 1.0, %v2252_v39  ;;  %v8209_v6 = vpop.f32.mrb[171].mxu0  ;;  %v8286_v50 = vpop.f32.mrb[171].mxu1  ;;  %8525 = vmatmul.mubr.msk.f32.gmra.mrb[20].mxu0 %vm906_vm2, %v10504_v30  ;;  %8602 = vmatmul.mubr.msk.f32.gmra.mrb[20].mxu1 %vm906_vm2, %v13906_v49 }
 0x36d   :  { %8527 = vmatprep.mubr.msk.f32.mxu0 %vm9826_vm0, %v13833_v38  ;;  %8604 = vmatprep.mubr.msk.f32.mxu1 %vm9826_vm0, %v13833_v38  ;;  %v9710_v50 = vld [vmem:[#allocation5 + $0x58] sm:$0xff] }
 0x36e   :  { %2385 = vst [vmem:[#allocation7 + $0x48] sm:$0xff] %v2360_v22  ;;  %v2417_v46 = vmul.f32 %v11550_v45, %v2360_v22  ;;  %v2336_v43 = vmul.f32 %v2253_v47, %v11699_v13  ;;  %v11715_v35 = vsub.f32 %v9710_v50, %v11381_v44  ;;  %v13910_v13 = vld [vmem:[#allocation45_spill] sm:$0xff] }
 0x36f   :  { %v2257_v24 = vpop.f32.mrb[172].mxu0  ;;  %v11712_v19 = vpop.f32.mrb[172].mxu1 }
 0x370   :  { %13907 = vst [vmem:[#allocation66_spill] sm:$0xff] %v11715_v35  ;;  %2442 = vst [vmem:[#allocation8 + $0x48] sm:$0xff] %v2417_v46  ;;  %v2361_v39 = vadd.f32 %v2336_v43, %v11370_v20  ;;  %v2258_v34 = vadd.f32 1.0, %v2257_v24  ;;  %v8212_v6 = vpop.f32.mrb[173].mxu0  ;;  %v8289_v49 = vpop.f32.mrb[173].mxu1  ;;  %8528 = vmatmul.mubr.msk.f32.gmra.mrb[22].mxu0 %vm906_vm2, %v10516_v32  ;;  %8605 = vmatmul.mubr.msk.f32.gmra.mrb[22].mxu1 %vm906_vm2, %v13908_v51 }
 0x371   :  { %8530 = vmatprep.mubr.msk.f32.mxu0 %vm9826_vm0, %v13833_v38  ;;  %8607 = vmatprep.mubr.msk.f32.mxu1 %vm9826_vm0, %v13833_v38  ;;  %v9711_v49 = vld [vmem:[#allocation5 + $0x60] sm:$0xff] }
 0x372   :  { %2386 = vst [vmem:[#allocation7 + $0x50] sm:$0xff] %v2361_v39  ;;  %v2418_v22 = vmul.f32 %v11550_v45, %v2361_v39  ;;  %v2337_v20 = vmul.f32 %v2258_v34, %v11715_v35  ;;  %v11731_v43 = vsub.f32 %v9711_v49, %v11392_v28  ;;  %v13912_v35 = vld [vmem:[#allocation46_spill] sm:$0xff] }
 0x373   :  { %v2262_v47 = vpop.f32.mrb[174].mxu0  ;;  %v11728_v46 = vpop.f32.mrb[174].mxu1 }
 0x374   :  { %13909 = vst [vmem:[#allocation67_spill] sm:$0xff] %v11731_v43  ;;  %2443 = vst [vmem:[#allocation8 + $0x50] sm:$0xff] %v2418_v22  ;;  %v2362_v24 = vadd.f32 %v2337_v20, %v11381_v44  ;;  %v2263_v50 = vadd.f32 1.0, %v2262_v47  ;;  %v8215_v6 = vpop.f32.mrb[175].mxu0  ;;  %v8292_v51 = vpop.f32.mrb[175].mxu1  ;;  %8531 = vmatmul.mubr.msk.f32.gmra.mrb[24].mxu0 %vm906_vm2, %v10528_v48  ;;  %8608 = vmatmul.mubr.msk.f32.gmra.mrb[24].mxu1 %vm906_vm2, %v13910_v13 }
 0x375   :  { %8533 = vmatprep.mubr.msk.f32.mxu0 %vm9826_vm0, %v13833_v38  ;;  %8610 = vmatprep.mubr.msk.f32.mxu1 %vm9826_vm0, %v13833_v38  ;;  %v9712_v51 = vld [vmem:[#allocation5 + $0x68] sm:$0xff] }
 0x376   :  { %2387 = vst [vmem:[#allocation7 + $0x58] sm:$0xff] %v2362_v24  ;;  %v2419_v39 = vmul.f32 %v11550_v45, %v2362_v24  ;;  %v2338_v44 = vmul.f32 %v2263_v50, %v11731_v43  ;;  %v11747_v20 = vsub.f32 %v9712_v51, %v11403_v10  ;;  %v13914_v43 = vld [vmem:[#allocation47_spill] sm:$0xff] }
 0x377   :  { %v2267_v34 = vpop.f32.mrb[176].mxu0  ;;  %v11744_v22 = vpop.f32.mrb[176].mxu1 }
 0x378   :  { %13911 = vst [vmem:[#allocation68_spill] sm:$0xff] %v11747_v20  ;;  %2444 = vst [vmem:[#allocation8 + $0x58] sm:$0xff] %v2419_v39  ;;  %v2363_v47 = vadd.f32 %v2338_v44, %v11392_v28  ;;  %v2268_v49 = vadd.f32 1.0, %v2267_v34  ;;  %v8218_v6 = vpop.f32.mrb[177].mxu0  ;;  %v8295_v13 = vpop.f32.mrb[177].mxu1  ;;  %8534 = vmatmul.mubr.msk.f32.gmra.mrb[26].mxu0 %vm906_vm2, %v10540_v36  ;;  %8611 = vmatmul.mubr.msk.f32.gmra.mrb[26].mxu1 %vm906_vm2, %v13912_v35 }
 0x379   :  { %8536 = vmatprep.mubr.msk.f32.mxu0 %vm9826_vm0, %v13833_v38  ;;  %8613 = vmatprep.mubr.msk.f32.mxu1 %vm9826_vm0, %v13833_v38  ;;  %v9713_v13 = vld [vmem:[#allocation5 + $0x70] sm:$0xff] }
 0x37a   :  { %2388 = vst [vmem:[#allocation7 + $0x60] sm:$0xff] %v2363_v47  ;;  %v2420_v24 = vmul.f32 %v11550_v45, %v2363_v47  ;;  %v2339_v28 = vmul.f32 %v2268_v49, %v11747_v20  ;;  %v11763_v44 = vsub.f32 %v9713_v13, %v11414_v61  ;;  %v13916_v20 = vld [vmem:[#allocation48_spill] sm:$0xff] }
 0x37b   :  { %v2272_v50 = vpop.f32.mrb[178].mxu0  ;;  %v11760_v39 = vpop.f32.mrb[178].mxu1 }
 0x37c   :  { %13913 = vst [vmem:[#allocation69_spill] sm:$0xff] %v11763_v44  ;;  %2445 = vst [vmem:[#allocation8 + $0x60] sm:$0xff] %v2420_v24  ;;  %v2364_v34 = vadd.f32 %v2339_v28, %v11403_v10  ;;  %v2273_v51 = vadd.f32 1.0, %v2272_v50  ;;  %v8221_v6 = vpop.f32.mrb[179].mxu0  ;;  %v8298_v35 = vpop.f32.mrb[179].mxu1  ;;  %8537 = vmatmul.mubr.msk.f32.gmra.mrb[28].mxu0 %vm906_vm2, %v10552_v18  ;;  %8614 = vmatmul.mubr.msk.f32.gmra.mrb[28].mxu1 %vm906_vm2, %v13914_v43 }
 0x37d   :  { %8539 = vmatprep.mubr.msk.f32.mxu0 %vm9826_vm0, %v13833_v38  ;;  %8616 = vmatprep.mubr.msk.f32.mxu1 %vm9826_vm0, %v13833_v38  ;;  %v9714_v35 = vld [vmem:[#allocation5 + $0x78] sm:$0xff] }
 0x37e   :  { %2389 = vst [vmem:[#allocation7 + $0x68] sm:$0xff] %v2364_v34  ;;  %v2421_v47 = vmul.f32 %v11550_v45, %v2364_v34  ;;  %v2340_v10 = vmul.f32 %v2273_v51, %v11763_v44  ;;  %v11779_v28 = vsub.f32 %v9714_v35, %v11425_v33  ;;  %v13918_v44 = vld [vmem:[#allocation49_spill] sm:$0xff] }
 0x37f   :  { %v2277_v49 = vpop.f32.mrb[180].mxu0  ;;  %v11776_v24 = vpop.f32.mrb[180].mxu1 }
 0x380   :  { %13915 = vst [vmem:[#allocation70_spill] sm:$0xff] %v11779_v28  ;;  %2446 = vst [vmem:[#allocation8 + $0x68] sm:$0xff] %v2421_v47  ;;  %v2365_v50 = vadd.f32 %v2340_v10, %v11414_v61  ;;  %v2278_v13 = vadd.f32 1.0, %v2277_v49  ;;  %v8224_v6 = vpop.f32.mrb[181].mxu0  ;;  %v8301_v43 = vpop.f32.mrb[181].mxu1  ;;  %8540 = vmatmul.mubr.msk.f32.gmra.mrb[30].mxu0 %vm906_vm2, %v10564_v37  ;;  %8617 = vmatmul.mubr.msk.f32.gmra.mrb[30].mxu1 %vm906_vm2, %v13916_v20 }
 0x381   :  { %8542 = vmatprep.mubr.msk.f32.mxu0 %vm9826_vm0, %v13833_v38  ;;  %8619 = vmatprep.mubr.msk.f32.mxu1 %vm9826_vm0, %v13833_v38  ;;  %v9715_v43 = vld [vmem:[#allocation5 + $0x80] sm:$0xff] }
 0x382   :  { %2390 = vst [vmem:[#allocation7 + $0x70] sm:$0xff] %v2365_v50  ;;  %v2422_v34 = vmul.f32 %v11550_v45, %v2365_v50  ;;  %v2341_v61 = vmul.f32 %v2278_v13, %v11779_v28  ;;  %v11795_v10 = vsub.f32 %v9715_v43, %v11436_v26  ;;  %v13920_v28 = vld [vmem:[#allocation50_spill] sm:$0xff] }
 0x383   :  { %v2282_v51 = vpop.f32.mrb[182].mxu0  ;;  %v11792_v47 = vpop.f32.mrb[182].mxu1 }
 0x384   :  { %13917 = vst [vmem:[#allocation71_spill] sm:$0xff] %v11795_v10  ;;  %2447 = vst [vmem:[#allocation8 + $0x70] sm:$0xff] %v2422_v34  ;;  %v2366_v49 = vadd.f32 %v2341_v61, %v11425_v33  ;;  %v2283_v35 = vadd.f32 1.0, %v2282_v51  ;;  %v8227_v6 = vpop.f32.mrb[183].mxu0  ;;  %v8304_v20 = vpop.f32.mrb[183].mxu1  ;;  %8543 = vmatmul.mubr.msk.f32.gmra.mrb[32].mxu0 %vm906_vm2, %v10576_v60  ;;  %8620 = vmatmul.mubr.msk.f32.gmra.mrb[32].mxu1 %vm906_vm2, %v13918_v44 }
 0x385   :  { %8545 = vmatprep.mubr.msk.f32.mxu0 %vm9826_vm0, %v13833_v38  ;;  %8622 = vmatprep.mubr.msk.f32.mxu1 %vm9826_vm0, %v13833_v38  ;;  %v9716_v20 = vld [vmem:[#allocation5 + $0x88] sm:$0xff] }
 0x386   :  { %2391 = vst [vmem:[#allocation7 + $0x78] sm:$0xff] %v2366_v49  ;;  %v2423_v50 = vmul.f32 %v11550_v45, %v2366_v49  ;;  %v2342_v33 = vmul.f32 %v2283_v35, %v11795_v10  ;;  %v11811_v61 = vsub.f32 %v9716_v20, %v11447_v11  ;;  %v13922_v10 = vld [vmem:[#allocation51_spill] sm:$0xff] }
 0x387   :  { %v2287_v13 = vpop.f32.mrb[184].mxu0  ;;  %v11808_v34 = vpop.f32.mrb[184].mxu1 }
 0x388   :  { %13919 = vst [vmem:[#allocation72_spill] sm:$0xff] %v11811_v61  ;;  %2448 = vst [vmem:[#allocation8 + $0x78] sm:$0xff] %v2423_v50  ;;  %v2367_v51 = vadd.f32 %v2342_v33, %v11436_v26  ;;  %v2288_v43 = vadd.f32 1.0, %v2287_v13  ;;  %v8230_v6 = vpop.f32.mrb[185].mxu0  ;;  %v8307_v44 = vpop.f32.mrb[185].mxu1  ;;  %8546 = vmatmul.mubr.msk.f32.gmra.mrb[34].mxu0 %vm906_vm2, %v10588_v9  ;;  %8623 = vmatmul.mubr.msk.f32.gmra.mrb[34].mxu1 %vm906_vm2, %v13920_v28 }
 0x389   :  { %8548 = vmatprep.mubr.msk.f32.mxu0 %vm9826_vm0, %v13833_v38  ;;  %8625 = vmatprep.mubr.msk.f32.mxu1 %vm9826_vm0, %v13833_v38  ;;  %v9717_v44 = vld [vmem:[#allocation5 + $0x90] sm:$0xff] }
 0x38a   :  { %2392 = vst [vmem:[#allocation7 + $0x80] sm:$0xff] %v2367_v51  ;;  %v2424_v49 = vmul.f32 %v11550_v45, %v2367_v51  ;;  %v2343_v26 = vmul.f32 %v2288_v43, %v11811_v61  ;;  %v11827_v33 = vsub.f32 %v9717_v44, %v11458_v27  ;;  %v13924_v61 = vld [vmem:[#allocation52_spill] sm:$0xff] }
 0x38b   :  { %v2292_v35 = vpop.f32.mrb[186].mxu0  ;;  %v11824_v50 = vpop.f32.mrb[186].mxu1 }
 0x38c   :  { %13921 = vst [vmem:[#allocation73_spill] sm:$0xff] %v11827_v33  ;;  %2449 = vst [vmem:[#allocation8 + $0x80] sm:$0xff] %v2424_v49  ;;  %v2368_v13 = vadd.f32 %v2343_v26, %v11447_v11  ;;  %v2293_v20 = vadd.f32 1.0, %v2292_v35  ;;  %v8233_v6 = vpop.f32.mrb[187].mxu0  ;;  %v8310_v28 = vpop.f32.mrb[187].mxu1  ;;  %8549 = vmatmul.mubr.msk.f32.gmra.mrb[36].mxu0 %vm906_vm2, %v10600_v8  ;;  %8626 = vmatmul.mubr.msk.f32.gmra.mrb[36].mxu1 %vm906_vm2, %v13922_v10 }
 0x38d   :  { %8551 = vmatprep.mubr.msk.f32.mxu0 %vm9826_vm0, %v13833_v38  ;;  %8628 = vmatprep.mubr.msk.f32.mxu1 %vm9826_vm0, %v13833_v38  ;;  %v9718_v28 = vld [vmem:[#allocation5 + $0x98] sm:$0xff] }
 0x38e   :  { %2393 = vst [vmem:[#allocation7 + $0x88] sm:$0xff] %v2368_v13  ;;  %v2425_v51 = vmul.f32 %v11550_v45, %v2368_v13  ;;  %v2344_v11 = vmul.f32 %v2293_v20, %v11827_v33  ;;  %v11843_v26 = vsub.f32 %v9718_v28, %v11469_v56  ;;  %v13926_v33 = vld [vmem:[#allocation28_spill] sm:$0xff] }
 0x38f   :  { %v2297_v43 = vpop.f32.mrb[188].mxu0  ;;  %v11840_v49 = vpop.f32.mrb[188].mxu1 }
 0x390   :  { %13923 = vst [vmem:[#allocation74_spill] sm:$0xff] %v11843_v26  ;;  %2450 = vst [vmem:[#allocation8 + $0x88] sm:$0xff] %v2425_v51  ;;  %v2369_v35 = vadd.f32 %v2344_v11, %v11458_v27  ;;  %v2298_v44 = vadd.f32 1.0, %v2297_v43  ;;  %v8236_v6 = vpop.f32.mrb[189].mxu0  ;;  %v8313_v10 = vpop.f32.mrb[189].mxu1  ;;  %8552 = vmatmul.mubr.msk.f32.gmra.mrb[38].mxu0 %vm906_vm2, %v10612_v41  ;;  %8629 = vmatmul.mubr.msk.f32.gmra.mrb[38].mxu1 %vm906_vm2, %v13924_v61  ;;  %v13927_v41 = vld [vmem:[#allocation53_spill] sm:$0xff] }
 0x391   :  { %8554 = vmatprep.mubr.msk.f32.mxu0 %vm9826_vm0, %v13833_v38  ;;  %8631 = vmatprep.mubr.msk.f32.mxu1 %vm9826_vm0, %v13833_v38  ;;  %v9719_v10 = vld [vmem:[#allocation5 + $0xa0] sm:$0xff] }
 0x392   :  { %2394 = vst [vmem:[#allocation7 + $0x90] sm:$0xff] %v2369_v35  ;;  %v2426_v13 = vmul.f32 %v11550_v45, %v2369_v35  ;;  %v2345_v27 = vmul.f32 %v2298_v44, %v11843_v26  ;;  %v11859_v11 = vsub.f32 %v9719_v10, %v11483_v40 }
 0x393   :  { %v2302_v20 = vpop.f32.mrb[190].mxu0  ;;  %v11856_v51 = vpop.f32.mrb[190].mxu1 }
 0x394   :  { %13925 = vst [vmem:[#allocation75_spill] sm:$0xff] %v11859_v11  ;;  %2451 = vst [vmem:[#allocation8 + $0x90] sm:$0xff] %v2426_v13  ;;  %v2370_v43 = vadd.f32 %v2345_v27, %v11469_v56  ;;  %v2303_v28 = vadd.f32 1.0, %v2302_v20  ;;  %v8239_v6 = vpop.f32.mrb[191].mxu0  ;;  %v8316_v61 = vpop.f32.mrb[191].mxu1  ;;  %8555 = vmatmul.mubr.msk.f32.gmra.mrb[40].mxu0 %vm906_vm2, %v13926_v33  ;;  %8632 = vmatmul.mubr.msk.f32.gmra.mrb[40].mxu1 %vm906_vm2, %v13927_v41  ;;  %v9720_v27 = vld [vmem:[#allocation5 + $0xa8] sm:$0xff] }
 0x395   :  { %8557 = vmatprep.mubr.msk.f32.mxu0 %vm9826_vm0, %v13833_v38  ;;  %8634 = vmatprep.mubr.msk.f32.mxu1 %vm9826_vm0, %v13833_v38  ;;  %v6788_v61 = vld [vmem:[%s13657_s3 + $0x28] sm:$0xff]  ;;  %v11878_v20 = vsub.f32 %v9720_v27, %v11494_v1 }
 0x396   :  { %2395 = vst [vmem:[#allocation7 + $0x98] sm:$0xff] %v2370_v43  ;;  %v2427_v35 = vmul.f32 %v11550_v45, %v2370_v43  ;;  %v2346_v56 = vmul.f32 %v2303_v28, %v11859_v11  ;;  %v13929_v43 = vld [vmem:[#allocation29_spill] sm:$0xff]  ;;  %v13930_v28 = vld [vmem:[#allocation54_spill] sm:$0xff]  ;;  %v4609_v27 = vcombine.high %v6788_v61, %v6788_v61 }
 0x397   :  { %v2307_v44 = vpop.f32.mrb[192].mxu0  ;;  %v11875_v13 = vpop.f32.mrb[192].mxu1  ;;  %13928 = vst [vmem:[#allocation76_spill] sm:$0xff] %v11878_v20 }
 0x398   :  { %2452 = vst [vmem:[#allocation8 + $0x98] sm:$0xff] %v2427_v35  ;;  %v2371_v10 = vadd.f32 %v2346_v56, %v11483_v40  ;;  %v2308_v6 = vadd.f32 1.0, %v2307_v44  ;;  %v8242_v41 = vpop.f32.mrb[193].mxu0  ;;  %v8319_v26 = vpop.f32.mrb[193].mxu1  ;;  %8558 = vmatmul.mubr.msk.f32.gmra.mrb[42].mxu0 %vm906_vm2, %v13929_v43  ;;  %8635 = vmatmul.mubr.msk.f32.gmra.mrb[42].mxu1 %vm906_vm2, %v13930_v28  ;;  %v9721_v56 = vld [vmem:[#allocation5 + $0xb0] sm:$0xff] }
 0x399   :  { %8639 = vmatprep.mubr.msk.f32.mxu0 %vm9826_vm0, %v13833_v38  ;;  %8716 = vmatprep.mubr.msk.f32.mxu1 %vm9826_vm0, %v13833_v38  ;;  %v11894_v44 = vsub.f32 %v9721_v56, %v11509_v17 }
 0x39a   :  { %2396 = vst [vmem:[#allocation7 + $0xa0] sm:$0xff] %v2371_v10  ;;  %v2428_v35 = vmul.f32 %v11550_v45, %v2371_v10  ;;  %v2347_v40 = vmul.f32 %v2308_v6, %v11878_v20 }
 0x39b   :  { %v2312_v41 = vpop.f32.mrb[194].mxu0  ;;  %v11891_v26 = vpop.f32.mrb[194].mxu1  ;;  %13931 = vst [vmem:[#allocation77_spill] sm:$0xff] %v11894_v44 }
 0x39c   :  { %2453 = vst [vmem:[#allocation8 + $0xa0] sm:$0xff] %v2428_v35  ;;  %v2372_v28 = vadd.f32 %v2347_v40, %v11494_v1  ;;  %v2313_v11 = vadd.f32 1.0, %v2312_v41  ;;  %v8245_v43 = vpop.f32.mrb[195].mxu0  ;;  %v8322_v33 = vpop.f32.mrb[195].mxu1  ;;  %8640 = vmatmul.mubr.msk.f32.vlgmr.msra.gmra.mrb[44].mxu0 %vm906_vm2, %v10362_v16  ;;  %8717 = vmatmul.mubr.msk.f32.vlgmr.msra.gmra.mrb[44].mxu1 %vm906_vm2, %v10362_v16  ;;  %v2679_v40 = vld [vmem:[#allocation2] sm:$0xff] }
 0x39d   :  { %8792 = vmatpush3.msk.msra.mxu0 %vm982_vm1, %v6788_v61  ;;  %8869 = vmatpush3.msk.msra.mxu1 %vm982_vm1, %v4609_v27  ;;  %v9722_v61 = vld [vmem:[#allocation5 + $0xb8] sm:$0xff] }
 0x39e   :  { %2397 = vst [vmem:[#allocation7 + $0xa8] sm:$0xff] %v2372_v28  ;;  %v2429_v10 = vmul.f32 %v11550_v45, %v2372_v28  ;;  %v2348_v6 = vmul.f32 %v2313_v11, %v11894_v44  ;;  %8642 = vmatprep.mubr.msk.f32.mxu0 %vm9826_vm0, %v13833_v38  ;;  %8719 = vmatprep.mubr.msk.f32.mxu1 %vm9826_vm0, %v13833_v38 }
 0x39f   :  { %v2317_v1 = vpop.f32.mrb[196].mxu0  ;;  %v11909_v33 = vpop.f32.mrb[196].mxu1  ;;  %8945 = vmatprep.subr.mxu0 %v13833_v38  ;;  %9022 = vmatprep.subr.mxu1 %v13833_v38  ;;  %v11914_v43 = vsub.f32 %v9722_v61, %v11520_v25  ;;  %v2704_v61 = vmul.f32 %v2679_v40, %v11531_v29  ;;  %v3190_v40 = vld [vmem:[#allocation2 + $0x190] sm:$0xff] }
 0x3a0   :  { %2454 = vst [vmem:[#allocation8 + $0xa8] sm:$0xff] %v2429_v10  ;;  %v2373_v11 = vadd.f32 %v2348_v6, %v11509_v17  ;;  %v2318_v28 = vadd.f32 1.0, %v2317_v1  ;;  %v8248_v27 = vpop.f32.mrb[197].mxu0  ;;  %v8325_v35 = vpop.f32.mrb[197].mxu1  ;;  %8643 = vmatmul.mubr.msk.f32.gmra.mrb[46].mxu0 %vm906_vm2, %v10374_v31  ;;  %8720 = vmatmul.mubr.msk.f32.gmra.mrb[46].mxu1 %vm906_vm2, %v10374_v31  ;;  %v9723_v6 = vld [vmem:[#allocation5 + $0xc0] sm:$0xff] }
 0x3a1   :  { %13932 = vst [vmem:[#allocation78_spill] sm:$0xff] %v11914_v43  ;;  %8645 = vmatprep.mubr.msk.f32.mxu0 %vm9826_vm0, %v13833_v38  ;;  %8722 = vmatprep.mubr.msk.f32.mxu1 %vm9826_vm0, %v13833_v38  ;;  %v11930_v1 = vsub.f32 %v9723_v6, %v11536_v7  ;;  %v2680_v27 = vld [vmem:[#allocation2 + $0x8] sm:$0xff] }
 0x3a2   :  { %2398 = vst [vmem:[#allocation7 + $0xb0] sm:$0xff] %v2373_v11  ;;  %v2430_v41 = vmul.f32 %v11550_v45, %v2373_v11  ;;  %v2349_v17 = vmul.f32 %v2318_v28, %v11914_v43  ;;  %v2461_v11 = vld [vmem:[#allocation2 + $0xc8] sm:$0xff] }
 0x3a3   :  { %v2322_v56 = vpop.f32.mrb[198].mxu0  ;;  %v11927_v10 = vpop.f32.mrb[198].mxu1  ;;  %13934 = vst [vmem:[#allocation80_spill] sm:$0xff] %v11930_v1 }
 0x3a4   :  { %13933 = vst [vmem:[#allocation79_spill] sm:$0xff] %v11927_v10  ;;  %2455 = vst [vmem:[#allocation8 + $0xb0] sm:$0xff] %v2430_v41  ;;  %v2374_v35 = vadd.f32 %v2349_v17, %v11520_v25  ;;  %v2323_v44 = vadd.f32 1.0, %v2322_v56  ;;  %v8251_v20 = vpop.f32.mrb[199].mxu0  ;;  %v8328_v31 = vpop.f32.mrb[199].mxu1  ;;  %8646 = vmatmul.mubr.msk.f32.gmra.mrb[48].mxu0 %vm906_vm2, %v13883_v2  ;;  %8723 = vmatmul.mubr.msk.f32.gmra.mrb[48].mxu1 %vm906_vm2, %v13883_v2  ;;  %v2729_v17 = vadd.f32 %v2704_v61, %v2461_v11  ;;  %v13935_v10 = vld [vmem:[#allocation18_spill] sm:$0xff] }
 0x3a5   :  { %8648 = vmatprep.mubr.msk.f32.mxu0 %vm9826_vm0, %v13833_v38  ;;  %8725 = vmatprep.mubr.msk.f32.mxu1 %vm9826_vm0, %v13833_v38  ;;  %v2705_v31 = vmul.f32 %v2680_v27, %v11552_v21 }
 0x3a6   :  { %2399 = vst [vmem:[#allocation7 + $0xb8] sm:$0xff] %v2374_v35  ;;  %v2431_v29 = vmul.f32 %v11550_v45, %v2374_v35  ;;  %v2350_v25 = vmul.f32 %v2323_v44, %v11930_v1  ;;  %v2462_v35 = vld [vmem:[#allocation2 + $0xd0] sm:$0xff] }
 0x3a7   :  { %v2823_v20 = vpop.f32.mrb[200].mxu0  ;;  %v3066_v28 = vpop.f32.mrb[200].mxu1  ;;  %v2681_v44 = vld [vmem:[#allocation2 + $0x10] sm:$0xff] }
 0x3a8   :  { %2456 = vst [vmem:[#allocation8 + $0xb8] sm:$0xff] %v2431_v29  ;;  %v2375_v41 = vadd.f32 %v2350_v25, %v11536_v7  ;;  %v2947_v56 = vmul.f32 %v2823_v20, %v2461_v11  ;;  %v8333_v6 = vpop.f32.mrb[201].mxu0  ;;  %v8410_v43 = vpop.f32.mrb[201].mxu1  ;;  %8649 = vmatmul.mubr.msk.f32.gmra.mrb[50].mxu0 %vm906_vm2, %v10396_v55  ;;  %8726 = vmatmul.mubr.msk.f32.gmra.mrb[50].mxu1 %vm906_vm2, %v10396_v55  ;;  %v3191_v29 = vld [vmem:[#allocation2 + $0x198] sm:$0xff] }
 0x3a9   :  { %8651 = vmatprep.mubr.msk.f32.mxu0 %vm9826_vm0, %v13833_v38  ;;  %8728 = vmatprep.mubr.msk.f32.mxu1 %vm9826_vm0, %v13833_v38  ;;  %v3215_v61 = vmul.f32 %v3190_v40, %v3066_v28  ;;  %v2730_v43 = vadd.f32 %v2705_v31, %v2462_v35  ;;  %v2706_v25 = vmul.f32 %v2681_v44, %v11568_v23  ;;  %v2682_v20 = vld [vmem:[#allocation2 + $0x18] sm:$0xff] }
 0x3aa   :  { %2400 = vst [vmem:[#allocation7 + $0xc0] sm:$0xff] %v2375_v41  ;;  %v2432_v7 = vmul.f32 %v11550_v45, %v2375_v41  ;;  %v2972_v21 = vadd.f32 %v2947_v56, %v2729_v17  ;;  %v2463_v45 = vld [vmem:[#allocation2 + $0xd8] sm:$0xff]  ;;  %v2707_v28 = vmul.f32 %v2682_v20, %v11584_v15 }
 0x3ab   :  { %v2828_v27 = vpop.f32.mrb[202].mxu0  ;;  %v3071_v11 = vpop.f32.mrb[202].mxu1  ;;  %v2731_v17 = vadd.f32 %v2706_v25, %v2463_v45  ;;  %v2684_v25 = vld [vmem:[#allocation2 + $0x28] sm:$0xff] }
 0x3ac   :  { %2457 = vst [vmem:[#allocation8 + $0xc0] sm:$0xff] %v2432_v7  ;;  %v11956_v6 = vadd.f32 %v3215_v61, %v2972_v21  ;;  %v2948_v1 = vmul.f32 %v2828_v27, %v2462_v35  ;;  %v8336_v55 = vpop.f32.mrb[203].mxu0  ;;  %v8413_v2 = vpop.f32.mrb[203].mxu1  ;;  %8652 = vmatmul.mubr.msk.f32.gmra.mrb[52].mxu0 %vm906_vm2, %v13935_v10  ;;  %8729 = vmatmul.mubr.msk.f32.gmra.mrb[52].mxu1 %vm906_vm2, %v13935_v10  ;;  %v2464_v7 = vld [vmem:[#allocation2 + $0xe0] sm:$0xff] }
 0x3ad   :  { %8654 = vmatprep.mubr.msk.f32.mxu0 %vm9826_vm0, %v13833_v38  ;;  %8731 = vmatprep.mubr.msk.f32.mxu1 %vm9826_vm0, %v13833_v38  ;;  %v3216_v31 = vmul.f32 %v3191_v29, %v3071_v11  ;;  %v3192_v2 = vld [vmem:[#allocation2 + $0x1a0] sm:$0xff]  ;;  %v2732_v61 = vadd.f32 %v2707_v28, %v2464_v7  ;;  %v3193_v11 = vld [vmem:[#allocation2 + $0x1a8] sm:$0xff] }
 0x3ae   :  { %v2973_v23 = vadd.f32 %v2948_v1, %v2730_v43  ;;  %v2683_v1 = vld [vmem:[#allocation2 + $0x20] sm:$0xff] }
 0x3af   :  { %v2833_v40 = vpop.f32.mrb[204].mxu0  ;;  %v3076_v55 = vpop.f32.mrb[204].mxu1  ;;  %v2708_v29 = vmul.f32 %v2683_v1, %v11600_v54 }
 0x3b0   :  { %v11967_v41 = vadd.f32 %v3216_v31, %v2973_v23  ;;  %v2949_v56 = vmul.f32 %v2833_v40, %v2463_v45  ;;  %v8339_v35 = vpop.f32.mrb[205].mxu0  ;;  %v8416_v44 = vpop.f32.mrb[205].mxu1  ;;  %8655 = vmatmul.mubr.msk.f32.gmra.mrb[54].mxu0 %vm906_vm2, %v10416_v57  ;;  %8732 = vmatmul.mubr.msk.f32.gmra.mrb[54].mxu1 %vm906_vm2, %v10416_v57  ;;  %v3217_v21 = vmul.f32 %v3192_v2, %v3076_v55  ;;  %v2465_v40 = vld [vmem:[#allocation2 + $0xe8] sm:$0xff] }
 0x3b1   :  { %8657 = vmatprep.mubr.msk.f32.mxu0 %vm9826_vm0, %v13833_v38  ;;  %8734 = vmatprep.mubr.msk.f32.mxu1 %vm9826_vm0, %v13833_v38  ;;  %v2709_v55 = vmul.f32 %v2684_v25, %v11616_v5  ;;  %v2733_v44 = vadd.f32 %v2708_v29, %v2465_v40  ;;  %v3195_v25 = vld [vmem:[#allocation2 + $0x1b8] sm:$0xff] }
 0x3b2   :  { %v2974_v15 = vadd.f32 %v2949_v56, %v2731_v17  ;;  %v3194_v56 = vld [vmem:[#allocation2 + $0x1b0] sm:$0xff] }
 0x3b3   :  { %v2838_v43 = vpop.f32.mrb[206].mxu0  ;;  %v3081_v27 = vpop.f32.mrb[206].mxu1 }
 0x3b4   :  { %v11978_v20 = vadd.f32 %v3217_v21, %v2974_v15  ;;  %v2950_v45 = vmul.f32 %v2838_v43, %v2464_v7  ;;  %v8342_v23 = vpop.f32.mrb[207].mxu0  ;;  %v8419_v31 = vpop.f32.mrb[207].mxu1  ;;  %8658 = vmatmul.mubr.msk.f32.gmra.mrb[56].mxu0 %vm906_vm2, %v10426_v62  ;;  %8735 = vmatmul.mubr.msk.f32.gmra.mrb[56].mxu1 %vm906_vm2, %v10426_v62  ;;  %v3218_v28 = vmul.f32 %v3193_v11, %v3081_v27  ;;  %v2466_v21 = vld [vmem:[#allocation2 + $0xf0] sm:$0xff] }
 0x3b5   :  { %8660 = vmatprep.mubr.msk.f32.mxu0 %vm9826_vm0, %v13833_v38  ;;  %8737 = vmatprep.mubr.msk.f32.mxu1 %vm9826_vm0, %v13833_v38  ;;  %v2734_v27 = vadd.f32 %v2709_v55, %v2466_v21  ;;  %v2686_v23 = vld [vmem:[#allocation2 + $0x38] sm:$0xff] }
 0x3b6   :  { %v2975_v54 = vadd.f32 %v2950_v45, %v2732_v61  ;;  %v2685_v61 = vld [vmem:[#allocation2 + $0x30] sm:$0xff] }
 0x3b7   :  { %v2843_v2 = vpop.f32.mrb[208].mxu0  ;;  %v3086_v17 = vpop.f32.mrb[208].mxu1  ;;  %v2710_v45 = vmul.f32 %v2685_v61, %v11632_v53 }
 0x3b8   :  { %v11989_v35 = vadd.f32 %v3218_v28, %v2975_v54  ;;  %v2951_v7 = vmul.f32 %v2843_v2, %v2465_v40  ;;  %v8345_v1 = vpop.f32.mrb[209].mxu0  ;;  %v8422_v15 = vpop.f32.mrb[209].mxu1  ;;  %8661 = vmatmul.mubr.msk.f32.gmra.mrb[58].mxu0 %vm906_vm2, %v10436_v58  ;;  %8738 = vmatmul.mubr.msk.f32.gmra.mrb[58].mxu1 %vm906_vm2, %v10436_v58  ;;  %v3219_v43 = vmul.f32 %v3194_v56, %v3086_v17  ;;  %v2467_v2 = vld [vmem:[#allocation2 + $0xf8] sm:$0xff] }
 0x3b9   :  { %8663 = vmatprep.mubr.msk.f32.mxu0 %vm9826_vm0, %v13833_v38  ;;  %8740 = vmatprep.mubr.msk.f32.mxu1 %vm9826_vm0, %v13833_v38  ;;  %v2711_v17 = vmul.f32 %v2686_v23, %v11648_v52  ;;  %v2735_v15 = vadd.f32 %v2710_v45, %v2467_v2  ;;  %v3197_v23 = vld [vmem:[#allocation2 + $0x1c8] sm:$0xff] }
 0x3ba   :  { %v2976_v5 = vadd.f32 %v2951_v7, %v2733_v44  ;;  %v3196_v7 = vld [vmem:[#allocation2 + $0x1c0] sm:$0xff] }
 0x3bb   :  { %v2848_v11 = vpop.f32.mrb[210].mxu0  ;;  %v3091_v29 = vpop.f32.mrb[210].mxu1 }
 0x3bc   :  { %v12000_v31 = vadd.f32 %v3219_v43, %v2976_v5  ;;  %v2952_v40 = vmul.f32 %v2848_v11, %v2466_v21  ;;  %v8348_v54 = vpop.f32.mrb[211].mxu0  ;;  %v8425_v28 = vpop.f32.mrb[211].mxu1  ;;  %8664 = vmatmul.mubr.msk.f32.gmra.mrb[60].mxu0 %vm906_vm2, %v10446_v3  ;;  %8741 = vmatmul.mubr.msk.f32.gmra.mrb[60].mxu1 %vm906_vm2, %v10446_v3  ;;  %v3220_v55 = vmul.f32 %v3195_v25, %v3091_v29  ;;  %v2468_v43 = vld [vmem:[#allocation2 + $0x100] sm:$0xff] }
 0x3bd   :  { %8666 = vmatprep.mubr.msk.f32.mxu0 %vm9826_vm0, %v13833_v38  ;;  %8743 = vmatprep.mubr.msk.f32.mxu1 %vm9826_vm0, %v13833_v38  ;;  %v2736_v29 = vadd.f32 %v2711_v17, %v2468_v43  ;;  %v2688_v54 = vld [vmem:[#allocation2 + $0x48] sm:$0xff] }
 0x3be   :  { %v2977_v53 = vadd.f32 %v2952_v40, %v2734_v27  ;;  %v2687_v27 = vld [vmem:[#allocation2 + $0x40] sm:$0xff] }
 0x3bf   :  { %v2853_v56 = vpop.f32.mrb[212].mxu0  ;;  %v3096_v44 = vpop.f32.mrb[212].mxu1  ;;  %v2712_v40 = vmul.f32 %v2687_v27, %v11664_v42 }
 0x3c0   :  { %v12011_v1 = vadd.f32 %v3220_v55, %v2977_v53  ;;  %v2953_v21 = vmul.f32 %v2853_v56, %v2467_v2  ;;  %v8351_v61 = vpop.f32.mrb[213].mxu0  ;;  %v8428_v5 = vpop.f32.mrb[213].mxu1  ;;  %8667 = vmatmul.mubr.msk.f32.gmra.mrb[62].mxu0 %vm906_vm2, %v10456_v63  ;;  %8744 = vmatmul.mubr.msk.f32.gmra.mrb[62].mxu1 %vm906_vm2, %v10456_v63  ;;  %v3221_v11 = vmul.f32 %v3196_v7, %v3096_v44  ;;  %v2469_v56 = vld [vmem:[#allocation2 + $0x108] sm:$0xff] }
 0x3c1   :  { %8669 = vmatprep.mubr.msk.f32.mxu0 %vm9826_vm0, %v13833_v38  ;;  %8746 = vmatprep.mubr.msk.f32.mxu1 %vm9826_vm0, %v13833_v38  ;;  %v2713_v44 = vmul.f32 %v2688_v54, %v11680_v14  ;;  %v2737_v5 = vadd.f32 %v2712_v40, %v2469_v56  ;;  %v3199_v54 = vld [vmem:[#allocation2 + $0x1d8] sm:$0xff] }
 0x3c2   :  { %v2978_v52 = vadd.f32 %v2953_v21, %v2735_v15  ;;  %v3198_v21 = vld [vmem:[#allocation2 + $0x1d0] sm:$0xff] }
 0x3c3   :  { %v2858_v25 = vpop.f32.mrb[214].mxu0  ;;  %v3101_v45 = vpop.f32.mrb[214].mxu1 }
 0x3c4   :  { %v12022_v28 = vadd.f32 %v3221_v11, %v2978_v52  ;;  %v2954_v2 = vmul.f32 %v2858_v25, %v2468_v43  ;;  %v8354_v53 = vpop.f32.mrb[215].mxu0  ;;  %v8431_v55 = vpop.f32.mrb[215].mxu1  ;;  %8670 = vmatmul.mubr.msk.f32.gmra.mrb[64].mxu0 %vm906_vm2, %v10468_v4  ;;  %8747 = vmatmul.mubr.msk.f32.gmra.mrb[64].mxu1 %vm906_vm2, %v10468_v4  ;;  %v3222_v17 = vmul.f32 %v3197_v23, %v3101_v45  ;;  %v2470_v11 = vld [vmem:[#allocation2 + $0x110] sm:$0xff] }
 0x3c5   :  { %8672 = vmatprep.mubr.msk.f32.mxu0 %vm9826_vm0, %v13833_v38  ;;  %8749 = vmatprep.mubr.msk.f32.mxu1 %vm9826_vm0, %v13833_v38  ;;  %v2738_v45 = vadd.f32 %v2713_v44, %v2470_v11  ;;  %v2690_v53 = vld [vmem:[#allocation2 + $0x58] sm:$0xff] }
 0x3c6   :  { %v2979_v42 = vadd.f32 %v2954_v2, %v2736_v29  ;;  %v2689_v29 = vld [vmem:[#allocation2 + $0x50] sm:$0xff] }
 0x3c7   :  { %v2863_v7 = vpop.f32.mrb[216].mxu0  ;;  %v3106_v15 = vpop.f32.mrb[216].mxu1  ;;  %v2714_v2 = vmul.f32 %v2689_v29, %v11696_v59 }
 0x3c8   :  { %v12033_v61 = vadd.f32 %v3222_v17, %v2979_v42  ;;  %v2955_v43 = vmul.f32 %v2863_v7, %v2469_v56  ;;  %v8357_v27 = vpop.f32.mrb[217].mxu0  ;;  %v8434_v52 = vpop.f32.mrb[217].mxu1  ;;  %8673 = vmatmul.mubr.msk.f32.gmra.mrb[66].mxu0 %vm906_vm2, %v10480_v12  ;;  %8750 = vmatmul.mubr.msk.f32.gmra.mrb[66].mxu1 %vm906_vm2, %v10480_v12  ;;  %v3223_v25 = vmul.f32 %v3198_v21, %v3106_v15  ;;  %v2471_v7 = vld [vmem:[#allocation2 + $0x118] sm:$0xff] }
 0x3c9   :  { %8675 = vmatprep.mubr.msk.f32.mxu0 %vm9826_vm0, %v13833_v38  ;;  %8752 = vmatprep.mubr.msk.f32.mxu1 %vm9826_vm0, %v13833_v38  ;;  %v2715_v15 = vmul.f32 %v2690_v53, %v11712_v19  ;;  %v2739_v52 = vadd.f32 %v2714_v2, %v2471_v7  ;;  %v3201_v53 = vld [vmem:[#allocation2 + $0x1e8] sm:$0xff] }
 0x3ca   :  { %v2980_v14 = vadd.f32 %v2955_v43, %v2737_v5  ;;  %v3200_v43 = vld [vmem:[#allocation2 + $0x1e0] sm:$0xff] }
 0x3cb   :  { %v2868_v23 = vpop.f32.mrb[218].mxu0  ;;  %v3111_v40 = vpop.f32.mrb[218].mxu1 }
 0x3cc   :  { %v12044_v55 = vadd.f32 %v3223_v25, %v2980_v14  ;;  %v2956_v56 = vmul.f32 %v2868_v23, %v2470_v11  ;;  %v8360_v42 = vpop.f32.mrb[219].mxu0  ;;  %v8437_v17 = vpop.f32.mrb[219].mxu1  ;;  %8676 = vmatmul.mubr.msk.f32.gmra.mrb[68].mxu0 %vm906_vm2, %v10492_v0  ;;  %8753 = vmatmul.mubr.msk.f32.gmra.mrb[68].mxu1 %vm906_vm2, %v10492_v0  ;;  %v3224_v44 = vmul.f32 %v3199_v54, %v3111_v40  ;;  %v2472_v25 = vld [vmem:[#allocation2 + $0x120] sm:$0xff] }
 0x3cd   :  { %8678 = vmatprep.mubr.msk.f32.mxu0 %vm9826_vm0, %v13833_v38  ;;  %8755 = vmatprep.mubr.msk.f32.mxu1 %vm9826_vm0, %v13833_v38  ;;  %v2740_v40 = vadd.f32 %v2715_v15, %v2472_v25  ;;  %v2692_v42 = vld [vmem:[#allocation2 + $0x68] sm:$0xff] }
 0x3ce   :  { %v2981_v59 = vadd.f32 %v2956_v56, %v2738_v45  ;;  %v2691_v45 = vld [vmem:[#allocation2 + $0x60] sm:$0xff] }
 0x3cf   :  { %v2873_v21 = vpop.f32.mrb[220].mxu0  ;;  %v3116_v5 = vpop.f32.mrb[220].mxu1  ;;  %v2716_v56 = vmul.f32 %v2691_v45, %v11728_v46 }
 0x3d0   :  { %v12055_v27 = vadd.f32 %v3224_v44, %v2981_v59  ;;  %v2957_v11 = vmul.f32 %v2873_v21, %v2471_v7  ;;  %v8363_v29 = vpop.f32.mrb[221].mxu0  ;;  %v8440_v14 = vpop.f32.mrb[221].mxu1  ;;  %8679 = vmatmul.mubr.msk.f32.gmra.mrb[70].mxu0 %vm906_vm2, %v10504_v30  ;;  %8756 = vmatmul.mubr.msk.f32.gmra.mrb[70].mxu1 %vm906_vm2, %v10504_v30  ;;  %v3225_v23 = vmul.f32 %v3200_v43, %v3116_v5  ;;  %v2473_v21 = vld [vmem:[#allocation2 + $0x128] sm:$0xff] }
 0x3d1   :  { %8681 = vmatprep.mubr.msk.f32.mxu0 %vm9826_vm0, %v13833_v38  ;;  %8758 = vmatprep.mubr.msk.f32.mxu1 %vm9826_vm0, %v13833_v38  ;;  %v2717_v5 = vmul.f32 %v2692_v42, %v11744_v22  ;;  %v2741_v14 = vadd.f32 %v2716_v56, %v2473_v21  ;;  %v3203_v42 = vld [vmem:[#allocation2 + $0x1f8] sm:$0xff] }
 0x3d2   :  { %v2982_v19 = vadd.f32 %v2957_v11, %v2739_v52  ;;  %v3202_v11 = vld [vmem:[#allocation2 + $0x1f0] sm:$0xff] }
 0x3d3   :  { %v2878_v54 = vpop.f32.mrb[222].mxu0  ;;  %v3121_v2 = vpop.f32.mrb[222].mxu1 }
 0x3d4   :  { %v12066_v17 = vadd.f32 %v3225_v23, %v2982_v19  ;;  %v2958_v7 = vmul.f32 %v2878_v54, %v2472_v25  ;;  %v8366_v59 = vpop.f32.mrb[223].mxu0  ;;  %v8443_v44 = vpop.f32.mrb[223].mxu1  ;;  %8682 = vmatmul.mubr.msk.f32.gmra.mrb[72].mxu0 %vm906_vm2, %v10516_v32  ;;  %8759 = vmatmul.mubr.msk.f32.gmra.mrb[72].mxu1 %vm906_vm2, %v10516_v32  ;;  %v3226_v15 = vmul.f32 %v3201_v53, %v3121_v2  ;;  %v2474_v23 = vld [vmem:[#allocation2 + $0x130] sm:$0xff] }
 0x3d5   :  { %8684 = vmatprep.mubr.msk.f32.mxu0 %vm9826_vm0, %v13833_v38  ;;  %8761 = vmatprep.mubr.msk.f32.mxu1 %vm9826_vm0, %v13833_v38  ;;  %v2742_v2 = vadd.f32 %v2717_v5, %v2474_v23  ;;  %v2694_v59 = vld [vmem:[#allocation2 + $0x78] sm:$0xff] }
 0x3d6   :  { %v2983_v46 = vadd.f32 %v2958_v7, %v2740_v40  ;;  %v2693_v40 = vld [vmem:[#allocation2 + $0x70] sm:$0xff] }
 0x3d7   :  { %v2883_v43 = vpop.f32.mrb[224].mxu0  ;;  %v3126_v52 = vpop.f32.mrb[224].mxu1  ;;  %v2718_v7 = vmul.f32 %v2693_v40, %v11760_v39 }
 0x3d8   :  { %v12077_v29 = vadd.f32 %v3226_v15, %v2983_v46  ;;  %v2959_v25 = vmul.f32 %v2883_v43, %v2473_v21  ;;  %v8369_v45 = vpop.f32.mrb[225].mxu0  ;;  %v8446_v19 = vpop.f32.mrb[225].mxu1  ;;  %8685 = vmatmul.mubr.msk.f32.gmra.mrb[74].mxu0 %vm906_vm2, %v10528_v48  ;;  %8762 = vmatmul.mubr.msk.f32.gmra.mrb[74].mxu1 %vm906_vm2, %v10528_v48  ;;  %v3227_v54 = vmul.f32 %v3202_v11, %v3126_v52  ;;  %v2475_v43 = vld [vmem:[#allocation2 + $0x138] sm:$0xff] }
 0x3d9   :  { %8687 = vmatprep.mubr.msk.f32.mxu0 %vm9826_vm0, %v13833_v38  ;;  %8764 = vmatprep.mubr.msk.f32.mxu1 %vm9826_vm0, %v13833_v38  ;;  %v2719_v52 = vmul.f32 %v2694_v59, %v11776_v24  ;;  %v2743_v19 = vadd.f32 %v2718_v7, %v2475_v43  ;;  %v3205_v59 = vld [vmem:[#allocation2 + $0x208] sm:$0xff] }
 0x3da   :  { %v2984_v22 = vadd.f32 %v2959_v25, %v2741_v14  ;;  %v3204_v25 = vld [vmem:[#allocation2 + $0x200] sm:$0xff] }
 0x3db   :  { %v2888_v53 = vpop.f32.mrb[226].mxu0  ;;  %v3131_v56 = vpop.f32.mrb[226].mxu1 }
 0x3dc   :  { %v12088_v44 = vadd.f32 %v3227_v54, %v2984_v22  ;;  %v2960_v21 = vmul.f32 %v2888_v53, %v2474_v23  ;;  %v8372_v46 = vpop.f32.mrb[227].mxu0  ;;  %v8449_v15 = vpop.f32.mrb[227].mxu1  ;;  %8688 = vmatmul.mubr.msk.f32.gmra.mrb[76].mxu0 %vm906_vm2, %v10540_v36  ;;  %8765 = vmatmul.mubr.msk.f32.gmra.mrb[76].mxu1 %vm906_vm2, %v10540_v36  ;;  %v3228_v5 = vmul.f32 %v3203_v42, %v3131_v56  ;;  %v2476_v54 = vld [vmem:[#allocation2 + $0x140] sm:$0xff] }
 0x3dd   :  { %8690 = vmatprep.mubr.msk.f32.mxu0 %vm9826_vm0, %v13833_v38  ;;  %8767 = vmatprep.mubr.msk.f32.mxu1 %vm9826_vm0, %v13833_v38  ;;  %v2744_v56 = vadd.f32 %v2719_v52, %v2476_v54  ;;  %v2696_v46 = vld [vmem:[#allocation2 + $0x88] sm:$0xff] }
 0x3de   :  { %v2985_v39 = vadd.f32 %v2960_v21, %v2742_v2  ;;  %v2695_v2 = vld [vmem:[#allocation2 + $0x80] sm:$0xff] }
 0x3df   :  { %v2893_v11 = vpop.f32.mrb[228].mxu0  ;;  %v3136_v14 = vpop.f32.mrb[228].mxu1  ;;  %v2720_v21 = vmul.f32 %v2695_v2, %v11792_v47 }
 0x3e0   :  { %v12099_v45 = vadd.f32 %v3228_v5, %v2985_v39  ;;  %v2961_v23 = vmul.f32 %v2893_v11, %v2475_v43  ;;  %v8375_v40 = vpop.f32.mrb[229].mxu0  ;;  %v8452_v22 = vpop.f32.mrb[229].mxu1  ;;  %8691 = vmatmul.mubr.msk.f32.gmra.mrb[78].mxu0 %vm906_vm2, %v10552_v18  ;;  %8768 = vmatmul.mubr.msk.f32.gmra.mrb[78].mxu1 %vm906_vm2, %v10552_v18  ;;  %v3229_v53 = vmul.f32 %v3204_v25, %v3136_v14  ;;  %v2477_v11 = vld [vmem:[#allocation2 + $0x148] sm:$0xff] }
 0x3e1   :  { %8693 = vmatprep.mubr.msk.f32.mxu0 %vm9826_vm0, %v13833_v38  ;;  %8770 = vmatprep.mubr.msk.f32.mxu1 %vm9826_vm0, %v13833_v38  ;;  %v2721_v14 = vmul.f32 %v2696_v46, %v11808_v34  ;;  %v2745_v22 = vadd.f32 %v2720_v21, %v2477_v11  ;;  %v3207_v46 = vld [vmem:[#allocation2 + $0x218] sm:$0xff] }
 0x3e2   :  { %v2986_v24 = vadd.f32 %v2961_v23, %v2743_v19  ;;  %v3206_v23 = vld [vmem:[#allocation2 + $0x210] sm:$0xff] }
 0x3e3   :  { %v2898_v42 = vpop.f32.mrb[230].mxu0  ;;  %v3141_v7 = vpop.f32.mrb[230].mxu1 }
 0x3e4   :  { %v12110_v15 = vadd.f32 %v3229_v53, %v2986_v24  ;;  %v2962_v43 = vmul.f32 %v2898_v42, %v2476_v54  ;;  %v8378_v39 = vpop.f32.mrb[231].mxu0  ;;  %v8455_v5 = vpop.f32.mrb[231].mxu1  ;;  %8694 = vmatmul.mubr.msk.f32.gmra.mrb[80].mxu0 %vm906_vm2, %v10564_v37  ;;  %8771 = vmatmul.mubr.msk.f32.gmra.mrb[80].mxu1 %vm906_vm2, %v10564_v37  ;;  %v3230_v52 = vmul.f32 %v3205_v59, %v3141_v7  ;;  %v2478_v53 = vld [vmem:[#allocation2 + $0x150] sm:$0xff] }
 0x3e5   :  { %8696 = vmatprep.mubr.msk.f32.mxu0 %vm9826_vm0, %v13833_v38  ;;  %8773 = vmatprep.mubr.msk.f32.mxu1 %vm9826_vm0, %v13833_v38  ;;  %v2746_v7 = vadd.f32 %v2721_v14, %v2478_v53  ;;  %v2698_v39 = vld [vmem:[#allocation2 + $0x98] sm:$0xff] }
 0x3e6   :  { %v2987_v47 = vadd.f32 %v2962_v43, %v2744_v56  ;;  %v2697_v56 = vld [vmem:[#allocation2 + $0x90] sm:$0xff] }
 0x3e7   :  { %v2903_v25 = vpop.f32.mrb[232].mxu0  ;;  %v3146_v19 = vpop.f32.mrb[232].mxu1  ;;  %v2722_v43 = vmul.f32 %v2697_v56, %v11824_v50 }
 0x3e8   :  { %v12121_v40 = vadd.f32 %v3230_v52, %v2987_v47  ;;  %v2963_v54 = vmul.f32 %v2903_v25, %v2477_v11  ;;  %v8381_v2 = vpop.f32.mrb[233].mxu0  ;;  %v8458_v24 = vpop.f32.mrb[233].mxu1  ;;  %8697 = vmatmul.mubr.msk.f32.gmra.mrb[82].mxu0 %vm906_vm2, %v10576_v60  ;;  %8774 = vmatmul.mubr.msk.f32.gmra.mrb[82].mxu1 %vm906_vm2, %v10576_v60  ;;  %v3231_v42 = vmul.f32 %v3206_v23, %v3146_v19  ;;  %v2479_v25 = vld [vmem:[#allocation2 + $0x158] sm:$0xff] }
 0x3e9   :  { %8699 = vmatprep.mubr.msk.f32.mxu0 %vm9826_vm0, %v13833_v38  ;;  %8776 = vmatprep.mubr.msk.f32.mxu1 %vm9826_vm0, %v13833_v38  ;;  %v2723_v19 = vmul.f32 %v2698_v39, %v11840_v49  ;;  %v2747_v24 = vadd.f32 %v2722_v43, %v2479_v25  ;;  %v3209_v39 = vld [vmem:[#allocation2 + $0x228] sm:$0xff] }
 0x3ea   :  { %v2988_v34 = vadd.f32 %v2963_v54, %v2745_v22  ;;  %v3208_v54 = vld [vmem:[#allocation2 + $0x220] sm:$0xff] }
 0x3eb   :  { %v2908_v59 = vpop.f32.mrb[234].mxu0  ;;  %v3151_v21 = vpop.f32.mrb[234].mxu1 }
 0x3ec   :  { %v12132_v5 = vadd.f32 %v3231_v42, %v2988_v34  ;;  %v2964_v11 = vmul.f32 %v2908_v59, %v2478_v53  ;;  %v8384_v47 = vpop.f32.mrb[235].mxu0  ;;  %v8461_v52 = vpop.f32.mrb[235].mxu1  ;;  %8700 = vmatmul.mubr.msk.f32.gmra.mrb[84].mxu0 %vm906_vm2, %v10588_v9  ;;  %8777 = vmatmul.mubr.msk.f32.gmra.mrb[84].mxu1 %vm906_vm2, %v10588_v9  ;;  %v3232_v14 = vmul.f32 %v3207_v46, %v3151_v21  ;;  %v2480_v42 = vld [vmem:[#allocation2 + $0x160] sm:$0xff] }
 0x3ed   :  { %8702 = vmatprep.mubr.msk.f32.mxu0 %vm9826_vm0, %v13833_v38  ;;  %8779 = vmatprep.mubr.msk.f32.mxu1 %vm9826_vm0, %v13833_v38  ;;  %v2748_v21 = vadd.f32 %v2723_v19, %v2480_v42  ;;  %v2700_v47 = vld [vmem:[#allocation2 + $0xa8] sm:$0xff] }
 0x3ee   :  { %v2989_v50 = vadd.f32 %v2964_v11, %v2746_v7  ;;  %v2699_v7 = vld [vmem:[#allocation2 + $0xa0] sm:$0xff] }
 0x3ef   :  { %v2913_v23 = vpop.f32.mrb[236].mxu0  ;;  %v3156_v22 = vpop.f32.mrb[236].mxu1  ;;  %v2724_v11 = vmul.f32 %v2699_v7, %v11856_v51 }
 0x3f0   :  { %v12143_v2 = vadd.f32 %v3232_v14, %v2989_v50  ;;  %v2965_v53 = vmul.f32 %v2913_v23, %v2479_v25  ;;  %v8387_v56 = vpop.f32.mrb[237].mxu0  ;;  %v8464_v34 = vpop.f32.mrb[237].mxu1  ;;  %8703 = vmatmul.mubr.msk.f32.gmra.mrb[86].mxu0 %vm906_vm2, %v10600_v8  ;;  %8780 = vmatmul.mubr.msk.f32.gmra.mrb[86].mxu1 %vm906_vm2, %v10600_v8  ;;  %v3233_v59 = vmul.f32 %v3208_v54, %v3156_v22  ;;  %v13936_v23 = vld [vmem:[#allocation27_spill] sm:$0xff] }
 0x3f1   :  { %8705 = vmatprep.mubr.msk.f32.mxu0 %vm9826_vm0, %v13833_v38  ;;  %8782 = vmatprep.mubr.msk.f32.mxu1 %vm9826_vm0, %v13833_v38  ;;  %v2725_v22 = vmul.f32 %v2700_v47, %v11875_v13  ;;  %v3210_v56 = vld [vmem:[#allocation2 + $0x230] sm:$0xff] }
 0x3f2   :  { %v2990_v49 = vadd.f32 %v2965_v53, %v2747_v24  ;;  %v2481_v24 = vld [vmem:[#allocation2 + $0x168] sm:$0xff] }
 0x3f3   :  { %v2918_v46 = vpop.f32.mrb[238].mxu0  ;;  %v3161_v43 = vpop.f32.mrb[238].mxu1 }
 0x3f4   :  { %v12154_v52 = vadd.f32 %v3233_v59, %v2990_v49  ;;  %v2966_v25 = vmul.f32 %v2918_v46, %v2480_v42  ;;  %v8390_v50 = vpop.f32.mrb[239].mxu0  ;;  %v8467_v14 = vpop.f32.mrb[239].mxu1  ;;  %8706 = vmatmul.mubr.msk.f32.gmra.mrb[88].mxu0 %vm906_vm2, %v13936_v23  ;;  %8783 = vmatmul.mubr.msk.f32.gmra.mrb[88].mxu1 %vm906_vm2, %v13936_v23  ;;  %v3234_v19 = vmul.f32 %v3209_v39, %v3161_v43  ;;  %v13937_v46 = vld [vmem:[#allocation28_spill] sm:$0xff] }
 0x3f5   :  { %8708 = vmatprep.mubr.msk.f32.mxu0 %vm9826_vm0, %v13833_v38  ;;  %8785 = vmatprep.mubr.msk.f32.mxu1 %vm9826_vm0, %v13833_v38  ;;  %v2749_v42 = vadd.f32 %v2724_v11, %v2481_v24  ;;  %v2482_v50 = vld [vmem:[#allocation2 + $0x170] sm:$0xff] }
 0x3f6   :  { %v2991_v51 = vadd.f32 %v2966_v25, %v2748_v21  ;;  %v2701_v21 = vld [vmem:[#allocation2 + $0xb0] sm:$0xff]  ;;  %v2750_v39 = vadd.f32 %v2725_v22, %v2482_v50  ;;  %v3211_v25 = vld [vmem:[#allocation2 + $0x238] sm:$0xff] }
 0x3f7   :  { %v2923_v54 = vpop.f32.mrb[240].mxu0  ;;  %v3166_v53 = vpop.f32.mrb[240].mxu1  ;;  %v2726_v14 = vmul.f32 %v2701_v21, %v11891_v26 }
 0x3f8   :  { %v12165_v34 = vadd.f32 %v3234_v19, %v2991_v51  ;;  %v2967_v7 = vmul.f32 %v2923_v54, %v2481_v24  ;;  %v8393_v49 = vpop.f32.mrb[241].mxu0  ;;  %v8470_v59 = vpop.f32.mrb[241].mxu1  ;;  %8709 = vmatmul.mubr.msk.f32.gmra.mrb[90].mxu0 %vm906_vm2, %v13937_v46  ;;  %8786 = vmatmul.mubr.msk.f32.gmra.mrb[90].mxu1 %vm906_vm2, %v13937_v46  ;;  %v3235_v43 = vmul.f32 %v3210_v56, %v3166_v53  ;;  %v2702_v24 = vld [vmem:[#allocation2 + $0xb8] sm:$0xff]  ;;  %v903_v53 = vld [vmem:[%s13658_s4 + $0x8] sm:$0xff]  ;;  %v12192_v56 = vld [vmem:[%s13657_s3 + $0x30] sm:$0xff] }
 0x3f9   :  { %8711 = vmatprep.mubr.msk.f32.mxu0 %vm9826_vm0, %v13833_v38  ;;  %8788 = vmatprep.mubr.msk.f32.mxu1 %vm9826_vm0, %v13833_v38  ;;  %v13938_v59 = vld [vmem:[#allocation29_spill] sm:$0xff] }
 0x3fa   :  { %v2992_v13 = vadd.f32 %v2967_v7, %v2749_v42  ;;  %v2483_v42 = vld [vmem:[#allocation2 + $0x178] sm:$0xff]  ;;  %v2727_v7 = vmul.f32 %v2702_v24, %v11909_v33 }
 0x3fb   :  { %v2928_v11 = vpop.f32.mrb[242].mxu0  ;;  %v3171_v47 = vpop.f32.mrb[242].mxu1 }
 0x3fc   :  { %v12176_v51 = vadd.f32 %v3235_v43, %v2992_v13  ;;  %v2968_v19 = vmul.f32 %v2928_v11, %v2482_v50  ;;  %v8396_v54 = vpop.f32.mrb[243].mxu0  ;;  %v8473_v49 = vpop.f32.mrb[243].mxu1  ;;  %8712 = vmatmul.mubr.msk.f32.gmra.mrb[92].mxu0 %vm906_vm2, %v13938_v59  ;;  %8789 = vmatmul.mubr.msk.f32.gmra.mrb[92].mxu1 %vm906_vm2, %v13938_v59  ;;  %v3236_v22 = vmul.f32 %v3211_v25, %v3171_v47  ;;  %v3212_v13 = vld [vmem:[#allocation2 + $0x240] sm:$0xff] }
 0x3fd   :  { %8793 = vmatprep.mubr.msk.f32.mxu0 %vm9826_vm0, %v13833_v38  ;;  %8870 = vmatprep.mubr.msk.f32.mxu1 %vm9826_vm0, %v13833_v38  ;;  %v2751_v11 = vadd.f32 %v2726_v14, %v2483_v42  ;;  %v2484_v25 = vld [vmem:[#allocation2 + $0x180] sm:$0xff] }
 0x3fe   :  { %v2993_v26 = vadd.f32 %v2968_v19, %v2750_v39  ;;  %v2703_v19 = vld [vmem:[#allocation2 + $0xc0] sm:$0xff]  ;;  %v2752_v14 = vadd.f32 %v2727_v7, %v2484_v25  ;;  %v2485_v7 = vld [vmem:[#allocation2 + $0x188] sm:$0xff] }
 0x3ff   :  { %v2933_v50 = vpop.f32.mrb[244].mxu0  ;;  %v3176_v21 = vpop.f32.mrb[244].mxu1 }
 0x400   :  { %v12195_v43 = vadd.f32 %v3236_v22, %v2993_v26  ;;  %v2969_v54 = vmul.f32 %v2933_v50, %v2483_v42  ;;  %v8399_v39 = vpop.f32.mrb[245].mxu0  ;;  %v8476_v47 = vpop.f32.mrb[245].mxu1  ;;  %8794 = vmatmul.mubr.msk.f32.vlgmr.msra.gmra.mrb[94].mxu0 %vm906_vm2, %v10362_v16  ;;  %8871 = vmatmul.mubr.msk.f32.vlgmr.msra.gmra.mrb[94].mxu1 %vm906_vm2, %v10362_v16  ;;  %v3237_v24 = vmul.f32 %v3212_v13, %v3176_v21  ;;  %v3213_v26 = vld [vmem:[#allocation2 + $0x248] sm:$0xff]  ;;  %v13940_v22 = vld [vmem:[#allocation79_spill] sm:$0xff] }
 0x401   :  { %8946 = vmatpush3.msk.msra.mxu0 %vm982_vm1, %v903_v53  ;;  %9023 = vmatpush3.msk.msra.mxu1 %vm982_vm1, %v12192_v56  ;;  %v2728_v53 = vmul.f32 %v2703_v19, %v13940_v22  ;;  %v13941_v21 = vld [vmem:[#allocation15_spill] sm:$0xff] }
 0x402   :  { %13939 = vst [vmem:[#allocation18_spill] sm:$0xff] %v12195_v43  ;;  %v2994_v33 = vadd.f32 %v2969_v54, %v2751_v11  ;;  %8796 = vmatprep.mubr.msk.f32.mxu0 %vm9826_vm0, %v13833_v38  ;;  %8873 = vmatprep.mubr.msk.f32.mxu1 %vm9826_vm0, %v13833_v38  ;;  %v13942_v43 = vld [vmem:[#allocation16_spill] sm:$0xff] }
 0x403   :  { %v2938_v49 = vpop.f32.mrb[246].mxu0  ;;  %v3181_v42 = vpop.f32.mrb[246].mxu1  ;;  %9099 = vmatprep.subr.mxu0 %v13833_v38  ;;  %9176 = vmatprep.subr.mxu1 %v13833_v38  ;;  %v2753_v22 = vadd.f32 %v2728_v53, %v2485_v7 }
 0x404   :  { %v2970_v50 = vmul.f32 %v2938_v49, %v2484_v25  ;;  %v8402_v39 = vpop.f32.mrb[247].mxu0  ;;  %v8479_v11 = vpop.f32.mrb[247].mxu1  ;;  %8797 = vmatmul.mubr.msk.f32.gmra.mrb[96].mxu0 %vm906_vm2, %v13941_v21  ;;  %8874 = vmatmul.mubr.msk.f32.gmra.mrb[96].mxu1 %vm906_vm2, %v13941_v21  ;;  %v12215_v13 = vadd.f32 %v3237_v24, %v2994_v33  ;;  %v3238_v47 = vmul.f32 %v3213_v26, %v3181_v42  ;;  %v3214_v49 = vld [vmem:[#allocation2 + $0x250] sm:$0xff]  ;;  %v3458_v24 = vld [vmem:[#allocation2 + $0x258] sm:$0xff] }
 0x405   :  { %8799 = vmatprep.mubr.msk.f32.mxu0 %vm9826_vm0, %v13833_v38  ;;  %8876 = vmatprep.mubr.msk.f32.mxu1 %vm9826_vm0, %v13833_v38 }
 0x406   :  { %v2995_v54 = vadd.f32 %v2970_v50, %v2752_v14 }
 0x407   :  { %v2943_v25 = vpop.f32.mrb[248].mxu0  ;;  %v3186_v19 = vpop.f32.mrb[248].mxu1 }
 0x408   :  { %v2971_v39 = vmul.f32 %v2943_v25, %v2485_v7  ;;  %v8405_v11 = vpop.f32.mrb[249].mxu0  ;;  %v8482_v16 = vpop.f32.mrb[249].mxu1  ;;  %8800 = vmatmul.mubr.msk.f32.gmra.mrb[98].mxu0 %vm906_vm2, %v13942_v43  ;;  %8877 = vmatmul.mubr.msk.f32.gmra.mrb[98].mxu1 %vm906_vm2, %v13942_v43  ;;  %v12225_v33 = vadd.f32 %v3238_v47, %v2995_v54  ;;  %v3239_v42 = vmul.f32 %v3214_v49, %v3186_v19  ;;  %v3459_v47 = vld [vmem:[#allocation2 + $0x260] sm:$0xff]  ;;  %v13944_v49 = vld [vmem:[#allocation55_spill] sm:$0xff] }
 0x409   :  { %8802 = vmatprep.mubr.msk.f32.mxu0 %vm9826_vm0, %v13833_v38  ;;  %8879 = vmatprep.mubr.msk.f32.mxu1 %vm9826_vm0, %v13833_v38  ;;  %v13943_v11 = vld [vmem:[#allocation17_spill] sm:$0xff] }
 0x40a   :  { %v2996_v14 = vadd.f32 %v2971_v39, %v2753_v22 }
 0x40b   :  { %v3334_v26 = vpop.f32.mrb[250].mxu0  ;;  %v3602_v53 = vpop.f32.mrb[250].mxu1 }
 0x40c   :  { %v3483_v16 = vmul.f32 %v3458_v24, %v3334_v26  ;;  %v3603_v50 = vadd.f32 1.0, %v3602_v53  ;;  %v8487_v7 = vpop.f32.mrb[251].mxu0  ;;  %v8564_v25 = vpop.f32.mrb[251].mxu1  ;;  %8803 = vmatmul.mubr.msk.f32.gmra.mrb[100].mxu0 %vm906_vm2, %v13943_v11  ;;  %8880 = vmatmul.mubr.msk.f32.gmra.mrb[100].mxu1 %vm906_vm2, %v13943_v11  ;;  %v12235_v54 = vadd.f32 %v3239_v42, %v2996_v14  ;;  %v3460_v14 = vld [vmem:[#allocation2 + $0x268] sm:$0xff]  ;;  %v13945_v42 = vld [vmem:[#allocation56_spill] sm:$0xff] }
 0x40d   :  { %8805 = vmatprep.mubr.msk.f32.mxu0 %vm9826_vm0, %v13833_v38  ;;  %8882 = vmatprep.mubr.msk.f32.mxu1 %vm9826_vm0, %v13833_v38 }
 0x40e   :  { %v3508_v19 = vadd.f32 %v3483_v16, %v11956_v6  ;;  %v3726_v22 = vmul.f32 %v3603_v50, %v13944_v49  ;;  %v4033_v49 = vld [vmem:[#allocation2 + $0x50] sm:$0xff] }
 0x40f   :  { %v3339_v39 = vpop.f32.mrb[252].mxu0  ;;  %v3607_v24 = vpop.f32.mrb[252].mxu1 }
 0x410   :  { %v3751_v26 = vadd.f32 %v3726_v22, %v3508_v19  ;;  %v3484_v53 = vmul.f32 %v3459_v47, %v3339_v39  ;;  %v3608_v7 = vadd.f32 1.0, %v3607_v24  ;;  %v8490_v25 = vpop.f32.mrb[253].mxu0  ;;  %v8567_v11 = vpop.f32.mrb[253].mxu1  ;;  %8806 = vmatmul.mubr.msk.f32.gmra.mrb[102].mxu0 %vm906_vm2, %v13935_v10  ;;  %8883 = vmatmul.mubr.msk.f32.gmra.mrb[102].mxu1 %vm906_vm2, %v13935_v10 }
 0x411   :  { %8808 = vmatprep.mubr.msk.f32.mxu0 %vm9826_vm0, %v13833_v38  ;;  %8885 = vmatprep.mubr.msk.f32.mxu1 %vm9826_vm0, %v13833_v38  ;;  %v3461_v25 = vld [vmem:[#allocation2 + $0x270] sm:$0xff] }
 0x412   :  { %3777 = vst [vmem:[#allocation7 + $0xc8] sm:$0xff] %v3751_v26  ;;  %v3509_v6 = vadd.f32 %v3484_v53, %v11967_v41  ;;  %v3727_v16 = vmul.f32 %v3608_v7, %v13945_v42  ;;  %v13946_v26 = vld [vmem:[#allocation57_spill] sm:$0xff] }
 0x413   :  { %v3344_v50 = vpop.f32.mrb[254].mxu0  ;;  %v3612_v11 = vpop.f32.mrb[254].mxu1  ;;  %v4032_v42 = vld [vmem:[#allocation2 + $0x48] sm:$0xff] }
 0x414   :  { %v3752_v47 = vadd.f32 %v3727_v16, %v3509_v6  ;;  %v3485_v19 = vmul.f32 %v3460_v14, %v3344_v50  ;;  %v3613_v22 = vadd.f32 1.0, %v3612_v11  ;;  %v8493_v39 = vpop.f32.mrb[255].mxu0  ;;  %v8570_v24 = vpop.f32.mrb[255].mxu1  ;;  %8809 = vmatmul.mubr.msk.f32.gmra.mrb[104].mxu0 %vm906_vm2, %v10416_v57  ;;  %8886 = vmatmul.mubr.msk.f32.gmra.mrb[104].mxu1 %vm906_vm2, %v10416_v57 }
 0x415   :  { %8811 = vmatprep.mubr.msk.f32.mxu0 %vm9826_vm0, %v13833_v38  ;;  %8888 = vmatprep.mubr.msk.f32.mxu1 %vm9826_vm0, %v13833_v38  ;;  %v3462_v24 = vld [vmem:[#allocation2 + $0x278] sm:$0xff] }
 0x416   :  { %3778 = vst [vmem:[#allocation7 + $0xd0] sm:$0xff] %v3752_v47  ;;  %v3510_v41 = vadd.f32 %v3485_v19, %v11978_v20  ;;  %v3728_v53 = vmul.f32 %v3613_v22, %v13946_v26  ;;  %v13947_v47 = vld [vmem:[#allocation58_spill] sm:$0xff]  ;;  %v4031_v26 = vld [vmem:[#allocation2 + $0x40] sm:$0xff] }
 0x417   :  { %v3349_v7 = vpop.f32.mrb[0].mxu0  ;;  %v3617_v14 = vpop.f32.mrb[0].mxu1 }
 0x418   :  { %v3753_v6 = vadd.f32 %v3728_v53, %v3510_v41  ;;  %v3486_v16 = vmul.f32 %v3461_v25, %v3349_v7  ;;  %v3618_v50 = vadd.f32 1.0, %v3617_v14  ;;  %v8496_v11 = vpop.f32.mrb[1].mxu0  ;;  %v8573_v39 = vpop.f32.mrb[1].mxu1  ;;  %8812 = vmatmul.mubr.msk.f32.gmra.mrb[106].mxu0 %vm906_vm2, %v10426_v62  ;;  %8889 = vmatmul.mubr.msk.f32.gmra.mrb[106].mxu1 %vm906_vm2, %v10426_v62 }
 0x419   :  { %8814 = vmatprep.mubr.msk.f32.mxu0 %vm9826_vm0, %v13833_v38  ;;  %8891 = vmatprep.mubr.msk.f32.mxu1 %vm9826_vm0, %v13833_v38  ;;  %v3463_v39 = vld [vmem:[#allocation2 + $0x280] sm:$0xff] }
 0x41a   :  { %3779 = vst [vmem:[#allocation7 + $0xd8] sm:$0xff] %v3753_v6  ;;  %v3511_v20 = vadd.f32 %v3486_v16, %v11989_v35  ;;  %v3729_v19 = vmul.f32 %v3618_v50, %v13947_v47  ;;  %v13948_v6 = vld [vmem:[#allocation59_spill] sm:$0xff] }
 0x41b   :  { %v3354_v22 = vpop.f32.mrb[2].mxu0  ;;  %v3622_v25 = vpop.f32.mrb[2].mxu1  ;;  %v4030_v47 = vld [vmem:[#allocation2 + $0x38] sm:$0xff] }
 0x41c   :  { %v3754_v41 = vadd.f32 %v3729_v19, %v3511_v20  ;;  %v3487_v53 = vmul.f32 %v3462_v24, %v3354_v22  ;;  %v3623_v7 = vadd.f32 1.0, %v3622_v25  ;;  %v8499_v14 = vpop.f32.mrb[3].mxu0  ;;  %v8576_v11 = vpop.f32.mrb[3].mxu1  ;;  %8815 = vmatmul.mubr.msk.f32.gmra.mrb[108].mxu0 %vm906_vm2, %v10436_v58  ;;  %8892 = vmatmul.mubr.msk.f32.gmra.mrb[108].mxu1 %vm906_vm2, %v10436_v58 }
 0x41d   :  { %8817 = vmatprep.mubr.msk.f32.mxu0 %vm9826_vm0, %v13833_v38  ;;  %8894 = vmatprep.mubr.msk.f32.mxu1 %vm9826_vm0, %v13833_v38  ;;  %v3464_v11 = vld [vmem:[#allocation2 + $0x288] sm:$0xff] }
 0x41e   :  { %3780 = vst [vmem:[#allocation7 + $0xe0] sm:$0xff] %v3754_v41  ;;  %v3512_v35 = vadd.f32 %v3487_v53, %v12000_v31  ;;  %v3730_v16 = vmul.f32 %v3623_v7, %v13948_v6  ;;  %v13949_v41 = vld [vmem:[#allocation60_spill] sm:$0xff]  ;;  %v4029_v6 = vld [vmem:[#allocation2 + $0x30] sm:$0xff] }
 0x41f   :  { %v3359_v50 = vpop.f32.mrb[4].mxu0  ;;  %v3627_v24 = vpop.f32.mrb[4].mxu1 }
 0x420   :  { %v3755_v20 = vadd.f32 %v3730_v16, %v3512_v35  ;;  %v3488_v19 = vmul.f32 %v3463_v39, %v3359_v50  ;;  %v3628_v22 = vadd.f32 1.0, %v3627_v24  ;;  %v8502_v25 = vpop.f32.mrb[5].mxu0  ;;  %v8579_v14 = vpop.f32.mrb[5].mxu1  ;;  %8818 = vmatmul.mubr.msk.f32.gmra.mrb[110].mxu0 %vm906_vm2, %v10446_v3  ;;  %8895 = vmatmul.mubr.msk.f32.gmra.mrb[110].mxu1 %vm906_vm2, %v10446_v3 }
 0x421   :  { %8820 = vmatprep.mubr.msk.f32.mxu0 %vm9826_vm0, %v13833_v38  ;;  %8897 = vmatprep.mubr.msk.f32.mxu1 %vm9826_vm0, %v13833_v38  ;;  %v3465_v14 = vld [vmem:[#allocation2 + $0x290] sm:$0xff] }
 0x422   :  { %3781 = vst [vmem:[#allocation7 + $0xe8] sm:$0xff] %v3755_v20  ;;  %v3513_v31 = vadd.f32 %v3488_v19, %v12011_v1  ;;  %v3731_v53 = vmul.f32 %v3628_v22, %v13949_v41  ;;  %v13950_v20 = vld [vmem:[#allocation61_spill] sm:$0xff] }
 0x423   :  { %v3364_v7 = vpop.f32.mrb[6].mxu0  ;;  %v3632_v39 = vpop.f32.mrb[6].mxu1 }
 0x424   :  { %v3756_v35 = vadd.f32 %v3731_v53, %v3513_v31  ;;  %v3489_v16 = vmul.f32 %v3464_v11, %v3364_v7  ;;  %v3633_v50 = vadd.f32 1.0, %v3632_v39  ;;  %v8505_v24 = vpop.f32.mrb[7].mxu0  ;;  %v8582_v25 = vpop.f32.mrb[7].mxu1  ;;  %8821 = vmatmul.mubr.msk.f32.gmra.mrb[112].mxu0 %vm906_vm2, %v10456_v63  ;;  %8898 = vmatmul.mubr.msk.f32.gmra.mrb[112].mxu1 %vm906_vm2, %v10456_v63 }
 0x425   :  { %8823 = vmatprep.mubr.msk.f32.mxu0 %vm9826_vm0, %v13833_v38  ;;  %8900 = vmatprep.mubr.msk.f32.mxu1 %vm9826_vm0, %v13833_v38  ;;  %v3466_v25 = vld [vmem:[#allocation2 + $0x298] sm:$0xff] }
 0x426   :  { %3782 = vst [vmem:[#allocation7 + $0xf0] sm:$0xff] %v3756_v35  ;;  %v3514_v1 = vadd.f32 %v3489_v16, %v12022_v28  ;;  %v3732_v19 = vmul.f32 %v3633_v50, %v13950_v20  ;;  %v13951_v35 = vld [vmem:[#allocation62_spill] sm:$0xff] }
 0x427   :  { %v3369_v22 = vpop.f32.mrb[8].mxu0  ;;  %v3637_v11 = vpop.f32.mrb[8].mxu1 }
 0x428   :  { %v3757_v31 = vadd.f32 %v3732_v19, %v3514_v1  ;;  %v3490_v53 = vmul.f32 %v3465_v14, %v3369_v22  ;;  %v3638_v7 = vadd.f32 1.0, %v3637_v11  ;;  %v8508_v39 = vpop.f32.mrb[9].mxu0  ;;  %v8585_v24 = vpop.f32.mrb[9].mxu1  ;;  %8824 = vmatmul.mubr.msk.f32.gmra.mrb[114].mxu0 %vm906_vm2, %v10468_v4  ;;  %8901 = vmatmul.mubr.msk.f32.gmra.mrb[114].mxu1 %vm906_vm2, %v10468_v4 }
 0x429   :  { %8826 = vmatprep.mubr.msk.f32.mxu0 %vm9826_vm0, %v13833_v38  ;;  %8903 = vmatprep.mubr.msk.f32.mxu1 %vm9826_vm0, %v13833_v38  ;;  %v3467_v24 = vld [vmem:[#allocation2 + $0x2a0] sm:$0xff] }
 0x42a   :  { %3783 = vst [vmem:[#allocation7 + $0xf8] sm:$0xff] %v3757_v31  ;;  %v3515_v28 = vadd.f32 %v3490_v53, %v12033_v61  ;;  %v3733_v16 = vmul.f32 %v3638_v7, %v13951_v35  ;;  %v13952_v31 = vld [vmem:[#allocation63_spill] sm:$0xff]  ;;  %v4028_v35 = vld [vmem:[#allocation2 + $0x28] sm:$0xff] }
 0x42b   :  { %v3374_v50 = vpop.f32.mrb[10].mxu0  ;;  %v3642_v14 = vpop.f32.mrb[10].mxu1 }
 0x42c   :  { %v3758_v1 = vadd.f32 %v3733_v16, %v3515_v28  ;;  %v3491_v19 = vmul.f32 %v3466_v25, %v3374_v50  ;;  %v3643_v22 = vadd.f32 1.0, %v3642_v14  ;;  %v8511_v11 = vpop.f32.mrb[11].mxu0  ;;  %v8588_v39 = vpop.f32.mrb[11].mxu1  ;;  %8827 = vmatmul.mubr.msk.f32.gmra.mrb[116].mxu0 %vm906_vm2, %v10480_v12  ;;  %8904 = vmatmul.mubr.msk.f32.gmra.mrb[116].mxu1 %vm906_vm2, %v10480_v12 }
 0x42d   :  { %8829 = vmatprep.mubr.msk.f32.mxu0 %vm9826_vm0, %v13833_v38  ;;  %8906 = vmatprep.mubr.msk.f32.mxu1 %vm9826_vm0, %v13833_v38  ;;  %v3468_v39 = vld [vmem:[#allocation2 + $0x2a8] sm:$0xff] }
 0x42e   :  { %3784 = vst [vmem:[#allocation7 + $0x100] sm:$0xff] %v3758_v1  ;;  %v3516_v61 = vadd.f32 %v3491_v19, %v12044_v55  ;;  %v3734_v53 = vmul.f32 %v3643_v22, %v13952_v31  ;;  %v13953_v1 = vld [vmem:[#allocation64_spill] sm:$0xff] }
 0x42f   :  { %v3379_v7 = vpop.f32.mrb[12].mxu0  ;;  %v3647_v25 = vpop.f32.mrb[12].mxu1 }
 0x430   :  { %v3759_v28 = vadd.f32 %v3734_v53, %v3516_v61  ;;  %v3492_v16 = vmul.f32 %v3467_v24, %v3379_v7  ;;  %v3648_v50 = vadd.f32 1.0, %v3647_v25  ;;  %v8514_v14 = vpop.f32.mrb[13].mxu0  ;;  %v8591_v11 = vpop.f32.mrb[13].mxu1  ;;  %8830 = vmatmul.mubr.msk.f32.gmra.mrb[118].mxu0 %vm906_vm2, %v10492_v0  ;;  %8907 = vmatmul.mubr.msk.f32.gmra.mrb[118].mxu1 %vm906_vm2, %v10492_v0 }
 0x431   :  { %8832 = vmatprep.mubr.msk.f32.mxu0 %vm9826_vm0, %v13833_v38  ;;  %8909 = vmatprep.mubr.msk.f32.mxu1 %vm9826_vm0, %v13833_v38  ;;  %v3469_v11 = vld [vmem:[#allocation2 + $0x2b0] sm:$0xff] }
 0x432   :  { %3785 = vst [vmem:[#allocation7 + $0x108] sm:$0xff] %v3759_v28  ;;  %v3517_v55 = vadd.f32 %v3492_v16, %v12055_v27  ;;  %v3735_v19 = vmul.f32 %v3648_v50, %v13953_v1  ;;  %v13954_v28 = vld [vmem:[#allocation65_spill] sm:$0xff] }
 0x433   :  { %v3384_v22 = vpop.f32.mrb[14].mxu0  ;;  %v3652_v24 = vpop.f32.mrb[14].mxu1 }
 0x434   :  { %v3760_v61 = vadd.f32 %v3735_v19, %v3517_v55  ;;  %v3493_v53 = vmul.f32 %v3468_v39, %v3384_v22  ;;  %v3653_v7 = vadd.f32 1.0, %v3652_v24  ;;  %v8517_v25 = vpop.f32.mrb[15].mxu0  ;;  %v8594_v14 = vpop.f32.mrb[15].mxu1  ;;  %8833 = vmatmul.mubr.msk.f32.gmra.mrb[120].mxu0 %vm906_vm2, %v10504_v30  ;;  %8910 = vmatmul.mubr.msk.f32.gmra.mrb[120].mxu1 %vm906_vm2, %v10504_v30 }
 0x435   :  { %8835 = vmatprep.mubr.msk.f32.mxu0 %vm9826_vm0, %v13833_v38  ;;  %8912 = vmatprep.mubr.msk.f32.mxu1 %vm9826_vm0, %v13833_v38  ;;  %v3470_v14 = vld [vmem:[#allocation2 + $0x2b8] sm:$0xff] }
 0x436   :  { %3786 = vst [vmem:[#allocation7 + $0x110] sm:$0xff] %v3760_v61  ;;  %v3518_v27 = vadd.f32 %v3493_v53, %v12066_v17  ;;  %v3736_v16 = vmul.f32 %v3653_v7, %v13954_v28  ;;  %v13955_v61 = vld [vmem:[#allocation66_spill] sm:$0xff]  ;;  %v4027_v28 = vld [vmem:[#allocation2 + $0x20] sm:$0xff] }
 0x437   :  { %v3389_v50 = vpop.f32.mrb[16].mxu0  ;;  %v3657_v39 = vpop.f32.mrb[16].mxu1 }
 0x438   :  { %v3761_v55 = vadd.f32 %v3736_v16, %v3518_v27  ;;  %v3494_v19 = vmul.f32 %v3469_v11, %v3389_v50  ;;  %v3658_v22 = vadd.f32 1.0, %v3657_v39  ;;  %v8520_v24 = vpop.f32.mrb[17].mxu0  ;;  %v8597_v25 = vpop.f32.mrb[17].mxu1  ;;  %8836 = vmatmul.mubr.msk.f32.gmra.mrb[122].mxu0 %vm906_vm2, %v10516_v32  ;;  %8913 = vmatmul.mubr.msk.f32.gmra.mrb[122].mxu1 %vm906_vm2, %v10516_v32 }
 0x439   :  { %8838 = vmatprep.mubr.msk.f32.mxu0 %vm9826_vm0, %v13833_v38  ;;  %8915 = vmatprep.mubr.msk.f32.mxu1 %vm9826_vm0, %v13833_v38  ;;  %v3471_v25 = vld [vmem:[#allocation2 + $0x2c0] sm:$0xff] }
 0x43a   :  { %3787 = vst [vmem:[#allocation7 + $0x118] sm:$0xff] %v3761_v55  ;;  %v3519_v17 = vadd.f32 %v3494_v19, %v12077_v29  ;;  %v3737_v53 = vmul.f32 %v3658_v22, %v13955_v61  ;;  %v13956_v55 = vld [vmem:[#allocation67_spill] sm:$0xff] }
 0x43b   :  { %v3394_v7 = vpop.f32.mrb[18].mxu0  ;;  %v3662_v11 = vpop.f32.mrb[18].mxu1 }
 0x43c   :  { %v3762_v27 = vadd.f32 %v3737_v53, %v3519_v17  ;;  %v3495_v16 = vmul.f32 %v3470_v14, %v3394_v7  ;;  %v3663_v50 = vadd.f32 1.0, %v3662_v11  ;;  %v8523_v39 = vpop.f32.mrb[19].mxu0  ;;  %v8600_v24 = vpop.f32.mrb[19].mxu1  ;;  %8839 = vmatmul.mubr.msk.f32.gmra.mrb[124].mxu0 %vm906_vm2, %v10528_v48  ;;  %8916 = vmatmul.mubr.msk.f32.gmra.mrb[124].mxu1 %vm906_vm2, %v10528_v48 }
 0x43d   :  { %8841 = vmatprep.mubr.msk.f32.mxu0 %vm9826_vm0, %v13833_v38  ;;  %8918 = vmatprep.mubr.msk.f32.mxu1 %vm9826_vm0, %v13833_v38  ;;  %v3472_v24 = vld [vmem:[#allocation2 + $0x2c8] sm:$0xff] }
 0x43e   :  { %3788 = vst [vmem:[#allocation7 + $0x120] sm:$0xff] %v3762_v27  ;;  %v3520_v29 = vadd.f32 %v3495_v16, %v12088_v44  ;;  %v3738_v19 = vmul.f32 %v3663_v50, %v13956_v55  ;;  %v13957_v27 = vld [vmem:[#allocation68_spill] sm:$0xff] }
 0x43f   :  { %v3399_v22 = vpop.f32.mrb[20].mxu0  ;;  %v3667_v14 = vpop.f32.mrb[20].mxu1 }
 0x440   :  { %v3763_v17 = vadd.f32 %v3738_v19, %v3520_v29  ;;  %v3496_v53 = vmul.f32 %v3471_v25, %v3399_v22  ;;  %v3668_v7 = vadd.f32 1.0, %v3667_v14  ;;  %v8526_v11 = vpop.f32.mrb[21].mxu0  ;;  %v8603_v39 = vpop.f32.mrb[21].mxu1  ;;  %8842 = vmatmul.mubr.msk.f32.gmra.mrb[126].mxu0 %vm906_vm2, %v10540_v36  ;;  %8919 = vmatmul.mubr.msk.f32.gmra.mrb[126].mxu1 %vm906_vm2, %v10540_v36 }
 0x441   :  { %8844 = vmatprep.mubr.msk.f32.mxu0 %vm9826_vm0, %v13833_v38  ;;  %8921 = vmatprep.mubr.msk.f32.mxu1 %vm9826_vm0, %v13833_v38  ;;  %v3473_v39 = vld [vmem:[#allocation2 + $0x2d0] sm:$0xff] }
 0x442   :  { %3789 = vst [vmem:[#allocation7 + $0x128] sm:$0xff] %v3763_v17  ;;  %v3521_v44 = vadd.f32 %v3496_v53, %v12099_v45  ;;  %v3739_v16 = vmul.f32 %v3668_v7, %v13957_v27  ;;  %v13958_v17 = vld [vmem:[#allocation69_spill] sm:$0xff]  ;;  %v4026_v27 = vld [vmem:[#allocation2 + $0x18] sm:$0xff] }
 0x443   :  { %v3404_v50 = vpop.f32.mrb[22].mxu0  ;;  %v3672_v25 = vpop.f32.mrb[22].mxu1 }
 0x444   :  { %v3764_v29 = vadd.f32 %v3739_v16, %v3521_v44  ;;  %v3497_v19 = vmul.f32 %v3472_v24, %v3404_v50  ;;  %v3673_v22 = vadd.f32 1.0, %v3672_v25  ;;  %v8529_v14 = vpop.f32.mrb[23].mxu0  ;;  %v8606_v11 = vpop.f32.mrb[23].mxu1  ;;  %8845 = vmatmul.mubr.msk.f32.gmra.mrb[128].mxu0 %vm906_vm2, %v10552_v18  ;;  %8922 = vmatmul.mubr.msk.f32.gmra.mrb[128].mxu1 %vm906_vm2, %v10552_v18 }
 0x445   :  { %8847 = vmatprep.mubr.msk.f32.mxu0 %vm9826_vm0, %v13833_v38  ;;  %8924 = vmatprep.mubr.msk.f32.mxu1 %vm9826_vm0, %v13833_v38  ;;  %v3474_v11 = vld [vmem:[#allocation2 + $0x2d8] sm:$0xff] }
 0x446   :  { %3790 = vst [vmem:[#allocation7 + $0x130] sm:$0xff] %v3764_v29  ;;  %v3522_v45 = vadd.f32 %v3497_v19, %v12110_v15  ;;  %v3740_v53 = vmul.f32 %v3673_v22, %v13958_v17  ;;  %v13959_v29 = vld [vmem:[#allocation70_spill] sm:$0xff] }
 0x447   :  { %v3409_v7 = vpop.f32.mrb[24].mxu0  ;;  %v3677_v24 = vpop.f32.mrb[24].mxu1 }
 0x448   :  { %v3765_v44 = vadd.f32 %v3740_v53, %v3522_v45  ;;  %v3498_v16 = vmul.f32 %v3473_v39, %v3409_v7  ;;  %v3678_v50 = vadd.f32 1.0, %v3677_v24  ;;  %v8532_v25 = vpop.f32.mrb[25].mxu0  ;;  %v8609_v14 = vpop.f32.mrb[25].mxu1  ;;  %8848 = vmatmul.mubr.msk.f32.gmra.mrb[130].mxu0 %vm906_vm2, %v10564_v37  ;;  %8925 = vmatmul.mubr.msk.f32.gmra.mrb[130].mxu1 %vm906_vm2, %v10564_v37 }
 0x449   :  { %8850 = vmatprep.mubr.msk.f32.mxu0 %vm9826_vm0, %v13833_v38  ;;  %8927 = vmatprep.mubr.msk.f32.mxu1 %vm9826_vm0, %v13833_v38  ;;  %v3475_v14 = vld [vmem:[#allocation2 + $0x2e0] sm:$0xff] }
 0x44a   :  { %3791 = vst [vmem:[#allocation7 + $0x138] sm:$0xff] %v3765_v44  ;;  %v3523_v15 = vadd.f32 %v3498_v16, %v12121_v40  ;;  %v3741_v19 = vmul.f32 %v3678_v50, %v13959_v29  ;;  %v13960_v44 = vld [vmem:[#allocation71_spill] sm:$0xff] }
 0x44b   :  { %v3414_v22 = vpop.f32.mrb[26].mxu0  ;;  %v3682_v39 = vpop.f32.mrb[26].mxu1 }
 0x44c   :  { %v3766_v45 = vadd.f32 %v3741_v19, %v3523_v15  ;;  %v3499_v53 = vmul.f32 %v3474_v11, %v3414_v22  ;;  %v3683_v7 = vadd.f32 1.0, %v3682_v39  ;;  %v8535_v24 = vpop.f32.mrb[27].mxu0  ;;  %v8612_v25 = vpop.f32.mrb[27].mxu1  ;;  %8851 = vmatmul.mubr.msk.f32.gmra.mrb[132].mxu0 %vm906_vm2, %v10576_v60  ;;  %8928 = vmatmul.mubr.msk.f32.gmra.mrb[132].mxu1 %vm906_vm2, %v10576_v60 }
 0x44d   :  { %8853 = vmatprep.mubr.msk.f32.mxu0 %vm9826_vm0, %v13833_v38  ;;  %8930 = vmatprep.mubr.msk.f32.mxu1 %vm9826_vm0, %v13833_v38  ;;  %v3476_v25 = vld [vmem:[#allocation2 + $0x2e8] sm:$0xff] }
 0x44e   :  { %3792 = vst [vmem:[#allocation7 + $0x140] sm:$0xff] %v3766_v45  ;;  %v3524_v40 = vadd.f32 %v3499_v53, %v12132_v5  ;;  %v3742_v16 = vmul.f32 %v3683_v7, %v13960_v44  ;;  %v13961_v45 = vld [vmem:[#allocation72_spill] sm:$0xff] }
 0x44f   :  { %v3419_v50 = vpop.f32.mrb[28].mxu0  ;;  %v3687_v11 = vpop.f32.mrb[28].mxu1 }
 0x450   :  { %v3767_v15 = vadd.f32 %v3742_v16, %v3524_v40  ;;  %v3500_v19 = vmul.f32 %v3475_v14, %v3419_v50  ;;  %v3688_v22 = vadd.f32 1.0, %v3687_v11  ;;  %v8538_v39 = vpop.f32.mrb[29].mxu0  ;;  %v8615_v24 = vpop.f32.mrb[29].mxu1  ;;  %8854 = vmatmul.mubr.msk.f32.gmra.mrb[134].mxu0 %vm906_vm2, %v10588_v9  ;;  %8931 = vmatmul.mubr.msk.f32.gmra.mrb[134].mxu1 %vm906_vm2, %v10588_v9 }
 0x451   :  { %8856 = vmatprep.mubr.msk.f32.mxu0 %vm9826_vm0, %v13833_v38  ;;  %8933 = vmatprep.mubr.msk.f32.mxu1 %vm9826_vm0, %v13833_v38  ;;  %v3477_v24 = vld [vmem:[#allocation2 + $0x2f0] sm:$0xff] }
 0x452   :  { %3793 = vst [vmem:[#allocation7 + $0x148] sm:$0xff] %v3767_v15  ;;  %v3525_v5 = vadd.f32 %v3500_v19, %v12143_v2  ;;  %v3743_v53 = vmul.f32 %v3688_v22, %v13961_v45  ;;  %v13962_v15 = vld [vmem:[#allocation73_spill] sm:$0xff] }
 0x453   :  { %v3424_v7 = vpop.f32.mrb[30].mxu0  ;;  %v3692_v14 = vpop.f32.mrb[30].mxu1  ;;  %v13975_v45 = vld [vmem:[#allocation17_spill] sm:$0xff] }
 0x454   :  { %v3768_v40 = vadd.f32 %v3743_v53, %v3525_v5  ;;  %v3501_v16 = vmul.f32 %v3476_v25, %v3424_v7  ;;  %v3693_v50 = vadd.f32 1.0, %v3692_v14  ;;  %v8541_v11 = vpop.f32.mrb[31].mxu0  ;;  %v8618_v39 = vpop.f32.mrb[31].mxu1  ;;  %8857 = vmatmul.mubr.msk.f32.gmra.mrb[136].mxu0 %vm906_vm2, %v10600_v8  ;;  %8934 = vmatmul.mubr.msk.f32.gmra.mrb[136].mxu1 %vm906_vm2, %v10600_v8 }
 0x455   :  { %8859 = vmatprep.mubr.msk.f32.mxu0 %vm9826_vm0, %v13833_v38  ;;  %8936 = vmatprep.mubr.msk.f32.mxu1 %vm9826_vm0, %v13833_v38  ;;  %v3478_v39 = vld [vmem:[#allocation2 + $0x2f8] sm:$0xff] }
 0x456   :  { %3794 = vst [vmem:[#allocation7 + $0x150] sm:$0xff] %v3768_v40  ;;  %v3526_v2 = vadd.f32 %v3501_v16, %v12154_v52  ;;  %v3744_v19 = vmul.f32 %v3693_v50, %v13962_v15  ;;  %v13963_v40 = vld [vmem:[#allocation74_spill] sm:$0xff]  ;;  %v4023_v15 = vld [vmem:[#allocation2] sm:$0xff] }
 0x457   :  { %v3429_v22 = vpop.f32.mrb[32].mxu0  ;;  %v3697_v25 = vpop.f32.mrb[32].mxu1 }
 0x458   :  { %v3769_v5 = vadd.f32 %v3744_v19, %v3526_v2  ;;  %v3502_v53 = vmul.f32 %v3477_v24, %v3429_v22  ;;  %v3698_v7 = vadd.f32 1.0, %v3697_v25  ;;  %v8544_v14 = vpop.f32.mrb[33].mxu0  ;;  %v8621_v11 = vpop.f32.mrb[33].mxu1  ;;  %8860 = vmatmul.mubr.msk.f32.gmra.mrb[138].mxu0 %vm906_vm2, %v13936_v23  ;;  %8937 = vmatmul.mubr.msk.f32.gmra.mrb[138].mxu1 %vm906_vm2, %v13936_v23 }
 0x459   :  { %8862 = vmatprep.mubr.msk.f32.mxu0 %vm9826_vm0, %v13833_v38  ;;  %8939 = vmatprep.mubr.msk.f32.mxu1 %vm9826_vm0, %v13833_v38  ;;  %v3479_v11 = vld [vmem:[#allocation2 + $0x300] sm:$0xff] }
 0x45a   :  { %3795 = vst [vmem:[#allocation7 + $0x158] sm:$0xff] %v3769_v5  ;;  %v3527_v52 = vadd.f32 %v3502_v53, %v12165_v34  ;;  %v3745_v16 = vmul.f32 %v3698_v7, %v13963_v40  ;;  %v13964_v5 = vld [vmem:[#allocation75_spill] sm:$0xff]  ;;  %v13967_v40 = vld [vmem:[#allocation30_spill] sm:$0xff] }
 0x45b   :  { %v3434_v50 = vpop.f32.mrb[34].mxu0  ;;  %v3702_v24 = vpop.f32.mrb[34].mxu1 }
 0x45c   :  { %v3770_v2 = vadd.f32 %v3745_v16, %v3527_v52  ;;  %v3503_v19 = vmul.f32 %v3478_v39, %v3434_v50  ;;  %v3703_v22 = vadd.f32 1.0, %v3702_v24  ;;  %v8547_v25 = vpop.f32.mrb[35].mxu0  ;;  %v8624_v14 = vpop.f32.mrb[35].mxu1  ;;  %8863 = vmatmul.mubr.msk.f32.gmra.mrb[140].mxu0 %vm906_vm2, %v13937_v46  ;;  %8940 = vmatmul.mubr.msk.f32.gmra.mrb[140].mxu1 %vm906_vm2, %v13937_v46 }
 0x45d   :  { %8865 = vmatprep.mubr.msk.f32.mxu0 %vm9826_vm0, %v13833_v38  ;;  %8942 = vmatprep.mubr.msk.f32.mxu1 %vm9826_vm0, %v13833_v38  ;;  %v3480_v14 = vld [vmem:[#allocation2 + $0x308] sm:$0xff] }
 0x45e   :  { %3796 = vst [vmem:[#allocation7 + $0x160] sm:$0xff] %v3770_v2  ;;  %v3528_v34 = vadd.f32 %v3503_v19, %v12176_v51  ;;  %v3746_v53 = vmul.f32 %v3703_v22, %v13964_v5  ;;  %v5442_v2 = vcombine.high %v12192_v56, %v12192_v56  ;;  %v13965_v51 = vld [vmem:[#allocation18_spill] sm:$0xff]  ;;  %v13966_v22 = vld [vmem:[#allocation76_spill] sm:$0xff] }
 0x45f   :  { %v3439_v7 = vpop.f32.mrb[36].mxu0  ;;  %v3707_v39 = vpop.f32.mrb[36].mxu1 }
 0x460   :  { %v3771_v52 = vadd.f32 %v3746_v53, %v3528_v34  ;;  %v3504_v16 = vmul.f32 %v3479_v11, %v3439_v7  ;;  %v3708_v50 = vadd.f32 1.0, %v3707_v39  ;;  %v8550_v24 = vpop.f32.mrb[37].mxu0  ;;  %v8627_v25 = vpop.f32.mrb[37].mxu1  ;;  %8866 = vmatmul.mubr.msk.f32.gmra.mrb[142].mxu0 %vm906_vm2, %v13938_v59  ;;  %8943 = vmatmul.mubr.msk.f32.gmra.mrb[142].mxu1 %vm906_vm2, %v13938_v59  ;;  %v12458_v34 = vld [vmem:[%s13657_s3 + $0x38] sm:$0xff] }
 0x461   :  { %8947 = vmatprep.mubr.msk.f32.mxu0 %vm9826_vm0, %v13833_v38  ;;  %9024 = vmatprep.mubr.msk.f32.mxu1 %vm9826_vm0, %v13833_v38 }
 0x462   :  { %3797 = vst [vmem:[#allocation7 + $0x168] sm:$0xff] %v3771_v52  ;;  %v3529_v19 = vadd.f32 %v3504_v16, %v13965_v51  ;;  %v3747_v11 = vmul.f32 %v3708_v50, %v13966_v22  ;;  %v13968_v52 = vld [vmem:[#allocation14_spill] sm:$0xff]  ;;  %v13969_v51 = vld [vmem:[#allocation77_spill] sm:$0xff]  ;;  %v13972_v22 = vld [vmem:[#allocation32_spill] sm:$0xff] }
 0x463   :  { %v3444_v53 = vpop.f32.mrb[38].mxu0  ;;  %v3712_v7 = vpop.f32.mrb[38].mxu1  ;;  %v3481_v16 = vld [vmem:[#allocation2 + $0x310] sm:$0xff] }
 0x464   :  { %v3772_v56 = vadd.f32 %v3747_v11, %v3529_v19  ;;  %v3505_v39 = vmul.f32 %v3480_v14, %v3444_v53  ;;  %v3713_v24 = vadd.f32 1.0, %v3712_v7  ;;  %v8553_v25 = vpop.f32.mrb[39].mxu0  ;;  %v8630_v5 = vpop.f32.mrb[39].mxu1  ;;  %8948 = vmatmul.mubr.msk.f32.vlgmr.msra.gmra.mrb[144].mxu0 %vm906_vm2, %v13967_v40  ;;  %9025 = vmatmul.mubr.msk.f32.vlgmr.msra.gmra.mrb[144].mxu1 %vm906_vm2, %v13968_v52  ;;  %v4035_v40 = vld [vmem:[#allocation2 + $0x60] sm:$0xff] }
 0x465   :  { %9100 = vmatpush3.msk.msra.mxu0 %vm982_vm1, %v5442_v2  ;;  %9177 = vmatpush3.msk.msra.mxu1 %vm982_vm1, %v12458_v34  ;;  %v13971_v25 = vld [vmem:[#allocation78_spill] sm:$0xff] }
 0x466   :  { %3798 = vst [vmem:[#allocation7 + $0x170] sm:$0xff] %v3772_v56  ;;  %v3530_v50 = vadd.f32 %v3505_v39, %v12215_v13  ;;  %v3748_v14 = vmul.f32 %v3713_v24, %v13969_v51  ;;  %8950 = vmatprep.mubr.msk.f32.mxu0 %vm9826_vm0, %v13833_v38  ;;  %9027 = vmatprep.mubr.msk.f32.mxu1 %vm9826_vm0, %v13833_v38  ;;  %v13970_v13 = vld [vmem:[#allocation31_spill] sm:$0xff] }
 0x467   :  { %v3449_v5 = vpop.f32.mrb[40].mxu0  ;;  %v3717_v19 = vpop.f32.mrb[40].mxu1  ;;  %9253 = vmatprep.subr.mxu0 %v13833_v38  ;;  %9330 = vmatprep.subr.mxu1 %v13833_v38  ;;  %v3482_v39 = vld [vmem:[#allocation2 + $0x318] sm:$0xff] }
 0x468   :  { %v3773_v2 = vadd.f32 %v3748_v14, %v3530_v50  ;;  %v3506_v11 = vmul.f32 %v3481_v16, %v3449_v5  ;;  %v3718_v53 = vadd.f32 1.0, %v3717_v19  ;;  %v8556_v7 = vpop.f32.mrb[41].mxu0  ;;  %v8633_v56 = vpop.f32.mrb[41].mxu1  ;;  %8951 = vmatmul.mubr.msk.f32.gmra.mrb[146].mxu0 %vm906_vm2, %v13970_v13  ;;  %9028 = vmatmul.mubr.msk.f32.gmra.mrb[146].mxu1 %vm906_vm2, %v13941_v21 }
 0x469   :  { %8953 = vmatprep.mubr.msk.f32.mxu0 %vm9826_vm0, %v13833_v38  ;;  %9030 = vmatprep.mubr.msk.f32.mxu1 %vm9826_vm0, %v13833_v38 }
 0x46a   :  { %3799 = vst [vmem:[#allocation7 + $0x178] sm:$0xff] %v3773_v2  ;;  %v3531_v24 = vadd.f32 %v3506_v11, %v12225_v33  ;;  %v3749_v16 = vmul.f32 %v3718_v53, %v13971_v25  ;;  %v13973_v2 = vld [vmem:[#allocation80_spill] sm:$0xff]  ;;  %v13974_v25 = vld [vmem:[#allocation33_spill] sm:$0xff] }
 0x46b   :  { %v3454_v50 = vpop.f32.mrb[42].mxu0  ;;  %v3722_v14 = vpop.f32.mrb[42].mxu1 }
 0x46c   :  { %v3774_v5 = vadd.f32 %v3749_v16, %v3531_v24  ;;  %v3507_v19 = vmul.f32 %v3482_v39, %v3454_v50  ;;  %v3723_v7 = vadd.f32 1.0, %v3722_v14  ;;  %v8559_v56 = vpop.f32.mrb[43].mxu0  ;;  %v8636_v51 = vpop.f32.mrb[43].mxu1  ;;  %8954 = vmatmul.mubr.msk.f32.gmra.mrb[148].mxu0 %vm906_vm2, %v13972_v22  ;;  %9031 = vmatmul.mubr.msk.f32.gmra.mrb[148].mxu1 %vm906_vm2, %v13942_v43  ;;  %v4291_v39 = vld [vmem:[#allocation2 + $0xc8] sm:$0xff]  ;;  %v12495_v24 = vld [vmem:[#allocation2 + $0x190] sm:$0xff]  ;;  %v4034_v22 = vld [vmem:[#allocation2 + $0x58] sm:$0xff] }
 0x46d   :  { %8956 = vmatprep.mubr.msk.f32.mxu0 %vm9826_vm0, %v13833_v38  ;;  %9033 = vmatprep.mubr.msk.f32.mxu1 %vm9826_vm0, %v13833_v38 }
 0x46e   :  { %3800 = vst [vmem:[#allocation7 + $0x180] sm:$0xff] %v3774_v5  ;;  %v3532_v33 = vadd.f32 %v3507_v19, %v12235_v54  ;;  %v3750_v11 = vmul.f32 %v3723_v7, %v13973_v2  ;;  %v4024_v5 = vld [vmem:[#allocation2 + $0x8] sm:$0xff]  ;;  %v13976_v2 = vld [vmem:[#allocation34_spill] sm:$0xff] }
 0x46f   :  { %v3899_v53 = vpop.f32.mrb[44].mxu0  ;;  %v4167_v51 = vpop.f32.mrb[44].mxu1 }
 0x470   :  { %v3775_v16 = vadd.f32 %v3750_v11, %v3532_v33  ;;  %v4048_v50 = vmul.f32 %v4023_v15, %v3899_v53  ;;  %v8641_v14 = vpop.f32.mrb[45].mxu0  ;;  %v8718_v56 = vpop.f32.mrb[45].mxu1  ;;  %8957 = vmatmul.mubr.msk.f32.gmra.mrb[150].mxu0 %vm906_vm2, %v13974_v25  ;;  %9034 = vmatmul.mubr.msk.f32.gmra.mrb[150].mxu1 %vm906_vm2, %v13975_v45  ;;  %v4316_v54 = vmul.f32 %v4291_v39, %v4167_v51  ;;  %v4292_v33 = vld [vmem:[#allocation2 + $0xd0] sm:$0xff]  ;;  %v12506_v11 = vld [vmem:[#allocation2 + $0x198] sm:$0xff] }
 0x471   :  { %8959 = vmatprep.mubr.msk.f32.mxu0 %vm9826_vm0, %v13833_v38  ;;  %9036 = vmatprep.mubr.msk.f32.mxu1 %vm9826_vm0, %v13833_v38 }
 0x472   :  { %3801 = vst [vmem:[#allocation7 + $0x188] sm:$0xff] %v3775_v16  ;;  %v4073_v19 = vadd.f32 %v4048_v50, %v12495_v24  ;;  %v4025_v16 = vld [vmem:[#allocation2 + $0x10] sm:$0xff] }
 0x473   :  { %v3904_v15 = vpop.f32.mrb[46].mxu0  ;;  %v4172_v7 = vpop.f32.mrb[46].mxu1 }
 0x474   :  { %v4049_v53 = vmul.f32 %v4024_v5, %v3904_v15  ;;  %v8644_v14 = vpop.f32.mrb[47].mxu0  ;;  %v8721_v56 = vpop.f32.mrb[47].mxu1  ;;  %8960 = vmatmul.mubr.msk.f32.gmra.mrb[152].mxu0 %vm906_vm2, %v13976_v2  ;;  %9037 = vmatmul.mubr.msk.f32.gmra.mrb[152].mxu1 %vm906_vm2, %v13935_v10  ;;  %v12512_v44 = vadd.f32 %v4316_v54, %v4073_v19  ;;  %v4317_v51 = vmul.f32 %v4292_v33, %v4172_v7  ;;  %v4293_v15 = vld [vmem:[#allocation2 + $0xd8] sm:$0xff] }
 0x475   :  { %8962 = vmatprep.mubr.msk.f32.mxu0 %vm9826_vm0, %v13833_v38  ;;  %9039 = vmatprep.mubr.msk.f32.mxu1 %vm9826_vm0, %v13833_v38  ;;  %v12519_v14 = vld [vmem:[#allocation2 + $0x1a0] sm:$0xff]  ;;  %v13977_v54 = vld [vmem:[#allocation35_spill] sm:$0xff] }
 0x476   :  { %v4074_v39 = vadd.f32 %v4049_v53, %v12506_v11  ;;  %v4294_v53 = vld [vmem:[#allocation2 + $0xe0] sm:$0xff] }
 0x477   :  { %v3909_v50 = vpop.f32.mrb[48].mxu0  ;;  %v4177_v5 = vpop.f32.mrb[48].mxu1 }
 0x478   :  { %v4050_v56 = vmul.f32 %v4025_v16, %v3909_v50  ;;  %v8647_v29 = vpop.f32.mrb[49].mxu0  ;;  %v8724_v17 = vpop.f32.mrb[49].mxu1  ;;  %8963 = vmatmul.mubr.msk.f32.gmra.mrb[154].mxu0 %vm906_vm2, %v13977_v54  ;;  %9040 = vmatmul.mubr.msk.f32.gmra.mrb[154].mxu1 %vm906_vm2, %v10416_v57  ;;  %v12525_v19 = vadd.f32 %v4317_v51, %v4074_v39  ;;  %v4318_v7 = vmul.f32 %v4293_v15, %v4177_v5  ;;  %v12532_v16 = vld [vmem:[#allocation2 + $0x1a8] sm:$0xff]  ;;  %v13978_v51 = vld [vmem:[#allocation36_spill] sm:$0xff] }
 0x479   :  { %8965 = vmatprep.mubr.msk.f32.mxu0 %vm9826_vm0, %v13833_v38  ;;  %9042 = vmatprep.mubr.msk.f32.mxu1 %vm9826_vm0, %v13833_v38  ;;  %v4295_v15 = vld [vmem:[#allocation2 + $0xe8] sm:$0xff] }
 0x47a   :  { %v4075_v33 = vadd.f32 %v4050_v56, %v12519_v14  ;;  %v12545_v56 = vld [vmem:[#allocation2 + $0x1b0] sm:$0xff] }
 0x47b   :  { %v3914_v29 = vpop.f32.mrb[50].mxu0  ;;  %v4182_v17 = vpop.f32.mrb[50].mxu1 }
 0x47c   :  { %v4051_v50 = vmul.f32 %v4026_v27, %v3914_v29  ;;  %v8650_v55 = vpop.f32.mrb[51].mxu0  ;;  %v8727_v61 = vpop.f32.mrb[51].mxu1  ;;  %8966 = vmatmul.mubr.msk.f32.gmra.mrb[156].mxu0 %vm906_vm2, %v13978_v51  ;;  %9043 = vmatmul.mubr.msk.f32.gmra.mrb[156].mxu1 %vm906_vm2, %v10426_v62  ;;  %v12538_v39 = vadd.f32 %v4318_v7, %v4075_v33  ;;  %v4319_v5 = vmul.f32 %v4294_v53, %v4182_v17  ;;  %v13979_v7 = vld [vmem:[#allocation37_spill] sm:$0xff]  ;;  %v4296_v53 = vld [vmem:[#allocation2 + $0xf0] sm:$0xff] }
 0x47d   :  { %8968 = vmatprep.mubr.msk.f32.mxu0 %vm9826_vm0, %v13833_v38  ;;  %9045 = vmatprep.mubr.msk.f32.mxu1 %vm9826_vm0, %v13833_v38 }
 0x47e   :  { %v4076_v27 = vadd.f32 %v4051_v50, %v12532_v16  ;;  %v12558_v50 = vld [vmem:[#allocation2 + $0x1b8] sm:$0xff] }
 0x47f   :  { %v3919_v55 = vpop.f32.mrb[52].mxu0  ;;  %v4187_v61 = vpop.f32.mrb[52].mxu1 }
 0x480   :  { %v4052_v29 = vmul.f32 %v4027_v28, %v3919_v55  ;;  %v8653_v1 = vpop.f32.mrb[53].mxu0  ;;  %v8730_v31 = vpop.f32.mrb[53].mxu1  ;;  %8969 = vmatmul.mubr.msk.f32.gmra.mrb[158].mxu0 %vm906_vm2, %v13979_v7  ;;  %9046 = vmatmul.mubr.msk.f32.gmra.mrb[158].mxu1 %vm906_vm2, %v10436_v58  ;;  %v12551_v33 = vadd.f32 %v4319_v5, %v4076_v27  ;;  %v4320_v17 = vmul.f32 %v4295_v15, %v4187_v61  ;;  %v13980_v5 = vld [vmem:[#allocation38_spill] sm:$0xff]  ;;  %v4297_v15 = vld [vmem:[#allocation2 + $0xf8] sm:$0xff] }
 0x481   :  { %8971 = vmatprep.mubr.msk.f32.mxu0 %vm9826_vm0, %v13833_v38  ;;  %9048 = vmatprep.mubr.msk.f32.mxu1 %vm9826_vm0, %v13833_v38 }
 0x482   :  { %v4077_v28 = vadd.f32 %v4052_v29, %v12545_v56  ;;  %v12571_v29 = vld [vmem:[#allocation2 + $0x1c0] sm:$0xff] }
 0x483   :  { %v3924_v1 = vpop.f32.mrb[54].mxu0  ;;  %v4192_v31 = vpop.f32.mrb[54].mxu1 }
 0x484   :  { %v4053_v55 = vmul.f32 %v4028_v35, %v3924_v1  ;;  %v8656_v20 = vpop.f32.mrb[55].mxu0  ;;  %v8733_v41 = vpop.f32.mrb[55].mxu1  ;;  %8972 = vmatmul.mubr.msk.f32.gmra.mrb[160].mxu0 %vm906_vm2, %v13980_v5  ;;  %9049 = vmatmul.mubr.msk.f32.gmra.mrb[160].mxu1 %vm906_vm2, %v10446_v3  ;;  %v12564_v27 = vadd.f32 %v4320_v17, %v4077_v28  ;;  %v4321_v61 = vmul.f32 %v4296_v53, %v4192_v31  ;;  %v13981_v17 = vld [vmem:[#allocation39_spill] sm:$0xff] }
 0x485   :  { %8974 = vmatprep.mubr.msk.f32.mxu0 %vm9826_vm0, %v13833_v38  ;;  %9051 = vmatprep.mubr.msk.f32.mxu1 %vm9826_vm0, %v13833_v38 }
 0x486   :  { %v4078_v35 = vadd.f32 %v4053_v55, %v12558_v50  ;;  %v4298_v55 = vld [vmem:[#allocation2 + $0x100] sm:$0xff] }
 0x487   :  { %v3929_v20 = vpop.f32.mrb[56].mxu0  ;;  %v4197_v41 = vpop.f32.mrb[56].mxu1 }
 0x488   :  { %v4054_v1 = vmul.f32 %v4029_v6, %v3929_v20  ;;  %v8659_v5 = vpop.f32.mrb[57].mxu0  ;;  %v8736_v7 = vpop.f32.mrb[57].mxu1  ;;  %8975 = vmatmul.mubr.msk.f32.gmra.mrb[162].mxu0 %vm906_vm2, %v13981_v17  ;;  %9052 = vmatmul.mubr.msk.f32.gmra.mrb[162].mxu1 %vm906_vm2, %v10456_v63  ;;  %v12577_v28 = vadd.f32 %v4321_v61, %v4078_v35  ;;  %v4322_v31 = vmul.f32 %v4297_v15, %v4197_v41  ;;  %v13982_v61 = vld [vmem:[#allocation40_spill] sm:$0xff] }
 0x489   :  { %8977 = vmatprep.mubr.msk.f32.mxu0 %vm9826_vm0, %v13833_v38  ;;  %9054 = vmatprep.mubr.msk.f32.mxu1 %vm9826_vm0, %v13833_v38  ;;  %v12584_v5 = vld [vmem:[#allocation2 + $0x1c8] sm:$0xff] }
 0x48a   :  { %v4079_v6 = vadd.f32 %v4054_v1, %v12571_v29  ;;  %v4299_v1 = vld [vmem:[#allocation2 + $0x108] sm:$0xff] }
 0x48b   :  { %v3934_v53 = vpop.f32.mrb[58].mxu0  ;;  %v4202_v7 = vpop.f32.mrb[58].mxu1 }
 0x48c   :  { %v4055_v20 = vmul.f32 %v4030_v47, %v3934_v53  ;;  %v8662_v17 = vpop.f32.mrb[59].mxu0  ;;  %v8739_v51 = vpop.f32.mrb[59].mxu1  ;;  %8978 = vmatmul.mubr.msk.f32.gmra.mrb[164].mxu0 %vm906_vm2, %v13982_v61  ;;  %9055 = vmatmul.mubr.msk.f32.gmra.mrb[164].mxu1 %vm906_vm2, %v10468_v4  ;;  %v12590_v35 = vadd.f32 %v4322_v31, %v4079_v6  ;;  %v4323_v41 = vmul.f32 %v4298_v55, %v4202_v7  ;;  %v13983_v31 = vld [vmem:[#allocation41_spill] sm:$0xff] }
 0x48d   :  { %8980 = vmatprep.mubr.msk.f32.mxu0 %vm9826_vm0, %v13833_v38  ;;  %9057 = vmatprep.mubr.msk.f32.mxu1 %vm9826_vm0, %v13833_v38  ;;  %v12597_v17 = vld [vmem:[#allocation2 + $0x1d0] sm:$0xff] }
 0x48e   :  { %v4080_v47 = vadd.f32 %v4055_v20, %v12584_v5  ;;  %v4300_v20 = vld [vmem:[#allocation2 + $0x110] sm:$0xff] }
 0x48f   :  { %v3939_v15 = vpop.f32.mrb[60].mxu0  ;;  %v4207_v51 = vpop.f32.mrb[60].mxu1 }
 0x490   :  { %v4056_v53 = vmul.f32 %v4031_v26, %v3939_v15  ;;  %v8665_v61 = vpop.f32.mrb[61].mxu0  ;;  %v8742_v54 = vpop.f32.mrb[61].mxu1  ;;  %8981 = vmatmul.mubr.msk.f32.gmra.mrb[166].mxu0 %vm906_vm2, %v13983_v31  ;;  %9058 = vmatmul.mubr.msk.f32.gmra.mrb[166].mxu1 %vm906_vm2, %v10480_v12  ;;  %v12603_v6 = vadd.f32 %v4323_v41, %v4080_v47  ;;  %v4324_v7 = vmul.f32 %v4299_v1, %v4207_v51  ;;  %v13984_v41 = vld [vmem:[#allocation42_spill] sm:$0xff] }
 0x491   :  { %8983 = vmatprep.mubr.msk.f32.mxu0 %vm9826_vm0, %v13833_v38  ;;  %9060 = vmatprep.mubr.msk.f32.mxu1 %vm9826_vm0, %v13833_v38  ;;  %v12610_v61 = vld [vmem:[#allocation2 + $0x1d8] sm:$0xff] }
 0x492   :  { %v4081_v26 = vadd.f32 %v4056_v53, %v12597_v17  ;;  %v4301_v53 = vld [vmem:[#allocation2 + $0x118] sm:$0xff] }
 0x493   :  { %v3944_v55 = vpop.f32.mrb[62].mxu0  ;;  %v4212_v54 = vpop.f32.mrb[62].mxu1 }
 0x494   :  { %v4057_v15 = vmul.f32 %v4032_v42, %v3944_v55  ;;  %v8668_v31 = vpop.f32.mrb[63].mxu0  ;;  %v8745_v2 = vpop.f32.mrb[63].mxu1  ;;  %8984 = vmatmul.mubr.msk.f32.gmra.mrb[168].mxu0 %vm906_vm2, %v13984_v41  ;;  %9061 = vmatmul.mubr.msk.f32.gmra.mrb[168].mxu1 %vm906_vm2, %v10492_v0  ;;  %v12616_v47 = vadd.f32 %v4324_v7, %v4081_v26  ;;  %v4325_v51 = vmul.f32 %v4300_v20, %v4212_v54  ;;  %v13985_v7 = vld [vmem:[#allocation43_spill] sm:$0xff] }
 0x495   :  { %8986 = vmatprep.mubr.msk.f32.mxu0 %vm9826_vm0, %v13833_v38  ;;  %9063 = vmatprep.mubr.msk.f32.mxu1 %vm9826_vm0, %v13833_v38  ;;  %v12623_v31 = vld [vmem:[#allocation2 + $0x1e0] sm:$0xff] }
 0x496   :  { %v4082_v42 = vadd.f32 %v4057_v15, %v12610_v61  ;;  %v4302_v15 = vld [vmem:[#allocation2 + $0x120] sm:$0xff] }
 0x497   :  { %v3949_v1 = vpop.f32.mrb[64].mxu0  ;;  %v4217_v2 = vpop.f32.mrb[64].mxu1 }
 0x498   :  { %v4058_v55 = vmul.f32 %v4033_v49, %v3949_v1  ;;  %v8671_v41 = vpop.f32.mrb[65].mxu0  ;;  %v8748_v25 = vpop.f32.mrb[65].mxu1  ;;  %8987 = vmatmul.mubr.msk.f32.gmra.mrb[170].mxu0 %vm906_vm2, %v13985_v7  ;;  %9064 = vmatmul.mubr.msk.f32.gmra.mrb[170].mxu1 %vm906_vm2, %v10504_v30  ;;  %v12629_v26 = vadd.f32 %v4325_v51, %v4082_v42  ;;  %v4326_v54 = vmul.f32 %v4301_v53, %v4217_v2  ;;  %v13986_v51 = vld [vmem:[#allocation44_spill] sm:$0xff] }
 0x499   :  { %8989 = vmatprep.mubr.msk.f32.mxu0 %vm9826_vm0, %v13833_v38  ;;  %9066 = vmatprep.mubr.msk.f32.mxu1 %vm9826_vm0, %v13833_v38  ;;  %v12636_v41 = vld [vmem:[#allocation2 + $0x1e8] sm:$0xff] }
 0x49a   :  { %v4083_v49 = vadd.f32 %v4058_v55, %v12623_v31  ;;  %v4303_v55 = vld [vmem:[#allocation2 + $0x128] sm:$0xff] }
 0x49b   :  { %v3954_v20 = vpop.f32.mrb[66].mxu0  ;;  %v4222_v25 = vpop.f32.mrb[66].mxu1 }
 0x49c   :  { %v4059_v1 = vmul.f32 %v4034_v22, %v3954_v20  ;;  %v8674_v7 = vpop.f32.mrb[67].mxu0  ;;  %v8751_v13 = vpop.f32.mrb[67].mxu1  ;;  %8990 = vmatmul.mubr.msk.f32.gmra.mrb[172].mxu0 %vm906_vm2, %v13986_v51  ;;  %9067 = vmatmul.mubr.msk.f32.gmra.mrb[172].mxu1 %vm906_vm2, %v10516_v32  ;;  %v12642_v42 = vadd.f32 %v4326_v54, %v4083_v49  ;;  %v4327_v2 = vmul.f32 %v4302_v15, %v4222_v25  ;;  %v13988_v54 = vld [vmem:[#allocation45_spill] sm:$0xff] }
 0x49d   :  { %8992 = vmatprep.mubr.msk.f32.mxu0 %vm9826_vm0, %v13833_v38  ;;  %9069 = vmatprep.mubr.msk.f32.mxu1 %vm9826_vm0, %v13833_v38  ;;  %v12649_v7 = vld [vmem:[#allocation2 + $0x1f0] sm:$0xff] }
 0x49e   :  { %13987 = vst [vmem:[#allocation79_spill] sm:$0xff] %v12642_v42  ;;  %v4084_v22 = vadd.f32 %v4059_v1, %v12636_v41  ;;  %v4036_v42 = vld [vmem:[#allocation2 + $0x68] sm:$0xff]  ;;  %v4304_v1 = vld [vmem:[#allocation2 + $0x130] sm:$0xff] }
 0x49f   :  { %v3959_v53 = vpop.f32.mrb[68].mxu0  ;;  %v4227_v13 = vpop.f32.mrb[68].mxu1 }
 0x4a0   :  { %v4060_v20 = vmul.f32 %v4035_v40, %v3959_v53  ;;  %v8677_v51 = vpop.f32.mrb[69].mxu0  ;;  %v8754_v32 = vpop.f32.mrb[69].mxu1  ;;  %8993 = vmatmul.mubr.msk.f32.gmra.mrb[174].mxu0 %vm906_vm2, %v13988_v54  ;;  %9070 = vmatmul.mubr.msk.f32.gmra.mrb[174].mxu1 %vm906_vm2, %v10528_v48  ;;  %v12655_v49 = vadd.f32 %v4327_v2, %v4084_v22  ;;  %v4328_v25 = vmul.f32 %v4303_v55, %v4227_v13  ;;  %v13990_v2 = vld [vmem:[#allocation46_spill] sm:$0xff] }
 0x4a1   :  { %8995 = vmatprep.mubr.msk.f32.mxu0 %vm9826_vm0, %v13833_v38  ;;  %9072 = vmatprep.mubr.msk.f32.mxu1 %vm9826_vm0, %v13833_v38  ;;  %v12662_v51 = vld [vmem:[#allocation2 + $0x1f8] sm:$0xff] }
 0x4a2   :  { %13989 = vst [vmem:[#allocation16_spill] sm:$0xff] %v12655_v49  ;;  %v4085_v40 = vadd.f32 %v4060_v20, %v12649_v7  ;;  %v4037_v49 = vld [vmem:[#allocation2 + $0x70] sm:$0xff]  ;;  %v4305_v20 = vld [vmem:[#allocation2 + $0x138] sm:$0xff] }
 0x4a3   :  { %v3964_v15 = vpop.f32.mrb[70].mxu0  ;;  %v4232_v32 = vpop.f32.mrb[70].mxu1 }
 0x4a4   :  { %v4061_v53 = vmul.f32 %v4036_v42, %v3964_v15  ;;  %v8680_v54 = vpop.f32.mrb[71].mxu0  ;;  %v8757_v48 = vpop.f32.mrb[71].mxu1  ;;  %8996 = vmatmul.mubr.msk.f32.gmra.mrb[176].mxu0 %vm906_vm2, %v13990_v2  ;;  %9073 = vmatmul.mubr.msk.f32.gmra.mrb[176].mxu1 %vm906_vm2, %v10540_v36  ;;  %v12668_v22 = vadd.f32 %v4328_v25, %v4085_v40  ;;  %v4329_v13 = vmul.f32 %v4304_v1, %v4232_v32  ;;  %v13992_v25 = vld [vmem:[#allocation47_spill] sm:$0xff] }
 0x4a5   :  { %8998 = vmatprep.mubr.msk.f32.mxu0 %vm9826_vm0, %v13833_v38  ;;  %9075 = vmatprep.mubr.msk.f32.mxu1 %vm9826_vm0, %v13833_v38  ;;  %v12675_v54 = vld [vmem:[#allocation2 + $0x200] sm:$0xff] }
 0x4a6   :  { %13991 = vst [vmem:[#allocation18_spill] sm:$0xff] %v12668_v22  ;;  %v4086_v42 = vadd.f32 %v4061_v53, %v12662_v51  ;;  %v4038_v22 = vld [vmem:[#allocation2 + $0x78] sm:$0xff]  ;;  %v4306_v53 = vld [vmem:[#allocation2 + $0x140] sm:$0xff] }
 0x4a7   :  { %v3969_v55 = vpop.f32.mrb[72].mxu0  ;;  %v4237_v48 = vpop.f32.mrb[72].mxu1 }
 0x4a8   :  { %v4062_v15 = vmul.f32 %v4037_v49, %v3969_v55  ;;  %v8683_v2 = vpop.f32.mrb[73].mxu0  ;;  %v8760_v36 = vpop.f32.mrb[73].mxu1  ;;  %8999 = vmatmul.mubr.msk.f32.gmra.mrb[178].mxu0 %vm906_vm2, %v13992_v25  ;;  %9076 = vmatmul.mubr.msk.f32.gmra.mrb[178].mxu1 %vm906_vm2, %v10552_v18  ;;  %v12681_v40 = vadd.f32 %v4329_v13, %v4086_v42  ;;  %v4330_v32 = vmul.f32 %v4305_v20, %v4237_v48  ;;  %v13994_v13 = vld [vmem:[#allocation48_spill] sm:$0xff] }
 0x4a9   :  { %9001 = vmatprep.mubr.msk.f32.mxu0 %vm9826_vm0, %v13833_v38  ;;  %9078 = vmatprep.mubr.msk.f32.mxu1 %vm9826_vm0, %v13833_v38  ;;  %v12688_v2 = vld [vmem:[#allocation2 + $0x208] sm:$0xff] }
 0x4aa   :  { %13993 = vst [vmem:[#allocation81_spill] sm:$0xff] %v12681_v40  ;;  %v4087_v49 = vadd.f32 %v4062_v15, %v12675_v54  ;;  %v4039_v40 = vld [vmem:[#allocation2 + $0x80] sm:$0xff]  ;;  %v4307_v15 = vld [vmem:[#allocation2 + $0x148] sm:$0xff] }
 0x4ab   :  { %v3974_v1 = vpop.f32.mrb[74].mxu0  ;;  %v4242_v36 = vpop.f32.mrb[74].mxu1 }
 0x4ac   :  { %v4063_v55 = vmul.f32 %v4038_v22, %v3974_v1  ;;  %v8686_v25 = vpop.f32.mrb[75].mxu0  ;;  %v8763_v18 = vpop.f32.mrb[75].mxu1  ;;  %9002 = vmatmul.mubr.msk.f32.gmra.mrb[180].mxu0 %vm906_vm2, %v13994_v13  ;;  %9079 = vmatmul.mubr.msk.f32.gmra.mrb[180].mxu1 %vm906_vm2, %v10564_v37  ;;  %v12694_v42 = vadd.f32 %v4330_v32, %v4087_v49  ;;  %v4331_v48 = vmul.f32 %v4306_v53, %v4242_v36  ;;  %v13996_v32 = vld [vmem:[#allocation49_spill] sm:$0xff] }
 0x4ad   :  { %9004 = vmatprep.mubr.msk.f32.mxu0 %vm9826_vm0, %v13833_v38  ;;  %9081 = vmatprep.mubr.msk.f32.mxu1 %vm9826_vm0, %v13833_v38  ;;  %v12701_v25 = vld [vmem:[#allocation2 + $0x210] sm:$0xff] }
 0x4ae   :  { %13995 = vst [vmem:[#allocation82_spill] sm:$0xff] %v12694_v42  ;;  %v4088_v22 = vadd.f32 %v4063_v55, %v12688_v2  ;;  %v4040_v42 = vld [vmem:[#allocation2 + $0x88] sm:$0xff]  ;;  %v4308_v55 = vld [vmem:[#allocation2 + $0x150] sm:$0xff] }
 0x4af   :  { %v3979_v20 = vpop.f32.mrb[76].mxu0  ;;  %v4247_v18 = vpop.f32.mrb[76].mxu1 }
 0x4b0   :  { %v4064_v1 = vmul.f32 %v4039_v40, %v3979_v20  ;;  %v8689_v13 = vpop.f32.mrb[77].mxu0  ;;  %v8766_v37 = vpop.f32.mrb[77].mxu1  ;;  %9005 = vmatmul.mubr.msk.f32.gmra.mrb[182].mxu0 %vm906_vm2, %v13996_v32  ;;  %9082 = vmatmul.mubr.msk.f32.gmra.mrb[182].mxu1 %vm906_vm2, %v10576_v60  ;;  %v12707_v49 = vadd.f32 %v4331_v48, %v4088_v22  ;;  %v4332_v36 = vmul.f32 %v4307_v15, %v4247_v18  ;;  %v13998_v48 = vld [vmem:[#allocation50_spill] sm:$0xff] }
 0x4b1   :  { %9007 = vmatprep.mubr.msk.f32.mxu0 %vm9826_vm0, %v13833_v38  ;;  %9084 = vmatprep.mubr.msk.f32.mxu1 %vm9826_vm0, %v13833_v38  ;;  %v12714_v13 = vld [vmem:[#allocation2 + $0x218] sm:$0xff] }
 0x4b2   :  { %13997 = vst [vmem:[#allocation83_spill] sm:$0xff] %v12707_v49  ;;  %v4089_v40 = vadd.f32 %v4064_v1, %v12701_v25  ;;  %v4041_v49 = vld [vmem:[#allocation2 + $0x90] sm:$0xff]  ;;  %v4309_v1 = vld [vmem:[#allocation2 + $0x158] sm:$0xff] }
 0x4b3   :  { %v3984_v53 = vpop.f32.mrb[78].mxu0  ;;  %v4252_v37 = vpop.f32.mrb[78].mxu1 }
 0x4b4   :  { %v4065_v20 = vmul.f32 %v4040_v42, %v3984_v53  ;;  %v8692_v32 = vpop.f32.mrb[79].mxu0  ;;  %v8769_v60 = vpop.f32.mrb[79].mxu1  ;;  %9008 = vmatmul.mubr.msk.f32.gmra.mrb[184].mxu0 %vm906_vm2, %v13998_v48  ;;  %9085 = vmatmul.mubr.msk.f32.gmra.mrb[184].mxu1 %vm906_vm2, %v10588_v9  ;;  %v12720_v22 = vadd.f32 %v4332_v36, %v4089_v40  ;;  %v4333_v18 = vmul.f32 %v4308_v55, %v4252_v37  ;;  %v14000_v36 = vld [vmem:[#allocation51_spill] sm:$0xff] }
 0x4b5   :  { %9010 = vmatprep.mubr.msk.f32.mxu0 %vm9826_vm0, %v13833_v38  ;;  %9087 = vmatprep.mubr.msk.f32.mxu1 %vm9826_vm0, %v13833_v38  ;;  %v12727_v32 = vld [vmem:[#allocation2 + $0x220] sm:$0xff] }
 0x4b6   :  { %13999 = vst [vmem:[#allocation84_spill] sm:$0xff] %v12720_v22  ;;  %v4090_v42 = vadd.f32 %v4065_v20, %v12714_v13  ;;  %v4042_v22 = vld [vmem:[#allocation2 + $0x98] sm:$0xff]  ;;  %v4310_v20 = vld [vmem:[#allocation2 + $0x160] sm:$0xff] }
 0x4b7   :  { %v3989_v15 = vpop.f32.mrb[80].mxu0  ;;  %v4257_v60 = vpop.f32.mrb[80].mxu1 }
 0x4b8   :  { %v4066_v53 = vmul.f32 %v4041_v49, %v3989_v15  ;;  %v8695_v48 = vpop.f32.mrb[81].mxu0  ;;  %v8772_v9 = vpop.f32.mrb[81].mxu1  ;;  %9011 = vmatmul.mubr.msk.f32.gmra.mrb[186].mxu0 %vm906_vm2, %v14000_v36  ;;  %9088 = vmatmul.mubr.msk.f32.gmra.mrb[186].mxu1 %vm906_vm2, %v10600_v8  ;;  %v12733_v40 = vadd.f32 %v4333_v18, %v4090_v42  ;;  %v4334_v37 = vmul.f32 %v4309_v1, %v4257_v60  ;;  %v14002_v18 = vld [vmem:[#allocation52_spill] sm:$0xff] }
 0x4b9   :  { %9013 = vmatprep.mubr.msk.f32.mxu0 %vm9826_vm0, %v13833_v38  ;;  %9090 = vmatprep.mubr.msk.f32.mxu1 %vm9826_vm0, %v13833_v38  ;;  %v12740_v48 = vld [vmem:[#allocation2 + $0x228] sm:$0xff] }
 0x4ba   :  { %14001 = vst [vmem:[#allocation85_spill] sm:$0xff] %v12733_v40  ;;  %v4091_v49 = vadd.f32 %v4066_v53, %v12727_v32  ;;  %v4043_v40 = vld [vmem:[#allocation2 + $0xa0] sm:$0xff]  ;;  %v4311_v53 = vld [vmem:[#allocation2 + $0x168] sm:$0xff] }
 0x4bb   :  { %v3994_v55 = vpop.f32.mrb[82].mxu0  ;;  %v4262_v9 = vpop.f32.mrb[82].mxu1 }
 0x4bc   :  { %v4067_v15 = vmul.f32 %v4042_v22, %v3994_v55  ;;  %v8698_v36 = vpop.f32.mrb[83].mxu0  ;;  %v8775_v8 = vpop.f32.mrb[83].mxu1  ;;  %9014 = vmatmul.mubr.msk.f32.gmra.mrb[188].mxu0 %vm906_vm2, %v14002_v18  ;;  %9091 = vmatmul.mubr.msk.f32.gmra.mrb[188].mxu1 %vm906_vm2, %v13936_v23  ;;  %v12746_v42 = vadd.f32 %v4334_v37, %v4091_v49  ;;  %v4335_v60 = vmul.f32 %v4310_v20, %v4262_v9  ;;  %v14005_v37 = vld [vmem:[#allocation53_spill] sm:$0xff] }
 0x4bd   :  { %9016 = vmatprep.mubr.msk.f32.mxu0 %vm9826_vm0, %v13833_v38  ;;  %9093 = vmatprep.mubr.msk.f32.mxu1 %vm9826_vm0, %v13833_v38  ;;  %v12753_v36 = vld [vmem:[#allocation2 + $0x230] sm:$0xff] }
 0x4be   :  { %14003 = vst [vmem:[#allocation86_spill] sm:$0xff] %v12746_v42  ;;  %v4092_v22 = vadd.f32 %v4067_v15, %v12740_v48  ;;  %14004 = vst [vmem:[#allocation87_spill] sm:$0xff] %v12753_v36  ;;  %v4044_v42 = vld [vmem:[#allocation2 + $0xa8] sm:$0xff]  ;;  %v4312_v15 = vld [vmem:[#allocation2 + $0x170] sm:$0xff] }
 0x4bf   :  { %v3999_v1 = vpop.f32.mrb[84].mxu0  ;;  %v4267_v8 = vpop.f32.mrb[84].mxu1 }
 0x4c0   :  { %v4068_v55 = vmul.f32 %v4043_v40, %v3999_v1  ;;  %v8701_v18 = vpop.f32.mrb[85].mxu0  ;;  %v8778_v23 = vpop.f32.mrb[85].mxu1  ;;  %9017 = vmatmul.mubr.msk.f32.gmra.mrb[190].mxu0 %vm906_vm2, %v14005_v37  ;;  %9094 = vmatmul.mubr.msk.f32.gmra.mrb[190].mxu1 %vm906_vm2, %v13937_v46  ;;  %v12759_v49 = vadd.f32 %v4335_v60, %v4092_v22  ;;  %v4336_v9 = vmul.f32 %v4311_v53, %v4267_v8  ;;  %v14006_v60 = vld [vmem:[#allocation54_spill] sm:$0xff]  ;;  %v9724_v8 = vld [vmem:[%s13658_s4 + $0x8] sm:$0xff]  ;;  %s9828_s4 = smov [#allocation8]  }
 0x4c1   :  { %9019 = vmatprep.mubr.msk.f32.mxu0 %vm9826_vm0, %v13833_v38  ;;  %9096 = vmatprep.mubr.msk.f32.mxu1 %vm9826_vm0, %v13833_v38  ;;  %v12766_v18 = vld [vmem:[#allocation2 + $0x238] sm:$0xff]  ;;  %v6221_v53 = vcombine.high %v9724_v8, %v9724_v8  ;;  %s6507_s9 = sshll.u32 %s9828_s4, 4  ;;  %s6508_s9 = int_to_ptr.vmem [resolvable:$true] %s6507_s9 }
 0x4c2   :  { %v4093_v40 = vadd.f32 %v4068_v55, %v12753_v36  ;;  %v5978_v55 = vcombine.high %v12458_v34, %v12458_v34  ;;  %v4045_v36 = vld [vmem:[#allocation2 + $0xb0] sm:$0xff]  ;;  %s9769_s10 = scalar_lea.vmem %s6508_s9, 3200  ;;  %p9774_p3 = scmp.lt.s32.totalorder %s6508_s9, %s6508_s9 }
 0x4c3   :  { %v4004_v20 = vpop.f32.mrb[86].mxu0  ;;  %v4272_v23 = vpop.f32.mrb[86].mxu1  ;;  %p9770_p2 = scmp.ne.s32.totalorder %s6508_s9, %s9769_s10  ;;  %p9775_p4 = scmp.lt.s32.totalorder %s9769_s10, %s9769_s10 }
 0x4c4   :  { %v4069_v1 = vmul.f32 %v4044_v42, %v4004_v20  ;;  %v8704_v37 = vpop.f32.mrb[87].mxu0  ;;  %v8781_v46 = vpop.f32.mrb[87].mxu1  ;;  %9020 = vmatmul.mubr.msk.f32.gmra.mrb[192].mxu0 %vm906_vm2, %v14006_v60  ;;  %9097 = vmatmul.mubr.msk.f32.gmra.mrb[192].mxu1 %vm906_vm2, %v13938_v59  ;;  %v12772_v22 = vadd.f32 %v4336_v9, %v4093_v40  ;;  %v4313_v40 = vld [vmem:[#allocation2 + $0x178] sm:$0xff]  ;;  %v12784_v20 = vld [vmem:[#allocation2 + $0x240] sm:$0xff] }
 0x4c5   :  { %9101 = vmatprep.mubr.msk.f32.mxu0 %vm9826_vm0, %v13833_v38  ;;  %9178 = vmatprep.mubr.msk.f32.mxu1 %vm9826_vm0, %v13833_v38  ;;  %v4337_v46 = vmul.f32 %v4312_v15, %v4272_v23  ;;  %14007 = vst [vmem:[#allocation88_spill] sm:$0xff] %v12784_v20  ;;  %v4046_v23 = vld [vmem:[#allocation2 + $0xb8] sm:$0xff]  ;;  %p9776_p5 = por %p9775_p4, %p9774_p3 }
 0x4c6   :  { %v4094_v42 = vadd.f32 %v4069_v1, %v12766_v18 }
 0x4c7   :  { %v4009_v37 = vpop.f32.mrb[88].mxu0  ;;  %v4277_v9 = vpop.f32.mrb[88].mxu1  ;;  %p9777_p6 = pnand %p9776_p5, %p9770_p2 }
 0x4c8   :  { %v4070_v60 = vmul.f32 %v4045_v36, %v4009_v37  ;;  %v8707_v8 = vpop.f32.mrb[89].mxu0  ;;  %v8784_v59 = vpop.f32.mrb[89].mxu1  ;;  %9102 = vmatmul.mubr.msk.f32.vlgmr.msra.gmra.mrb[194].mxu0 %vm906_vm2, %v13968_v52  ;;  %9179 = vmatmul.mubr.msk.f32.vlgmr.msra.gmra.mrb[194].mxu1 %vm906_vm2, %v13968_v52  ;;  %v12790_v34 = vadd.f32 %v4337_v46, %v4094_v42  ;;  %v4338_v15 = vmul.f32 %v4313_v40, %v4277_v9  ;;  %v4314_v37 = vld [vmem:[#allocation2 + $0x180] sm:$0xff] }
 0x4c9   :  { %9254 = vmatpush3.msk.msra.mxu0 %vm982_vm1, %v5978_v55  ;;  %9331 = vmatpush3.msk.msra.mxu1 %vm982_vm1, %v6221_v53  ;;  %v12799_v8 = vld [vmem:[#allocation2 + $0x248] sm:$0xff]  ;;  %v4047_v9 = vld [vmem:[#allocation2 + $0xc0] sm:$0xff] }
 0x4ca   :  { %9104 = vmatprep.mubr.msk.f32.mxu0 %vm9826_vm0, %v13833_v38  ;;  %9181 = vmatprep.mubr.msk.f32.mxu1 %vm9826_vm0, %v13833_v38  ;;  %v4095_v59 = vadd.f32 %v4070_v60, %v12784_v20 }
 0x4cb   :  { %v4014_v36 = vpop.f32.mrb[90].mxu0  ;;  %v4282_v1 = vpop.f32.mrb[90].mxu1 }
 0x4cc   :  { %v4071_v46 = vmul.f32 %v4046_v23, %v4014_v36  ;;  %v8710_v42 = vpop.f32.mrb[91].mxu0  ;;  %v8787_v55 = vpop.f32.mrb[91].mxu1  ;;  %9105 = vmatmul.mubr.msk.f32.gmra.mrb[196].mxu0 %vm906_vm2, %v13941_v21  ;;  %9182 = vmatmul.mubr.msk.f32.gmra.mrb[196].mxu1 %vm906_vm2, %v13941_v21  ;;  %v12805_v53 = vadd.f32 %v4338_v15, %v4095_v59  ;;  %v4339_v60 = vmul.f32 %v4314_v37, %v4282_v1 }
 0x4cd   :  { %9107 = vmatprep.mubr.msk.f32.mxu0 %vm9826_vm0, %v13833_v38  ;;  %9184 = vmatprep.mubr.msk.f32.mxu1 %vm9826_vm0, %v13833_v38  ;;  %v4315_v42 = vld [vmem:[#allocation2 + $0x188] sm:$0xff]  ;;  %v12812_v55 = vld [vmem:[#allocation2 + $0x250] sm:$0xff] }
 0x4ce   :  { %v4096_v40 = vadd.f32 %v4071_v46, %v12799_v8 }
 0x4cf   :  { %v4019_v23 = vpop.f32.mrb[92].mxu0  ;;  %v4287_v36 = vpop.f32.mrb[92].mxu1 }
 0x4d0   :  { %v4072_v52 = vmul.f32 %v4047_v9, %v4019_v23  ;;  %v8713_v20 = vpop.f32.mrb[93].mxu0  ;;  %v8790_v21 = vpop.f32.mrb[93].mxu1  ;;  %9108 = vmatmul.mubr.msk.f32.gmra.mrb[198].mxu0 %vm906_vm2, %v13942_v43  ;;  %9185 = vmatmul.mubr.msk.f32.gmra.mrb[198].mxu1 %vm906_vm2, %v13942_v43  ;;  %v12818_v15 = vadd.f32 %v4339_v60, %v4096_v40  ;;  %v4340_v59 = vmul.f32 %v4315_v42, %v4287_v36  ;;  %v4803_v42 = vld [vmem:[#allocation2 + $0x260] sm:$0xff] }
 0x4d1   :  { %9110 = vmatprep.mubr.msk.f32.mxu0 %vm9826_vm0, %v13833_v38  ;;  %9187 = vmatprep.mubr.msk.f32.mxu1 %vm9826_vm0, %v13833_v38  ;;  %v4802_v21 = vld [vmem:[#allocation2 + $0x258] sm:$0xff] }
 0x4d2   :  { %v4097_v1 = vadd.f32 %v4072_v52, %v12812_v55 }
 0x4d3   :  { %v4435_v37 = vpop.f32.mrb[94].mxu0  ;;  %v4678_v20 = vpop.f32.mrb[94].mxu1 }
 0x4d4   :  { %v4559_v46 = vmul.f32 %v4435_v37, %v12495_v24  ;;  %v8795_v9 = vpop.f32.mrb[95].mxu0  ;;  %v8872_v23 = vpop.f32.mrb[95].mxu1  ;;  %9111 = vmatmul.mubr.msk.f32.gmra.mrb[200].mxu0 %vm906_vm2, %v13975_v45  ;;  %9188 = vmatmul.mubr.msk.f32.gmra.mrb[200].mxu1 %vm906_vm2, %v13975_v45  ;;  %v12830_v60 = vadd.f32 %v4340_v59, %v4097_v1  ;;  %v4827_v40 = vmul.f32 %v4802_v21, %v4678_v20 }
 0x4d5   :  { %9113 = vmatprep.mubr.msk.f32.mxu0 %vm9826_vm0, %v13833_v38  ;;  %9190 = vmatprep.mubr.msk.f32.mxu1 %vm9826_vm0, %v13833_v38 }
 0x4d6   :  { %v4584_v52 = vadd.f32 %v4559_v46, %v12512_v44 }
 0x4d7   :  { %v4440_v24 = vpop.f32.mrb[96].mxu0  ;;  %v4683_v36 = vpop.f32.mrb[96].mxu1 }
 0x4d8   :  { %v12837_v37 = vadd.f32 %v4827_v40, %v4584_v52  ;;  %v4560_v9 = vmul.f32 %v4440_v24, %v12506_v11  ;;  %v8798_v23 = vpop.f32.mrb[97].mxu0  ;;  %v8875_v45 = vpop.f32.mrb[97].mxu1  ;;  %9114 = vmatmul.mubr.msk.f32.gmra.mrb[202].mxu0 %vm906_vm2, %v13935_v10  ;;  %9191 = vmatmul.mubr.msk.f32.gmra.mrb[202].mxu1 %vm906_vm2, %v13935_v10  ;;  %v4828_v59 = vmul.f32 %v4803_v42, %v4683_v36  ;;  %v4804_v11 = vld [vmem:[#allocation2 + $0x268] sm:$0xff] }
 0x4d9   :  { %9116 = vmatprep.mubr.msk.f32.mxu0 %vm9826_vm0, %v13833_v38  ;;  %9193 = vmatprep.mubr.msk.f32.mxu1 %vm9826_vm0, %v13833_v38 }
 0x4da   :  { %v4585_v44 = vadd.f32 %v4560_v9, %v12525_v19 }
 0x4db   :  { %v4445_v1 = vpop.f32.mrb[98].mxu0  ;;  %v4688_v20 = vpop.f32.mrb[98].mxu1 }
 0x4dc   :  { %v12849_v21 = vadd.f32 %v4828_v59, %v4585_v44  ;;  %v4561_v45 = vmul.f32 %v4445_v1, %v12519_v14  ;;  %v8801_v46 = vpop.f32.mrb[99].mxu0  ;;  %v8878_v52 = vpop.f32.mrb[99].mxu1  ;;  %9117 = vmatmul.mubr.msk.f32.gmra.mrb[204].mxu0 %vm906_vm2, %v10416_v57  ;;  %9194 = vmatmul.mubr.msk.f32.gmra.mrb[204].mxu1 %vm906_vm2, %v10416_v57  ;;  %v4829_v40 = vmul.f32 %v4804_v11, %v4688_v20  ;;  %v4805_v14 = vld [vmem:[#allocation2 + $0x270] sm:$0xff] }
 0x4dd   :  { %9119 = vmatprep.mubr.msk.f32.mxu0 %vm9826_vm0, %v13833_v38  ;;  %9196 = vmatprep.mubr.msk.f32.mxu1 %vm9826_vm0, %v13833_v38 }
 0x4de   :  { %v4586_v19 = vadd.f32 %v4561_v45, %v12538_v39 }
 0x4df   :  { %v4450_v24 = vpop.f32.mrb[100].mxu0  ;;  %v4693_v36 = vpop.f32.mrb[100].mxu1 }
 0x4e0   :  { %v12861_v42 = vadd.f32 %v4829_v40, %v4586_v19  ;;  %v4562_v9 = vmul.f32 %v4450_v24, %v12532_v16  ;;  %v8804_v23 = vpop.f32.mrb[101].mxu0  ;;  %v8881_v44 = vpop.f32.mrb[101].mxu1  ;;  %9120 = vmatmul.mubr.msk.f32.gmra.mrb[206].mxu0 %vm906_vm2, %v10426_v62  ;;  %9197 = vmatmul.mubr.msk.f32.gmra.mrb[206].mxu1 %vm906_vm2, %v10426_v62  ;;  %v4830_v59 = vmul.f32 %v4805_v14, %v4693_v36  ;;  %v4806_v16 = vld [vmem:[#allocation2 + $0x278] sm:$0xff] }
 0x4e1   :  { %9122 = vmatprep.mubr.msk.f32.mxu0 %vm9826_vm0, %v13833_v38  ;;  %9199 = vmatprep.mubr.msk.f32.mxu1 %vm9826_vm0, %v13833_v38 }
 0x4e2   :  { %v4587_v39 = vadd.f32 %v4562_v9, %v12551_v33 }
 0x4e3   :  { %v4455_v1 = vpop.f32.mrb[102].mxu0  ;;  %v4698_v20 = vpop.f32.mrb[102].mxu1 }
 0x4e4   :  { %v12873_v11 = vadd.f32 %v4830_v59, %v4587_v39  ;;  %v4563_v45 = vmul.f32 %v4455_v1, %v12545_v56  ;;  %v8807_v46 = vpop.f32.mrb[103].mxu0  ;;  %v8884_v52 = vpop.f32.mrb[103].mxu1  ;;  %9123 = vmatmul.mubr.msk.f32.gmra.mrb[208].mxu0 %vm906_vm2, %v10436_v58  ;;  %9200 = vmatmul.mubr.msk.f32.gmra.mrb[208].mxu1 %vm906_vm2, %v10436_v58  ;;  %v4831_v19 = vmul.f32 %v4806_v16, %v4698_v20  ;;  %v4807_v56 = vld [vmem:[#allocation2 + $0x280] sm:$0xff] }
 0x4e5   :  { %9125 = vmatprep.mubr.msk.f32.mxu0 %vm9826_vm0, %v13833_v38  ;;  %9202 = vmatprep.mubr.msk.f32.mxu1 %vm9826_vm0, %v13833_v38 }
 0x4e6   :  { %v4588_v33 = vadd.f32 %v4563_v45, %v12564_v27 }
 0x4e7   :  { %v4460_v40 = vpop.f32.mrb[104].mxu0  ;;  %v4703_v24 = vpop.f32.mrb[104].mxu1 }
 0x4e8   :  { %v12885_v36 = vadd.f32 %v4831_v19, %v4588_v33  ;;  %v4564_v14 = vmul.f32 %v4460_v40, %v12558_v50  ;;  %v8810_v9 = vpop.f32.mrb[105].mxu0  ;;  %v8887_v23 = vpop.f32.mrb[105].mxu1  ;;  %9126 = vmatmul.mubr.msk.f32.gmra.mrb[210].mxu0 %vm906_vm2, %v10446_v3  ;;  %9203 = vmatmul.mubr.msk.f32.gmra.mrb[210].mxu1 %vm906_vm2, %v10446_v3  ;;  %v4832_v44 = vmul.f32 %v4807_v56, %v4703_v24  ;;  %v4808_v50 = vld [vmem:[#allocation2 + $0x288] sm:$0xff] }
 0x4e9   :  { %9128 = vmatprep.mubr.msk.f32.mxu0 %vm9826_vm0, %v13833_v38  ;;  %9205 = vmatprep.mubr.msk.f32.mxu1 %vm9826_vm0, %v13833_v38 }
 0x4ea   :  { %v4589_v27 = vadd.f32 %v4564_v14, %v12577_v28 }
 0x4eb   :  { %v4465_v39 = vpop.f32.mrb[106].mxu0  ;;  %v4708_v59 = vpop.f32.mrb[106].mxu1 }
 0x4ec   :  { %v12897_v1 = vadd.f32 %v4832_v44, %v4589_v27  ;;  %v4565_v20 = vmul.f32 %v4465_v39, %v12571_v29  ;;  %v8813_v16 = vpop.f32.mrb[107].mxu0  ;;  %v8890_v45 = vpop.f32.mrb[107].mxu1  ;;  %9129 = vmatmul.mubr.msk.f32.gmra.mrb[212].mxu0 %vm906_vm2, %v10456_v63  ;;  %9206 = vmatmul.mubr.msk.f32.gmra.mrb[212].mxu1 %vm906_vm2, %v10456_v63  ;;  %v4833_v46 = vmul.f32 %v4808_v50, %v4708_v59  ;;  %v4809_v29 = vld [vmem:[#allocation2 + $0x290] sm:$0xff] }
 0x4ed   :  { %9131 = vmatprep.mubr.msk.f32.mxu0 %vm9826_vm0, %v13833_v38  ;;  %9208 = vmatprep.mubr.msk.f32.mxu1 %vm9826_vm0, %v13833_v38 }
 0x4ee   :  { %v4590_v28 = vadd.f32 %v4565_v20, %v12590_v35 }
 0x4ef   :  { %v4470_v52 = vpop.f32.mrb[108].mxu0  ;;  %v4713_v33 = vpop.f32.mrb[108].mxu1 }
 0x4f0   :  { %v12909_v19 = vadd.f32 %v4833_v46, %v4590_v28  ;;  %v4566_v40 = vmul.f32 %v4470_v52, %v12584_v5  ;;  %v8816_v24 = vpop.f32.mrb[109].mxu0  ;;  %v8893_v56 = vpop.f32.mrb[109].mxu1  ;;  %9132 = vmatmul.mubr.msk.f32.gmra.mrb[214].mxu0 %vm906_vm2, %v10468_v4  ;;  %9209 = vmatmul.mubr.msk.f32.gmra.mrb[214].mxu1 %vm906_vm2, %v10468_v4  ;;  %v4834_v14 = vmul.f32 %v4809_v29, %v4713_v33  ;;  %v4810_v5 = vld [vmem:[#allocation2 + $0x298] sm:$0xff] }
 0x4f1   :  { %9134 = vmatprep.mubr.msk.f32.mxu0 %vm9826_vm0, %v13833_v38  ;;  %9211 = vmatprep.mubr.msk.f32.mxu1 %vm9826_vm0, %v13833_v38 }
 0x4f2   :  { %v4591_v35 = vadd.f32 %v4566_v40, %v12603_v6 }
 0x4f3   :  { %v4475_v9 = vpop.f32.mrb[110].mxu0  ;;  %v4718_v23 = vpop.f32.mrb[110].mxu1 }
 0x4f4   :  { %v12921_v27 = vadd.f32 %v4834_v14, %v4591_v35  ;;  %v4567_v44 = vmul.f32 %v4475_v9, %v12597_v17  ;;  %v8819_v39 = vpop.f32.mrb[111].mxu0  ;;  %v8896_v59 = vpop.f32.mrb[111].mxu1  ;;  %9135 = vmatmul.mubr.msk.f32.gmra.mrb[216].mxu0 %vm906_vm2, %v10480_v12  ;;  %9212 = vmatmul.mubr.msk.f32.gmra.mrb[216].mxu1 %vm906_vm2, %v10480_v12  ;;  %v4835_v50 = vmul.f32 %v4810_v5, %v4718_v23  ;;  %v4811_v17 = vld [vmem:[#allocation2 + $0x2a0] sm:$0xff] }
 0x4f5   :  { %9137 = vmatprep.mubr.msk.f32.mxu0 %vm9826_vm0, %v13833_v38  ;;  %9214 = vmatprep.mubr.msk.f32.mxu1 %vm9826_vm0, %v13833_v38 }
 0x4f6   :  { %v4592_v6 = vadd.f32 %v4567_v44, %v12616_v47 }
 0x4f7   :  { %v4480_v20 = vpop.f32.mrb[112].mxu0  ;;  %v4723_v16 = vpop.f32.mrb[112].mxu1 }
 0x4f8   :  { %v12933_v45 = vadd.f32 %v4835_v50, %v4592_v6  ;;  %v4568_v28 = vmul.f32 %v4480_v20, %v12610_v61  ;;  %v8822_v46 = vpop.f32.mrb[113].mxu0  ;;  %v8899_v52 = vpop.f32.mrb[113].mxu1  ;;  %9138 = vmatmul.mubr.msk.f32.gmra.mrb[218].mxu0 %vm906_vm2, %v10492_v0  ;;  %9215 = vmatmul.mubr.msk.f32.gmra.mrb[218].mxu1 %vm906_vm2, %v10492_v0  ;;  %v4836_v33 = vmul.f32 %v4811_v17, %v4723_v16  ;;  %v4812_v61 = vld [vmem:[#allocation2 + $0x2a8] sm:$0xff]  ;;  %v14009_v20 = vld [vmem:[#allocation19_spill] sm:$0xff]  ;;  %v14010_v16 = vld [vmem:[#allocation16_spill] sm:$0xff] }
 0x4f9   :  { %9140 = vmatprep.mubr.msk.f32.mxu0 %vm9826_vm0, %v13833_v38  ;;  %9217 = vmatprep.mubr.msk.f32.mxu1 %vm9826_vm0, %v13833_v38 }
 0x4fa   :  { %v4593_v47 = vadd.f32 %v4568_v28, %v12629_v26  ;;  %v14008_v26 = vld [vmem:[#allocation79_spill] sm:$0xff] }
 0x4fb   :  { %v4485_v29 = vpop.f32.mrb[114].mxu0  ;;  %v4728_v40 = vpop.f32.mrb[114].mxu1 }
 0x4fc   :  { %v12945_v24 = vadd.f32 %v4836_v33, %v4593_v47  ;;  %v4569_v56 = vmul.f32 %v4485_v29, %v12623_v31  ;;  %v8825_v35 = vpop.f32.mrb[115].mxu0  ;;  %v8902_v14 = vpop.f32.mrb[115].mxu1  ;;  %9141 = vmatmul.mubr.msk.f32.gmra.mrb[220].mxu0 %vm906_vm2, %v10504_v30  ;;  %9218 = vmatmul.mubr.msk.f32.gmra.mrb[220].mxu1 %vm906_vm2, %v10504_v30  ;;  %v4837_v23 = vmul.f32 %v4812_v61, %v4728_v40  ;;  %v4813_v31 = vld [vmem:[#allocation2 + $0x2b0] sm:$0xff]  ;;  %v14011_v61 = vld [vmem:[#allocation20_spill] sm:$0xff] }
 0x4fd   :  { %9143 = vmatprep.mubr.msk.f32.mxu0 %vm9826_vm0, %v13833_v38  ;;  %9220 = vmatprep.mubr.msk.f32.mxu1 %vm9826_vm0, %v13833_v38 }
 0x4fe   :  { %v4594_v9 = vadd.f32 %v4569_v56, %v14008_v26  ;;  %v14012_v56 = vld [vmem:[#allocation18_spill] sm:$0xff] }
 0x4ff   :  { %v4490_v5 = vpop.f32.mrb[116].mxu0  ;;  %v4733_v44 = vpop.f32.mrb[116].mxu1 }
 0x500   :  { %v12957_v39 = vadd.f32 %v4837_v23, %v4594_v9  ;;  %v4570_v59 = vmul.f32 %v4490_v5, %v12636_v41  ;;  %v8828_v6 = vpop.f32.mrb[117].mxu0  ;;  %v8905_v50 = vpop.f32.mrb[117].mxu1  ;;  %9144 = vmatmul.mubr.msk.f32.gmra.mrb[222].mxu0 %vm906_vm2, %v14009_v20  ;;  %9221 = vmatmul.mubr.msk.f32.gmra.mrb[222].mxu1 %vm906_vm2, %v14009_v20  ;;  %v4838_v28 = vmul.f32 %v4813_v31, %v4733_v44  ;;  %v4814_v41 = vld [vmem:[#allocation2 + $0x2b8] sm:$0xff] }
 0x501   :  { %9146 = vmatprep.mubr.msk.f32.mxu0 %vm9826_vm0, %v13833_v38  ;;  %9223 = vmatprep.mubr.msk.f32.mxu1 %vm9826_vm0, %v13833_v38  ;;  %v14014_v6 = vld [vmem:[#allocation81_spill] sm:$0xff] }
 0x502   :  { %v4595_v17 = vadd.f32 %v4570_v59, %v14010_v16  ;;  %v14013_v59 = vld [vmem:[#allocation21_spill] sm:$0xff] }
 0x503   :  { %v4495_v46 = vpop.f32.mrb[118].mxu0  ;;  %v4738_v52 = vpop.f32.mrb[118].mxu1 }
 0x504   :  { %v12969_v47 = vadd.f32 %v4838_v28, %v4595_v17  ;;  %v4571_v33 = vmul.f32 %v4495_v46, %v12649_v7  ;;  %v8831_v29 = vpop.f32.mrb[119].mxu0  ;;  %v8908_v40 = vpop.f32.mrb[119].mxu1  ;;  %9147 = vmatmul.mubr.msk.f32.gmra.mrb[224].mxu0 %vm906_vm2, %v14011_v61  ;;  %9224 = vmatmul.mubr.msk.f32.gmra.mrb[224].mxu1 %vm906_vm2, %v14011_v61  ;;  %v4839_v14 = vmul.f32 %v4814_v41, %v4738_v52  ;;  %v4815_v7 = vld [vmem:[#allocation2 + $0x2c0] sm:$0xff] }
 0x505   :  { %9149 = vmatprep.mubr.msk.f32.mxu0 %vm9826_vm0, %v13833_v38  ;;  %9226 = vmatprep.mubr.msk.f32.mxu1 %vm9826_vm0, %v13833_v38  ;;  %v14015_v29 = vld [vmem:[#allocation22_spill] sm:$0xff] }
 0x506   :  { %v4596_v35 = vadd.f32 %v4571_v33, %v14012_v56  ;;  %v14016_v40 = vld [vmem:[#allocation82_spill] sm:$0xff] }
 0x507   :  { %v4500_v26 = vpop.f32.mrb[120].mxu0  ;;  %v4743_v9 = vpop.f32.mrb[120].mxu1 }
 0x508   :  { %v12981_v23 = vadd.f32 %v4839_v14, %v4596_v35  ;;  %v4572_v5 = vmul.f32 %v4500_v26, %v12662_v51  ;;  %v8834_v44 = vpop.f32.mrb[121].mxu0  ;;  %v8911_v31 = vpop.f32.mrb[121].mxu1  ;;  %9150 = vmatmul.mubr.msk.f32.gmra.mrb[226].mxu0 %vm906_vm2, %v14013_v59  ;;  %9227 = vmatmul.mubr.msk.f32.gmra.mrb[226].mxu1 %vm906_vm2, %v14013_v59  ;;  %v4840_v16 = vmul.f32 %v4815_v7, %v4743_v9  ;;  %v4816_v51 = vld [vmem:[#allocation2 + $0x2c8] sm:$0xff] }
 0x509   :  { %9152 = vmatprep.mubr.msk.f32.mxu0 %vm9826_vm0, %v13833_v38  ;;  %9229 = vmatprep.mubr.msk.f32.mxu1 %vm9826_vm0, %v13833_v38  ;;  %v14017_v31 = vld [vmem:[#allocation23_spill] sm:$0xff] }
 0x50a   :  { %v4597_v50 = vadd.f32 %v4572_v5, %v14014_v6  ;;  %v14018_v6 = vld [vmem:[#allocation83_spill] sm:$0xff] }
 0x50b   :  { %v4505_v17 = vpop.f32.mrb[122].mxu0  ;;  %v4748_v28 = vpop.f32.mrb[122].mxu1 }
 0x50c   :  { %v12993_v46 = vadd.f32 %v4840_v16, %v4597_v50  ;;  %v4573_v52 = vmul.f32 %v4505_v17, %v12675_v54  ;;  %v8837_v41 = vpop.f32.mrb[123].mxu0  ;;  %v8914_v33 = vpop.f32.mrb[123].mxu1  ;;  %9153 = vmatmul.mubr.msk.f32.gmra.mrb[228].mxu0 %vm906_vm2, %v14015_v29  ;;  %9230 = vmatmul.mubr.msk.f32.gmra.mrb[228].mxu1 %vm906_vm2, %v14015_v29  ;;  %v4841_v35 = vmul.f32 %v4816_v51, %v4748_v28  ;;  %v4817_v54 = vld [vmem:[#allocation2 + $0x2d0] sm:$0xff] }
 0x50d   :  { %9155 = vmatprep.mubr.msk.f32.mxu0 %vm9826_vm0, %v13833_v38  ;;  %9232 = vmatprep.mubr.msk.f32.mxu1 %vm9826_vm0, %v13833_v38 }
 0x50e   :  { %v4598_v56 = vadd.f32 %v4573_v52, %v14016_v40  ;;  %v14019_v40 = vld [vmem:[#allocation24_spill] sm:$0xff] }
 0x50f   :  { %v4510_v14 = vpop.f32.mrb[124].mxu0  ;;  %v4753_v26 = vpop.f32.mrb[124].mxu1 }
 0x510   :  { %v13005_v9 = vadd.f32 %v4841_v35, %v4598_v56  ;;  %v4574_v7 = vmul.f32 %v4510_v14, %v12688_v2  ;;  %v8840_v5 = vpop.f32.mrb[125].mxu0  ;;  %v8917_v44 = vpop.f32.mrb[125].mxu1  ;;  %9156 = vmatmul.mubr.msk.f32.gmra.mrb[230].mxu0 %vm906_vm2, %v14017_v31  ;;  %9233 = vmatmul.mubr.msk.f32.gmra.mrb[230].mxu1 %vm906_vm2, %v14017_v31  ;;  %v4842_v16 = vmul.f32 %v4817_v54, %v4753_v26  ;;  %v4818_v2 = vld [vmem:[#allocation2 + $0x2d8] sm:$0xff]  ;;  %v14020_v56 = vld [vmem:[#allocation84_spill] sm:$0xff] }
 0x511   :  { %9158 = vmatprep.mubr.msk.f32.mxu0 %vm9826_vm0, %v13833_v38  ;;  %9235 = vmatprep.mubr.msk.f32.mxu1 %vm9826_vm0, %v13833_v38 }
 0x512   :  { %v4599_v50 = vadd.f32 %v4574_v7, %v14018_v6 }
 0x513   :  { %v4515_v17 = vpop.f32.mrb[126].mxu0  ;;  %v4758_v28 = vpop.f32.mrb[126].mxu1 }
 0x514   :  { %v13017_v51 = vadd.f32 %v4842_v16, %v4599_v50  ;;  %v4575_v52 = vmul.f32 %v4515_v17, %v12701_v25  ;;  %v8843_v41 = vpop.f32.mrb[127].mxu0  ;;  %v8920_v33 = vpop.f32.mrb[127].mxu1  ;;  %9159 = vmatmul.mubr.msk.f32.gmra.mrb[232].mxu0 %vm906_vm2, %v14019_v40  ;;  %9236 = vmatmul.mubr.msk.f32.gmra.mrb[232].mxu1 %vm906_vm2, %v14019_v40  ;;  %v4843_v14 = vmul.f32 %v4818_v2, %v4758_v28  ;;  %v4819_v25 = vld [vmem:[#allocation2 + $0x2e0] sm:$0xff]  ;;  %v14021_v50 = vld [vmem:[#allocation25_spill] sm:$0xff] }
 0x515   :  { %9161 = vmatprep.mubr.msk.f32.mxu0 %vm9826_vm0, %v13833_v38  ;;  %9238 = vmatprep.mubr.msk.f32.mxu1 %vm9826_vm0, %v13833_v38  ;;  %v14022_v16 = vld [vmem:[#allocation85_spill] sm:$0xff] }
 0x516   :  { %v4600_v35 = vadd.f32 %v4575_v52, %v14020_v56 }
 0x517   :  { %v4520_v26 = vpop.f32.mrb[128].mxu0  ;;  %v4763_v54 = vpop.f32.mrb[128].mxu1 }
 0x518   :  { %v13029_v7 = vadd.f32 %v4843_v14, %v4600_v35  ;;  %v4576_v5 = vmul.f32 %v4520_v26, %v12714_v13  ;;  %v8846_v44 = vpop.f32.mrb[129].mxu0  ;;  %v8923_v6 = vpop.f32.mrb[129].mxu1  ;;  %9162 = vmatmul.mubr.msk.f32.gmra.mrb[234].mxu0 %vm906_vm2, %v14021_v50  ;;  %9239 = vmatmul.mubr.msk.f32.gmra.mrb[234].mxu1 %vm906_vm2, %v14021_v50  ;;  %v4844_v28 = vmul.f32 %v4819_v25, %v4763_v54  ;;  %v4820_v13 = vld [vmem:[#allocation2 + $0x2e8] sm:$0xff]  ;;  %v14023_v14 = vld [vmem:[#allocation26_spill] sm:$0xff] }
 0x519   :  { %9164 = vmatprep.mubr.msk.f32.mxu0 %vm9826_vm0, %v13833_v38  ;;  %9241 = vmatprep.mubr.msk.f32.mxu1 %vm9826_vm0, %v13833_v38  ;;  %v14024_v26 = vld [vmem:[#allocation86_spill] sm:$0xff] }
 0x51a   :  { %v4601_v17 = vadd.f32 %v4576_v5, %v14022_v16 }
 0x51b   :  { %v4525_v2 = vpop.f32.mrb[130].mxu0  ;;  %v4768_v52 = vpop.f32.mrb[130].mxu1 }
 0x51c   :  { %v13041_v41 = vadd.f32 %v4844_v28, %v4601_v17  ;;  %v4577_v33 = vmul.f32 %v4525_v2, %v12727_v32  ;;  %v8849_v56 = vpop.f32.mrb[131].mxu0  ;;  %v8926_v35 = vpop.f32.mrb[131].mxu1  ;;  %9165 = vmatmul.mubr.msk.f32.gmra.mrb[236].mxu0 %vm906_vm2, %v14023_v14  ;;  %9242 = vmatmul.mubr.msk.f32.gmra.mrb[236].mxu1 %vm906_vm2, %v14023_v14  ;;  %v4845_v25 = vmul.f32 %v4820_v13, %v4768_v52  ;;  %v4821_v32 = vld [vmem:[#allocation2 + $0x2f0] sm:$0xff]  ;;  %v14025_v2 = vld [vmem:[#allocation27_spill] sm:$0xff] }
 0x51d   :  { %9167 = vmatprep.mubr.msk.f32.mxu0 %vm9826_vm0, %v13833_v38  ;;  %9244 = vmatprep.mubr.msk.f32.mxu1 %vm9826_vm0, %v13833_v38 }
 0x51e   :  { %v4602_v54 = vadd.f32 %v4577_v33, %v14024_v26  ;;  %v14026_v26 = vld [vmem:[#allocation87_spill] sm:$0xff] }
 0x51f   :  { %v4530_v5 = vpop.f32.mrb[132].mxu0  ;;  %v4773_v44 = vpop.f32.mrb[132].mxu1 }
 0x520   :  { %v13053_v6 = vadd.f32 %v4845_v25, %v4602_v54  ;;  %v4578_v16 = vmul.f32 %v4530_v5, %v12740_v48  ;;  %v8852_v17 = vpop.f32.mrb[133].mxu0  ;;  %v8929_v28 = vpop.f32.mrb[133].mxu1  ;;  %9168 = vmatmul.mubr.msk.f32.gmra.mrb[238].mxu0 %vm906_vm2, %v14025_v2  ;;  %9245 = vmatmul.mubr.msk.f32.gmra.mrb[238].mxu1 %vm906_vm2, %v14025_v2  ;;  %v4846_v13 = vmul.f32 %v4821_v32, %v4773_v44  ;;  %v4822_v48 = vld [vmem:[#allocation2 + $0x2f8] sm:$0xff] }
 0x521   :  { %9170 = vmatprep.mubr.msk.f32.mxu0 %vm9826_vm0, %v13833_v38  ;;  %9247 = vmatprep.mubr.msk.f32.mxu1 %vm9826_vm0, %v13833_v38  ;;  %v14027_v17 = vld [vmem:[#allocation28_spill] sm:$0xff] }
 0x522   :  { %v4603_v52 = vadd.f32 %v4578_v16, %v12759_v49  ;;  %v4823_v28 = vld [vmem:[#allocation2 + $0x300] sm:$0xff] }
 0x523   :  { %v4535_v33 = vpop.f32.mrb[134].mxu0  ;;  %v4778_v56 = vpop.f32.mrb[134].mxu1 }
 0x524   :  { %v13065_v35 = vadd.f32 %v4846_v13, %v4603_v52  ;;  %v4579_v54 = vmul.f32 %v4535_v33, %v14026_v26  ;;  %v8855_v25 = vpop.f32.mrb[135].mxu0  ;;  %v8932_v5 = vpop.f32.mrb[135].mxu1  ;;  %9171 = vmatmul.mubr.msk.f32.gmra.mrb[240].mxu0 %vm906_vm2, %v14027_v17  ;;  %9248 = vmatmul.mubr.msk.f32.gmra.mrb[240].mxu1 %vm906_vm2, %v14027_v17  ;;  %v4847_v44 = vmul.f32 %v4822_v48, %v4778_v56 }
 0x525   :  { %9173 = vmatprep.mubr.msk.f32.mxu0 %vm9826_vm0, %v13833_v38  ;;  %9250 = vmatprep.mubr.msk.f32.mxu1 %vm9826_vm0, %v13833_v38  ;;  %v14028_v25 = vld [vmem:[#allocation29_spill] sm:$0xff] }
 0x526   :  { %v4604_v49 = vadd.f32 %v4579_v54, %v12772_v22 }
 0x527   :  { %v4540_v32 = vpop.f32.mrb[136].mxu0  ;;  %v4783_v16 = vpop.f32.mrb[136].mxu1 }
 0x528   :  { %v13077_v52 = vadd.f32 %v4847_v44, %v4604_v49  ;;  %v4580_v13 = vmul.f32 %v4540_v32, %v12766_v18  ;;  %v8858_v33 = vpop.f32.mrb[137].mxu0  ;;  %v8935_v26 = vpop.f32.mrb[137].mxu1  ;;  %9174 = vmatmul.mubr.msk.f32.gmra.mrb[242].mxu0 %vm906_vm2, %v14028_v25  ;;  %9251 = vmatmul.mubr.msk.f32.gmra.mrb[242].mxu1 %vm906_vm2, %v14028_v25  ;;  %v4848_v56 = vmul.f32 %v4823_v28, %v4783_v16  ;;  %v4824_v18 = vld [vmem:[#allocation2 + $0x308] sm:$0xff]  ;;  %v14029_v49 = vld [vmem:[#allocation88_spill] sm:$0xff]  ;;  %v14031_v25 = vld [vmem:[#allocation30_spill] sm:$0xff] }
 0x529   :  { %9255 = vmatprep.mubr.msk.f32.mxu0 %vm9826_vm0, %v13833_v38  ;;  %9332 = vmatprep.mubr.msk.f32.mxu1 %vm9826_vm0, %v13833_v38  ;;  %v14030_v26 = vld [vmem:[#allocation14_spill] sm:$0xff] }
 0x52a   :  { %v4605_v22 = vadd.f32 %v4580_v13, %v12790_v34 }
 0x52b   :  { %v4545_v48 = vpop.f32.mrb[138].mxu0  ;;  %v4788_v54 = vpop.f32.mrb[138].mxu1 }
 0x52c   :  { %v13089_v5 = vadd.f32 %v4848_v56, %v4605_v22  ;;  %v4581_v44 = vmul.f32 %v4545_v48, %v14029_v49  ;;  %v8861_v32 = vpop.f32.mrb[139].mxu0  ;;  %v8938_v33 = vpop.f32.mrb[139].mxu1  ;;  %9256 = vmatmul.mubr.msk.f32.vlgmr.msra.gmra.mrb[244].mxu0 %vm906_vm2, %v14030_v26  ;;  %9333 = vmatmul.mubr.msk.f32.vlgmr.msra.gmra.mrb[244].mxu1 %vm906_vm2, %v14031_v25  ;;  %v4849_v16 = vmul.f32 %v4824_v18, %v4788_v54  ;;  %v4825_v22 = vld [vmem:[#allocation2 + $0x310] sm:$0xff]  ;;  %v14033_v25 = vld [vmem:[#allocation31_spill] sm:$0xff] }
 0x52d   :  { %9258 = vmatprep.mubr.msk.f32.mxu0 %vm9826_vm0, %v13833_v38  ;;  %9335 = vmatprep.mubr.msk.f32.mxu1 %vm9826_vm0, %v13833_v38  ;;  %v14032_v33 = vld [vmem:[#allocation15_spill] sm:$0xff] }
 0x52e   :  { %v4606_v34 = vadd.f32 %v4581_v44, %v12805_v53 }
 0x52f   :  { %v4550_v28 = vpop.f32.mrb[140].mxu0  ;;  %v4793_v13 = vpop.f32.mrb[140].mxu1 }
 0x530   :  { %v13101_v56 = vadd.f32 %v4849_v16, %v4606_v34  ;;  %v4582_v48 = vmul.f32 %v4550_v28, %v12799_v8  ;;  %v8864_v49 = vpop.f32.mrb[141].mxu0  ;;  %v8941_v32 = vpop.f32.mrb[141].mxu1  ;;  %9259 = vmatmul.mubr.msk.f32.gmra.mrb[246].mxu0 %vm906_vm2, %v14032_v33  ;;  %9336 = vmatmul.mubr.msk.f32.gmra.mrb[246].mxu1 %vm906_vm2, %v14033_v25  ;;  %v4850_v54 = vmul.f32 %v4825_v22, %v4793_v13  ;;  %v4826_v8 = vld [vmem:[#allocation2 + $0x318] sm:$0xff]  ;;  %v14035_v25 = vld [vmem:[#allocation17_spill] sm:$0xff] }
 0x531   :  { %9261 = vmatprep.mubr.msk.f32.mxu0 %vm9826_vm0, %v13833_v38  ;;  %9338 = vmatprep.mubr.msk.f32.mxu1 %vm9826_vm0, %v13833_v38  ;;  %v14034_v49 = vld [vmem:[#allocation32_spill] sm:$0xff] }
 0x532   :  { %v4607_v53 = vadd.f32 %v4582_v48, %v12818_v15 }
 0x533   :  { %v4555_v18 = vpop.f32.mrb[142].mxu0  ;;  %v4798_v44 = vpop.f32.mrb[142].mxu1 }
 0x534   :  { %v13113_v26 = vadd.f32 %v4850_v54, %v4607_v53  ;;  %v4583_v34 = vmul.f32 %v4555_v18, %v12812_v55  ;;  %v8867_v16 = vpop.f32.mrb[143].mxu0  ;;  %v8944_v28 = vpop.f32.mrb[143].mxu1  ;;  %9262 = vmatmul.mubr.msk.f32.gmra.mrb[248].mxu0 %vm906_vm2, %v13942_v43  ;;  %9339 = vmatmul.mubr.msk.f32.gmra.mrb[248].mxu1 %vm906_vm2, %v14034_v49  ;;  %v4851_v13 = vmul.f32 %v4826_v8, %v4798_v44  ;;  %v14036_v53 = vld [vmem:[#allocation33_spill] sm:$0xff]  ;;  %v14038_v49 = vld [vmem:[#allocation34_spill] sm:$0xff] }
 0x535   :  { %9264 = vmatprep.mubr.msk.f32.mxu0 %vm9826_vm0, %v13833_v38  ;;  %9341 = vmatprep.mubr.msk.f32.mxu1 %vm9826_vm0, %v13833_v38 }
 0x536   :  { %v4608_v15 = vadd.f32 %v4583_v34, %v12830_v60  ;;  %v14037_v60 = vld [vmem:[#allocation55_spill] sm:$0xff] }
 0x537   :  { %v4946_v22 = vpop.f32.mrb[144].mxu0  ;;  %v13125_v48 = vpop.f32.mrb[144].mxu1 }
 0x538   :  { %v13127_v55 = vadd.f32 %v4851_v13, %v4608_v15  ;;  %v4947_v32 = vadd.f32 1.0, %v4946_v22  ;;  %v8949_v33 = vpop.f32.mrb[145].mxu0  ;;  %v9026_v43 = vpop.f32.mrb[145].mxu1  ;;  %9265 = vmatmul.mubr.msk.f32.gmra.mrb[250].mxu0 %vm906_vm2, %v14035_v25  ;;  %9342 = vmatmul.mubr.msk.f32.gmra.mrb[250].mxu1 %vm906_vm2, %v14036_v53  ;;  %v14039_v15 = vld [vmem:[#allocation56_spill] sm:$0xff]  ;;  %v14040_v25 = vld [vmem:[#allocation35_spill] sm:$0xff]  ;;  %v14041_v53 = vld [vmem:[#allocation57_spill] sm:$0xff] }
 0x539   :  { %9267 = vmatprep.mubr.msk.f32.mxu0 %vm9826_vm0, %v13833_v38  ;;  %9344 = vmatprep.mubr.msk.f32.mxu1 %vm9826_vm0, %v13833_v38 }
 0x53a   :  { %v5070_v54 = vmul.f32 %v4947_v32, %v14037_v60 }
 0x53b   :  { %v4951_v18 = vpop.f32.mrb[146].mxu0  ;;  %v13138_v44 = vpop.f32.mrb[146].mxu1 }
 0x53c   :  { %v5095_v8 = vadd.f32 %v5070_v54, %v12837_v37  ;;  %v4952_v34 = vadd.f32 1.0, %v4951_v18  ;;  %v8952_v16 = vpop.f32.mrb[147].mxu0  ;;  %v9029_v28 = vpop.f32.mrb[147].mxu1  ;;  %9268 = vmatmul.mubr.msk.f32.gmra.mrb[252].mxu0 %vm906_vm2, %v13935_v10  ;;  %9345 = vmatmul.mubr.msk.f32.gmra.mrb[252].mxu1 %vm906_vm2, %v14038_v49  ;;  %v14043_v49 = vld [vmem:[#allocation58_spill] sm:$0xff] }
 0x53d   :  { %9270 = vmatprep.mubr.msk.f32.mxu0 %vm9826_vm0, %v13833_v38  ;;  %9347 = vmatprep.mubr.msk.f32.mxu1 %vm9826_vm0, %v13833_v38  ;;  %v14042_v28 = vld [vmem:[#allocation36_spill] sm:$0xff] }
 0x53e   :  { %5121 = vst [vmem:[#allocation7 + $0x190] sm:$0xff] %v5095_v8  ;;  %v5071_v13 = vmul.f32 %v4952_v34, %v14039_v15 }
 0x53f   :  { %v4956_v22 = vpop.f32.mrb[148].mxu0  ;;  %v13150_v37 = vpop.f32.mrb[148].mxu1 }
 0x540   :  { %v5096_v32 = vadd.f32 %v5071_v13, %v12849_v21  ;;  %v4957_v33 = vadd.f32 1.0, %v4956_v22  ;;  %v8955_v43 = vpop.f32.mrb[149].mxu0  ;;  %v9032_v10 = vpop.f32.mrb[149].mxu1  ;;  %9271 = vmatmul.mubr.msk.f32.gmra.mrb[254].mxu0 %vm906_vm2, %v10416_v57  ;;  %9348 = vmatmul.mubr.msk.f32.gmra.mrb[254].mxu1 %vm906_vm2, %v14040_v25  ;;  %v14045_v25 = vld [vmem:[#allocation59_spill] sm:$0xff] }
 0x541   :  { %9273 = vmatprep.mubr.msk.f32.mxu0 %vm9826_vm0, %v13833_v38  ;;  %9350 = vmatprep.mubr.msk.f32.mxu1 %vm9826_vm0, %v13833_v38  ;;  %v14044_v10 = vld [vmem:[#allocation37_spill] sm:$0xff] }
 0x542   :  { %5122 = vst [vmem:[#allocation7 + $0x198] sm:$0xff] %v5096_v32  ;;  %v5072_v54 = vmul.f32 %v4957_v33, %v14041_v53 }
 0x543   :  { %v4961_v18 = vpop.f32.mrb[150].mxu0  ;;  %v13162_v21 = vpop.f32.mrb[150].mxu1 }
 0x544   :  { %v5097_v8 = vadd.f32 %v5072_v54, %v12861_v42  ;;  %v4962_v34 = vadd.f32 1.0, %v4961_v18  ;;  %v8958_v16 = vpop.f32.mrb[151].mxu0  ;;  %v9035_v57 = vpop.f32.mrb[151].mxu1  ;;  %9274 = vmatmul.mubr.msk.f32.gmra.mrb[0].mxu0 %vm906_vm2, %v10426_v62  ;;  %9351 = vmatmul.mubr.msk.f32.gmra.mrb[0].mxu1 %vm906_vm2, %v14042_v28  ;;  %v14047_v28 = vld [vmem:[#allocation60_spill] sm:$0xff] }
 0x545   :  { %9276 = vmatprep.mubr.msk.f32.mxu0 %vm9826_vm0, %v13833_v38  ;;  %9353 = vmatprep.mubr.msk.f32.mxu1 %vm9826_vm0, %v13833_v38  ;;  %v14046_v57 = vld [vmem:[#allocation38_spill] sm:$0xff] }
 0x546   :  { %5123 = vst [vmem:[#allocation7 + $0x1a0] sm:$0xff] %v5097_v8  ;;  %v5073_v13 = vmul.f32 %v4962_v34, %v14043_v49 }
 0x547   :  { %v4966_v22 = vpop.f32.mrb[152].mxu0  ;;  %v13174_v42 = vpop.f32.mrb[152].mxu1 }
 0x548   :  { %v5098_v32 = vadd.f32 %v5073_v13, %v12873_v11  ;;  %v4967_v33 = vadd.f32 1.0, %v4966_v22  ;;  %v8961_v43 = vpop.f32.mrb[153].mxu0  ;;  %v9038_v62 = vpop.f32.mrb[153].mxu1  ;;  %9277 = vmatmul.mubr.msk.f32.gmra.mrb[2].mxu0 %vm906_vm2, %v10436_v58  ;;  %9354 = vmatmul.mubr.msk.f32.gmra.mrb[2].mxu1 %vm906_vm2, %v14044_v10  ;;  %v14049_v10 = vld [vmem:[#allocation61_spill] sm:$0xff] }
 0x549   :  { %9279 = vmatprep.mubr.msk.f32.mxu0 %vm9826_vm0, %v13833_v38  ;;  %9356 = vmatprep.mubr.msk.f32.mxu1 %vm9826_vm0, %v13833_v38  ;;  %v14048_v62 = vld [vmem:[#allocation39_spill] sm:$0xff] }
 0x54a   :  { %5124 = vst [vmem:[#allocation7 + $0x1a8] sm:$0xff] %v5098_v32  ;;  %v5074_v54 = vmul.f32 %v4967_v33, %v14045_v25 }
 0x54b   :  { %v4971_v18 = vpop.f32.mrb[154].mxu0  ;;  %v13186_v11 = vpop.f32.mrb[154].mxu1 }
 0x54c   :  { %v5099_v8 = vadd.f32 %v5074_v54, %v12885_v36  ;;  %v4972_v34 = vadd.f32 1.0, %v4971_v18  ;;  %v8964_v16 = vpop.f32.mrb[155].mxu0  ;;  %v9041_v58 = vpop.f32.mrb[155].mxu1  ;;  %9280 = vmatmul.mubr.msk.f32.gmra.mrb[4].mxu0 %vm906_vm2, %v10446_v3  ;;  %9357 = vmatmul.mubr.msk.f32.gmra.mrb[4].mxu1 %vm906_vm2, %v14046_v57  ;;  %v14051_v57 = vld [vmem:[#allocation62_spill] sm:$0xff] }
 0x54d   :  { %9282 = vmatprep.mubr.msk.f32.mxu0 %vm9826_vm0, %v13833_v38  ;;  %9359 = vmatprep.mubr.msk.f32.mxu1 %vm9826_vm0, %v13833_v38  ;;  %v14050_v58 = vld [vmem:[#allocation40_spill] sm:$0xff] }
 0x54e   :  { %5125 = vst [vmem:[#allocation7 + $0x1b0] sm:$0xff] %v5099_v8  ;;  %v5075_v13 = vmul.f32 %v4972_v34, %v14047_v28 }
 0x54f   :  { %v4976_v22 = vpop.f32.mrb[156].mxu0  ;;  %v13198_v36 = vpop.f32.mrb[156].mxu1 }
 0x550   :  { %v5100_v32 = vadd.f32 %v5075_v13, %v12897_v1  ;;  %v4977_v33 = vadd.f32 1.0, %v4976_v22  ;;  %v8967_v43 = vpop.f32.mrb[157].mxu0  ;;  %v9044_v3 = vpop.f32.mrb[157].mxu1  ;;  %9283 = vmatmul.mubr.msk.f32.gmra.mrb[6].mxu0 %vm906_vm2, %v10456_v63  ;;  %9360 = vmatmul.mubr.msk.f32.gmra.mrb[6].mxu1 %vm906_vm2, %v14048_v62  ;;  %v14053_v62 = vld [vmem:[#allocation63_spill] sm:$0xff] }
 0x551   :  { %9285 = vmatprep.mubr.msk.f32.mxu0 %vm9826_vm0, %v13833_v38  ;;  %9362 = vmatprep.mubr.msk.f32.mxu1 %vm9826_vm0, %v13833_v38  ;;  %v14052_v3 = vld [vmem:[#allocation41_spill] sm:$0xff] }
 0x552   :  { %5126 = vst [vmem:[#allocation7 + $0x1b8] sm:$0xff] %v5100_v32  ;;  %v5076_v54 = vmul.f32 %v4977_v33, %v14049_v10 }
 0x553   :  { %v4981_v18 = vpop.f32.mrb[158].mxu0  ;;  %v13210_v1 = vpop.f32.mrb[158].mxu1 }
 0x554   :  { %v5101_v8 = vadd.f32 %v5076_v54, %v12909_v19  ;;  %v4982_v34 = vadd.f32 1.0, %v4981_v18  ;;  %v8970_v16 = vpop.f32.mrb[159].mxu0  ;;  %v9047_v63 = vpop.f32.mrb[159].mxu1  ;;  %9286 = vmatmul.mubr.msk.f32.gmra.mrb[8].mxu0 %vm906_vm2, %v10468_v4  ;;  %9363 = vmatmul.mubr.msk.f32.gmra.mrb[8].mxu1 %vm906_vm2, %v14050_v58  ;;  %v14055_v58 = vld [vmem:[#allocation64_spill] sm:$0xff] }
 0x555   :  { %9288 = vmatprep.mubr.msk.f32.mxu0 %vm9826_vm0, %v13833_v38  ;;  %9365 = vmatprep.mubr.msk.f32.mxu1 %vm9826_vm0, %v13833_v38  ;;  %v14054_v63 = vld [vmem:[#allocation42_spill] sm:$0xff] }
 0x556   :  { %5127 = vst [vmem:[#allocation7 + $0x1c0] sm:$0xff] %v5101_v8  ;;  %v5077_v13 = vmul.f32 %v4982_v34, %v14051_v57 }
 0x557   :  { %v4986_v22 = vpop.f32.mrb[160].mxu0  ;;  %v13222_v19 = vpop.f32.mrb[160].mxu1 }
 0x558   :  { %v5102_v32 = vadd.f32 %v5077_v13, %v12921_v27  ;;  %v4987_v33 = vadd.f32 1.0, %v4986_v22  ;;  %v8973_v43 = vpop.f32.mrb[161].mxu0  ;;  %v9050_v4 = vpop.f32.mrb[161].mxu1  ;;  %9289 = vmatmul.mubr.msk.f32.gmra.mrb[10].mxu0 %vm906_vm2, %v10480_v12  ;;  %9366 = vmatmul.mubr.msk.f32.gmra.mrb[10].mxu1 %vm906_vm2, %v14052_v3  ;;  %v14057_v3 = vld [vmem:[#allocation65_spill] sm:$0xff] }
 0x559   :  { %9291 = vmatprep.mubr.msk.f32.mxu0 %vm9826_vm0, %v13833_v38  ;;  %9368 = vmatprep.mubr.msk.f32.mxu1 %vm9826_vm0, %v13833_v38  ;;  %v14056_v4 = vld [vmem:[#allocation43_spill] sm:$0xff] }
 0x55a   :  { %5128 = vst [vmem:[#allocation7 + $0x1c8] sm:$0xff] %v5102_v32  ;;  %v5078_v54 = vmul.f32 %v4987_v33, %v14053_v62 }
 0x55b   :  { %v4991_v18 = vpop.f32.mrb[162].mxu0  ;;  %v13234_v27 = vpop.f32.mrb[162].mxu1 }
 0x55c   :  { %v5103_v8 = vadd.f32 %v5078_v54, %v12933_v45  ;;  %v4992_v34 = vadd.f32 1.0, %v4991_v18  ;;  %v8976_v16 = vpop.f32.mrb[163].mxu0  ;;  %v9053_v12 = vpop.f32.mrb[163].mxu1  ;;  %9292 = vmatmul.mubr.msk.f32.gmra.mrb[12].mxu0 %vm906_vm2, %v10492_v0  ;;  %9369 = vmatmul.mubr.msk.f32.gmra.mrb[12].mxu1 %vm906_vm2, %v14054_v63  ;;  %v14059_v63 = vld [vmem:[#allocation66_spill] sm:$0xff] }
 0x55d   :  { %9294 = vmatprep.mubr.msk.f32.mxu0 %vm9826_vm0, %v13833_v38  ;;  %9371 = vmatprep.mubr.msk.f32.mxu1 %vm9826_vm0, %v13833_v38  ;;  %v14058_v12 = vld [vmem:[#allocation44_spill] sm:$0xff] }
 0x55e   :  { %5129 = vst [vmem:[#allocation7 + $0x1d0] sm:$0xff] %v5103_v8  ;;  %v5079_v13 = vmul.f32 %v4992_v34, %v14055_v58 }
 0x55f   :  { %v4996_v22 = vpop.f32.mrb[164].mxu0  ;;  %v13246_v45 = vpop.f32.mrb[164].mxu1 }
 0x560   :  { %v5104_v32 = vadd.f32 %v5079_v13, %v12945_v24  ;;  %v4997_v33 = vadd.f32 1.0, %v4996_v22  ;;  %v8979_v43 = vpop.f32.mrb[165].mxu0  ;;  %v9056_v0 = vpop.f32.mrb[165].mxu1  ;;  %9295 = vmatmul.mubr.msk.f32.gmra.mrb[14].mxu0 %vm906_vm2, %v10504_v30  ;;  %9372 = vmatmul.mubr.msk.f32.gmra.mrb[14].mxu1 %vm906_vm2, %v14056_v4  ;;  %v14061_v4 = vld [vmem:[#allocation67_spill] sm:$0xff] }
 0x561   :  { %9297 = vmatprep.mubr.msk.f32.mxu0 %vm9826_vm0, %v13833_v38  ;;  %9374 = vmatprep.mubr.msk.f32.mxu1 %vm9826_vm0, %v13833_v38  ;;  %v14060_v0 = vld [vmem:[#allocation45_spill] sm:$0xff] }
 0x562   :  { %5130 = vst [vmem:[#allocation7 + $0x1d8] sm:$0xff] %v5104_v32  ;;  %v5080_v54 = vmul.f32 %v4997_v33, %v14057_v3 }
 0x563   :  { %v5001_v18 = vpop.f32.mrb[166].mxu0  ;;  %v13258_v24 = vpop.f32.mrb[166].mxu1 }
 0x564   :  { %v5105_v8 = vadd.f32 %v5080_v54, %v12957_v39  ;;  %v5002_v34 = vadd.f32 1.0, %v5001_v18  ;;  %v8982_v16 = vpop.f32.mrb[167].mxu0  ;;  %v9059_v30 = vpop.f32.mrb[167].mxu1  ;;  %9298 = vmatmul.mubr.msk.f32.gmra.mrb[16].mxu0 %vm906_vm2, %v14009_v20  ;;  %9375 = vmatmul.mubr.msk.f32.gmra.mrb[16].mxu1 %vm906_vm2, %v14058_v12  ;;  %v14063_v12 = vld [vmem:[#allocation68_spill] sm:$0xff] }
 0x565   :  { %9300 = vmatprep.mubr.msk.f32.mxu0 %vm9826_vm0, %v13833_v38  ;;  %9377 = vmatprep.mubr.msk.f32.mxu1 %vm9826_vm0, %v13833_v38  ;;  %v14062_v30 = vld [vmem:[#allocation46_spill] sm:$0xff] }
 0x566   :  { %5131 = vst [vmem:[#allocation7 + $0x1e0] sm:$0xff] %v5105_v8  ;;  %v5081_v13 = vmul.f32 %v5002_v34, %v14059_v63 }
 0x567   :  { %v5006_v22 = vpop.f32.mrb[168].mxu0  ;;  %v13270_v39 = vpop.f32.mrb[168].mxu1 }
 0x568   :  { %v5106_v32 = vadd.f32 %v5081_v13, %v12969_v47  ;;  %v5007_v33 = vadd.f32 1.0, %v5006_v22  ;;  %v8985_v43 = vpop.f32.mrb[169].mxu0  ;;  %v9062_v20 = vpop.f32.mrb[169].mxu1  ;;  %9301 = vmatmul.mubr.msk.f32.gmra.mrb[18].mxu0 %vm906_vm2, %v14011_v61  ;;  %9378 = vmatmul.mubr.msk.f32.gmra.mrb[18].mxu1 %vm906_vm2, %v14060_v0  ;;  %v14065_v0 = vld [vmem:[#allocation69_spill] sm:$0xff] }
 0x569   :  { %9303 = vmatprep.mubr.msk.f32.mxu0 %vm9826_vm0, %v13833_v38  ;;  %9380 = vmatprep.mubr.msk.f32.mxu1 %vm9826_vm0, %v13833_v38  ;;  %v14064_v20 = vld [vmem:[#allocation47_spill] sm:$0xff] }
 0x56a   :  { %5132 = vst [vmem:[#allocation7 + $0x1e8] sm:$0xff] %v5106_v32  ;;  %v5082_v54 = vmul.f32 %v5007_v33, %v14061_v4 }
 0x56b   :  { %v5011_v18 = vpop.f32.mrb[170].mxu0  ;;  %v13282_v47 = vpop.f32.mrb[170].mxu1 }
 0x56c   :  { %v5107_v8 = vadd.f32 %v5082_v54, %v12981_v23  ;;  %v5012_v34 = vadd.f32 1.0, %v5011_v18  ;;  %v8988_v16 = vpop.f32.mrb[171].mxu0  ;;  %v9065_v61 = vpop.f32.mrb[171].mxu1  ;;  %9304 = vmatmul.mubr.msk.f32.gmra.mrb[20].mxu0 %vm906_vm2, %v14013_v59  ;;  %9381 = vmatmul.mubr.msk.f32.gmra.mrb[20].mxu1 %vm906_vm2, %v14062_v30  ;;  %v14067_v30 = vld [vmem:[#allocation70_spill] sm:$0xff] }
 0x56d   :  { %9306 = vmatprep.mubr.msk.f32.mxu0 %vm9826_vm0, %v13833_v38  ;;  %9383 = vmatprep.mubr.msk.f32.mxu1 %vm9826_vm0, %v13833_v38  ;;  %v14066_v61 = vld [vmem:[#allocation48_spill] sm:$0xff] }
 0x56e   :  { %5133 = vst [vmem:[#allocation7 + $0x1f0] sm:$0xff] %v5107_v8  ;;  %v5083_v13 = vmul.f32 %v5012_v34, %v14063_v12 }
 0x56f   :  { %v5016_v22 = vpop.f32.mrb[172].mxu0  ;;  %v13294_v23 = vpop.f32.mrb[172].mxu1 }
 0x570   :  { %v5108_v32 = vadd.f32 %v5083_v13, %v12993_v46  ;;  %v5017_v33 = vadd.f32 1.0, %v5016_v22  ;;  %v8991_v43 = vpop.f32.mrb[173].mxu0  ;;  %v9068_v59 = vpop.f32.mrb[173].mxu1  ;;  %9307 = vmatmul.mubr.msk.f32.gmra.mrb[22].mxu0 %vm906_vm2, %v14015_v29  ;;  %9384 = vmatmul.mubr.msk.f32.gmra.mrb[22].mxu1 %vm906_vm2, %v14064_v20  ;;  %v14069_v20 = vld [vmem:[#allocation71_spill] sm:$0xff] }
 0x571   :  { %9309 = vmatprep.mubr.msk.f32.mxu0 %vm9826_vm0, %v13833_v38  ;;  %9386 = vmatprep.mubr.msk.f32.mxu1 %vm9826_vm0, %v13833_v38  ;;  %v14068_v59 = vld [vmem:[#allocation49_spill] sm:$0xff] }
 0x572   :  { %5134 = vst [vmem:[#allocation7 + $0x1f8] sm:$0xff] %v5108_v32  ;;  %v5084_v54 = vmul.f32 %v5017_v33, %v14065_v0 }
 0x573   :  { %v5021_v18 = vpop.f32.mrb[174].mxu0  ;;  %v13306_v46 = vpop.f32.mrb[174].mxu1 }
 0x574   :  { %v5109_v8 = vadd.f32 %v5084_v54, %v13005_v9  ;;  %v5022_v34 = vadd.f32 1.0, %v5021_v18  ;;  %v8994_v16 = vpop.f32.mrb[175].mxu0  ;;  %v9071_v29 = vpop.f32.mrb[175].mxu1  ;;  %9310 = vmatmul.mubr.msk.f32.gmra.mrb[24].mxu0 %vm906_vm2, %v14017_v31  ;;  %9387 = vmatmul.mubr.msk.f32.gmra.mrb[24].mxu1 %vm906_vm2, %v14066_v61  ;;  %v14071_v61 = vld [vmem:[#allocation72_spill] sm:$0xff] }
 0x575   :  { %9312 = vmatprep.mubr.msk.f32.mxu0 %vm9826_vm0, %v13833_v38  ;;  %9389 = vmatprep.mubr.msk.f32.mxu1 %vm9826_vm0, %v13833_v38  ;;  %v14070_v29 = vld [vmem:[#allocation50_spill] sm:$0xff] }
 0x576   :  { %5135 = vst [vmem:[#allocation7 + $0x200] sm:$0xff] %v5109_v8  ;;  %v5085_v13 = vmul.f32 %v5022_v34, %v14067_v30 }
 0x577   :  { %v5026_v22 = vpop.f32.mrb[176].mxu0  ;;  %v13318_v9 = vpop.f32.mrb[176].mxu1 }
 0x578   :  { %v5110_v32 = vadd.f32 %v5085_v13, %v13017_v51  ;;  %v5027_v33 = vadd.f32 1.0, %v5026_v22  ;;  %v8997_v43 = vpop.f32.mrb[177].mxu0  ;;  %v9074_v31 = vpop.f32.mrb[177].mxu1  ;;  %9313 = vmatmul.mubr.msk.f32.gmra.mrb[26].mxu0 %vm906_vm2, %v14019_v40  ;;  %9390 = vmatmul.mubr.msk.f32.gmra.mrb[26].mxu1 %vm906_vm2, %v14068_v59  ;;  %v14073_v59 = vld [vmem:[#allocation73_spill] sm:$0xff] }
 0x579   :  { %9315 = vmatprep.mubr.msk.f32.mxu0 %vm9826_vm0, %v13833_v38  ;;  %9392 = vmatprep.mubr.msk.f32.mxu1 %vm9826_vm0, %v13833_v38  ;;  %v14072_v31 = vld [vmem:[#allocation51_spill] sm:$0xff] }
 0x57a   :  { %5136 = vst [vmem:[#allocation7 + $0x208] sm:$0xff] %v5110_v32  ;;  %v5086_v54 = vmul.f32 %v5027_v33, %v14069_v20 }
 0x57b   :  { %v5031_v18 = vpop.f32.mrb[178].mxu0  ;;  %v13330_v51 = vpop.f32.mrb[178].mxu1 }
 0x57c   :  { %v5111_v8 = vadd.f32 %v5086_v54, %v13029_v7  ;;  %v5032_v34 = vadd.f32 1.0, %v5031_v18  ;;  %v9000_v16 = vpop.f32.mrb[179].mxu0  ;;  %v9077_v40 = vpop.f32.mrb[179].mxu1  ;;  %9316 = vmatmul.mubr.msk.f32.gmra.mrb[28].mxu0 %vm906_vm2, %v14021_v50  ;;  %9393 = vmatmul.mubr.msk.f32.gmra.mrb[28].mxu1 %vm906_vm2, %v14070_v29  ;;  %v14075_v29 = vld [vmem:[#allocation74_spill] sm:$0xff] }
 0x57d   :  { %9318 = vmatprep.mubr.msk.f32.mxu0 %vm9826_vm0, %v13833_v38  ;;  %9395 = vmatprep.mubr.msk.f32.mxu1 %vm9826_vm0, %v13833_v38  ;;  %v14074_v40 = vld [vmem:[#allocation52_spill] sm:$0xff] }
 0x57e   :  { %5137 = vst [vmem:[#allocation7 + $0x210] sm:$0xff] %v5111_v8  ;;  %v5087_v13 = vmul.f32 %v5032_v34, %v14071_v61  ;;  %v5904_v61 = vld [vmem:[#allocation2 + $0x198] sm:$0xff] }
 0x57f   :  { %v5036_v22 = vpop.f32.mrb[180].mxu0  ;;  %v13342_v7 = vpop.f32.mrb[180].mxu1 }
 0x580   :  { %v5112_v32 = vadd.f32 %v5087_v13, %v13041_v41  ;;  %v5037_v33 = vadd.f32 1.0, %v5036_v22  ;;  %v9003_v43 = vpop.f32.mrb[181].mxu0  ;;  %v9080_v50 = vpop.f32.mrb[181].mxu1  ;;  %9319 = vmatmul.mubr.msk.f32.gmra.mrb[30].mxu0 %vm906_vm2, %v14023_v14  ;;  %9396 = vmatmul.mubr.msk.f32.gmra.mrb[30].mxu1 %vm906_vm2, %v14072_v31  ;;  %v14077_v31 = vld [vmem:[#allocation75_spill] sm:$0xff] }
 0x581   :  { %9321 = vmatprep.mubr.msk.f32.mxu0 %vm9826_vm0, %v13833_v38  ;;  %9398 = vmatprep.mubr.msk.f32.mxu1 %vm9826_vm0, %v13833_v38  ;;  %v14076_v50 = vld [vmem:[#allocation53_spill] sm:$0xff] }
 0x582   :  { %5138 = vst [vmem:[#allocation7 + $0x218] sm:$0xff] %v5112_v32  ;;  %v5088_v54 = vmul.f32 %v5037_v33, %v14073_v59 }
 0x583   :  { %v5041_v18 = vpop.f32.mrb[182].mxu0  ;;  %v13354_v41 = vpop.f32.mrb[182].mxu1 }
 0x584   :  { %v5113_v8 = vadd.f32 %v5088_v54, %v13053_v6  ;;  %v5042_v34 = vadd.f32 1.0, %v5041_v18  ;;  %v9006_v16 = vpop.f32.mrb[183].mxu0  ;;  %v9083_v14 = vpop.f32.mrb[183].mxu1  ;;  %9322 = vmatmul.mubr.msk.f32.gmra.mrb[32].mxu0 %vm906_vm2, %v14025_v2  ;;  %9399 = vmatmul.mubr.msk.f32.gmra.mrb[32].mxu1 %vm906_vm2, %v14074_v40  ;;  %v14079_v40 = vld [vmem:[#allocation54_spill] sm:$0xff] }
 0x585   :  { %9324 = vmatprep.mubr.msk.f32.mxu0 %vm9826_vm0, %v13833_v38  ;;  %9401 = vmatprep.mubr.msk.f32.mxu1 %vm9826_vm0, %v13833_v38  ;;  %v14078_v14 = vld [vmem:[#allocation29_spill] sm:$0xff] }
 0x586   :  { %5139 = vst [vmem:[#allocation7 + $0x220] sm:$0xff] %v5113_v8  ;;  %v5089_v13 = vmul.f32 %v5042_v34, %v14075_v29 }
 0x587   :  { %v5046_v22 = vpop.f32.mrb[184].mxu0  ;;  %v13366_v6 = vpop.f32.mrb[184].mxu1 }
 0x588   :  { %v5114_v32 = vadd.f32 %v5089_v13, %v13065_v35  ;;  %v5047_v33 = vadd.f32 1.0, %v5046_v22  ;;  %v9009_v43 = vpop.f32.mrb[185].mxu0  ;;  %v9086_v2 = vpop.f32.mrb[185].mxu1  ;;  %9325 = vmatmul.mubr.msk.f32.gmra.mrb[34].mxu0 %vm906_vm2, %v14027_v17  ;;  %9402 = vmatmul.mubr.msk.f32.gmra.mrb[34].mxu1 %vm906_vm2, %v14076_v50  ;;  %v14080_v13 = vld [vmem:[#allocation76_spill] sm:$0xff]  ;;  %v14081_v50 = vld [vmem:[#allocation77_spill] sm:$0xff] }
 0x589   :  { %9327 = vmatprep.mubr.msk.f32.mxu0 %vm9826_vm0, %v13833_v38  ;;  %9404 = vmatprep.mubr.msk.f32.mxu1 %vm9826_vm0, %v13833_v38 }
 0x58a   :  { %5140 = vst [vmem:[#allocation7 + $0x228] sm:$0xff] %v5114_v32  ;;  %v5090_v54 = vmul.f32 %v5047_v33, %v14077_v31 }
 0x58b   :  { %v5051_v18 = vpop.f32.mrb[186].mxu0  ;;  %v13378_v35 = vpop.f32.mrb[186].mxu1 }
 0x58c   :  { %v5115_v8 = vadd.f32 %v5090_v54, %v13077_v52  ;;  %v5052_v34 = vadd.f32 1.0, %v5051_v18  ;;  %v9012_v16 = vpop.f32.mrb[187].mxu0  ;;  %v9089_v17 = vpop.f32.mrb[187].mxu1  ;;  %9328 = vmatmul.mubr.msk.f32.gmra.mrb[36].mxu0 %vm906_vm2, %v14078_v14  ;;  %9405 = vmatmul.mubr.msk.f32.gmra.mrb[36].mxu1 %vm906_vm2, %v14079_v40 }
 0x58e   :  { %5141 = vst [vmem:[#allocation7 + $0x230] sm:$0xff] %v5115_v8  ;;  %v5091_v38 = vmul.f32 %v5052_v34, %v14080_v13  ;;  %v5367_v34 = vld [vmem:[#allocation2] sm:$0xff]  ;;  %v14082_v13 = vld [vmem:[#allocation78_spill] sm:$0xff] }
 0x58f   :  { %v5056_v22 = vpop.f32.mrb[188].mxu0  ;;  %v13386_v32 = vpop.f32.mrb[188].mxu1 }
 0x590   :  { %v5116_v33 = vadd.f32 %v5091_v38, %v13089_v5  ;;  %v5057_v43 = vadd.f32 1.0, %v5056_v22  ;;  %v9015_v2 = vpop.f32.mrb[189].mxu0  ;;  %v9092_v52 = vpop.f32.mrb[189].mxu1  ;;  %v5392_v38 = vmul.f32 %v5367_v34, %v13125_v48 }
 0x591   :  { %v5368_v52 = vld [vmem:[#allocation2 + $0x8] sm:$0xff] }
 0x592   :  { %5142 = vst [vmem:[#allocation7 + $0x238] sm:$0xff] %v5116_v33  ;;  %v5092_v54 = vmul.f32 %v5057_v43, %v14081_v50  ;;  %v5635_v50 = vld [vmem:[#allocation2 + $0xc8] sm:$0xff] }
 0x593   :  { %v5061_v18 = vpop.f32.mrb[190].mxu0  ;;  %v13390_v16 = vpop.f32.mrb[190].mxu1 }
 0x594   :  { %v5117_v17 = vadd.f32 %v5092_v54, %v13101_v56  ;;  %v5062_v14 = vadd.f32 1.0, %v5061_v18  ;;  %v9018_v8 = vpop.f32.mrb[191].mxu0  ;;  %v9095_v40 = vpop.f32.mrb[191].mxu1  ;;  %v13398_v56 = vld [vmem:[#allocation2 + $0x258] sm:$0xff]  ;;  %v14083_v54 = vld [vmem:[#allocation80_spill] sm:$0xff] }
 0x595   :  { %v5393_v40 = vmul.f32 %v5368_v52, %v13138_v44 }
 0x596   :  { %5143 = vst [vmem:[#allocation7 + $0x240] sm:$0xff] %v5117_v17  ;;  %v5093_v31 = vmul.f32 %v5062_v14, %v14082_v13  ;;  %v5903_v14 = vld [vmem:[#allocation2 + $0x190] sm:$0xff] }
 0x597   :  { %v5066_v29 = vpop.f32.mrb[192].mxu0  ;;  %v13394_v5 = vpop.f32.mrb[192].mxu1 }
 0x598   :  { %v5118_v22 = vadd.f32 %v5093_v31, %v13113_v26  ;;  %v5067_v33 = vadd.f32 1.0, %v5066_v29  ;;  %v9021_v43 = vpop.f32.mrb[193].mxu0  ;;  %v9098_v2 = vpop.f32.mrb[193].mxu1  ;;  %v5417_v29 = vadd.f32 %v5392_v38, %v13398_v56  ;;  %v5369_v31 = vld [vmem:[#allocation2 + $0x10] sm:$0xff]  ;;  %v5370_v38 = vld [vmem:[#allocation2 + $0x18] sm:$0xff] }
 0x599   :  { %v5636_v43 = vld [vmem:[#allocation2 + $0xd0] sm:$0xff]  ;;  %v13404_v2 = vld [vmem:[#allocation2 + $0x260] sm:$0xff]  ;;  %v5394_v20 = vmul.f32 %v5369_v31, %v13150_v37 }
 0x59a   :  { %5144 = vst [vmem:[#allocation7 + $0x248] sm:$0xff] %v5118_v22  ;;  %v5094_v18 = vmul.f32 %v5067_v33, %v14083_v54 }
 0x59b   :  { %v5511_v17 = vpop.f32.mrb[194].mxu0  ;;  %v5779_v8 = vpop.f32.mrb[194].mxu1 }
 0x59c   :  { %v5119_v13 = vadd.f32 %v5094_v18, %v13127_v55  ;;  %v5660_v48 = vmul.f32 %v5635_v50, %v5511_v17  ;;  %v9103_v34 = vpop.f32.mrb[195].mxu0  ;;  %v9180_v26 = vpop.f32.mrb[195].mxu1  ;;  %v5928_v22 = vmul.f32 %v5903_v14, %v5779_v8  ;;  %v5418_v18 = vadd.f32 %v5393_v40, %v13404_v2  ;;  %v5637_v17 = vld [vmem:[#allocation2 + $0xd8] sm:$0xff]  ;;  %v5638_v40 = vld [vmem:[#allocation2 + $0xe0] sm:$0xff] }
 0x59d   :  { %v13410_v34 = vld [vmem:[#allocation2 + $0x268] sm:$0xff] }
 0x59e   :  { %5145 = vst [vmem:[#allocation7 + $0x250] sm:$0xff] %v5119_v13  ;;  %v5685_v59 = vadd.f32 %v5660_v48, %v5417_v29  ;;  %v5905_v48 = vld [vmem:[#allocation2 + $0x1a0] sm:$0xff]  ;;  %v5395_v29 = vmul.f32 %v5370_v38, %v13162_v21 }
 0x59f   :  { %v5516_v33 = vpop.f32.mrb[196].mxu0  ;;  %v5784_v54 = vpop.f32.mrb[196].mxu1 }
 0x5a0   :  { %v5661_v44 = vmul.f32 %v5636_v43, %v5516_v33  ;;  %v9106_v52 = vpop.f32.mrb[197].mxu0  ;;  %v9183_v55 = vpop.f32.mrb[197].mxu1  ;;  %v13407_v50 = vadd.f32 %v5928_v22, %v5685_v59  ;;  %v5929_v26 = vmul.f32 %v5904_v61, %v5784_v54  ;;  %v5419_v59 = vadd.f32 %v5394_v20, %v13410_v34  ;;  %v5371_v22 = vld [vmem:[#allocation2 + $0x20] sm:$0xff]  ;;  %v13416_v33 = vld [vmem:[#allocation2 + $0x270] sm:$0xff]  ;;  %v5639_v20 = vld [vmem:[#allocation2 + $0xe8] sm:$0xff] }
 0x5a2   :  { %v5686_v13 = vadd.f32 %v5661_v44, %v5418_v18  ;;  %v5906_v44 = vld [vmem:[#allocation2 + $0x1a8] sm:$0xff]  ;;  %v5396_v18 = vmul.f32 %v5371_v22, %v13174_v42 }
 0x5a3   :  { %v5521_v8 = vpop.f32.mrb[198].mxu0  ;;  %v5789_v14 = vpop.f32.mrb[198].mxu1 }
 0x5a4   :  { %v5662_v30 = vmul.f32 %v5637_v17, %v5521_v8  ;;  %v9109_v37 = vpop.f32.mrb[199].mxu0  ;;  %v9186_v31 = vpop.f32.mrb[199].mxu1  ;;  %v13413_v43 = vadd.f32 %v5929_v26, %v5686_v13  ;;  %v5930_v52 = vmul.f32 %v5905_v48, %v5789_v14  ;;  %v5420_v26 = vadd.f32 %v5395_v29, %v13416_v33  ;;  %v5372_v13 = vld [vmem:[#allocation2 + $0x28] sm:$0xff]  ;;  %v13422_v8 = vld [vmem:[#allocation2 + $0x278] sm:$0xff]  ;;  %v5907_v48 = vld [vmem:[#allocation2 + $0x1b0] sm:$0xff] }
 0x5a5   :  { %v5640_v29 = vld [vmem:[#allocation2 + $0xf0] sm:$0xff] }
 0x5a6   :  { %v5687_v55 = vadd.f32 %v5662_v30, %v5419_v59  ;;  %v5397_v59 = vmul.f32 %v5372_v13, %v13186_v11 }
 0x5a7   :  { %v5526_v61 = vpop.f32.mrb[200].mxu0  ;;  %v5794_v54 = vpop.f32.mrb[200].mxu1 }
 0x5a8   :  { %v5663_v0 = vmul.f32 %v5638_v40, %v5526_v61  ;;  %v9112_v21 = vpop.f32.mrb[201].mxu0  ;;  %v9189_v38 = vpop.f32.mrb[201].mxu1  ;;  %v13419_v17 = vadd.f32 %v5930_v52, %v5687_v55  ;;  %v5931_v37 = vmul.f32 %v5906_v44, %v5794_v54  ;;  %v5421_v52 = vadd.f32 %v5396_v18, %v13422_v8  ;;  %v5373_v55 = vld [vmem:[#allocation2 + $0x30] sm:$0xff]  ;;  %v13428_v61 = vld [vmem:[#allocation2 + $0x280] sm:$0xff]  ;;  %v5908_v44 = vld [vmem:[#allocation2 + $0x1b8] sm:$0xff] }
 0x5a9   :  { %v5641_v18 = vld [vmem:[#allocation2 + $0xf8] sm:$0xff] }
 0x5aa   :  { %v5688_v31 = vadd.f32 %v5663_v0, %v5420_v26  ;;  %v5398_v26 = vmul.f32 %v5373_v55, %v13198_v36 }
 0x5ab   :  { %v5531_v14 = vpop.f32.mrb[202].mxu0  ;;  %v5799_v30 = vpop.f32.mrb[202].mxu1 }
 0x5ac   :  { %v5664_v12 = vmul.f32 %v5639_v20, %v5531_v14  ;;  %v9115_v42 = vpop.f32.mrb[203].mxu0  ;;  %v9192_v22 = vpop.f32.mrb[203].mxu1  ;;  %v13425_v40 = vadd.f32 %v5931_v37, %v5688_v31  ;;  %v5932_v21 = vmul.f32 %v5907_v48, %v5799_v30  ;;  %v5422_v37 = vadd.f32 %v5397_v59, %v13428_v61  ;;  %v5374_v31 = vld [vmem:[#allocation2 + $0x38] sm:$0xff]  ;;  %v13434_v14 = vld [vmem:[#allocation2 + $0x288] sm:$0xff]  ;;  %v5909_v48 = vld [vmem:[#allocation2 + $0x1c0] sm:$0xff] }
 0x5ad   :  { %v5642_v59 = vld [vmem:[#allocation2 + $0x100] sm:$0xff] }
 0x5ae   :  { %v5689_v38 = vadd.f32 %v5664_v12, %v5421_v52  ;;  %v5399_v52 = vmul.f32 %v5374_v31, %v13210_v1 }
 0x5af   :  { %v5536_v54 = vpop.f32.mrb[204].mxu0  ;;  %v5804_v0 = vpop.f32.mrb[204].mxu1 }
 0x5b0   :  { %v5665_v4 = vmul.f32 %v5640_v29, %v5536_v54  ;;  %v9118_v11 = vpop.f32.mrb[205].mxu0  ;;  %v9195_v13 = vpop.f32.mrb[205].mxu1  ;;  %v13431_v20 = vadd.f32 %v5932_v21, %v5689_v38  ;;  %v5933_v42 = vmul.f32 %v5908_v44, %v5804_v0  ;;  %v5423_v21 = vadd.f32 %v5398_v26, %v13434_v14  ;;  %v5375_v38 = vld [vmem:[#allocation2 + $0x40] sm:$0xff]  ;;  %v13440_v54 = vld [vmem:[#allocation2 + $0x290] sm:$0xff]  ;;  %v5910_v44 = vld [vmem:[#allocation2 + $0x1c8] sm:$0xff] }
 0x5b1   :  { %v5643_v26 = vld [vmem:[#allocation2 + $0x108] sm:$0xff] }
 0x5b2   :  { %v5690_v22 = vadd.f32 %v5665_v4, %v5422_v37  ;;  %v5400_v37 = vmul.f32 %v5375_v38, %v13222_v19 }
 0x5b3   :  { %v5541_v30 = vpop.f32.mrb[206].mxu0  ;;  %v5809_v12 = vpop.f32.mrb[206].mxu1 }
 0x5b4   :  { %v5666_v63 = vmul.f32 %v5641_v18, %v5541_v30  ;;  %v9121_v36 = vpop.f32.mrb[207].mxu0  ;;  %v9198_v55 = vpop.f32.mrb[207].mxu1  ;;  %v13437_v29 = vadd.f32 %v5933_v42, %v5690_v22  ;;  %v5934_v11 = vmul.f32 %v5909_v48, %v5809_v12  ;;  %v5424_v42 = vadd.f32 %v5399_v52, %v13440_v54  ;;  %v5376_v22 = vld [vmem:[#allocation2 + $0x48] sm:$0xff]  ;;  %v13446_v30 = vld [vmem:[#allocation2 + $0x298] sm:$0xff]  ;;  %v5911_v48 = vld [vmem:[#allocation2 + $0x1d0] sm:$0xff] }
 0x5b5   :  { %14084 = vst [vmem:[#allocation79_spill] sm:$0xff] %v13446_v30  ;;  %v5644_v52 = vld [vmem:[#allocation2 + $0x110] sm:$0xff] }
 0x5b6   :  { %v5691_v13 = vadd.f32 %v5666_v63, %v5423_v21  ;;  %v5401_v21 = vmul.f32 %v5376_v22, %v13234_v27 }
 0x5b7   :  { %v5546_v0 = vpop.f32.mrb[208].mxu0  ;;  %v5814_v4 = vpop.f32.mrb[208].mxu1 }
 0x5b8   :  { %v5667_v3 = vmul.f32 %v5642_v59, %v5546_v0  ;;  %v9124_v1 = vpop.f32.mrb[209].mxu0  ;;  %v9201_v31 = vpop.f32.mrb[209].mxu1  ;;  %v13443_v18 = vadd.f32 %v5934_v11, %v5691_v13  ;;  %v5935_v36 = vmul.f32 %v5910_v44, %v5814_v4  ;;  %v5425_v11 = vadd.f32 %v5400_v37, %v13446_v30  ;;  %v5377_v13 = vld [vmem:[#allocation2 + $0x50] sm:$0xff]  ;;  %v13452_v0 = vld [vmem:[#allocation2 + $0x2a0] sm:$0xff]  ;;  %v5912_v44 = vld [vmem:[#allocation2 + $0x1d8] sm:$0xff] }
 0x5b9   :  { %14085 = vst [vmem:[#allocation19_spill] sm:$0xff] %v13452_v0  ;;  %v5645_v37 = vld [vmem:[#allocation2 + $0x118] sm:$0xff] }
 0x5ba   :  { %v5692_v55 = vadd.f32 %v5667_v3, %v5424_v42  ;;  %v5402_v42 = vmul.f32 %v5377_v13, %v13246_v45 }
 0x5bb   :  { %v5551_v12 = vpop.f32.mrb[210].mxu0  ;;  %v5819_v63 = vpop.f32.mrb[210].mxu1 }
 0x5bc   :  { %v5668_v58 = vmul.f32 %v5643_v26, %v5551_v12  ;;  %v9127_v19 = vpop.f32.mrb[211].mxu0  ;;  %v9204_v38 = vpop.f32.mrb[211].mxu1  ;;  %v13449_v59 = vadd.f32 %v5935_v36, %v5692_v55  ;;  %v5936_v1 = vmul.f32 %v5911_v48, %v5819_v63  ;;  %v5426_v36 = vadd.f32 %v5401_v21, %v13452_v0  ;;  %v5378_v55 = vld [vmem:[#allocation2 + $0x58] sm:$0xff]  ;;  %v13458_v12 = vld [vmem:[#allocation2 + $0x2a8] sm:$0xff]  ;;  %v5913_v48 = vld [vmem:[#allocation2 + $0x1e0] sm:$0xff] }
 0x5bd   :  { %14086 = vst [vmem:[#allocation16_spill] sm:$0xff] %v13458_v12  ;;  %v5646_v21 = vld [vmem:[#allocation2 + $0x120] sm:$0xff] }
 0x5be   :  { %v5693_v31 = vadd.f32 %v5668_v58, %v5425_v11  ;;  %v5403_v11 = vmul.f32 %v5378_v55, %v13258_v24 }
 0x5bf   :  { %v5556_v4 = vpop.f32.mrb[212].mxu0  ;;  %v5824_v3 = vpop.f32.mrb[212].mxu1 }
 0x5c0   :  { %v5669_v62 = vmul.f32 %v5644_v52, %v5556_v4  ;;  %v9130_v27 = vpop.f32.mrb[213].mxu0  ;;  %v9207_v22 = vpop.f32.mrb[213].mxu1  ;;  %v13455_v26 = vadd.f32 %v5936_v1, %v5693_v31  ;;  %v5937_v19 = vmul.f32 %v5912_v44, %v5824_v3  ;;  %v5427_v1 = vadd.f32 %v5402_v42, %v13458_v12  ;;  %v5379_v31 = vld [vmem:[#allocation2 + $0x60] sm:$0xff]  ;;  %v13464_v4 = vld [vmem:[#allocation2 + $0x2b0] sm:$0xff]  ;;  %v5914_v44 = vld [vmem:[#allocation2 + $0x1e8] sm:$0xff] }
 0x5c1   :  { %14087 = vst [vmem:[#allocation20_spill] sm:$0xff] %v13464_v4  ;;  %v5647_v42 = vld [vmem:[#allocation2 + $0x128] sm:$0xff] }
 0x5c2   :  { %v5694_v38 = vadd.f32 %v5669_v62, %v5426_v36  ;;  %v5404_v36 = vmul.f32 %v5379_v31, %v13270_v39 }
 0x5c3   :  { %v5561_v63 = vpop.f32.mrb[214].mxu0  ;;  %v5829_v58 = vpop.f32.mrb[214].mxu1 }
 0x5c4   :  { %v5670_v30 = vmul.f32 %v5645_v37, %v5561_v63  ;;  %v9133_v45 = vpop.f32.mrb[215].mxu0  ;;  %v9210_v13 = vpop.f32.mrb[215].mxu1  ;;  %v13461_v52 = vadd.f32 %v5937_v19, %v5694_v38  ;;  %v5938_v27 = vmul.f32 %v5913_v48, %v5829_v58  ;;  %v5428_v19 = vadd.f32 %v5403_v11, %v13464_v4  ;;  %v5380_v38 = vld [vmem:[#allocation2 + $0x68] sm:$0xff]  ;;  %v13470_v63 = vld [vmem:[#allocation2 + $0x2b8] sm:$0xff]  ;;  %v5915_v48 = vld [vmem:[#allocation2 + $0x1f0] sm:$0xff] }
 0x5c5   :  { %14088 = vst [vmem:[#allocation18_spill] sm:$0xff] %v13470_v63  ;;  %v5648_v11 = vld [vmem:[#allocation2 + $0x130] sm:$0xff] }
 0x5c6   :  { %v5695_v22 = vadd.f32 %v5670_v30, %v5427_v1  ;;  %v5405_v1 = vmul.f32 %v5380_v38, %v13282_v47 }
 0x5c7   :  { %v5566_v3 = vpop.f32.mrb[216].mxu0  ;;  %v5834_v62 = vpop.f32.mrb[216].mxu1 }
 0x5c8   :  { %v5671_v0 = vmul.f32 %v5646_v21, %v5566_v3  ;;  %v9136_v24 = vpop.f32.mrb[217].mxu0  ;;  %v9213_v55 = vpop.f32.mrb[217].mxu1  ;;  %v13467_v37 = vadd.f32 %v5938_v27, %v5695_v22  ;;  %v5939_v45 = vmul.f32 %v5914_v44, %v5834_v62  ;;  %v5429_v27 = vadd.f32 %v5404_v36, %v13470_v63  ;;  %v5381_v22 = vld [vmem:[#allocation2 + $0x70] sm:$0xff]  ;;  %v13476_v3 = vld [vmem:[#allocation2 + $0x2c0] sm:$0xff]  ;;  %v5916_v44 = vld [vmem:[#allocation2 + $0x1f8] sm:$0xff] }
 0x5c9   :  { %14089 = vst [vmem:[#allocation21_spill] sm:$0xff] %v13476_v3  ;;  %v5649_v36 = vld [vmem:[#allocation2 + $0x138] sm:$0xff] }
 0x5ca   :  { %v5696_v13 = vadd.f32 %v5671_v0, %v5428_v19  ;;  %v5406_v19 = vmul.f32 %v5381_v22, %v13294_v23 }
 0x5cb   :  { %v5571_v58 = vpop.f32.mrb[218].mxu0  ;;  %v5839_v30 = vpop.f32.mrb[218].mxu1 }
 0x5cc   :  { %v5672_v12 = vmul.f32 %v5647_v42, %v5571_v58  ;;  %v9139_v39 = vpop.f32.mrb[219].mxu0  ;;  %v9216_v31 = vpop.f32.mrb[219].mxu1  ;;  %v13473_v21 = vadd.f32 %v5939_v45, %v5696_v13  ;;  %v5940_v24 = vmul.f32 %v5915_v48, %v5839_v30  ;;  %v5430_v45 = vadd.f32 %v5405_v1, %v13476_v3  ;;  %v5382_v13 = vld [vmem:[#allocation2 + $0x78] sm:$0xff]  ;;  %v13482_v58 = vld [vmem:[#allocation2 + $0x2c8] sm:$0xff]  ;;  %v5917_v48 = vld [vmem:[#allocation2 + $0x200] sm:$0xff] }
 0x5cd   :  { %14090 = vst [vmem:[#allocation81_spill] sm:$0xff] %v13482_v58  ;;  %v5650_v1 = vld [vmem:[#allocation2 + $0x140] sm:$0xff] }
 0x5ce   :  { %v5697_v55 = vadd.f32 %v5672_v12, %v5429_v27  ;;  %v5407_v27 = vmul.f32 %v5382_v13, %v13306_v46 }
 0x5cf   :  { %v5576_v62 = vpop.f32.mrb[220].mxu0  ;;  %v5844_v0 = vpop.f32.mrb[220].mxu1 }
 0x5d0   :  { %v5673_v4 = vmul.f32 %v5648_v11, %v5576_v62  ;;  %v9142_v47 = vpop.f32.mrb[221].mxu0  ;;  %v9219_v38 = vpop.f32.mrb[221].mxu1  ;;  %v13479_v42 = vadd.f32 %v5940_v24, %v5697_v55  ;;  %v5941_v39 = vmul.f32 %v5916_v44, %v5844_v0  ;;  %v5431_v24 = vadd.f32 %v5406_v19, %v13482_v58  ;;  %v5383_v55 = vld [vmem:[#allocation2 + $0x80] sm:$0xff]  ;;  %v13488_v62 = vld [vmem:[#allocation2 + $0x2d0] sm:$0xff]  ;;  %v5918_v44 = vld [vmem:[#allocation2 + $0x208] sm:$0xff] }
 0x5d1   :  { %14091 = vst [vmem:[#allocation22_spill] sm:$0xff] %v13488_v62  ;;  %v5651_v19 = vld [vmem:[#allocation2 + $0x148] sm:$0xff] }
 0x5d2   :  { %v5698_v31 = vadd.f32 %v5673_v4, %v5430_v45  ;;  %v5408_v45 = vmul.f32 %v5383_v55, %v13318_v9 }
 0x5d3   :  { %v5581_v30 = vpop.f32.mrb[222].mxu0  ;;  %v5849_v12 = vpop.f32.mrb[222].mxu1 }
 0x5d4   :  { %v5674_v63 = vmul.f32 %v5649_v36, %v5581_v30  ;;  %v9145_v23 = vpop.f32.mrb[223].mxu0  ;;  %v9222_v22 = vpop.f32.mrb[223].mxu1  ;;  %v13485_v11 = vadd.f32 %v5941_v39, %v5698_v31  ;;  %v5942_v47 = vmul.f32 %v5917_v48, %v5849_v12  ;;  %v5432_v39 = vadd.f32 %v5407_v27, %v13488_v62  ;;  %v5384_v31 = vld [vmem:[#allocation2 + $0x88] sm:$0xff]  ;;  %v13494_v30 = vld [vmem:[#allocation2 + $0x2d8] sm:$0xff]  ;;  %v5919_v48 = vld [vmem:[#allocation2 + $0x210] sm:$0xff] }
 0x5d5   :  { %14092 = vst [vmem:[#allocation82_spill] sm:$0xff] %v13494_v30  ;;  %v5652_v27 = vld [vmem:[#allocation2 + $0x150] sm:$0xff] }
 0x5d6   :  { %v5699_v38 = vadd.f32 %v5674_v63, %v5431_v24  ;;  %v5409_v24 = vmul.f32 %v5384_v31, %v13330_v51 }
 0x5d7   :  { %v5586_v0 = vpop.f32.mrb[224].mxu0  ;;  %v5854_v4 = vpop.f32.mrb[224].mxu1 }
 0x5d8   :  { %v5675_v3 = vmul.f32 %v5650_v1, %v5586_v0  ;;  %v9148_v46 = vpop.f32.mrb[225].mxu0  ;;  %v9225_v13 = vpop.f32.mrb[225].mxu1  ;;  %v13491_v36 = vadd.f32 %v5942_v47, %v5699_v38  ;;  %v5943_v23 = vmul.f32 %v5918_v44, %v5854_v4  ;;  %v5433_v47 = vadd.f32 %v5408_v45, %v13494_v30  ;;  %v5385_v38 = vld [vmem:[#allocation2 + $0x90] sm:$0xff]  ;;  %v13500_v0 = vld [vmem:[#allocation2 + $0x2e0] sm:$0xff]  ;;  %v5920_v44 = vld [vmem:[#allocation2 + $0x218] sm:$0xff] }
 0x5d9   :  { %v5653_v45 = vld [vmem:[#allocation2 + $0x158] sm:$0xff] }
 0x5da   :  { %v5700_v22 = vadd.f32 %v5675_v3, %v5432_v39  ;;  %v5410_v39 = vmul.f32 %v5385_v38, %v13342_v7 }
 0x5db   :  { %v5591_v12 = vpop.f32.mrb[226].mxu0  ;;  %v5859_v63 = vpop.f32.mrb[226].mxu1 }
 0x5dc   :  { %v5676_v58 = vmul.f32 %v5651_v19, %v5591_v12  ;;  %v9151_v9 = vpop.f32.mrb[227].mxu0  ;;  %v9228_v55 = vpop.f32.mrb[227].mxu1  ;;  %v13497_v1 = vadd.f32 %v5943_v23, %v5700_v22  ;;  %v5944_v46 = vmul.f32 %v5919_v48, %v5859_v63  ;;  %v5434_v23 = vadd.f32 %v5409_v24, %v13500_v0  ;;  %v5386_v22 = vld [vmem:[#allocation2 + $0x98] sm:$0xff]  ;;  %v13506_v12 = vld [vmem:[#allocation2 + $0x2e8] sm:$0xff]  ;;  %v5921_v48 = vld [vmem:[#allocation2 + $0x220] sm:$0xff] }
 0x5dd   :  { %14093 = vst [vmem:[#allocation23_spill] sm:$0xff] %v13506_v12  ;;  %v5654_v24 = vld [vmem:[#allocation2 + $0x160] sm:$0xff] }
 0x5de   :  { %v5701_v13 = vadd.f32 %v5676_v58, %v5433_v47  ;;  %v5411_v47 = vmul.f32 %v5386_v22, %v13354_v41 }
 0x5df   :  { %v5596_v4 = vpop.f32.mrb[228].mxu0  ;;  %v5864_v3 = vpop.f32.mrb[228].mxu1 }
 0x5e0   :  { %v5677_v62 = vmul.f32 %v5652_v27, %v5596_v4  ;;  %v9154_v51 = vpop.f32.mrb[229].mxu0  ;;  %v9231_v31 = vpop.f32.mrb[229].mxu1  ;;  %v13503_v19 = vadd.f32 %v5944_v46, %v5701_v13  ;;  %v5945_v9 = vmul.f32 %v5920_v44, %v5864_v3  ;;  %v5435_v46 = vadd.f32 %v5410_v39, %v13506_v12  ;;  %v5387_v13 = vld [vmem:[#allocation2 + $0xa0] sm:$0xff]  ;;  %v13512_v4 = vld [vmem:[#allocation2 + $0x2f0] sm:$0xff] }
 0x5e1   :  { %14095 = vst [vmem:[#allocation24_spill] sm:$0xff] %v13512_v4  ;;  %v5922_v31 = vld [vmem:[#allocation2 + $0x228] sm:$0xff] }
 0x5e2   :  { %v5702_v55 = vadd.f32 %v5677_v62, %v5434_v23 }
 0x5e3   :  { %v5601_v63 = vpop.f32.mrb[230].mxu0  ;;  %v5869_v58 = vpop.f32.mrb[230].mxu1 }
 0x5e4   :  { %v5678_v30 = vmul.f32 %v5653_v45, %v5601_v63  ;;  %v9157_v7 = vpop.f32.mrb[231].mxu0  ;;  %v9234_v38 = vpop.f32.mrb[231].mxu1  ;;  %v13509_v27 = vadd.f32 %v5945_v9, %v5702_v55  ;;  %v5946_v3 = vmul.f32 %v5921_v48, %v5869_v58 }
 0x5e6   :  { %14094 = vst [vmem:[#allocation83_spill] sm:$0xff] %v13509_v27  ;;  %v5703_v62 = vadd.f32 %v5678_v30, %v5435_v46 }
 0x5e7   :  { %v5606_v44 = vpop.f32.mrb[232].mxu0  ;;  %v5874_v51 = vpop.f32.mrb[232].mxu1 }
 0x5e8   :  { %9780 = shalt.err (!%p9777_p6)
}
 0x5e9   :  { %s9781_s14 = scalar_lea.hbm %s13661_s7, 3200 }
 0x5ea   :  { %p9782_p7 = scmp.ne.s32.totalorder %s13661_s7, %s9781_s14  ;;  %p9785_p8 = scmp.lt.u32.totalorder %s9781_s14, %s13661_s7 }
 0x5ec   :  { %p9787_p9 = pnand %p9785_p8, %p9782_p7 }
 0x5ee   :  { %9790 = shalt.err (!%p9787_p9)
}
 0x5ef   :  { %6513 = dma.vmem_to_hbm [thread:$0]  %s6508_s9, 3200, %s13661_s7, [#allocation9], %s9822_s11, %s9822_s11, %s9823_s12   ;;  %v5412_v41 = vmul.f32 %v5387_v13, %v13366_v6  ;;  %v5679_v30 = vmul.f32 %v5654_v24, %v5606_v44  ;;  %v9160_v39 = vpop.f32.mrb[233].mxu0  ;;  %v9237_v23 = vpop.f32.mrb[233].mxu1  ;;  %v13530_v22 = vadd.f32 %v5946_v3, %v5703_v62  ;;  %v5436_v45 = vadd.f32 %v5411_v47, %v13512_v4  ;;  %v5388_v9 = vld [vmem:[#allocation2 + $0xa8] sm:$0xff]  ;;  %v13533_v63 = vld [vmem:[#allocation2 + $0x2f8] sm:$0xff] }
 0x5f0   :  { %v5655_v55 = vld [vmem:[#allocation2 + $0x168] sm:$0xff]  ;;  %14096 = vst [vmem:[#allocation84_spill] sm:$0xff] %v13533_v63  ;;  %v5947_v58 = vmul.f32 %v5922_v31, %v5874_v51  ;;  %v5611_v7 = vpop.f32.mrb[234].mxu0  ;;  %v5879_v38 = vpop.f32.mrb[234].mxu1  ;;  %v5923_v46 = vld [vmem:[#allocation2 + $0x230] sm:$0xff]  ;;  %v5413_v12 = vmul.f32 %v5388_v9, %v13378_v35  ;;  %v13539_v44 = vld [vmem:[#allocation2 + $0x300] sm:$0xff] }
 0x5f1   :  { %v5704_v48 = vadd.f32 %v5679_v30, %v5436_v45  ;;  %v5680_v27 = vmul.f32 %v5655_v55, %v5611_v7  ;;  %v9163_v6 = vpop.f32.mrb[235].mxu0  ;;  %v9240_v13 = vpop.f32.mrb[235].mxu1  ;;  %v5437_v3 = vadd.f32 %v5412_v41, %v13533_v63  ;;  %v5389_v62 = vld [vmem:[#allocation2 + $0xb0] sm:$0xff]  ;;  %14097 = vst [vmem:[#allocation25_spill] sm:$0xff] %v13539_v44  ;;  %v5948_v39 = vmul.f32 %v5923_v46, %v5879_v38  ;;  %v5924_v30 = vld [vmem:[#allocation2 + $0x238] sm:$0xff]  ;;  %v13545_v7 = vld [vmem:[#allocation2 + $0x308] sm:$0xff] }
 0x5f2   :  { %v5656_v47 = vld [vmem:[#allocation2 + $0x170] sm:$0xff]  ;;  %v5616_v51 = vpop.f32.mrb[236].mxu0  ;;  %v5884_v31 = vpop.f32.mrb[236].mxu1  ;;  %v5414_v45 = vmul.f32 %v5389_v62, %v13386_v32  ;;  %v5657_v41 = vld [vmem:[#allocation2 + $0x178] sm:$0xff]  ;;  %14098 = vst [vmem:[#allocation85_spill] sm:$0xff] %v13545_v7  ;;  %v5925_v46 = vld [vmem:[#allocation2 + $0x240] sm:$0xff] }
 0x5f3   :  { %v13536_v24 = vadd.f32 %v5947_v58, %v5704_v48  ;;  %v5705_v23 = vadd.f32 %v5680_v27, %v5437_v3  ;;  %v5681_v4 = vmul.f32 %v5656_v47, %v5616_v51  ;;  %v9166_v35 = vpop.f32.mrb[237].mxu0  ;;  %v9243_v9 = vpop.f32.mrb[237].mxu1  ;;  %v5438_v58 = vadd.f32 %v5413_v12, %v13539_v44  ;;  %v5390_v48 = vld [vmem:[#allocation2 + $0xb8] sm:$0xff]  ;;  %v5658_v12 = vld [vmem:[#allocation2 + $0x180] sm:$0xff]  ;;  %v13551_v51 = vld [vmem:[#allocation2 + $0x310] sm:$0xff]  ;;  %s9829_s7 = smov [#allocation7]  }
 0x5f4   :  { %v5949_v6 = vmul.f32 %v5924_v30, %v5884_v31  ;;  %v5621_v38 = vpop.f32.mrb[238].mxu0  ;;  %v5889_v27 = vpop.f32.mrb[238].mxu1  ;;  %v5415_v3 = vmul.f32 %v5390_v48, %v13390_v16  ;;  %v5926_v30 = vld [vmem:[#allocation2 + $0x248] sm:$0xff]  ;;  %s6495_s21 = sshll.u32 %s9829_s7, 4  ;;  %s6496_s21 = int_to_ptr.vmem [resolvable:$true] %s6495_s21 }
 0x5f5   :  { %v13542_v55 = vadd.f32 %v5948_v39, %v5705_v23  ;;  %v5706_v13 = vadd.f32 %v5681_v4, %v5438_v58  ;;  %v5682_v63 = vmul.f32 %v5657_v41, %v5621_v38  ;;  %v9169_v32 = vpop.f32.mrb[239].mxu0  ;;  %v9246_v62 = vpop.f32.mrb[239].mxu1  ;;  %v5439_v39 = vadd.f32 %v5414_v45, %v13545_v7  ;;  %v5391_v23 = vld [vmem:[#allocation2 + $0xc0] sm:$0xff]  ;;  %v13557_v45 = vld [vmem:[#allocation2 + $0x318] sm:$0xff]  ;;  %s9791_s22 = scalar_lea.vmem %s6496_s21, 12800  ;;  %p9796_p11 = scmp.lt.s32.totalorder %s6496_s21, %s6496_s21 }
 0x5f6   :  { %v5950_v35 = vmul.f32 %v5925_v46, %v5889_v27  ;;  %v5416_v58 = vmul.f32 %v5391_v23, %v13394_v5  ;;  %p9792_p10 = scmp.ne.s32.totalorder %s6496_s21, %s9791_s22  ;;  %p9797_p12 = scmp.lt.s32.totalorder %s9791_s22, %s9791_s22 }
 0x5f7   :  { %v13548_v47 = vadd.f32 %v5949_v6, %v5706_v13  ;;  %v5707_v9 = vadd.f32 %v5682_v63, %v5439_v39  ;;  %v5626_v31 = vpop.f32.mrb[240].mxu0  ;;  %v5894_v4 = vpop.f32.mrb[240].mxu1  ;;  %v5440_v6 = vadd.f32 %v5415_v3, %v13551_v51  ;;  %v5659_v13 = vld [vmem:[#allocation2 + $0x188] sm:$0xff]  ;;  %v5927_v63 = vld [vmem:[#allocation2 + $0x250] sm:$0xff] }
 0x5f8   :  { %v5683_v44 = vmul.f32 %v5658_v12, %v5626_v31  ;;  %v9172_v16 = vpop.f32.mrb[241].mxu0  ;;  %v9249_v48 = vpop.f32.mrb[241].mxu1  ;;  %v5951_v38 = vmul.f32 %v5926_v30, %v5894_v4  ;;  %v5441_v5 = vadd.f32 %v5416_v58, %v13557_v45  ;;  %p9798_p13 = por %p9797_p12, %p9796_p11 }
 0x5f9   :  { %14099 = vst [vmem:[#allocation26_spill] sm:$0xff] %v13548_v47  ;;  %v13554_v41 = vadd.f32 %v5950_v35, %v5707_v9 }
 0x5fa   :  { %v5708_v32 = vadd.f32 %v5683_v44, %v5440_v6  ;;  %p9799_p0 = pnand %p9798_p13, %p9792_p10 }
 0x5fb   :  { %v5631_v62 = vpop.f32.mrb[242].mxu0  ;;  %v5899_v27 = vpop.f32.mrb[242].mxu1 }
 0x5fc   :  { %v5684_v46 = vmul.f32 %v5659_v13, %v5631_v62  ;;  %v9175_v39 = vpop.f32.mrb[243].mxu0  ;;  %v9252_v7 = vpop.f32.mrb[243].mxu1  ;;  %v13559_v47 = vadd.f32 %v5951_v38, %v5708_v32  ;;  %v5952_v23 = vmul.f32 %v5927_v63, %v5899_v27 }
 0x5fe   :  { %v5709_v12 = vadd.f32 %v5684_v46, %v5441_v5 }
 0x5ff   :  { %v6047_v35 = vpop.f32.mrb[244].mxu0  ;;  %v6290_v9 = vpop.f32.mrb[244].mxu1 }
 0x600   :  { %v6171_v3 = vmul.f32 %v6047_v35, %v13398_v56  ;;  %v6291_v31 = vadd.f32 1.0, %v6290_v9  ;;  %v9257_v16 = vpop.f32.mrb[245].mxu0  ;;  %v9334_v4 = vpop.f32.mrb[245].mxu1  ;;  %v13563_v44 = vadd.f32 %v5952_v23, %v5709_v12 }
 0x602   :  { %v6196_v30 = vadd.f32 %v6171_v3, %v13407_v50  ;;  %v6414_v48 = vmul.f32 %v6291_v31, %v14037_v60 }
 0x603   :  { %v6052_v7 = vpop.f32.mrb[246].mxu0  ;;  %v6295_v6 = vpop.f32.mrb[246].mxu1 }
 0x604   :  { %v6439_v13 = vadd.f32 %v6414_v48, %v6196_v30  ;;  %v6172_v58 = vmul.f32 %v6052_v7, %v13404_v2  ;;  %v6296_v38 = vadd.f32 1.0, %v6295_v6  ;;  %v9260_v32 = vpop.f32.mrb[247].mxu0  ;;  %v9337_v62 = vpop.f32.mrb[247].mxu1 }
 0x606   :  { %6465 = vst [vmem:[#allocation7 + $0x258] sm:$0xff] %v6439_v13  ;;  %v6197_v56 = vadd.f32 %v6172_v58, %v13413_v43  ;;  %v6415_v27 = vmul.f32 %v6296_v38, %v14039_v15 }
 0x607   :  { %v6057_v63 = vpop.f32.mrb[248].mxu0  ;;  %v6300_v46 = vpop.f32.mrb[248].mxu1 }
 0x608   :  { %v6440_v39 = vadd.f32 %v6415_v27, %v6197_v56  ;;  %v6173_v50 = vmul.f32 %v6057_v63, %v13410_v34  ;;  %v6301_v5 = vadd.f32 1.0, %v6300_v46  ;;  %v9263_v60 = vpop.f32.mrb[249].mxu0  ;;  %v9340_v23 = vpop.f32.mrb[249].mxu1 }
 0x60a   :  { %6466 = vst [vmem:[#allocation7 + $0x260] sm:$0xff] %v6440_v39  ;;  %v6198_v12 = vadd.f32 %v6173_v50, %v13419_v17  ;;  %v6416_v2 = vmul.f32 %v6301_v5, %v14041_v53 }
 0x60b   :  { %v6062_v35 = vpop.f32.mrb[250].mxu0  ;;  %v6305_v9 = vpop.f32.mrb[250].mxu1 }
 0x60c   :  { %v6441_v3 = vadd.f32 %v6416_v2, %v6198_v12  ;;  %v6174_v43 = vmul.f32 %v6062_v35, %v13416_v33  ;;  %v6306_v31 = vadd.f32 1.0, %v6305_v9  ;;  %v9266_v15 = vpop.f32.mrb[251].mxu0  ;;  %v9343_v16 = vpop.f32.mrb[251].mxu1 }
 0x60e   :  { %6467 = vst [vmem:[#allocation7 + $0x268] sm:$0xff] %v6441_v3  ;;  %v6199_v4 = vadd.f32 %v6174_v43, %v13425_v40  ;;  %v6417_v34 = vmul.f32 %v6306_v31, %v14043_v49 }
 0x60f   :  { %v6067_v30 = vpop.f32.mrb[252].mxu0  ;;  %v6310_v48 = vpop.f32.mrb[252].mxu1 }
 0x610   :  { %v6442_v7 = vadd.f32 %v6417_v34, %v6199_v4  ;;  %v6175_v17 = vmul.f32 %v6067_v30, %v13422_v8  ;;  %v6311_v6 = vadd.f32 1.0, %v6310_v48  ;;  %v9269_v53 = vpop.f32.mrb[253].mxu0  ;;  %v9346_v13 = vpop.f32.mrb[253].mxu1  ;;  %v14100_v4 = vld [vmem:[#allocation79_spill] sm:$0xff] }
 0x611   :  { %v14102_v13 = vld [vmem:[#allocation19_spill] sm:$0xff] }
 0x612   :  { %6468 = vst [vmem:[#allocation7 + $0x270] sm:$0xff] %v6442_v7  ;;  %v6200_v58 = vadd.f32 %v6175_v17, %v13431_v20  ;;  %v6418_v33 = vmul.f32 %v6311_v6, %v14045_v25 }
 0x613   :  { %v6072_v38 = vpop.f32.mrb[254].mxu0  ;;  %v6315_v32 = vpop.f32.mrb[254].mxu1 }
 0x614   :  { %v6443_v62 = vadd.f32 %v6418_v33, %v6200_v58  ;;  %v6176_v40 = vmul.f32 %v6072_v38, %v13428_v61  ;;  %v6316_v56 = vadd.f32 1.0, %v6315_v32  ;;  %v9272_v49 = vpop.f32.mrb[255].mxu0  ;;  %v9349_v27 = vpop.f32.mrb[255].mxu1  ;;  %v14103_v32 = vld [vmem:[#allocation64_spill] sm:$0xff] }
 0x615   :  { %v14104_v27 = vld [vmem:[#allocation16_spill] sm:$0xff] }
 0x616   :  { %6469 = vst [vmem:[#allocation7 + $0x278] sm:$0xff] %v6443_v62  ;;  %v6201_v63 = vadd.f32 %v6176_v40, %v13437_v29  ;;  %v6419_v8 = vmul.f32 %v6316_v56, %v14047_v28 }
 0x617   :  { %v6077_v46 = vpop.f32.mrb[0].mxu0  ;;  %v6320_v39 = vpop.f32.mrb[0].mxu1 }
 0x618   :  { %v6444_v50 = vadd.f32 %v6419_v8, %v6201_v63  ;;  %v6177_v20 = vmul.f32 %v6077_v46, %v13434_v14  ;;  %v6321_v5 = vadd.f32 1.0, %v6320_v39  ;;  %v9275_v25 = vpop.f32.mrb[1].mxu0  ;;  %v9352_v60 = vpop.f32.mrb[1].mxu1 }
 0x61a   :  { %6470 = vst [vmem:[#allocation7 + $0x280] sm:$0xff] %v6444_v50  ;;  %v6202_v23 = vadd.f32 %v6177_v20, %v13443_v18  ;;  %v6420_v61 = vmul.f32 %v6321_v5, %v14049_v10  ;;  %v14105_v50 = vld [vmem:[#allocation65_spill] sm:$0xff] }
 0x61b   :  { %v6082_v12 = vpop.f32.mrb[2].mxu0  ;;  %v6325_v2 = vpop.f32.mrb[2].mxu1 }
 0x61c   :  { %v6445_v35 = vadd.f32 %v6420_v61, %v6202_v23  ;;  %v6178_v29 = vmul.f32 %v6082_v12, %v13440_v54  ;;  %v6326_v9 = vadd.f32 1.0, %v6325_v2  ;;  %v9278_v28 = vpop.f32.mrb[3].mxu0  ;;  %v9355_v3 = vpop.f32.mrb[3].mxu1  ;;  %v14101_v54 = vld [vmem:[#allocation63_spill] sm:$0xff]  ;;  %v14106_v23 = vld [vmem:[#allocation20_spill] sm:$0xff] }
 0x61e   :  { %6471 = vst [vmem:[#allocation7 + $0x288] sm:$0xff] %v6445_v35  ;;  %v6203_v43 = vadd.f32 %v6178_v29, %v13449_v59  ;;  %v6421_v14 = vmul.f32 %v6326_v9, %v14051_v57  ;;  %v14107_v29 = vld [vmem:[#allocation66_spill] sm:$0xff] }
 0x61f   :  { %v6087_v31 = vpop.f32.mrb[4].mxu0  ;;  %v6330_v15 = vpop.f32.mrb[4].mxu1 }
 0x620   :  { %v6446_v16 = vadd.f32 %v6421_v14, %v6203_v43  ;;  %v6179_v18 = vmul.f32 %v6087_v31, %v14100_v4  ;;  %v6331_v34 = vadd.f32 1.0, %v6330_v15  ;;  %v9281_v10 = vpop.f32.mrb[5].mxu0  ;;  %v9358_v30 = vpop.f32.mrb[5].mxu1  ;;  %v14108_v14 = vld [vmem:[#allocation18_spill] sm:$0xff] }
 0x622   :  { %6472 = vst [vmem:[#allocation7 + $0x290] sm:$0xff] %v6446_v16  ;;  %v6204_v48 = vadd.f32 %v6179_v18, %v13455_v26  ;;  %v6422_v7 = vmul.f32 %v6331_v34, %v14101_v54  ;;  %v14109_v18 = vld [vmem:[#allocation67_spill] sm:$0xff]  ;;  %v14110_v54 = vld [vmem:[#allocation21_spill] sm:$0xff] }
 0x623   :  { %v6092_v17 = vpop.f32.mrb[6].mxu0  ;;  %v6335_v6 = vpop.f32.mrb[6].mxu1 }
 0x624   :  { %v6447_v53 = vadd.f32 %v6422_v7, %v6204_v48  ;;  %v6180_v59 = vmul.f32 %v6092_v17, %v14102_v13  ;;  %v6336_v58 = vadd.f32 1.0, %v6335_v6  ;;  %v9284_v57 = vpop.f32.mrb[7].mxu0  ;;  %v9361_v33 = vpop.f32.mrb[7].mxu1  ;;  %v14111_v13 = vld [vmem:[#allocation68_spill] sm:$0xff] }
 0x626   :  { %6473 = vst [vmem:[#allocation7 + $0x298] sm:$0xff] %v6447_v53  ;;  %v6205_v38 = vadd.f32 %v6180_v59, %v13461_v52  ;;  %v6423_v62 = vmul.f32 %v6336_v58, %v14103_v32 }
 0x627   :  { %v6097_v40 = vpop.f32.mrb[8].mxu0  ;;  %v6340_v56 = vpop.f32.mrb[8].mxu1 }
 0x628   :  { %v6448_v49 = vadd.f32 %v6423_v62, %v6205_v38  ;;  %v6181_v26 = vmul.f32 %v6097_v40, %v14104_v27  ;;  %v6341_v63 = vadd.f32 1.0, %v6340_v56  ;;  %v9287_v8 = vpop.f32.mrb[9].mxu0  ;;  %v9364_v46 = vpop.f32.mrb[9].mxu1  ;;  %v14112_v38 = vld [vmem:[#allocation81_spill] sm:$0xff] }
 0x629   :  { %v14114_v46 = vld [vmem:[#allocation22_spill] sm:$0xff] }
 0x62a   :  { %6474 = vst [vmem:[#allocation7 + $0x2a0] sm:$0xff] %v6448_v49  ;;  %v6206_v39 = vadd.f32 %v6181_v26, %v13467_v37  ;;  %v6424_v20 = vmul.f32 %v6341_v63, %v14105_v50  ;;  %v14113_v49 = vld [vmem:[#allocation69_spill] sm:$0xff] }
 0x62b   :  { %v6102_v5 = vpop.f32.mrb[10].mxu0  ;;  %v6345_v25 = vpop.f32.mrb[10].mxu1 }
 0x62c   :  { %v6449_v60 = vadd.f32 %v6424_v20, %v6206_v39  ;;  %v6182_v52 = vmul.f32 %v6102_v5, %v14106_v23  ;;  %v6346_v61 = vadd.f32 1.0, %v6345_v25  ;;  %v9290_v12 = vpop.f32.mrb[11].mxu0  ;;  %v9367_v2 = vpop.f32.mrb[11].mxu1  ;;  %v14115_v25 = vld [vmem:[#allocation70_spill] sm:$0xff] }
 0x62d   :  { %v14116_v12 = vld [vmem:[#allocation82_spill] sm:$0xff] }
 0x62e   :  { %6475 = vst [vmem:[#allocation7 + $0x2a8] sm:$0xff] %v6449_v60  ;;  %v6207_v35 = vadd.f32 %v6182_v52, %v13473_v21  ;;  %v6425_v9 = vmul.f32 %v6346_v61, %v14107_v29 }
 0x62f   :  { %v6107_v28 = vpop.f32.mrb[12].mxu0  ;;  %v6350_v3 = vpop.f32.mrb[12].mxu1 }
 0x630   :  { %v6450_v43 = vadd.f32 %v6425_v9, %v6207_v35  ;;  %v6183_v37 = vmul.f32 %v6107_v28, %v14108_v14  ;;  %v6351_v31 = vadd.f32 1.0, %v6350_v3  ;;  %v9293_v15 = vpop.f32.mrb[13].mxu0  ;;  %v9370_v16 = vpop.f32.mrb[13].mxu1  ;;  %v14117_v28 = vld [vmem:[#allocation71_spill] sm:$0xff] }
 0x632   :  { %6476 = vst [vmem:[#allocation7 + $0x2b0] sm:$0xff] %v6450_v43  ;;  %v6208_v4 = vadd.f32 %v6183_v37, %v13479_v42  ;;  %v6426_v34 = vmul.f32 %v6351_v31, %v14109_v18 }
 0x633   :  { %v6112_v10 = vpop.f32.mrb[14].mxu0  ;;  %v6355_v30 = vpop.f32.mrb[14].mxu1 }
 0x634   :  { %v6451_v48 = vadd.f32 %v6426_v34, %v6208_v4  ;;  %v6184_v21 = vmul.f32 %v6112_v10, %v14110_v54  ;;  %v6356_v7 = vadd.f32 1.0, %v6355_v30  ;;  %v9296_v17 = vpop.f32.mrb[15].mxu0  ;;  %v9373_v6 = vpop.f32.mrb[15].mxu1  ;;  %v14118_v4 = vld [vmem:[#allocation83_spill] sm:$0xff]  ;;  %v14119_v34 = vld [vmem:[#allocation72_spill] sm:$0xff] }
 0x636   :  { %6477 = vst [vmem:[#allocation7 + $0x2b8] sm:$0xff] %v6451_v48  ;;  %v6209_v53 = vadd.f32 %v6184_v21, %v13485_v11  ;;  %v6427_v59 = vmul.f32 %v6356_v7, %v14111_v13  ;;  %v14120_v21 = vld [vmem:[#allocation23_spill] sm:$0xff] }
 0x637   :  { %v6117_v58 = vpop.f32.mrb[16].mxu0  ;;  %v6360_v57 = vpop.f32.mrb[16].mxu1 }
 0x638   :  { %v6452_v33 = vadd.f32 %v6427_v59, %v6209_v53  ;;  %v6185_v42 = vmul.f32 %v6117_v58, %v14112_v38  ;;  %v6361_v32 = vadd.f32 1.0, %v6360_v57  ;;  %v9299_v62 = vpop.f32.mrb[17].mxu0  ;;  %v9376_v40 = vpop.f32.mrb[17].mxu1 }
 0x63a   :  { %6478 = vst [vmem:[#allocation7 + $0x2c0] sm:$0xff] %v6452_v33  ;;  %v6210_v56 = vadd.f32 %v6185_v42, %v13491_v36  ;;  %v6428_v27 = vmul.f32 %v6361_v32, %v14113_v49  ;;  %v14122_v33 = vld [vmem:[#allocation24_spill] sm:$0xff] }
 0x63b   :  { %v6122_v26 = vpop.f32.mrb[18].mxu0  ;;  %v6365_v63 = vpop.f32.mrb[18].mxu1 }
 0x63c   :  { %v6453_v8 = vadd.f32 %v6428_v27, %v6210_v56  ;;  %v6186_v11 = vmul.f32 %v6122_v26, %v14114_v46  ;;  %v6366_v39 = vadd.f32 1.0, %v6365_v63  ;;  %v9302_v50 = vpop.f32.mrb[19].mxu0  ;;  %v9379_v20 = vpop.f32.mrb[19].mxu1  ;;  %v14123_v56 = vld [vmem:[#allocation74_spill] sm:$0xff] }
 0x63d   :  { %v14125_v20 = vld [vmem:[#allocation75_spill] sm:$0xff] }
 0x63e   :  { %6479 = vst [vmem:[#allocation7 + $0x2c8] sm:$0xff] %v6453_v8  ;;  %v6211_v5 = vadd.f32 %v6186_v11, %v13497_v1  ;;  %v6429_v60 = vmul.f32 %v6366_v39, %v14115_v25  ;;  %v14124_v8 = vld [vmem:[#allocation84_spill] sm:$0xff] }
 0x63f   :  { %v6127_v23 = vpop.f32.mrb[20].mxu0  ;;  %v6370_v52 = vpop.f32.mrb[20].mxu1 }
 0x640   :  { %v6454_v61 = vadd.f32 %v6429_v60, %v6211_v5  ;;  %v6187_v36 = vmul.f32 %v6127_v23, %v14116_v12  ;;  %v6371_v2 = vadd.f32 1.0, %v6370_v52  ;;  %v9305_v35 = vpop.f32.mrb[21].mxu0  ;;  %v9382_v29 = vpop.f32.mrb[21].mxu1  ;;  %v14126_v52 = vld [vmem:[#allocation25_spill] sm:$0xff] }
 0x641   :  { %v14128_v29 = vld [vmem:[#allocation76_spill] sm:$0xff] }
 0x642   :  { %6480 = vst [vmem:[#allocation7 + $0x2d0] sm:$0xff] %v6454_v61  ;;  %v6212_v9 = vadd.f32 %v6187_v36, %v13503_v19  ;;  %v6430_v3 = vmul.f32 %v6371_v2, %v14117_v28  ;;  %v14127_v2 = vld [vmem:[#allocation26_spill] sm:$0xff] }
 0x643   :  { %v6132_v43 = vpop.f32.mrb[22].mxu0  ;;  %v6375_v14 = vpop.f32.mrb[22].mxu1 }
 0x644   :  { %v6455_v37 = vadd.f32 %v6430_v3, %v6212_v9  ;;  %v6188_v1 = vmul.f32 %v6132_v43, %v13500_v0  ;;  %v6376_v31 = vadd.f32 1.0, %v6375_v14  ;;  %v9308_v15 = vpop.f32.mrb[23].mxu0  ;;  %v9385_v16 = vpop.f32.mrb[23].mxu1  ;;  %v14121_v0 = vld [vmem:[#allocation73_spill] sm:$0xff] }
 0x645   :  { %v14129_v14 = vld [vmem:[#allocation85_spill] sm:$0xff] }
 0x646   :  { %6481 = vst [vmem:[#allocation7 + $0x2d8] sm:$0xff] %v6455_v37  ;;  %v6213_v18 = vadd.f32 %v6188_v1, %v14118_v4  ;;  %v6431_v10 = vmul.f32 %v6376_v31, %v14119_v34  ;;  %v14130_v16 = vld [vmem:[#allocation77_spill] sm:$0xff] }
 0x647   :  { %v6137_v30 = vpop.f32.mrb[24].mxu0  ;;  %v6380_v48 = vpop.f32.mrb[24].mxu1 }
 0x648   :  { %v6456_v54 = vadd.f32 %v6431_v10, %v6213_v18  ;;  %v6189_v19 = vmul.f32 %v6137_v30, %v14120_v21  ;;  %v6381_v7 = vadd.f32 1.0, %v6380_v48  ;;  %v9311_v17 = vpop.f32.mrb[25].mxu0  ;;  %v9388_v6 = vpop.f32.mrb[25].mxu1 }
 0x64a   :  { %6482 = vst [vmem:[#allocation7 + $0x2e0] sm:$0xff] %v6456_v54  ;;  %v6214_v53 = vadd.f32 %v6189_v19, %v13530_v22  ;;  %v6432_v13 = vmul.f32 %v6381_v7, %v14121_v0  ;;  %v14131_v7 = vld [vmem:[#allocation78_spill] sm:$0xff] }
 0x64b   :  { %v6142_v59 = vpop.f32.mrb[26].mxu0  ;;  %v6385_v58 = vpop.f32.mrb[26].mxu1 }
 0x64c   :  { %v6457_v57 = vadd.f32 %v6432_v13, %v6214_v53  ;;  %v6190_v38 = vmul.f32 %v6142_v59, %v14122_v33  ;;  %v6386_v42 = vadd.f32 1.0, %v6385_v58  ;;  %v9314_v32 = vpop.f32.mrb[27].mxu0  ;;  %v9391_v62 = vpop.f32.mrb[27].mxu1 }
 0x64e   :  { %6483 = vst [vmem:[#allocation7 + $0x2e8] sm:$0xff] %v6457_v57  ;;  %v6215_v40 = vadd.f32 %v6190_v38, %v13536_v24  ;;  %v6433_v49 = vmul.f32 %v6386_v42, %v14123_v56  ;;  %v14132_v57 = vld [vmem:[#allocation80_spill] sm:$0xff] }
 0x64f   :  { %v6147_v27 = vpop.f32.mrb[28].mxu0  ;;  %v6390_v26 = vpop.f32.mrb[28].mxu1 }
 0x650   :  { %v6458_v63 = vadd.f32 %v6433_v49, %v6215_v40  ;;  %v6191_v22 = vmul.f32 %v6147_v27, %v14124_v8  ;;  %v6391_v46 = vadd.f32 1.0, %v6390_v26  ;;  %v9317_v11 = vpop.f32.mrb[29].mxu0  ;;  %v9394_v39 = vpop.f32.mrb[29].mxu1 }
 0x652   :  { %6484 = vst [vmem:[#allocation7 + $0x2f0] sm:$0xff] %v6458_v63  ;;  %v6216_v50 = vadd.f32 %v6191_v22, %v13542_v55  ;;  %v6434_v5 = vmul.f32 %v6391_v46, %v14125_v20 }
 0x653   :  { %v6152_v25 = vpop.f32.mrb[30].mxu0  ;;  %v6395_v60 = vpop.f32.mrb[30].mxu1 }
 0x654   :  { %v6459_v23 = vadd.f32 %v6434_v5, %v6216_v50  ;;  %v6192_v24 = vmul.f32 %v6152_v25, %v14126_v52  ;;  %v6396_v61 = vadd.f32 1.0, %v6395_v60  ;;  %v9320_v12 = vpop.f32.mrb[31].mxu0  ;;  %v9397_v36 = vpop.f32.mrb[31].mxu1 }
 0x656   :  { %6485 = vst [vmem:[#allocation7 + $0x2f8] sm:$0xff] %v6459_v23  ;;  %v6217_v35 = vadd.f32 %v6192_v24, %v14127_v2  ;;  %v6435_v9 = vmul.f32 %v6396_v61, %v14128_v29 }
 0x657   :  { %v6157_v28 = vpop.f32.mrb[32].mxu0  ;;  %v6400_v3 = vpop.f32.mrb[32].mxu1 }
 0x658   :  { %v6460_v43 = vadd.f32 %v6435_v9, %v6217_v35  ;;  %v6193_v55 = vmul.f32 %v6157_v28, %v14129_v14  ;;  %v6401_v37 = vadd.f32 1.0, %v6400_v3  ;;  %v9323_v1 = vpop.f32.mrb[33].mxu0  ;;  %v9400_v31 = vpop.f32.mrb[33].mxu1 }
 0x65a   :  { %6486 = vst [vmem:[#allocation7 + $0x300] sm:$0xff] %v6460_v43  ;;  %v6218_v15 = vadd.f32 %v6193_v55, %v13554_v41  ;;  %v6436_v4 = vmul.f32 %v6401_v37, %v14130_v16 }
 0x65b   :  { %v6162_v18 = vpop.f32.mrb[34].mxu0  ;;  %v6405_v34 = vpop.f32.mrb[34].mxu1 }
 0x65c   :  { %v6461_v10 = vadd.f32 %v6436_v4, %v6218_v15  ;;  %v6194_v30 = vmul.f32 %v6162_v18, %v13551_v51  ;;  %v6406_v48 = vadd.f32 1.0, %v6405_v34  ;;  %v9326_v54 = vpop.f32.mrb[35].mxu0  ;;  %v9403_v21 = vpop.f32.mrb[35].mxu1 }
 0x65e   :  { %6487 = vst [vmem:[#allocation7 + $0x308] sm:$0xff] %v6461_v10  ;;  %v6219_v19 = vadd.f32 %v6194_v30, %v13559_v47  ;;  %v6437_v17 = vmul.f32 %v6406_v48, %v14131_v7 }
 0x65f   :  { %v6167_v6 = vpop.f32.mrb[36].mxu0  ;;  %v6410_v53 = vpop.f32.mrb[36].mxu1 }
 0x660   :  { %v6462_v0 = vadd.f32 %v6437_v17, %v6219_v19  ;;  %v6195_v41 = vmul.f32 %v6167_v6, %v13557_v45  ;;  %v6411_v13 = vadd.f32 1.0, %v6410_v53  ;;  %v9329_v59 = vpop.f32.mrb[37].mxu0  ;;  %v9406_v58 = vpop.f32.mrb[37].mxu1 }
 0x662   :  { %6488 = vst [vmem:[#allocation7 + $0x310] sm:$0xff] %v6462_v0  ;;  %v6220_v51 = vadd.f32 %v6195_v41, %v13563_v44  ;;  %v6438_v33 = vmul.f32 %v6411_v13, %v14132_v57 }
 0x664   :  { %v6463_v38 = vadd.f32 %v6438_v33, %v6220_v51 }
 0x666   :  { %6489 = vst [vmem:[#allocation7 + $0x318] sm:$0xff] %v6463_v38 }
 0x667   :  { %9802 = shalt.err (!%p9799_p0)
}
 0x668   :  { %s9803_s0 = scalar_lea.hbm %s13660_s6, 12800 }
 0x669   :  { %p9804_p1 = scmp.ne.s32.totalorder %s13660_s6, %s9803_s0  ;;  %p9807_p2 = scmp.lt.u32.totalorder %s9803_s0, %s13660_s6 }
 0x66b   :  { %p9809_p3 = pnand %p9807_p2, %p9804_p1 }
 0x66d   :  { %9812 = shalt.err (!%p9809_p3)
}
 0x66e   :  { %6501 = dma.vmem_to_hbm [thread:$0]  %s6496_s21, 12800, %s13660_s6, [#allocation4], %s9822_s11, %s9822_s11, %s9823_s12  }
 0x66f   :  { %9817 = dma.done.wait [#allocation4], 12800  }
 0x670   :  { %9818 = vsyncadd [#allocation4], 4294954496 }
 0x671   :  { %9819 = dma.done.wait [#allocation9], 3200  }
 0x672   :  { %9820 = vsyncadd [#allocation9], 4294964096 }
 0x673   :  { %6520 = vsyncpa [#allocation3], 1 }
 0x674   :  { %6521 = vsyncpa [#allocation6], 1 }
 0x675   :  { %6522 = vsyncpa [#allocation4], 1 }
 0x676   :  { %6523 = vsyncpa [#allocation9], 1 }

</bundles_post_ra>
